<compile_context>
chip_gen: v6e
topology: v6e:2x2x1
jax: 0.10.0
libtpu: 0.0.40
codegen_flags: <defaults>
</compile_context>

<pallas_src>
import functools

import jax
import jax.numpy as jnp
from jax import lax
from jax.experimental import pallas as pl
from jax.experimental.pallas import tpu as pltpu

LN_EPS = 1e-5


# --------------------------------------------------------------------------
# Fused Pallas kernel: full U2GNN forward
# --------------------------------------------------------------------------
def _u2gnn_fused_kernel(idx_ref, concat_ref, pool_ref,
                        wq_ref, bq_ref, wk_ref, bk_ref, wv_ref, bv_ref,
                        wo_ref, bo_ref,
                        w1_ref, b1_ref, w2_ref, b2_ref,
                        g1_ref, be1_ref, g2_ref, be2_ref,
                        wpred_ref, bpred_ref,
                        out_ref, bias_ref, *, num_gnn, num_att, seq_len):
    nodes = concat_ref[...]                       # [N, D] current per-node features
    n, d = nodes.shape
    s = seq_len
    ns = n * s
    pool = pool_ref[...]                          # [G, N]
    num_graphs = pool.shape[0]
    num_classes = out_ref.shape[1]

    # one-hot embedding matrix (small: [NS, N]); emb[r, j] = 1 iff j == idx_flat[r]
    idx_col = idx_ref[...]                        # [NS, 1] int32 (seq-major flatten)
    emb = (lax.broadcasted_iota(jnp.int32, (ns, n), 1) == idx_col).astype(jnp.float32)

    # Additive attention-mask bias, materialized ONCE into VMEM scratch and
    # re-loaded per attention layer so the [NS,NS] constant is not held live
    # in vregs across the unrolled body.  Seq-major rows: same node <=> r%N == c%N.
    ri = lax.broadcasted_iota(jnp.int32, (ns, ns), 0)
    ci = lax.broadcasted_iota(jnp.int32, (ns, ns), 1)
    bias_ref[...] = jnp.where((ri % n) == (ci % n),
                              jnp.float32(0.0), jnp.float32(-1e30))

    acc = jnp.zeros((num_graphs, num_classes), jnp.float32)

    li = 0
    for gnn in range(num_gnn):
        # F.embedding(idx, nodes) as an MXU one-hot matmul: [NS, N] @ [N, D]
        x = jnp.dot(emb, nodes, preferred_element_type=jnp.float32)    # [NS, D]

        for _ in range(num_att):
            # ----- self attention (single head) -----
            # wq/bq already carry the 1/sqrt(D) scale (folded in the wrapper).
            q = jnp.dot(x, wq_ref[li], preferred_element_type=jnp.float32) + bq_ref[li]
            k = jnp.dot(x, wk_ref[li], preferred_element_type=jnp.float32) + bk_ref[li]
            v = jnp.dot(x, wv_ref[li], preferred_element_type=jnp.float32) + bv_ref[li]

            scores = lax.dot_general(
                q, k, dimension_numbers=(((1,), (1,)), ((), ())),
                preferred_element_type=jnp.float32)                    # [NS, NS]
            scores = scores + bias_ref[...]                            # mask bias
            m = scores.max(axis=-1, keepdims=True)
            p = jnp.exp(scores - m)                                    # unnormalized
            denom = p.sum(axis=-1, keepdims=True)                      # [NS, 1]
            ctx = jnp.dot(p, v, preferred_element_type=jnp.float32)    # [NS, D]
            # deferred softmax normalization: scale the [NS,D] result, not [NS,NS]
            ctx = ctx * pl.reciprocal(denom, approx=False)
            attn = jnp.dot(ctx, wo_ref[li],
                           preferred_element_type=jnp.float32) + bo_ref[li]

            # residual + LayerNorm 1   (dropout1 is identity in eval mode)
            h = x + attn
            mu = jnp.mean(h, axis=-1, keepdims=True)
            var = jnp.mean((h - mu) ** 2, axis=-1, keepdims=True)
            h = (h - mu) * lax.rsqrt(var + LN_EPS) * g1_ref[li] + be1_ref[li]

            # ----- feed-forward (relu) -----
            f = jnp.dot(h, w1_ref[li], preferred_element_type=jnp.float32) + b1_ref[li]
            f = jnp.maximum(f, 0.0)
            f = jnp.dot(f, w2_ref[li], preferred_element_type=jnp.float32) + b2_ref[li]

            # residual + LayerNorm 2   (dropout2 is identity in eval mode)
            h2 = h + f
            mu2 = jnp.mean(h2, axis=-1, keepdims=True)
            var2 = jnp.mean((h2 - mu2) ** 2, axis=-1, keepdims=True)
            x = (h2 - mu2) * lax.rsqrt(var2 + LN_EPS) * g2_ref[li] + be2_ref[li]
            li += 1

        # output_temp = encoder(x)[0]: with seq-major row order, token 0 of every
        # node occupies the first N rows -> contiguous, tile-aligned slice.
        nodes = x[:n, :]                                               # [N, D]

        # prediction-head contribution of this GNN layer:
        #   (graph_pool @ output_temp) @ W_pred[rows of this layer]
        g = jnp.dot(pool, nodes, preferred_element_type=jnp.float32)   # [G, D]
        acc = acc + jnp.dot(g, wpred_ref[gnn],
                            preferred_element_type=jnp.float32)        # [G, C]

    # TODO(synk): self.dropouts on graph_temp is stochastic; eval-mode identity used.
    out_ref[...] = acc + bpred_ref[...]


# --------------------------------------------------------------------------
# Wrapper: one pallas_call for the whole forward
# --------------------------------------------------------------------------
def u2gnn_forward(idx, concat, graph_pool, params, *, num_att):
    s, n = idx.shape
    d = concat.shape[1]
    g = graph_pool.shape[0]
    c = params['w_pred'].shape[1]
    num_gnn = params['w_pred'].shape[0] // d
    ns = n * s
    scale = 1.0 / (float(d) ** 0.5)               # nhead=1 -> head_dim = D

    # Seq-major flattening: row t*N + nd == token t of node nd (row-major reshape
    # of the [S, N] index tensor). Token 0 of every node is then rows [0, N).
    idx_col = idx.reshape(ns, 1).astype(jnp.int32)

    # Fold the attention 1/sqrt(D) scale into the Q projection (free at runtime).
    wq = params['wq'] * scale
    bq = params['bq'] * scale
    # Pre-slice the prediction weight per GNN layer: rows gnn*D:(gnn+1)*D.
    w_pred = params['w_pred'].reshape(num_gnn, d, c)

    operands = (idx_col, concat, graph_pool,
                wq, bq, params['wk'], params['bk'], params['wv'], params['bv'],
                params['wo'], params['bo'],
                params['w1'], params['b1'], params['w2'], params['b2'],
                params['g1'], params['be1'], params['g2'], params['be2'],
                w_pred, params['b_pred'])

    def full_spec(x):
        nd = x.ndim
        return pl.BlockSpec(x.shape, lambda i, _nd=nd: (0,) * _nd)

    kernel = functools.partial(_u2gnn_fused_kernel,
                               num_gnn=num_gnn, num_att=num_att, seq_len=s)

    # NOTE: with grid=(1,) each operand is read exactly once; at larger model
    # sizes switch the layer loop onto a grid axis (streamed, double-buffered
    # weights) instead of the monolithic full-array specs used here.
    return pl.pallas_call(
        kernel,
        out_shape=jax.ShapeDtypeStruct((g, c), jnp.float32),
        grid=(1,),
        in_specs=[full_spec(x) for x in operands],
        out_specs=pl.BlockSpec((g, c), lambda i: (0, 0)),
        scratch_shapes=[pltpu.VMEM((ns, ns), jnp.float32)],   # additive attn-mask bias
        compiler_params=pltpu.CompilerParams(
            dimension_semantics=("arbitrary",)),
    )(*operands)


# --------------------------------------------------------------------------
# Parameter init (deterministic, synthetic — no checkpoint loading)
# NOTE: if real PyTorch checkpoints are ever loaded, in_proj_weight must be
#       sliced into Q/K/V and transposed into the stacked [L, D, D] layout.
# --------------------------------------------------------------------------
def init_params(key, d, h, c, num_gnn, num_att):
    L = num_gnn * num_att

    def lin(k, shape):
        return jax.random.normal(k, shape, jnp.float32) * 0.05

    ks = jax.random.split(key, 8)
    return {
        'wq': lin(ks[0], (L, d, d)), 'bq': jnp.zeros((L, 1, d), jnp.float32),
        'wk': lin(ks[1], (L, d, d)), 'bk': jnp.zeros((L, 1, d), jnp.float32),
        'wv': lin(ks[2], (L, d, d)), 'bv': jnp.zeros((L, 1, d), jnp.float32),
        'wo': lin(ks[3], (L, d, d)), 'bo': jnp.zeros((L, 1, d), jnp.float32),
        'w1': lin(ks[4], (L, d, h)), 'b1': jnp.zeros((L, 1, h), jnp.float32),
        'w2': lin(ks[5], (L, h, d)), 'b2': jnp.zeros((L, 1, d), jnp.float32),
        'g1': jnp.ones((L, 1, d), jnp.float32), 'be1': jnp.zeros((L, 1, d), jnp.float32),
        'g2': jnp.ones((L, 1, d), jnp.float32), 'be2': jnp.zeros((L, 1, d), jnp.float32),
        'w_pred': lin(ks[6], (d * num_gnn, c)),   # stored [in, out] (PyTorch W.T)
        'b_pred': jnp.zeros((1, c), jnp.float32),
    }


if __name__ == "__main__":
    # Lane-dense model dims (D = H = 128) per the perf review; kernel handles
    # arbitrary D/H, but 128 keeps every matmul / vreg fully utilized.
    D, H, C = 128, 128, 4          # feature_size, hidden_size, num_classes
    NUM_GNN, NUM_ATT = 2, 2        # num_GNN_layers, num_ATT_layers
    S, N, G = 8, 16, 2             # seq (sampled neighbors), nodes, graphs -> NS=128

    key = jax.random.PRNGKey(0)
    k_idx, k_feat, k_param = jax.random.split(key, 3)

    idx = jax.random.randint(k_idx, (S, N), 0, N, dtype=jnp.int32)       # `input`
    concat = jax.random.normal(k_feat, (N, D), jnp.float32)              # `concat`

    # dense stand-in for the sparse graph_pool (torch.spmm): mean-pool per graph
    assign = jnp.arange(N) % G
    graph_pool = (jnp.arange(G)[:, None] == assign[None, :]).astype(jnp.float32)
    graph_pool = graph_pool / graph_pool.sum(axis=1, keepdims=True)

    params = init_params(k_param, D, H, C, NUM_GNN, NUM_ATT)

    out = u2gnn_forward(idx, concat, graph_pool, params, num_att=NUM_ATT)
    out = jax.block_until_ready(out)
    assert out.shape == (G, C) and out.dtype == jnp.float32
    assert bool(jnp.all(jnp.isfinite(out)))
    print("KERNEL_OK")
</pallas_src>

<mosaic_0001>
module attributes {stable_mosaic.version = 11 : i64} {
  func.func @_u2gnn_fused_kernel(%arg0: i32, %arg1: memref<128x1xi32, #tpu.memory_space<vmem>>, %arg2: memref<16x128xf32, #tpu.memory_space<vmem>>, %arg3: memref<2x16xf32, #tpu.memory_space<vmem>>, %arg4: memref<4x128x128xf32, #tpu.memory_space<vmem>>, %arg5: memref<4x1x128xf32, #tpu.memory_space<vmem>>, %arg6: memref<4x128x128xf32, #tpu.memory_space<vmem>>, %arg7: memref<4x1x128xf32, #tpu.memory_space<vmem>>, %arg8: memref<4x128x128xf32, #tpu.memory_space<vmem>>, %arg9: memref<4x1x128xf32, #tpu.memory_space<vmem>>, %arg10: memref<4x128x128xf32, #tpu.memory_space<vmem>>, %arg11: memref<4x1x128xf32, #tpu.memory_space<vmem>>, %arg12: memref<4x128x128xf32, #tpu.memory_space<vmem>>, %arg13: memref<4x1x128xf32, #tpu.memory_space<vmem>>, %arg14: memref<4x128x128xf32, #tpu.memory_space<vmem>>, %arg15: memref<4x1x128xf32, #tpu.memory_space<vmem>>, %arg16: memref<4x1x128xf32, #tpu.memory_space<vmem>>, %arg17: memref<4x1x128xf32, #tpu.memory_space<vmem>>, %arg18: memref<4x1x128xf32, #tpu.memory_space<vmem>>, %arg19: memref<4x1x128xf32, #tpu.memory_space<vmem>>, %arg20: memref<2x128x4xf32, #tpu.memory_space<vmem>>, %arg21: memref<1x4xf32, #tpu.memory_space<vmem>>, %arg22: memref<2x4xf32, #tpu.memory_space<vmem>>, %arg23: memref<128x128xf32, #tpu.memory_space<vmem>>) attributes {dimension_semantics = [#tpu.dimension_semantics<arbitrary>], iteration_bounds = array<i64: 1>, scalar_prefetch = 0 : i64, scratch_operands = 1 : i64, tpu.core_type = #tpu.core_type<tc>, window_params = [{pipeline_mode = #tpu.pipeline_mode<synchronous>, transform_indices = @transform_0, window_bounds = array<i64: 128, 1>}, {pipeline_mode = #tpu.pipeline_mode<synchronous>, transform_indices = @transform_1, window_bounds = array<i64: 16, 128>}, {pipeline_mode = #tpu.pipeline_mode<synchronous>, transform_indices = @transform_2, window_bounds = array<i64: 2, 16>}, {pipeline_mode = #tpu.pipeline_mode<synchronous>, transform_indices = @transform_3, window_bounds = array<i64: 4, 128, 128>}, {pipeline_mode = #tpu.pipeline_mode<synchronous>, transform_indices = @transform_4, window_bounds = array<i64: 4, 1, 128>}, {pipeline_mode = #tpu.pipeline_mode<synchronous>, transform_indices = @transform_5, window_bounds = array<i64: 4, 128, 128>}, {pipeline_mode = #tpu.pipeline_mode<synchronous>, transform_indices = @transform_6, window_bounds = array<i64: 4, 1, 128>}, {pipeline_mode = #tpu.pipeline_mode<synchronous>, transform_indices = @transform_7, window_bounds = array<i64: 4, 128, 128>}, {pipeline_mode = #tpu.pipeline_mode<synchronous>, transform_indices = @transform_8, window_bounds = array<i64: 4, 1, 128>}, {pipeline_mode = #tpu.pipeline_mode<synchronous>, transform_indices = @transform_9, window_bounds = array<i64: 4, 128, 128>}, {pipeline_mode = #tpu.pipeline_mode<synchronous>, transform_indices = @transform_10, window_bounds = array<i64: 4, 1, 128>}, {pipeline_mode = #tpu.pipeline_mode<synchronous>, transform_indices = @transform_11, window_bounds = array<i64: 4, 128, 128>}, {pipeline_mode = #tpu.pipeline_mode<synchronous>, transform_indices = @transform_12, window_bounds = array<i64: 4, 1, 128>}, {pipeline_mode = #tpu.pipeline_mode<synchronous>, transform_indices = @transform_13, window_bounds = array<i64: 4, 128, 128>}, {pipeline_mode = #tpu.pipeline_mode<synchronous>, transform_indices = @transform_14, window_bounds = array<i64: 4, 1, 128>}, {pipeline_mode = #tpu.pipeline_mode<synchronous>, transform_indices = @transform_15, window_bounds = array<i64: 4, 1, 128>}, {pipeline_mode = #tpu.pipeline_mode<synchronous>, transform_indices = @transform_16, window_bounds = array<i64: 4, 1, 128>}, {pipeline_mode = #tpu.pipeline_mode<synchronous>, transform_indices = @transform_17, window_bounds = array<i64: 4, 1, 128>}, {pipeline_mode = #tpu.pipeline_mode<synchronous>, transform_indices = @transform_18, window_bounds = array<i64: 4, 1, 128>}, {pipeline_mode = #tpu.pipeline_mode<synchronous>, transform_indices = @transform_19, window_bounds = array<i64: 2, 128, 4>}, {pipeline_mode = #tpu.pipeline_mode<synchronous>, transform_indices = @transform_20, window_bounds = array<i64: 1, 4>}, {pipeline_mode = #tpu.pipeline_mode<synchronous>, transform_indices = @transform_21, window_bounds = array<i64: 2, 4>}]} {
    %c0 = arith.constant 0 : index
    %c0_0 = arith.constant 0 : index
    %0 = vector.load %arg2[%c0, %c0_0] : memref<16x128xf32, #tpu.memory_space<vmem>>, vector<16x128xf32>
    %c0_1 = arith.constant 0 : index
    %c0_2 = arith.constant 0 : index
    %1 = vector.load %arg3[%c0_1, %c0_2] : memref<2x16xf32, #tpu.memory_space<vmem>>, vector<2x16xf32>
    %c0_3 = arith.constant 0 : index
    %c0_4 = arith.constant 0 : index
    %2 = vector.load %arg1[%c0_3, %c0_4] : memref<128x1xi32, #tpu.memory_space<vmem>>, vector<128x1xi32>
    %3 = tpu.iota {dimensions = array<i32: 1>} : vector<128x16xi32>
    %4 = vector.broadcast %2 : vector<128x1xi32> to vector<128x16xi32>
    %5 = arith.cmpi eq, %3, %4 : vector<128x16xi32>
    %6 = arith.extui %5 : vector<128x16xi1> to vector<128x16xi32>
    %7 = arith.sitofp %6 : vector<128x16xi32> to vector<128x16xf32>
    %8 = tpu.iota {dimensions = array<i32: 0>} : vector<128x128xi32>
    %9 = tpu.iota {dimensions = array<i32: 1>} : vector<128x128xi32>
    %c16_i32 = arith.constant 16 : i32
    %c0_i32 = arith.constant 0 : i32
    %10 = arith.cmpi eq, %c16_i32, %c0_i32 : i32
    %c1_i32 = arith.constant 1 : i32
    %11 = arith.select %10, %c1_i32, %c16_i32 : i32
    %12 = vector.broadcast %11 : i32 to vector<128x128xi32>
    %13 = arith.remsi %8, %12 : vector<128x128xi32>
    %c0_i32_5 = arith.constant 0 : i32
    %14 = vector.broadcast %c0_i32_5 : i32 to vector<128x128xi32>
    %15 = arith.cmpi ne, %13, %14 : vector<128x128xi32>
    %c0_i32_6 = arith.constant 0 : i32
    %16 = vector.broadcast %c0_i32_6 : i32 to vector<128x128xi32>
    %17 = arith.cmpi slt, %13, %16 : vector<128x128xi32>
    %c0_i32_7 = arith.constant 0 : i32
    %18 = arith.cmpi slt, %11, %c0_i32_7 : i32
    %19 = vector.broadcast %18 : i1 to vector<128x128xi1>
    %20 = vector.broadcast %19 : vector<128x128xi1> to vector<128x128xi1>
    %21 = arith.xori %17, %20 : vector<128x128xi1>
    %22 = arith.andi %21, %15 : vector<128x128xi1>
    %23 = vector.broadcast %11 : i32 to vector<128x128xi32>
    %24 = arith.addi %13, %23 : vector<128x128xi32>
    %25 = arith.select %22, %24, %13 : vector<128x128xi1>, vector<128x128xi32>
    %c16_i32_8 = arith.constant 16 : i32
    %c0_i32_9 = arith.constant 0 : i32
    %26 = arith.cmpi eq, %c16_i32_8, %c0_i32_9 : i32
    %c1_i32_10 = arith.constant 1 : i32
    %27 = arith.select %26, %c1_i32_10, %c16_i32_8 : i32
    %28 = vector.broadcast %27 : i32 to vector<128x128xi32>
    %29 = arith.remsi %9, %28 : vector<128x128xi32>
    %c0_i32_11 = arith.constant 0 : i32
    %30 = vector.broadcast %c0_i32_11 : i32 to vector<128x128xi32>
    %31 = arith.cmpi ne, %29, %30 : vector<128x128xi32>
    %c0_i32_12 = arith.constant 0 : i32
    %32 = vector.broadcast %c0_i32_12 : i32 to vector<128x128xi32>
    %33 = arith.cmpi slt, %29, %32 : vector<128x128xi32>
    %c0_i32_13 = arith.constant 0 : i32
    %34 = arith.cmpi slt, %27, %c0_i32_13 : i32
    %35 = vector.broadcast %34 : i1 to vector<128x128xi1>
    %36 = vector.broadcast %35 : vector<128x128xi1> to vector<128x128xi1>
    %37 = arith.xori %33, %36 : vector<128x128xi1>
    %38 = arith.andi %37, %31 : vector<128x128xi1>
    %39 = vector.broadcast %27 : i32 to vector<128x128xi32>
    %40 = arith.addi %29, %39 : vector<128x128xi32>
    %41 = arith.select %38, %40, %29 : vector<128x128xi1>, vector<128x128xi32>
    %42 = arith.cmpi eq, %25, %41 : vector<128x128xi32>
    %cst = arith.constant 0.000000e+00 : f32
    %cst_14 = arith.constant -1.000000e+30 : f32
    %43 = vector.broadcast %cst : f32 to vector<128x128xf32>
    %44 = vector.broadcast %cst_14 : f32 to vector<128x128xf32>
    %45 = arith.select %42, %43, %44 : vector<128x128xi1>, vector<128x128xf32>
    %c0_15 = arith.constant 0 : index
    %c0_16 = arith.constant 0 : index
    %46 = vector.load %arg23[%c0_15, %c0_16] : memref<128x128xf32, #tpu.memory_space<vmem>>, vector<128x128xf32>
    tpu.vector_store %arg23[%c0_15, %c0_16], %45 {strides = array<i32>} : memref<128x128xf32, #tpu.memory_space<vmem>>, vector<128x128xf32>,
    %cst_17 = arith.constant 0.000000e+00 : f32
    %47 = vector.broadcast %cst_17 : f32 to vector<2x4xf32>
    %cst_18 = arith.constant dense<0.000000e+00> : vector<128x128xf32>
    %48 = tpu.matmul %7, %0, %cst_18 {dimension_numbers = #tpu.dot_dimension_numbers<[1], [0], [0], [1], [0, 0, 1, 1], [], []>} : vector<128x16xf32>, vector<16x128xf32>, vector<128x128xf32> -> vector<128x128xf32>
    %c0_19 = arith.constant 0 : index
    %c0_20 = arith.constant 0 : index
    %c0_21 = arith.constant 0 : index
    %49 = vector.load %arg4[%c0_19, %c0_20, %c0_21] : memref<4x128x128xf32, #tpu.memory_space<vmem>>, vector<1x128x128xf32>
    %50 = vector.shape_cast %49 : vector<1x128x128xf32> to vector<128x128xf32>
    %cst_22 = arith.constant dense<0.000000e+00> : vector<128x128xf32>
    %51 = tpu.matmul %48, %50, %cst_22 {dimension_numbers = #tpu.dot_dimension_numbers<[1], [0], [0], [1], [0, 0, 1, 1], [], []>} : vector<128x128xf32>, vector<128x128xf32>, vector<128x128xf32> -> vector<128x128xf32>
    %c0_23 = arith.constant 0 : index
    %c0_24 = arith.constant 0 : index
    %c0_25 = arith.constant 0 : index
    %52 = vector.load %arg5[%c0_23, %c0_24, %c0_25] : memref<4x1x128xf32, #tpu.memory_space<vmem>>, vector<1x1x128xf32>
    %53 = vector.shape_cast %52 : vector<1x1x128xf32> to vector<1x128xf32>
    %54 = vector.broadcast %53 : vector<1x128xf32> to vector<128x128xf32>
    %55 = arith.addf %51, %54 : vector<128x128xf32>
    %c0_26 = arith.constant 0 : index
    %c0_27 = arith.constant 0 : index
    %c0_28 = arith.constant 0 : index
    %56 = vector.load %arg6[%c0_26, %c0_27, %c0_28] : memref<4x128x128xf32, #tpu.memory_space<vmem>>, vector<1x128x128xf32>
    %57 = vector.shape_cast %56 : vector<1x128x128xf32> to vector<128x128xf32>
    %cst_29 = arith.constant dense<0.000000e+00> : vector<128x128xf32>
    %58 = tpu.matmul %48, %57, %cst_29 {dimension_numbers = #tpu.dot_dimension_numbers<[1], [0], [0], [1], [0, 0, 1, 1], [], []>} : vector<128x128xf32>, vector<128x128xf32>, vector<128x128xf32> -> vector<128x128xf32>
    %c0_30 = arith.constant 0 : index
    %c0_31 = arith.constant 0 : index
    %c0_32 = arith.constant 0 : index
    %59 = vector.load %arg7[%c0_30, %c0_31, %c0_32] : memref<4x1x128xf32, #tpu.memory_space<vmem>>, vector<1x1x128xf32>
    %60 = vector.shape_cast %59 : vector<1x1x128xf32> to vector<1x128xf32>
    %61 = vector.broadcast %60 : vector<1x128xf32> to vector<128x128xf32>
    %62 = arith.addf %58, %61 : vector<128x128xf32>
    %c0_33 = arith.constant 0 : index
    %c0_34 = arith.constant 0 : index
    %c0_35 = arith.constant 0 : index
    %63 = vector.load %arg8[%c0_33, %c0_34, %c0_35] : memref<4x128x128xf32, #tpu.memory_space<vmem>>, vector<1x128x128xf32>
    %64 = vector.shape_cast %63 : vector<1x128x128xf32> to vector<128x128xf32>
    %cst_36 = arith.constant dense<0.000000e+00> : vector<128x128xf32>
    %65 = tpu.matmul %48, %64, %cst_36 {dimension_numbers = #tpu.dot_dimension_numbers<[1], [0], [0], [1], [0, 0, 1, 1], [], []>} : vector<128x128xf32>, vector<128x128xf32>, vector<128x128xf32> -> vector<128x128xf32>
    %c0_37 = arith.constant 0 : index
    %c0_38 = arith.constant 0 : index
    %c0_39 = arith.constant 0 : index
    %66 = vector.load %arg9[%c0_37, %c0_38, %c0_39] : memref<4x1x128xf32, #tpu.memory_space<vmem>>, vector<1x1x128xf32>
    %67 = vector.shape_cast %66 : vector<1x1x128xf32> to vector<1x128xf32>
    %68 = vector.broadcast %67 : vector<1x128xf32> to vector<128x128xf32>
    %69 = arith.addf %65, %68 : vector<128x128xf32>
    %cst_40 = arith.constant dense<0.000000e+00> : vector<128x128xf32>
    %70 = tpu.matmul %55, %62, %cst_40 {dimension_numbers = #tpu.dot_dimension_numbers<[1], [1], [0], [0], [0, 0, 1, 0], [], []>} : vector<128x128xf32>, vector<128x128xf32>, vector<128x128xf32> -> vector<128x128xf32>
    %c0_41 = arith.constant 0 : index
    %c0_42 = arith.constant 0 : index
    %71 = vector.load %arg23[%c0_41, %c0_42] : memref<128x128xf32, #tpu.memory_space<vmem>>, vector<128x128xf32>
    %72 = arith.addf %70, %71 : vector<128x128xf32>
    %cst_43 = arith.constant dense<0xFF800000> : vector<128xf32>
    %73 = vector.multi_reduction <maximumf>, %72, %cst_43 [1] : vector<128x128xf32> to vector<128xf32>
    %74 = vector.shape_cast %73 : vector<128xf32> to vector<128x1xf32>
    %75 = vector.broadcast %74 : vector<128x1xf32> to vector<128x128xf32>
    %76 = arith.subf %72, %75 : vector<128x128xf32>
    %77 = math.exp %76 : vector<128x128xf32>
    %cst_44 = arith.constant dense<0.000000e+00> : vector<128xf32>
    %78 = vector.multi_reduction <add>, %77, %cst_44 [1] : vector<128x128xf32> to vector<128xf32>
    %79 = vector.shape_cast %78 : vector<128xf32> to vector<128x1xf32>
    %cst_45 = arith.constant dense<0.000000e+00> : vector<128x128xf32>
    %80 = tpu.matmul %77, %69, %cst_45 {dimension_numbers = #tpu.dot_dimension_numbers<[1], [0], [0], [1], [0, 0, 1, 1], [], []>} : vector<128x128xf32>, vector<128x128xf32>, vector<128x128xf32> -> vector<128x128xf32>
    %81 = tpu.reciprocal %79 : vector<128x1xf32> -> vector<128x1xf32>
    %82 = vector.broadcast %81 : vector<128x1xf32> to vector<128x128xf32>
    %83 = arith.mulf %80, %82 : vector<128x128xf32>
    %c0_46 = arith.constant 0 : index
    %c0_47 = arith.constant 0 : index
    %c0_48 = arith.constant 0 : index
    %84 = vector.load %arg10[%c0_46, %c0_47, %c0_48] : memref<4x128x128xf32, #tpu.memory_space<vmem>>, vector<1x128x128xf32>
    %85 = vector.shape_cast %84 : vector<1x128x128xf32> to vector<128x128xf32>
    %cst_49 = arith.constant dense<0.000000e+00> : vector<128x128xf32>
    %86 = tpu.matmul %83, %85, %cst_49 {dimension_numbers = #tpu.dot_dimension_numbers<[1], [0], [0], [1], [0, 0, 1, 1], [], []>} : vector<128x128xf32>, vector<128x128xf32>, vector<128x128xf32> -> vector<128x128xf32>
    %c0_50 = arith.constant 0 : index
    %c0_51 = arith.constant 0 : index
    %c0_52 = arith.constant 0 : index
    %87 = vector.load %arg11[%c0_50, %c0_51, %c0_52] : memref<4x1x128xf32, #tpu.memory_space<vmem>>, vector<1x1x128xf32>
    %88 = vector.shape_cast %87 : vector<1x1x128xf32> to vector<1x128xf32>
    %89 = vector.broadcast %88 : vector<1x128xf32> to vector<128x128xf32>
    %90 = arith.addf %86, %89 : vector<128x128xf32>
    %91 = arith.addf %48, %90 : vector<128x128xf32>
    %cst_53 = arith.constant dense<0.000000e+00> : vector<128xf32>
    %92 = vector.multi_reduction <add>, %91, %cst_53 [1] : vector<128x128xf32> to vector<128xf32>
    %93 = vector.shape_cast %92 : vector<128xf32> to vector<128x1xf32>
    %cst_54 = arith.constant 1.280000e+02 : f32
    %94 = vector.broadcast %cst_54 : f32 to vector<128x1xf32>
    %95 = arith.divf %93, %94 : vector<128x1xf32>
    %96 = vector.broadcast %95 : vector<128x1xf32> to vector<128x128xf32>
    %97 = arith.subf %91, %96 : vector<128x128xf32>
    %98 = arith.mulf %97, %97 : vector<128x128xf32>
    %cst_55 = arith.constant dense<0.000000e+00> : vector<128xf32>
    %99 = vector.multi_reduction <add>, %98, %cst_55 [1] : vector<128x128xf32> to vector<128xf32>
    %100 = vector.shape_cast %99 : vector<128xf32> to vector<128x1xf32>
    %cst_56 = arith.constant 1.280000e+02 : f32
    %101 = vector.broadcast %cst_56 : f32 to vector<128x1xf32>
    %102 = arith.divf %100, %101 : vector<128x1xf32>
    %103 = vector.broadcast %95 : vector<128x1xf32> to vector<128x128xf32>
    %104 = arith.subf %91, %103 : vector<128x128xf32>
    %cst_57 = arith.constant 9.99999974E-6 : f32
    %105 = vector.broadcast %cst_57 : f32 to vector<128x1xf32>
    %106 = arith.addf %102, %105 : vector<128x1xf32>
    %107 = math.rsqrt %106 : vector<128x1xf32>
    %108 = vector.broadcast %107 : vector<128x1xf32> to vector<128x128xf32>
    %109 = arith.mulf %104, %108 : vector<128x128xf32>
    %c0_58 = arith.constant 0 : index
    %c0_59 = arith.constant 0 : index
    %c0_60 = arith.constant 0 : index
    %110 = vector.load %arg16[%c0_58, %c0_59, %c0_60] : memref<4x1x128xf32, #tpu.memory_space<vmem>>, vector<1x1x128xf32>
    %111 = vector.shape_cast %110 : vector<1x1x128xf32> to vector<1x128xf32>
    %112 = vector.broadcast %111 : vector<1x128xf32> to vector<128x128xf32>
    %113 = arith.mulf %109, %112 : vector<128x128xf32>
    %c0_61 = arith.constant 0 : index
    %c0_62 = arith.constant 0 : index
    %c0_63 = arith.constant 0 : index
    %114 = vector.load %arg17[%c0_61, %c0_62, %c0_63] : memref<4x1x128xf32, #tpu.memory_space<vmem>>, vector<1x1x128xf32>
    %115 = vector.shape_cast %114 : vector<1x1x128xf32> to vector<1x128xf32>
    %116 = vector.broadcast %115 : vector<1x128xf32> to vector<128x128xf32>
    %117 = arith.addf %113, %116 : vector<128x128xf32>
    %c0_64 = arith.constant 0 : index
    %c0_65 = arith.constant 0 : index
    %c0_66 = arith.constant 0 : index
    %118 = vector.load %arg12[%c0_64, %c0_65, %c0_66] : memref<4x128x128xf32, #tpu.memory_space<vmem>>, vector<1x128x128xf32>
    %119 = vector.shape_cast %118 : vector<1x128x128xf32> to vector<128x128xf32>
    %cst_67 = arith.constant dense<0.000000e+00> : vector<128x128xf32>
    %120 = tpu.matmul %117, %119, %cst_67 {dimension_numbers = #tpu.dot_dimension_numbers<[1], [0], [0], [1], [0, 0, 1, 1], [], []>} : vector<128x128xf32>, vector<128x128xf32>, vector<128x128xf32> -> vector<128x128xf32>
    %c0_68 = arith.constant 0 : index
    %c0_69 = arith.constant 0 : index
    %c0_70 = arith.constant 0 : index
    %121 = vector.load %arg13[%c0_68, %c0_69, %c0_70] : memref<4x1x128xf32, #tpu.memory_space<vmem>>, vector<1x1x128xf32>
    %122 = vector.shape_cast %121 : vector<1x1x128xf32> to vector<1x128xf32>
    %123 = vector.broadcast %122 : vector<1x128xf32> to vector<128x128xf32>
    %124 = arith.addf %120, %123 : vector<128x128xf32>
    %cst_71 = arith.constant 0.000000e+00 : f32
    %125 = vector.broadcast %cst_71 : f32 to vector<128x128xf32>
    %126 = arith.maximumf %124, %125 : vector<128x128xf32>
    %c0_72 = arith.constant 0 : index
    %c0_73 = arith.constant 0 : index
    %c0_74 = arith.constant 0 : index
    %127 = vector.load %arg14[%c0_72, %c0_73, %c0_74] : memref<4x128x128xf32, #tpu.memory_space<vmem>>, vector<1x128x128xf32>
    %128 = vector.shape_cast %127 : vector<1x128x128xf32> to vector<128x128xf32>
    %cst_75 = arith.constant dense<0.000000e+00> : vector<128x128xf32>
    %129 = tpu.matmul %126, %128, %cst_75 {dimension_numbers = #tpu.dot_dimension_numbers<[1], [0], [0], [1], [0, 0, 1, 1], [], []>} : vector<128x128xf32>, vector<128x128xf32>, vector<128x128xf32> -> vector<128x128xf32>
    %c0_76 = arith.constant 0 : index
    %c0_77 = arith.constant 0 : index
    %c0_78 = arith.constant 0 : index
    %130 = vector.load %arg15[%c0_76, %c0_77, %c0_78] : memref<4x1x128xf32, #tpu.memory_space<vmem>>, vector<1x1x128xf32>
    %131 = vector.shape_cast %130 : vector<1x1x128xf32> to vector<1x128xf32>
    %132 = vector.broadcast %131 : vector<1x128xf32> to vector<128x128xf32>
    %133 = arith.addf %129, %132 : vector<128x128xf32>
    %134 = arith.addf %117, %133 : vector<128x128xf32>
    %cst_79 = arith.constant dense<0.000000e+00> : vector<128xf32>
    %135 = vector.multi_reduction <add>, %134, %cst_79 [1] : vector<128x128xf32> to vector<128xf32>
    %136 = vector.shape_cast %135 : vector<128xf32> to vector<128x1xf32>
    %cst_80 = arith.constant 1.280000e+02 : f32
    %137 = vector.broadcast %cst_80 : f32 to vector<128x1xf32>
    %138 = arith.divf %136, %137 : vector<128x1xf32>
    %139 = vector.broadcast %138 : vector<128x1xf32> to vector<128x128xf32>
    %140 = arith.subf %134, %139 : vector<128x128xf32>
    %141 = arith.mulf %140, %140 : vector<128x128xf32>
    %cst_81 = arith.constant dense<0.000000e+00> : vector<128xf32>
    %142 = vector.multi_reduction <add>, %141, %cst_81 [1] : vector<128x128xf32> to vector<128xf32>
    %143 = vector.shape_cast %142 : vector<128xf32> to vector<128x1xf32>
    %cst_82 = arith.constant 1.280000e+02 : f32
    %144 = vector.broadcast %cst_82 : f32 to vector<128x1xf32>
    %145 = arith.divf %143, %144 : vector<128x1xf32>
    %146 = vector.broadcast %138 : vector<128x1xf32> to vector<128x128xf32>
    %147 = arith.subf %134, %146 : vector<128x128xf32>
    %cst_83 = arith.constant 9.99999974E-6 : f32
    %148 = vector.broadcast %cst_83 : f32 to vector<128x1xf32>
    %149 = arith.addf %145, %148 : vector<128x1xf32>
    %150 = math.rsqrt %149 : vector<128x1xf32>
    %151 = vector.broadcast %150 : vector<128x1xf32> to vector<128x128xf32>
    %152 = arith.mulf %147, %151 : vector<128x128xf32>
    %c0_84 = arith.constant 0 : index
    %c0_85 = arith.constant 0 : index
    %c0_86 = arith.constant 0 : index
    %153 = vector.load %arg18[%c0_84, %c0_85, %c0_86] : memref<4x1x128xf32, #tpu.memory_space<vmem>>, vector<1x1x128xf32>
    %154 = vector.shape_cast %153 : vector<1x1x128xf32> to vector<1x128xf32>
    %155 = vector.broadcast %154 : vector<1x128xf32> to vector<128x128xf32>
    %156 = arith.mulf %152, %155 : vector<128x128xf32>
    %c0_87 = arith.constant 0 : index
    %c0_88 = arith.constant 0 : index
    %c0_89 = arith.constant 0 : index
    %157 = vector.load %arg19[%c0_87, %c0_88, %c0_89] : memref<4x1x128xf32, #tpu.memory_space<vmem>>, vector<1x1x128xf32>
    %158 = vector.shape_cast %157 : vector<1x1x128xf32> to vector<1x128xf32>
    %159 = vector.broadcast %158 : vector<1x128xf32> to vector<128x128xf32>
    %160 = arith.addf %156, %159 : vector<128x128xf32>
    %c1 = arith.constant 1 : index
    %c0_90 = arith.constant 0 : index
    %c0_91 = arith.constant 0 : index
    %161 = vector.load %arg4[%c1, %c0_90, %c0_91] : memref<4x128x128xf32, #tpu.memory_space<vmem>>, vector<1x128x128xf32>
    %162 = vector.shape_cast %161 : vector<1x128x128xf32> to vector<128x128xf32>
    %cst_92 = arith.constant dense<0.000000e+00> : vector<128x128xf32>
    %163 = tpu.matmul %160, %162, %cst_92 {dimension_numbers = #tpu.dot_dimension_numbers<[1], [0], [0], [1], [0, 0, 1, 1], [], []>} : vector<128x128xf32>, vector<128x128xf32>, vector<128x128xf32> -> vector<128x128xf32>
    %c1_93 = arith.constant 1 : index
    %c0_94 = arith.constant 0 : index
    %c0_95 = arith.constant 0 : index
    %164 = vector.load %arg5[%c1_93, %c0_94, %c0_95] : memref<4x1x128xf32, #tpu.memory_space<vmem>>, vector<1x1x128xf32>
    %165 = vector.shape_cast %164 : vector<1x1x128xf32> to vector<1x128xf32>
    %166 = vector.broadcast %165 : vector<1x128xf32> to vector<128x128xf32>
    %167 = arith.addf %163, %166 : vector<128x128xf32>
    %c1_96 = arith.constant 1 : index
    %c0_97 = arith.constant 0 : index
    %c0_98 = arith.constant 0 : index
    %168 = vector.load %arg6[%c1_96, %c0_97, %c0_98] : memref<4x128x128xf32, #tpu.memory_space<vmem>>, vector<1x128x128xf32>
    %169 = vector.shape_cast %168 : vector<1x128x128xf32> to vector<128x128xf32>
    %cst_99 = arith.constant dense<0.000000e+00> : vector<128x128xf32>
    %170 = tpu.matmul %160, %169, %cst_99 {dimension_numbers = #tpu.dot_dimension_numbers<[1], [0], [0], [1], [0, 0, 1, 1], [], []>} : vector<128x128xf32>, vector<128x128xf32>, vector<128x128xf32> -> vector<128x128xf32>
    %c1_100 = arith.constant 1 : index
    %c0_101 = arith.constant 0 : index
    %c0_102 = arith.constant 0 : index
    %171 = vector.load %arg7[%c1_100, %c0_101, %c0_102] : memref<4x1x128xf32, #tpu.memory_space<vmem>>, vector<1x1x128xf32>
    %172 = vector.shape_cast %171 : vector<1x1x128xf32> to vector<1x128xf32>
    %173 = vector.broadcast %172 : vector<1x128xf32> to vector<128x128xf32>
    %174 = arith.addf %170, %173 : vector<128x128xf32>
    %c1_103 = arith.constant 1 : index
    %c0_104 = arith.constant 0 : index
    %c0_105 = arith.constant 0 : index
    %175 = vector.load %arg8[%c1_103, %c0_104, %c0_105] : memref<4x128x128xf32, #tpu.memory_space<vmem>>, vector<1x128x128xf32>
    %176 = vector.shape_cast %175 : vector<1x128x128xf32> to vector<128x128xf32>
    %cst_106 = arith.constant dense<0.000000e+00> : vector<128x128xf32>
    %177 = tpu.matmul %160, %176, %cst_106 {dimension_numbers = #tpu.dot_dimension_numbers<[1], [0], [0], [1], [0, 0, 1, 1], [], []>} : vector<128x128xf32>, vector<128x128xf32>, vector<128x128xf32> -> vector<128x128xf32>
    %c1_107 = arith.constant 1 : index
    %c0_108 = arith.constant 0 : index
    %c0_109 = arith.constant 0 : index
    %178 = vector.load %arg9[%c1_107, %c0_108, %c0_109] : memref<4x1x128xf32, #tpu.memory_space<vmem>>, vector<1x1x128xf32>
    %179 = vector.shape_cast %178 : vector<1x1x128xf32> to vector<1x128xf32>
    %180 = vector.broadcast %179 : vector<1x128xf32> to vector<128x128xf32>
    %181 = arith.addf %177, %180 : vector<128x128xf32>
    %cst_110 = arith.constant dense<0.000000e+00> : vector<128x128xf32>
    %182 = tpu.matmul %167, %174, %cst_110 {dimension_numbers = #tpu.dot_dimension_numbers<[1], [1], [0], [0], [0, 0, 1, 0], [], []>} : vector<128x128xf32>, vector<128x128xf32>, vector<128x128xf32> -> vector<128x128xf32>
    %c0_111 = arith.constant 0 : index
    %c0_112 = arith.constant 0 : index
    %183 = vector.load %arg23[%c0_111, %c0_112] : memref<128x128xf32, #tpu.memory_space<vmem>>, vector<128x128xf32>
    %184 = arith.addf %182, %183 : vector<128x128xf32>
    %cst_113 = arith.constant dense<0xFF800000> : vector<128xf32>
    %185 = vector.multi_reduction <maximumf>, %184, %cst_113 [1] : vector<128x128xf32> to vector<128xf32>
    %186 = vector.shape_cast %185 : vector<128xf32> to vector<128x1xf32>
    %187 = vector.broadcast %186 : vector<128x1xf32> to vector<128x128xf32>
    %188 = arith.subf %184, %187 : vector<128x128xf32>
    %189 = math.exp %188 : vector<128x128xf32>
    %cst_114 = arith.constant dense<0.000000e+00> : vector<128xf32>
    %190 = vector.multi_reduction <add>, %189, %cst_114 [1] : vector<128x128xf32> to vector<128xf32>
    %191 = vector.shape_cast %190 : vector<128xf32> to vector<128x1xf32>
    %cst_115 = arith.constant dense<0.000000e+00> : vector<128x128xf32>
    %192 = tpu.matmul %189, %181, %cst_115 {dimension_numbers = #tpu.dot_dimension_numbers<[1], [0], [0], [1], [0, 0, 1, 1], [], []>} : vector<128x128xf32>, vector<128x128xf32>, vector<128x128xf32> -> vector<128x128xf32>
    %193 = tpu.reciprocal %191 : vector<128x1xf32> -> vector<128x1xf32>
    %194 = vector.broadcast %193 : vector<128x1xf32> to vector<128x128xf32>
    %195 = arith.mulf %192, %194 : vector<128x128xf32>
    %c1_116 = arith.constant 1 : index
    %c0_117 = arith.constant 0 : index
    %c0_118 = arith.constant 0 : index
    %196 = vector.load %arg10[%c1_116, %c0_117, %c0_118] : memref<4x128x128xf32, #tpu.memory_space<vmem>>, vector<1x128x128xf32>
    %197 = vector.shape_cast %196 : vector<1x128x128xf32> to vector<128x128xf32>
    %cst_119 = arith.constant dense<0.000000e+00> : vector<128x128xf32>
    %198 = tpu.matmul %195, %197, %cst_119 {dimension_numbers = #tpu.dot_dimension_numbers<[1], [0], [0], [1], [0, 0, 1, 1], [], []>} : vector<128x128xf32>, vector<128x128xf32>, vector<128x128xf32> -> vector<128x128xf32>
    %c1_120 = arith.constant 1 : index
    %c0_121 = arith.constant 0 : index
    %c0_122 = arith.constant 0 : index
    %199 = vector.load %arg11[%c1_120, %c0_121, %c0_122] : memref<4x1x128xf32, #tpu.memory_space<vmem>>, vector<1x1x128xf32>
    %200 = vector.shape_cast %199 : vector<1x1x128xf32> to vector<1x128xf32>
    %201 = vector.broadcast %200 : vector<1x128xf32> to vector<128x128xf32>
    %202 = arith.addf %198, %201 : vector<128x128xf32>
    %203 = arith.addf %160, %202 : vector<128x128xf32>
    %cst_123 = arith.constant dense<0.000000e+00> : vector<128xf32>
    %204 = vector.multi_reduction <add>, %203, %cst_123 [1] : vector<128x128xf32> to vector<128xf32>
    %205 = vector.shape_cast %204 : vector<128xf32> to vector<128x1xf32>
    %cst_124 = arith.constant 1.280000e+02 : f32
    %206 = vector.broadcast %cst_124 : f32 to vector<128x1xf32>
    %207 = arith.divf %205, %206 : vector<128x1xf32>
    %208 = vector.broadcast %207 : vector<128x1xf32> to vector<128x128xf32>
    %209 = arith.subf %203, %208 : vector<128x128xf32>
    %210 = arith.mulf %209, %209 : vector<128x128xf32>
    %cst_125 = arith.constant dense<0.000000e+00> : vector<128xf32>
    %211 = vector.multi_reduction <add>, %210, %cst_125 [1] : vector<128x128xf32> to vector<128xf32>
    %212 = vector.shape_cast %211 : vector<128xf32> to vector<128x1xf32>
    %cst_126 = arith.constant 1.280000e+02 : f32
    %213 = vector.broadcast %cst_126 : f32 to vector<128x1xf32>
    %214 = arith.divf %212, %213 : vector<128x1xf32>
    %215 = vector.broadcast %207 : vector<128x1xf32> to vector<128x128xf32>
    %216 = arith.subf %203, %215 : vector<128x128xf32>
    %cst_127 = arith.constant 9.99999974E-6 : f32
    %217 = vector.broadcast %cst_127 : f32 to vector<128x1xf32>
    %218 = arith.addf %214, %217 : vector<128x1xf32>
    %219 = math.rsqrt %218 : vector<128x1xf32>
    %220 = vector.broadcast %219 : vector<128x1xf32> to vector<128x128xf32>
    %221 = arith.mulf %216, %220 : vector<128x128xf32>
    %c1_128 = arith.constant 1 : index
    %c0_129 = arith.constant 0 : index
    %c0_130 = arith.constant 0 : index
    %222 = vector.load %arg16[%c1_128, %c0_129, %c0_130] : memref<4x1x128xf32, #tpu.memory_space<vmem>>, vector<1x1x128xf32>
    %223 = vector.shape_cast %222 : vector<1x1x128xf32> to vector<1x128xf32>
    %224 = vector.broadcast %223 : vector<1x128xf32> to vector<128x128xf32>
    %225 = arith.mulf %221, %224 : vector<128x128xf32>
    %c1_131 = arith.constant 1 : index
    %c0_132 = arith.constant 0 : index
    %c0_133 = arith.constant 0 : index
    %226 = vector.load %arg17[%c1_131, %c0_132, %c0_133] : memref<4x1x128xf32, #tpu.memory_space<vmem>>, vector<1x1x128xf32>
    %227 = vector.shape_cast %226 : vector<1x1x128xf32> to vector<1x128xf32>
    %228 = vector.broadcast %227 : vector<1x128xf32> to vector<128x128xf32>
    %229 = arith.addf %225, %228 : vector<128x128xf32>
    %c1_134 = arith.constant 1 : index
    %c0_135 = arith.constant 0 : index
    %c0_136 = arith.constant 0 : index
    %230 = vector.load %arg12[%c1_134, %c0_135, %c0_136] : memref<4x128x128xf32, #tpu.memory_space<vmem>>, vector<1x128x128xf32>
    %231 = vector.shape_cast %230 : vector<1x128x128xf32> to vector<128x128xf32>
    %cst_137 = arith.constant dense<0.000000e+00> : vector<128x128xf32>
    %232 = tpu.matmul %229, %231, %cst_137 {dimension_numbers = #tpu.dot_dimension_numbers<[1], [0], [0], [1], [0, 0, 1, 1], [], []>} : vector<128x128xf32>, vector<128x128xf32>, vector<128x128xf32> -> vector<128x128xf32>
    %c1_138 = arith.constant 1 : index
    %c0_139 = arith.constant 0 : index
    %c0_140 = arith.constant 0 : index
    %233 = vector.load %arg13[%c1_138, %c0_139, %c0_140] : memref<4x1x128xf32, #tpu.memory_space<vmem>>, vector<1x1x128xf32>
    %234 = vector.shape_cast %233 : vector<1x1x128xf32> to vector<1x128xf32>
    %235 = vector.broadcast %234 : vector<1x128xf32> to vector<128x128xf32>
    %236 = arith.addf %232, %235 : vector<128x128xf32>
    %cst_141 = arith.constant 0.000000e+00 : f32
    %237 = vector.broadcast %cst_141 : f32 to vector<128x128xf32>
    %238 = arith.maximumf %236, %237 : vector<128x128xf32>
    %c1_142 = arith.constant 1 : index
    %c0_143 = arith.constant 0 : index
    %c0_144 = arith.constant 0 : index
    %239 = vector.load %arg14[%c1_142, %c0_143, %c0_144] : memref<4x128x128xf32, #tpu.memory_space<vmem>>, vector<1x128x128xf32>
    %240 = vector.shape_cast %239 : vector<1x128x128xf32> to vector<128x128xf32>
    %cst_145 = arith.constant dense<0.000000e+00> : vector<128x128xf32>
    %241 = tpu.matmul %238, %240, %cst_145 {dimension_numbers = #tpu.dot_dimension_numbers<[1], [0], [0], [1], [0, 0, 1, 1], [], []>} : vector<128x128xf32>, vector<128x128xf32>, vector<128x128xf32> -> vector<128x128xf32>
    %c1_146 = arith.constant 1 : index
    %c0_147 = arith.constant 0 : index
    %c0_148 = arith.constant 0 : index
    %242 = vector.load %arg15[%c1_146, %c0_147, %c0_148] : memref<4x1x128xf32, #tpu.memory_space<vmem>>, vector<1x1x128xf32>
    %243 = vector.shape_cast %242 : vector<1x1x128xf32> to vector<1x128xf32>
    %244 = vector.broadcast %243 : vector<1x128xf32> to vector<128x128xf32>
    %245 = arith.addf %241, %244 : vector<128x128xf32>
    %246 = arith.addf %229, %245 : vector<128x128xf32>
    %cst_149 = arith.constant dense<0.000000e+00> : vector<128xf32>
    %247 = vector.multi_reduction <add>, %246, %cst_149 [1] : vector<128x128xf32> to vector<128xf32>
    %248 = vector.shape_cast %247 : vector<128xf32> to vector<128x1xf32>
    %cst_150 = arith.constant 1.280000e+02 : f32
    %249 = vector.broadcast %cst_150 : f32 to vector<128x1xf32>
    %250 = arith.divf %248, %249 : vector<128x1xf32>
    %251 = vector.broadcast %250 : vector<128x1xf32> to vector<128x128xf32>
    %252 = arith.subf %246, %251 : vector<128x128xf32>
    %253 = arith.mulf %252, %252 : vector<128x128xf32>
    %cst_151 = arith.constant dense<0.000000e+00> : vector<128xf32>
    %254 = vector.multi_reduction <add>, %253, %cst_151 [1] : vector<128x128xf32> to vector<128xf32>
    %255 = vector.shape_cast %254 : vector<128xf32> to vector<128x1xf32>
    %cst_152 = arith.constant 1.280000e+02 : f32
    %256 = vector.broadcast %cst_152 : f32 to vector<128x1xf32>
    %257 = arith.divf %255, %256 : vector<128x1xf32>
    %258 = vector.broadcast %250 : vector<128x1xf32> to vector<128x128xf32>
    %259 = arith.subf %246, %258 : vector<128x128xf32>
    %cst_153 = arith.constant 9.99999974E-6 : f32
    %260 = vector.broadcast %cst_153 : f32 to vector<128x1xf32>
    %261 = arith.addf %257, %260 : vector<128x1xf32>
    %262 = math.rsqrt %261 : vector<128x1xf32>
    %263 = vector.broadcast %262 : vector<128x1xf32> to vector<128x128xf32>
    %264 = arith.mulf %259, %263 : vector<128x128xf32>
    %c1_154 = arith.constant 1 : index
    %c0_155 = arith.constant 0 : index
    %c0_156 = arith.constant 0 : index
    %265 = vector.load %arg18[%c1_154, %c0_155, %c0_156] : memref<4x1x128xf32, #tpu.memory_space<vmem>>, vector<1x1x128xf32>
    %266 = vector.shape_cast %265 : vector<1x1x128xf32> to vector<1x128xf32>
    %267 = vector.broadcast %266 : vector<1x128xf32> to vector<128x128xf32>
    %268 = arith.mulf %264, %267 : vector<128x128xf32>
    %c1_157 = arith.constant 1 : index
    %c0_158 = arith.constant 0 : index
    %c0_159 = arith.constant 0 : index
    %269 = vector.load %arg19[%c1_157, %c0_158, %c0_159] : memref<4x1x128xf32, #tpu.memory_space<vmem>>, vector<1x1x128xf32>
    %270 = vector.shape_cast %269 : vector<1x1x128xf32> to vector<1x128xf32>
    %271 = vector.broadcast %270 : vector<1x128xf32> to vector<128x128xf32>
    %272 = arith.addf %268, %271 : vector<128x128xf32>
    %273 = vector.extract_strided_slice %272 {offsets = [0, 0], sizes = [16, 128], strides = [1, 1]} : vector<128x128xf32> to vector<16x128xf32>
    %cst_160 = arith.constant dense<0.000000e+00> : vector<2x128xf32>
    %274 = tpu.matmul %1, %273, %cst_160 {dimension_numbers = #tpu.dot_dimension_numbers<[1], [0], [0], [1], [0, 0, 1, 1], [], []>} : vector<2x16xf32>, vector<16x128xf32>, vector<2x128xf32> -> vector<2x128xf32>
    %c0_161 = arith.constant 0 : index
    %c0_162 = arith.constant 0 : index
    %c0_163 = arith.constant 0 : index
    %275 = vector.load %arg20[%c0_161, %c0_162, %c0_163] : memref<2x128x4xf32, #tpu.memory_space<vmem>>, vector<1x128x4xf32>
    %276 = vector.shape_cast %275 : vector<1x128x4xf32> to vector<128x4xf32>
    %cst_164 = arith.constant dense<0.000000e+00> : vector<2x4xf32>
    %277 = tpu.matmul %274, %276, %cst_164 {dimension_numbers = #tpu.dot_dimension_numbers<[1], [0], [0], [1], [0, 0, 1, 1], [], []>} : vector<2x128xf32>, vector<128x4xf32>, vector<2x4xf32> -> vector<2x4xf32>
    %278 = arith.addf %47, %277 : vector<2x4xf32>
    %cst_165 = arith.constant dense<0.000000e+00> : vector<128x128xf32>
    %279 = tpu.matmul %7, %273, %cst_165 {dimension_numbers = #tpu.dot_dimension_numbers<[1], [0], [0], [1], [0, 0, 1, 1], [], []>} : vector<128x16xf32>, vector<16x128xf32>, vector<128x128xf32> -> vector<128x128xf32>
    %c2 = arith.constant 2 : index
    %c0_166 = arith.constant 0 : index
    %c0_167 = arith.constant 0 : index
    %280 = vector.load %arg4[%c2, %c0_166, %c0_167] : memref<4x128x128xf32, #tpu.memory_space<vmem>>, vector<1x128x128xf32>
    %281 = vector.shape_cast %280 : vector<1x128x128xf32> to vector<128x128xf32>
    %cst_168 = arith.constant dense<0.000000e+00> : vector<128x128xf32>
    %282 = tpu.matmul %279, %281, %cst_168 {dimension_numbers = #tpu.dot_dimension_numbers<[1], [0], [0], [1], [0, 0, 1, 1], [], []>} : vector<128x128xf32>, vector<128x128xf32>, vector<128x128xf32> -> vector<128x128xf32>
    %c2_169 = arith.constant 2 : index
    %c0_170 = arith.constant 0 : index
    %c0_171 = arith.constant 0 : index
    %283 = vector.load %arg5[%c2_169, %c0_170, %c0_171] : memref<4x1x128xf32, #tpu.memory_space<vmem>>, vector<1x1x128xf32>
    %284 = vector.shape_cast %283 : vector<1x1x128xf32> to vector<1x128xf32>
    %285 = vector.broadcast %284 : vector<1x128xf32> to vector<128x128xf32>
    %286 = arith.addf %282, %285 : vector<128x128xf32>
    %c2_172 = arith.constant 2 : index
    %c0_173 = arith.constant 0 : index
    %c0_174 = arith.constant 0 : index
    %287 = vector.load %arg6[%c2_172, %c0_173, %c0_174] : memref<4x128x128xf32, #tpu.memory_space<vmem>>, vector<1x128x128xf32>
    %288 = vector.shape_cast %287 : vector<1x128x128xf32> to vector<128x128xf32>
    %cst_175 = arith.constant dense<0.000000e+00> : vector<128x128xf32>
    %289 = tpu.matmul %279, %288, %cst_175 {dimension_numbers = #tpu.dot_dimension_numbers<[1], [0], [0], [1], [0, 0, 1, 1], [], []>} : vector<128x128xf32>, vector<128x128xf32>, vector<128x128xf32> -> vector<128x128xf32>
    %c2_176 = arith.constant 2 : index
    %c0_177 = arith.constant 0 : index
    %c0_178 = arith.constant 0 : index
    %290 = vector.load %arg7[%c2_176, %c0_177, %c0_178] : memref<4x1x128xf32, #tpu.memory_space<vmem>>, vector<1x1x128xf32>
    %291 = vector.shape_cast %290 : vector<1x1x128xf32> to vector<1x128xf32>
    %292 = vector.broadcast %291 : vector<1x128xf32> to vector<128x128xf32>
    %293 = arith.addf %289, %292 : vector<128x128xf32>
    %c2_179 = arith.constant 2 : index
    %c0_180 = arith.constant 0 : index
    %c0_181 = arith.constant 0 : index
    %294 = vector.load %arg8[%c2_179, %c0_180, %c0_181] : memref<4x128x128xf32, #tpu.memory_space<vmem>>, vector<1x128x128xf32>
    %295 = vector.shape_cast %294 : vector<1x128x128xf32> to vector<128x128xf32>
    %cst_182 = arith.constant dense<0.000000e+00> : vector<128x128xf32>
    %296 = tpu.matmul %279, %295, %cst_182 {dimension_numbers = #tpu.dot_dimension_numbers<[1], [0], [0], [1], [0, 0, 1, 1], [], []>} : vector<128x128xf32>, vector<128x128xf32>, vector<128x128xf32> -> vector<128x128xf32>
    %c2_183 = arith.constant 2 : index
    %c0_184 = arith.constant 0 : index
    %c0_185 = arith.constant 0 : index
    %297 = vector.load %arg9[%c2_183, %c0_184, %c0_185] : memref<4x1x128xf32, #tpu.memory_space<vmem>>, vector<1x1x128xf32>
    %298 = vector.shape_cast %297 : vector<1x1x128xf32> to vector<1x128xf32>
    %299 = vector.broadcast %298 : vector<1x128xf32> to vector<128x128xf32>
    %300 = arith.addf %296, %299 : vector<128x128xf32>
    %cst_186 = arith.constant dense<0.000000e+00> : vector<128x128xf32>
    %301 = tpu.matmul %286, %293, %cst_186 {dimension_numbers = #tpu.dot_dimension_numbers<[1], [1], [0], [0], [0, 0, 1, 0], [], []>} : vector<128x128xf32>, vector<128x128xf32>, vector<128x128xf32> -> vector<128x128xf32>
    %c0_187 = arith.constant 0 : index
    %c0_188 = arith.constant 0 : index
    %302 = vector.load %arg23[%c0_187, %c0_188] : memref<128x128xf32, #tpu.memory_space<vmem>>, vector<128x128xf32>
    %303 = arith.addf %301, %302 : vector<128x128xf32>
    %cst_189 = arith.constant dense<0xFF800000> : vector<128xf32>
    %304 = vector.multi_reduction <maximumf>, %303, %cst_189 [1] : vector<128x128xf32> to vector<128xf32>
    %305 = vector.shape_cast %304 : vector<128xf32> to vector<128x1xf32>
    %306 = vector.broadcast %305 : vector<128x1xf32> to vector<128x128xf32>
    %307 = arith.subf %303, %306 : vector<128x128xf32>
    %308 = math.exp %307 : vector<128x128xf32>
    %cst_190 = arith.constant dense<0.000000e+00> : vector<128xf32>
    %309 = vector.multi_reduction <add>, %308, %cst_190 [1] : vector<128x128xf32> to vector<128xf32>
    %310 = vector.shape_cast %309 : vector<128xf32> to vector<128x1xf32>
    %cst_191 = arith.constant dense<0.000000e+00> : vector<128x128xf32>
    %311 = tpu.matmul %308, %300, %cst_191 {dimension_numbers = #tpu.dot_dimension_numbers<[1], [0], [0], [1], [0, 0, 1, 1], [], []>} : vector<128x128xf32>, vector<128x128xf32>, vector<128x128xf32> -> vector<128x128xf32>
    %312 = tpu.reciprocal %310 : vector<128x1xf32> -> vector<128x1xf32>
    %313 = vector.broadcast %312 : vector<128x1xf32> to vector<128x128xf32>
    %314 = arith.mulf %311, %313 : vector<128x128xf32>
    %c2_192 = arith.constant 2 : index
    %c0_193 = arith.constant 0 : index
    %c0_194 = arith.constant 0 : index
    %315 = vector.load %arg10[%c2_192, %c0_193, %c0_194] : memref<4x128x128xf32, #tpu.memory_space<vmem>>, vector<1x128x128xf32>
    %316 = vector.shape_cast %315 : vector<1x128x128xf32> to vector<128x128xf32>
    %cst_195 = arith.constant dense<0.000000e+00> : vector<128x128xf32>
    %317 = tpu.matmul %314, %316, %cst_195 {dimension_numbers = #tpu.dot_dimension_numbers<[1], [0], [0], [1], [0, 0, 1, 1], [], []>} : vector<128x128xf32>, vector<128x128xf32>, vector<128x128xf32> -> vector<128x128xf32>
    %c2_196 = arith.constant 2 : index
    %c0_197 = arith.constant 0 : index
    %c0_198 = arith.constant 0 : index
    %318 = vector.load %arg11[%c2_196, %c0_197, %c0_198] : memref<4x1x128xf32, #tpu.memory_space<vmem>>, vector<1x1x128xf32>
    %319 = vector.shape_cast %318 : vector<1x1x128xf32> to vector<1x128xf32>
    %320 = vector.broadcast %319 : vector<1x128xf32> to vector<128x128xf32>
    %321 = arith.addf %317, %320 : vector<128x128xf32>
    %322 = arith.addf %279, %321 : vector<128x128xf32>
    %cst_199 = arith.constant dense<0.000000e+00> : vector<128xf32>
    %323 = vector.multi_reduction <add>, %322, %cst_199 [1] : vector<128x128xf32> to vector<128xf32>
    %324 = vector.shape_cast %323 : vector<128xf32> to vector<128x1xf32>
    %cst_200 = arith.constant 1.280000e+02 : f32
    %325 = vector.broadcast %cst_200 : f32 to vector<128x1xf32>
    %326 = arith.divf %324, %325 : vector<128x1xf32>
    %327 = vector.broadcast %326 : vector<128x1xf32> to vector<128x128xf32>
    %328 = arith.subf %322, %327 : vector<128x128xf32>
    %329 = arith.mulf %328, %328 : vector<128x128xf32>
    %cst_201 = arith.constant dense<0.000000e+00> : vector<128xf32>
    %330 = vector.multi_reduction <add>, %329, %cst_201 [1] : vector<128x128xf32> to vector<128xf32>
    %331 = vector.shape_cast %330 : vector<128xf32> to vector<128x1xf32>
    %cst_202 = arith.constant 1.280000e+02 : f32
    %332 = vector.broadcast %cst_202 : f32 to vector<128x1xf32>
    %333 = arith.divf %331, %332 : vector<128x1xf32>
    %334 = vector.broadcast %326 : vector<128x1xf32> to vector<128x128xf32>
    %335 = arith.subf %322, %334 : vector<128x128xf32>
    %cst_203 = arith.constant 9.99999974E-6 : f32
    %336 = vector.broadcast %cst_203 : f32 to vector<128x1xf32>
    %337 = arith.addf %333, %336 : vector<128x1xf32>
    %338 = math.rsqrt %337 : vector<128x1xf32>
    %339 = vector.broadcast %338 : vector<128x1xf32> to vector<128x128xf32>
    %340 = arith.mulf %335, %339 : vector<128x128xf32>
    %c2_204 = arith.constant 2 : index
    %c0_205 = arith.constant 0 : index
    %c0_206 = arith.constant 0 : index
    %341 = vector.load %arg16[%c2_204, %c0_205, %c0_206] : memref<4x1x128xf32, #tpu.memory_space<vmem>>, vector<1x1x128xf32>
    %342 = vector.shape_cast %341 : vector<1x1x128xf32> to vector<1x128xf32>
    %343 = vector.broadcast %342 : vector<1x128xf32> to vector<128x128xf32>
    %344 = arith.mulf %340, %343 : vector<128x128xf32>
    %c2_207 = arith.constant 2 : index
    %c0_208 = arith.constant 0 : index
    %c0_209 = arith.constant 0 : index
    %345 = vector.load %arg17[%c2_207, %c0_208, %c0_209] : memref<4x1x128xf32, #tpu.memory_space<vmem>>, vector<1x1x128xf32>
    %346 = vector.shape_cast %345 : vector<1x1x128xf32> to vector<1x128xf32>
    %347 = vector.broadcast %346 : vector<1x128xf32> to vector<128x128xf32>
    %348 = arith.addf %344, %347 : vector<128x128xf32>
    %c2_210 = arith.constant 2 : index
    %c0_211 = arith.constant 0 : index
    %c0_212 = arith.constant 0 : index
    %349 = vector.load %arg12[%c2_210, %c0_211, %c0_212] : memref<4x128x128xf32, #tpu.memory_space<vmem>>, vector<1x128x128xf32>
    %350 = vector.shape_cast %349 : vector<1x128x128xf32> to vector<128x128xf32>
    %cst_213 = arith.constant dense<0.000000e+00> : vector<128x128xf32>
    %351 = tpu.matmul %348, %350, %cst_213 {dimension_numbers = #tpu.dot_dimension_numbers<[1], [0], [0], [1], [0, 0, 1, 1], [], []>} : vector<128x128xf32>, vector<128x128xf32>, vector<128x128xf32> -> vector<128x128xf32>
    %c2_214 = arith.constant 2 : index
    %c0_215 = arith.constant 0 : index
    %c0_216 = arith.constant 0 : index
    %352 = vector.load %arg13[%c2_214, %c0_215, %c0_216] : memref<4x1x128xf32, #tpu.memory_space<vmem>>, vector<1x1x128xf32>
    %353 = vector.shape_cast %352 : vector<1x1x128xf32> to vector<1x128xf32>
    %354 = vector.broadcast %353 : vector<1x128xf32> to vector<128x128xf32>
    %355 = arith.addf %351, %354 : vector<128x128xf32>
    %cst_217 = arith.constant 0.000000e+00 : f32
    %356 = vector.broadcast %cst_217 : f32 to vector<128x128xf32>
    %357 = arith.maximumf %355, %356 : vector<128x128xf32>
    %c2_218 = arith.constant 2 : index
    %c0_219 = arith.constant 0 : index
    %c0_220 = arith.constant 0 : index
    %358 = vector.load %arg14[%c2_218, %c0_219, %c0_220] : memref<4x128x128xf32, #tpu.memory_space<vmem>>, vector<1x128x128xf32>
    %359 = vector.shape_cast %358 : vector<1x128x128xf32> to vector<128x128xf32>
    %cst_221 = arith.constant dense<0.000000e+00> : vector<128x128xf32>
    %360 = tpu.matmul %357, %359, %cst_221 {dimension_numbers = #tpu.dot_dimension_numbers<[1], [0], [0], [1], [0, 0, 1, 1], [], []>} : vector<128x128xf32>, vector<128x128xf32>, vector<128x128xf32> -> vector<128x128xf32>
    %c2_222 = arith.constant 2 : index
    %c0_223 = arith.constant 0 : index
    %c0_224 = arith.constant 0 : index
    %361 = vector.load %arg15[%c2_222, %c0_223, %c0_224] : memref<4x1x128xf32, #tpu.memory_space<vmem>>, vector<1x1x128xf32>
    %362 = vector.shape_cast %361 : vector<1x1x128xf32> to vector<1x128xf32>
    %363 = vector.broadcast %362 : vector<1x128xf32> to vector<128x128xf32>
    %364 = arith.addf %360, %363 : vector<128x128xf32>
    %365 = arith.addf %348, %364 : vector<128x128xf32>
    %cst_225 = arith.constant dense<0.000000e+00> : vector<128xf32>
    %366 = vector.multi_reduction <add>, %365, %cst_225 [1] : vector<128x128xf32> to vector<128xf32>
    %367 = vector.shape_cast %366 : vector<128xf32> to vector<128x1xf32>
    %cst_226 = arith.constant 1.280000e+02 : f32
    %368 = vector.broadcast %cst_226 : f32 to vector<128x1xf32>
    %369 = arith.divf %367, %368 : vector<128x1xf32>
    %370 = vector.broadcast %369 : vector<128x1xf32> to vector<128x128xf32>
    %371 = arith.subf %365, %370 : vector<128x128xf32>
    %372 = arith.mulf %371, %371 : vector<128x128xf32>
    %cst_227 = arith.constant dense<0.000000e+00> : vector<128xf32>
    %373 = vector.multi_reduction <add>, %372, %cst_227 [1] : vector<128x128xf32> to vector<128xf32>
    %374 = vector.shape_cast %373 : vector<128xf32> to vector<128x1xf32>
    %cst_228 = arith.constant 1.280000e+02 : f32
    %375 = vector.broadcast %cst_228 : f32 to vector<128x1xf32>
    %376 = arith.divf %374, %375 : vector<128x1xf32>
    %377 = vector.broadcast %369 : vector<128x1xf32> to vector<128x128xf32>
    %378 = arith.subf %365, %377 : vector<128x128xf32>
    %cst_229 = arith.constant 9.99999974E-6 : f32
    %379 = vector.broadcast %cst_229 : f32 to vector<128x1xf32>
    %380 = arith.addf %376, %379 : vector<128x1xf32>
    %381 = math.rsqrt %380 : vector<128x1xf32>
    %382 = vector.broadcast %381 : vector<128x1xf32> to vector<128x128xf32>
    %383 = arith.mulf %378, %382 : vector<128x128xf32>
    %c2_230 = arith.constant 2 : index
    %c0_231 = arith.constant 0 : index
    %c0_232 = arith.constant 0 : index
    %384 = vector.load %arg18[%c2_230, %c0_231, %c0_232] : memref<4x1x128xf32, #tpu.memory_space<vmem>>, vector<1x1x128xf32>
    %385 = vector.shape_cast %384 : vector<1x1x128xf32> to vector<1x128xf32>
    %386 = vector.broadcast %385 : vector<1x128xf32> to vector<128x128xf32>
    %387 = arith.mulf %383, %386 : vector<128x128xf32>
    %c2_233 = arith.constant 2 : index
    %c0_234 = arith.constant 0 : index
    %c0_235 = arith.constant 0 : index
    %388 = vector.load %arg19[%c2_233, %c0_234, %c0_235] : memref<4x1x128xf32, #tpu.memory_space<vmem>>, vector<1x1x128xf32>
    %389 = vector.shape_cast %388 : vector<1x1x128xf32> to vector<1x128xf32>
    %390 = vector.broadcast %389 : vector<1x128xf32> to vector<128x128xf32>
    %391 = arith.addf %387, %390 : vector<128x128xf32>
    %c3 = arith.constant 3 : index
    %c0_236 = arith.constant 0 : index
    %c0_237 = arith.constant 0 : index
    %392 = vector.load %arg4[%c3, %c0_236, %c0_237] : memref<4x128x128xf32, #tpu.memory_space<vmem>>, vector<1x128x128xf32>
    %393 = vector.shape_cast %392 : vector<1x128x128xf32> to vector<128x128xf32>
    %cst_238 = arith.constant dense<0.000000e+00> : vector<128x128xf32>
    %394 = tpu.matmul %391, %393, %cst_238 {dimension_numbers = #tpu.dot_dimension_numbers<[1], [0], [0], [1], [0, 0, 1, 1], [], []>} : vector<128x128xf32>, vector<128x128xf32>, vector<128x128xf32> -> vector<128x128xf32>
    %c3_239 = arith.constant 3 : index
    %c0_240 = arith.constant 0 : index
    %c0_241 = arith.constant 0 : index
    %395 = vector.load %arg5[%c3_239, %c0_240, %c0_241] : memref<4x1x128xf32, #tpu.memory_space<vmem>>, vector<1x1x128xf32>
    %396 = vector.shape_cast %395 : vector<1x1x128xf32> to vector<1x128xf32>
    %397 = vector.broadcast %396 : vector<1x128xf32> to vector<128x128xf32>
    %398 = arith.addf %394, %397 : vector<128x128xf32>
    %c3_242 = arith.constant 3 : index
    %c0_243 = arith.constant 0 : index
    %c0_244 = arith.constant 0 : index
    %399 = vector.load %arg6[%c3_242, %c0_243, %c0_244] : memref<4x128x128xf32, #tpu.memory_space<vmem>>, vector<1x128x128xf32>
    %400 = vector.shape_cast %399 : vector<1x128x128xf32> to vector<128x128xf32>
    %cst_245 = arith.constant dense<0.000000e+00> : vector<128x128xf32>
    %401 = tpu.matmul %391, %400, %cst_245 {dimension_numbers = #tpu.dot_dimension_numbers<[1], [0], [0], [1], [0, 0, 1, 1], [], []>} : vector<128x128xf32>, vector<128x128xf32>, vector<128x128xf32> -> vector<128x128xf32>
    %c3_246 = arith.constant 3 : index
    %c0_247 = arith.constant 0 : index
    %c0_248 = arith.constant 0 : index
    %402 = vector.load %arg7[%c3_246, %c0_247, %c0_248] : memref<4x1x128xf32, #tpu.memory_space<vmem>>, vector<1x1x128xf32>
    %403 = vector.shape_cast %402 : vector<1x1x128xf32> to vector<1x128xf32>
    %404 = vector.broadcast %403 : vector<1x128xf32> to vector<128x128xf32>
    %405 = arith.addf %401, %404 : vector<128x128xf32>
    %c3_249 = arith.constant 3 : index
    %c0_250 = arith.constant 0 : index
    %c0_251 = arith.constant 0 : index
    %406 = vector.load %arg8[%c3_249, %c0_250, %c0_251] : memref<4x128x128xf32, #tpu.memory_space<vmem>>, vector<1x128x128xf32>
    %407 = vector.shape_cast %406 : vector<1x128x128xf32> to vector<128x128xf32>
    %cst_252 = arith.constant dense<0.000000e+00> : vector<128x128xf32>
    %408 = tpu.matmul %391, %407, %cst_252 {dimension_numbers = #tpu.dot_dimension_numbers<[1], [0], [0], [1], [0, 0, 1, 1], [], []>} : vector<128x128xf32>, vector<128x128xf32>, vector<128x128xf32> -> vector<128x128xf32>
    %c3_253 = arith.constant 3 : index
    %c0_254 = arith.constant 0 : index
    %c0_255 = arith.constant 0 : index
    %409 = vector.load %arg9[%c3_253, %c0_254, %c0_255] : memref<4x1x128xf32, #tpu.memory_space<vmem>>, vector<1x1x128xf32>
    %410 = vector.shape_cast %409 : vector<1x1x128xf32> to vector<1x128xf32>
    %411 = vector.broadcast %410 : vector<1x128xf32> to vector<128x128xf32>
    %412 = arith.addf %408, %411 : vector<128x128xf32>
    %cst_256 = arith.constant dense<0.000000e+00> : vector<128x128xf32>
    %413 = tpu.matmul %398, %405, %cst_256 {dimension_numbers = #tpu.dot_dimension_numbers<[1], [1], [0], [0], [0, 0, 1, 0], [], []>} : vector<128x128xf32>, vector<128x128xf32>, vector<128x128xf32> -> vector<128x128xf32>
    %c0_257 = arith.constant 0 : index
    %c0_258 = arith.constant 0 : index
    %414 = vector.load %arg23[%c0_257, %c0_258] : memref<128x128xf32, #tpu.memory_space<vmem>>, vector<128x128xf32>
    %415 = arith.addf %413, %414 : vector<128x128xf32>
    %cst_259 = arith.constant dense<0xFF800000> : vector<128xf32>
    %416 = vector.multi_reduction <maximumf>, %415, %cst_259 [1] : vector<128x128xf32> to vector<128xf32>
    %417 = vector.shape_cast %416 : vector<128xf32> to vector<128x1xf32>
    %418 = vector.broadcast %417 : vector<128x1xf32> to vector<128x128xf32>
    %419 = arith.subf %415, %418 : vector<128x128xf32>
    %420 = math.exp %419 : vector<128x128xf32>
    %cst_260 = arith.constant dense<0.000000e+00> : vector<128xf32>
    %421 = vector.multi_reduction <add>, %420, %cst_260 [1] : vector<128x128xf32> to vector<128xf32>
    %422 = vector.shape_cast %421 : vector<128xf32> to vector<128x1xf32>
    %cst_261 = arith.constant dense<0.000000e+00> : vector<128x128xf32>
    %423 = tpu.matmul %420, %412, %cst_261 {dimension_numbers = #tpu.dot_dimension_numbers<[1], [0], [0], [1], [0, 0, 1, 1], [], []>} : vector<128x128xf32>, vector<128x128xf32>, vector<128x128xf32> -> vector<128x128xf32>
    %424 = tpu.reciprocal %422 : vector<128x1xf32> -> vector<128x1xf32>
    %425 = vector.broadcast %424 : vector<128x1xf32> to vector<128x128xf32>
    %426 = arith.mulf %423, %425 : vector<128x128xf32>
    %c3_262 = arith.constant 3 : index
    %c0_263 = arith.constant 0 : index
    %c0_264 = arith.constant 0 : index
    %427 = vector.load %arg10[%c3_262, %c0_263, %c0_264] : memref<4x128x128xf32, #tpu.memory_space<vmem>>, vector<1x128x128xf32>
    %428 = vector.shape_cast %427 : vector<1x128x128xf32> to vector<128x128xf32>
    %cst_265 = arith.constant dense<0.000000e+00> : vector<128x128xf32>
    %429 = tpu.matmul %426, %428, %cst_265 {dimension_numbers = #tpu.dot_dimension_numbers<[1], [0], [0], [1], [0, 0, 1, 1], [], []>} : vector<128x128xf32>, vector<128x128xf32>, vector<128x128xf32> -> vector<128x128xf32>
    %c3_266 = arith.constant 3 : index
    %c0_267 = arith.constant 0 : index
    %c0_268 = arith.constant 0 : index
    %430 = vector.load %arg11[%c3_266, %c0_267, %c0_268] : memref<4x1x128xf32, #tpu.memory_space<vmem>>, vector<1x1x128xf32>
    %431 = vector.shape_cast %430 : vector<1x1x128xf32> to vector<1x128xf32>
    %432 = vector.broadcast %431 : vector<1x128xf32> to vector<128x128xf32>
    %433 = arith.addf %429, %432 : vector<128x128xf32>
    %434 = arith.addf %391, %433 : vector<128x128xf32>
    %cst_269 = arith.constant dense<0.000000e+00> : vector<128xf32>
    %435 = vector.multi_reduction <add>, %434, %cst_269 [1] : vector<128x128xf32> to vector<128xf32>
    %436 = vector.shape_cast %435 : vector<128xf32> to vector<128x1xf32>
    %cst_270 = arith.constant 1.280000e+02 : f32
    %437 = vector.broadcast %cst_270 : f32 to vector<128x1xf32>
    %438 = arith.divf %436, %437 : vector<128x1xf32>
    %439 = vector.broadcast %438 : vector<128x1xf32> to vector<128x128xf32>
    %440 = arith.subf %434, %439 : vector<128x128xf32>
    %441 = arith.mulf %440, %440 : vector<128x128xf32>
    %cst_271 = arith.constant dense<0.000000e+00> : vector<128xf32>
    %442 = vector.multi_reduction <add>, %441, %cst_271 [1] : vector<128x128xf32> to vector<128xf32>
    %443 = vector.shape_cast %442 : vector<128xf32> to vector<128x1xf32>
    %cst_272 = arith.constant 1.280000e+02 : f32
    %444 = vector.broadcast %cst_272 : f32 to vector<128x1xf32>
    %445 = arith.divf %443, %444 : vector<128x1xf32>
    %446 = vector.broadcast %438 : vector<128x1xf32> to vector<128x128xf32>
    %447 = arith.subf %434, %446 : vector<128x128xf32>
    %cst_273 = arith.constant 9.99999974E-6 : f32
    %448 = vector.broadcast %cst_273 : f32 to vector<128x1xf32>
    %449 = arith.addf %445, %448 : vector<128x1xf32>
    %450 = math.rsqrt %449 : vector<128x1xf32>
    %451 = vector.broadcast %450 : vector<128x1xf32> to vector<128x128xf32>
    %452 = arith.mulf %447, %451 : vector<128x128xf32>
    %c3_274 = arith.constant 3 : index
    %c0_275 = arith.constant 0 : index
    %c0_276 = arith.constant 0 : index
    %453 = vector.load %arg16[%c3_274, %c0_275, %c0_276] : memref<4x1x128xf32, #tpu.memory_space<vmem>>, vector<1x1x128xf32>
    %454 = vector.shape_cast %453 : vector<1x1x128xf32> to vector<1x128xf32>
    %455 = vector.broadcast %454 : vector<1x128xf32> to vector<128x128xf32>
    %456 = arith.mulf %452, %455 : vector<128x128xf32>
    %c3_277 = arith.constant 3 : index
    %c0_278 = arith.constant 0 : index
    %c0_279 = arith.constant 0 : index
    %457 = vector.load %arg17[%c3_277, %c0_278, %c0_279] : memref<4x1x128xf32, #tpu.memory_space<vmem>>, vector<1x1x128xf32>
    %458 = vector.shape_cast %457 : vector<1x1x128xf32> to vector<1x128xf32>
    %459 = vector.broadcast %458 : vector<1x128xf32> to vector<128x128xf32>
    %460 = arith.addf %456, %459 : vector<128x128xf32>
    %c3_280 = arith.constant 3 : index
    %c0_281 = arith.constant 0 : index
    %c0_282 = arith.constant 0 : index
    %461 = vector.load %arg12[%c3_280, %c0_281, %c0_282] : memref<4x128x128xf32, #tpu.memory_space<vmem>>, vector<1x128x128xf32>
    %462 = vector.shape_cast %461 : vector<1x128x128xf32> to vector<128x128xf32>
    %cst_283 = arith.constant dense<0.000000e+00> : vector<128x128xf32>
    %463 = tpu.matmul %460, %462, %cst_283 {dimension_numbers = #tpu.dot_dimension_numbers<[1], [0], [0], [1], [0, 0, 1, 1], [], []>} : vector<128x128xf32>, vector<128x128xf32>, vector<128x128xf32> -> vector<128x128xf32>
    %c3_284 = arith.constant 3 : index
    %c0_285 = arith.constant 0 : index
    %c0_286 = arith.constant 0 : index
    %464 = vector.load %arg13[%c3_284, %c0_285, %c0_286] : memref<4x1x128xf32, #tpu.memory_space<vmem>>, vector<1x1x128xf32>
    %465 = vector.shape_cast %464 : vector<1x1x128xf32> to vector<1x128xf32>
    %466 = vector.broadcast %465 : vector<1x128xf32> to vector<128x128xf32>
    %467 = arith.addf %463, %466 : vector<128x128xf32>
    %cst_287 = arith.constant 0.000000e+00 : f32
    %468 = vector.broadcast %cst_287 : f32 to vector<128x128xf32>
    %469 = arith.maximumf %467, %468 : vector<128x128xf32>
    %c3_288 = arith.constant 3 : index
    %c0_289 = arith.constant 0 : index
    %c0_290 = arith.constant 0 : index
    %470 = vector.load %arg14[%c3_288, %c0_289, %c0_290] : memref<4x128x128xf32, #tpu.memory_space<vmem>>, vector<1x128x128xf32>
    %471 = vector.shape_cast %470 : vector<1x128x128xf32> to vector<128x128xf32>
    %cst_291 = arith.constant dense<0.000000e+00> : vector<128x128xf32>
    %472 = tpu.matmul %469, %471, %cst_291 {dimension_numbers = #tpu.dot_dimension_numbers<[1], [0], [0], [1], [0, 0, 1, 1], [], []>} : vector<128x128xf32>, vector<128x128xf32>, vector<128x128xf32> -> vector<128x128xf32>
    %c3_292 = arith.constant 3 : index
    %c0_293 = arith.constant 0 : index
    %c0_294 = arith.constant 0 : index
    %473 = vector.load %arg15[%c3_292, %c0_293, %c0_294] : memref<4x1x128xf32, #tpu.memory_space<vmem>>, vector<1x1x128xf32>
    %474 = vector.shape_cast %473 : vector<1x1x128xf32> to vector<1x128xf32>
    %475 = vector.broadcast %474 : vector<1x128xf32> to vector<128x128xf32>
    %476 = arith.addf %472, %475 : vector<128x128xf32>
    %477 = arith.addf %460, %476 : vector<128x128xf32>
    %cst_295 = arith.constant dense<0.000000e+00> : vector<128xf32>
    %478 = vector.multi_reduction <add>, %477, %cst_295 [1] : vector<128x128xf32> to vector<128xf32>
    %479 = vector.shape_cast %478 : vector<128xf32> to vector<128x1xf32>
    %cst_296 = arith.constant 1.280000e+02 : f32
    %480 = vector.broadcast %cst_296 : f32 to vector<128x1xf32>
    %481 = arith.divf %479, %480 : vector<128x1xf32>
    %482 = vector.broadcast %481 : vector<128x1xf32> to vector<128x128xf32>
    %483 = arith.subf %477, %482 : vector<128x128xf32>
    %484 = arith.mulf %483, %483 : vector<128x128xf32>
    %cst_297 = arith.constant dense<0.000000e+00> : vector<128xf32>
    %485 = vector.multi_reduction <add>, %484, %cst_297 [1] : vector<128x128xf32> to vector<128xf32>
    %486 = vector.shape_cast %485 : vector<128xf32> to vector<128x1xf32>
    %cst_298 = arith.constant 1.280000e+02 : f32
    %487 = vector.broadcast %cst_298 : f32 to vector<128x1xf32>
    %488 = arith.divf %486, %487 : vector<128x1xf32>
    %489 = vector.broadcast %481 : vector<128x1xf32> to vector<128x128xf32>
    %490 = arith.subf %477, %489 : vector<128x128xf32>
    %cst_299 = arith.constant 9.99999974E-6 : f32
    %491 = vector.broadcast %cst_299 : f32 to vector<128x1xf32>
    %492 = arith.addf %488, %491 : vector<128x1xf32>
    %493 = math.rsqrt %492 : vector<128x1xf32>
    %494 = vector.broadcast %493 : vector<128x1xf32> to vector<128x128xf32>
    %495 = arith.mulf %490, %494 : vector<128x128xf32>
    %c3_300 = arith.constant 3 : index
    %c0_301 = arith.constant 0 : index
    %c0_302 = arith.constant 0 : index
    %496 = vector.load %arg18[%c3_300, %c0_301, %c0_302] : memref<4x1x128xf32, #tpu.memory_space<vmem>>, vector<1x1x128xf32>
    %497 = vector.shape_cast %496 : vector<1x1x128xf32> to vector<1x128xf32>
    %498 = vector.broadcast %497 : vector<1x128xf32> to vector<128x128xf32>
    %499 = arith.mulf %495, %498 : vector<128x128xf32>
    %c3_303 = arith.constant 3 : index
    %c0_304 = arith.constant 0 : index
    %c0_305 = arith.constant 0 : index
    %500 = vector.load %arg19[%c3_303, %c0_304, %c0_305] : memref<4x1x128xf32, #tpu.memory_space<vmem>>, vector<1x1x128xf32>
    %501 = vector.shape_cast %500 : vector<1x1x128xf32> to vector<1x128xf32>
    %502 = vector.broadcast %501 : vector<1x128xf32> to vector<128x128xf32>
    %503 = arith.addf %499, %502 : vector<128x128xf32>
    %504 = vector.extract_strided_slice %503 {offsets = [0, 0], sizes = [16, 128], strides = [1, 1]} : vector<128x128xf32> to vector<16x128xf32>
    %cst_306 = arith.constant dense<0.000000e+00> : vector<2x128xf32>
    %505 = tpu.matmul %1, %504, %cst_306 {dimension_numbers = #tpu.dot_dimension_numbers<[1], [0], [0], [1], [0, 0, 1, 1], [], []>} : vector<2x16xf32>, vector<16x128xf32>, vector<2x128xf32> -> vector<2x128xf32>
    %c1_307 = arith.constant 1 : index
    %c0_308 = arith.constant 0 : index
    %c0_309 = arith.constant 0 : index
    %506 = vector.load %arg20[%c1_307, %c0_308, %c0_309] : memref<2x128x4xf32, #tpu.memory_space<vmem>>, vector<1x128x4xf32>
    %507 = vector.shape_cast %506 : vector<1x128x4xf32> to vector<128x4xf32>
    %cst_310 = arith.constant dense<0.000000e+00> : vector<2x4xf32>
    %508 = tpu.matmul %505, %507, %cst_310 {dimension_numbers = #tpu.dot_dimension_numbers<[1], [0], [0], [1], [0, 0, 1, 1], [], []>} : vector<2x128xf32>, vector<128x4xf32>, vector<2x4xf32> -> vector<2x4xf32>
    %509 = arith.addf %278, %508 : vector<2x4xf32>
    %c0_311 = arith.constant 0 : index
    %c0_312 = arith.constant 0 : index
    %510 = vector.load %arg21[%c0_311, %c0_312] : memref<1x4xf32, #tpu.memory_space<vmem>>, vector<1x4xf32>
    %511 = vector.broadcast %510 : vector<1x4xf32> to vector<2x4xf32>
    %512 = arith.addf %509, %511 : vector<2x4xf32>
    %c0_313 = arith.constant 0 : index
    %c0_314 = arith.constant 0 : index
    %513 = vector.load %arg22[%c0_313, %c0_314] : memref<2x4xf32, #tpu.memory_space<vmem>>, vector<2x4xf32>
    tpu.vector_store %arg22[%c0_313, %c0_314], %512 {strides = array<i32>} : memref<2x4xf32, #tpu.memory_space<vmem>>, vector<2x4xf32>,
    return
  }
  func.func @transform_0(%arg0: i32) -> (i32, i32) {
    %c0_i32 = arith.constant 0 : i32
    %c0_i32_0 = arith.constant 0 : i32
    %c0_i32_1 = arith.constant 0 : i32
    return %c0_i32, %c0_i32_0 : i32, i32
  }
  func.func @transform_1(%arg0: i32) -> (i32, i32) {
    %c0_i32 = arith.constant 0 : i32
    %c0_i32_0 = arith.constant 0 : i32
    %c0_i32_1 = arith.constant 0 : i32
    return %c0_i32, %c0_i32_0 : i32, i32
  }
  func.func @transform_2(%arg0: i32) -> (i32, i32) {
    %c0_i32 = arith.constant 0 : i32
    %c0_i32_0 = arith.constant 0 : i32
    %c0_i32_1 = arith.constant 0 : i32
    return %c0_i32, %c0_i32_0 : i32, i32
  }
  func.func @transform_3(%arg0: i32) -> (i32, i32, i32) {
    %c0_i32 = arith.constant 0 : i32
    %c0_i32_0 = arith.constant 0 : i32
    %c0_i32_1 = arith.constant 0 : i32
    %c0_i32_2 = arith.constant 0 : i32
    return %c0_i32, %c0_i32_0, %c0_i32_1 : i32, i32, i32
  }
  func.func @transform_4(%arg0: i32) -> (i32, i32, i32) {
    %c0_i32 = arith.constant 0 : i32
    %c0_i32_0 = arith.constant 0 : i32
    %c0_i32_1 = arith.constant 0 : i32
    %c0_i32_2 = arith.constant 0 : i32
    return %c0_i32, %c0_i32_0, %c0_i32_1 : i32, i32, i32
  }
  func.func @transform_5(%arg0: i32) -> (i32, i32, i32) {
    %c0_i32 = arith.constant 0 : i32
    %c0_i32_0 = arith.constant 0 : i32
    %c0_i32_1 = arith.constant 0 : i32
    %c0_i32_2 = arith.constant 0 : i32
    return %c0_i32, %c0_i32_0, %c0_i32_1 : i32, i32, i32
  }
  func.func @transform_6(%arg0: i32) -> (i32, i32, i32) {
    %c0_i32 = arith.constant 0 : i32
    %c0_i32_0 = arith.constant 0 : i32
    %c0_i32_1 = arith.constant 0 : i32
    %c0_i32_2 = arith.constant 0 : i32
    return %c0_i32, %c0_i32_0, %c0_i32_1 : i32, i32, i32
  }
  func.func @transform_7(%arg0: i32) -> (i32, i32, i32) {
    %c0_i32 = arith.constant 0 : i32
    %c0_i32_0 = arith.constant 0 : i32
    %c0_i32_1 = arith.constant 0 : i32
    %c0_i32_2 = arith.constant 0 : i32
    return %c0_i32, %c0_i32_0, %c0_i32_1 : i32, i32, i32
  }
  func.func @transform_8(%arg0: i32) -> (i32, i32, i32) {
    %c0_i32 = arith.constant 0 : i32
    %c0_i32_0 = arith.constant 0 : i32
    %c0_i32_1 = arith.constant 0 : i32
    %c0_i32_2 = arith.constant 0 : i32
    return %c0_i32, %c0_i32_0, %c0_i32_1 : i32, i32, i32
  }
  func.func @transform_9(%arg0: i32) -> (i32, i32, i32) {
    %c0_i32 = arith.constant 0 : i32
    %c0_i32_0 = arith.constant 0 : i32
    %c0_i32_1 = arith.constant 0 : i32
    %c0_i32_2 = arith.constant 0 : i32
    return %c0_i32, %c0_i32_0, %c0_i32_1 : i32, i32, i32
  }
  func.func @transform_10(%arg0: i32) -> (i32, i32, i32) {
    %c0_i32 = arith.constant 0 : i32
    %c0_i32_0 = arith.constant 0 : i32
    %c0_i32_1 = arith.constant 0 : i32
    %c0_i32_2 = arith.constant 0 : i32
    return %c0_i32, %c0_i32_0, %c0_i32_1 : i32, i32, i32
  }
  func.func @transform_11(%arg0: i32) -> (i32, i32, i32) {
    %c0_i32 = arith.constant 0 : i32
    %c0_i32_0 = arith.constant 0 : i32
    %c0_i32_1 = arith.constant 0 : i32
    %c0_i32_2 = arith.constant 0 : i32
    return %c0_i32, %c0_i32_0, %c0_i32_1 : i32, i32, i32
  }
  func.func @transform_12(%arg0: i32) -> (i32, i32, i32) {
    %c0_i32 = arith.constant 0 : i32
    %c0_i32_0 = arith.constant 0 : i32
    %c0_i32_1 = arith.constant 0 : i32
    %c0_i32_2 = arith.constant 0 : i32
    return %c0_i32, %c0_i32_0, %c0_i32_1 : i32, i32, i32
  }
  func.func @transform_13(%arg0: i32) -> (i32, i32, i32) {
    %c0_i32 = arith.constant 0 : i32
    %c0_i32_0 = arith.constant 0 : i32
    %c0_i32_1 = arith.constant 0 : i32
    %c0_i32_2 = arith.constant 0 : i32
    return %c0_i32, %c0_i32_0, %c0_i32_1 : i32, i32, i32
  }
  func.func @transform_14(%arg0: i32) -> (i32, i32, i32) {
    %c0_i32 = arith.constant 0 : i32
    %c0_i32_0 = arith.constant 0 : i32
    %c0_i32_1 = arith.constant 0 : i32
    %c0_i32_2 = arith.constant 0 : i32
    return %c0_i32, %c0_i32_0, %c0_i32_1 : i32, i32, i32
  }
  func.func @transform_15(%arg0: i32) -> (i32, i32, i32) {
    %c0_i32 = arith.constant 0 : i32
    %c0_i32_0 = arith.constant 0 : i32
    %c0_i32_1 = arith.constant 0 : i32
    %c0_i32_2 = arith.constant 0 : i32
    return %c0_i32, %c0_i32_0, %c0_i32_1 : i32, i32, i32
  }
  func.func @transform_16(%arg0: i32) -> (i32, i32, i32) {
    %c0_i32 = arith.constant 0 : i32
    %c0_i32_0 = arith.constant 0 : i32
    %c0_i32_1 = arith.constant 0 : i32
    %c0_i32_2 = arith.constant 0 : i32
    return %c0_i32, %c0_i32_0, %c0_i32_1 : i32, i32, i32
  }
  func.func @transform_17(%arg0: i32) -> (i32, i32, i32) {
    %c0_i32 = arith.constant 0 : i32
    %c0_i32_0 = arith.constant 0 : i32
    %c0_i32_1 = arith.constant 0 : i32
    %c0_i32_2 = arith.constant 0 : i32
    return %c0_i32, %c0_i32_0, %c0_i32_1 : i32, i32, i32
  }
  func.func @transform_18(%arg0: i32) -> (i32, i32, i32) {
    %c0_i32 = arith.constant 0 : i32
    %c0_i32_0 = arith.constant 0 : i32
    %c0_i32_1 = arith.constant 0 : i32
    %c0_i32_2 = arith.constant 0 : i32
    return %c0_i32, %c0_i32_0, %c0_i32_1 : i32, i32, i32
  }
  func.func @transform_19(%arg0: i32) -> (i32, i32, i32) {
    %c0_i32 = arith.constant 0 : i32
    %c0_i32_0 = arith.constant 0 : i32
    %c0_i32_1 = arith.constant 0 : i32
    %c0_i32_2 = arith.constant 0 : i32
    return %c0_i32, %c0_i32_0, %c0_i32_1 : i32, i32, i32
  }
  func.func @transform_20(%arg0: i32) -> (i32, i32) {
    %c0_i32 = arith.constant 0 : i32
    %c0_i32_0 = arith.constant 0 : i32
    %c0_i32_1 = arith.constant 0 : i32
    return %c0_i32, %c0_i32_0 : i32, i32
  }
  func.func @transform_21(%arg0: i32) -> (i32, i32) {
    %c0_i32 = arith.constant 0 : i32
    %c0_i32_0 = arith.constant 0 : i32
    %c0_i32_1 = arith.constant 0 : i32
    return %c0_i32, %c0_i32_0 : i32, i32
  }
}

</mosaic_0001>

<bundles_post_ra>
// kernel: tpu_custom_call.1
= control target key start
LH: loop header
LB: loop body
LE: loop exit
PB: predicated region body
PF: predicated region fallthrough
CT: control target
= control target key end

     0   :  { %s15748_s0 = inlined_call_operand.vmem [shape: s32[128,1], index: 0, kind: input, shape index: {}]   ;;  %s15749_s1 = inlined_call_operand.vmem [shape: f32[16,128], index: 1, kind: input, shape index: {}]   ;;  %s15750_s2 = inlined_call_operand.vmem [shape: f32[2,16], index: 2, kind: input, shape index: {}]   ;;  %s15751_s3 = inlined_call_operand.hbm [shape: f32[4,128,128], index: 3, kind: input, shape index: {}]   ;;  %s15752_s4 = inlined_call_operand.vmem [shape: f32[4,1,128], index: 4, kind: input, shape index: {}]   ;;  %s15753_s5 = inlined_call_operand.hbm [shape: f32[4,128,128], index: 5, kind: input, shape index: {}]   ;;  %s15754_s6 = inlined_call_operand.vmem [shape: f32[4,1,128], index: 6, kind: input, shape index: {}]   ;;  %s15755_s7 = inlined_call_operand.hbm [shape: f32[4,128,128], index: 7, kind: input, shape index: {}]   ;;  %s15756_s8 = inlined_call_operand.vmem [shape: f32[4,1,128], index: 8, kind: input, shape index: {}]   ;;  %s15757_s9 = inlined_call_operand.hbm [shape: f32[4,128,128], index: 9, kind: input, shape index: {}]   ;;  %s15758_s10 = inlined_call_operand.vmem [shape: f32[4,1,128], index: 10, kind: input, shape index: {}]   ;;  %s15759_s11 = inlined_call_operand.hbm [shape: f32[4,128,128], index: 11, kind: input, shape index: {}]   ;;  %s15760_s12 = inlined_call_operand.vmem [shape: f32[4,1,128], index: 12, kind: input, shape index: {}]   ;;  %s15761_s13 = inlined_call_operand.hbm [shape: f32[4,128,128], index: 13, kind: input, shape index: {}]   ;;  %s15762_s14 = inlined_call_operand.vmem [shape: f32[4,1,128], index: 14, kind: input, shape index: {}]   ;;  %s15763_s15 = inlined_call_operand.vmem [shape: f32[4,1,128], index: 15, kind: input, shape index: {}]   ;;  %s15764_s16 = inlined_call_operand.vmem [shape: f32[4,1,128], index: 16, kind: input, shape index: {}]   ;;  %s15765_s17 = inlined_call_operand.vmem [shape: f32[4,1,128], index: 17, kind: input, shape index: {}]   ;;  %s15766_s18 = inlined_call_operand.vmem [shape: f32[4,1,128], index: 18, kind: input, shape index: {}]   ;;  %s15767_s19 = inlined_call_operand.vmem [shape: f32[2,128,4], index: 19, kind: input, shape index: {}]   ;;  %s15768_s20 = inlined_call_operand.vmem [shape: f32[1,4], index: 20, kind: input, shape index: {}]   ;;  %s15769_s21 = inlined_call_operand.hbm [shape: f32[2,4], index: 21, kind: output, shape index: {}]  }
   0x1   :  { %15842 = sst [smem:[#allocation52_spill]] %s15748_s0 }
   0x2   :  { %15843 = sst [smem:[#allocation53_spill]] %s15749_s1 }
   0x3   :  { %15844 = sst [smem:[#allocation54_spill]] %s15750_s2 }
   0x4   :  { %15845 = sst [smem:[#allocation55_spill]] %s15751_s3 }
   0x5   :  { %15846 = sst [smem:[#allocation56_spill]] %s15752_s4 }
   0x6   :  { %15847 = sst [smem:[#allocation57_spill]] %s15753_s5 }
   0x7   :  { %26 = vsyncpa [#allocation4], 0 }
   0x8   :  { %27 = vsyncpa [#allocation7], 0 }
   0x9   :  { %28 = vsyncpa [#allocation10], 0 }
   0xa   :  { %29 = vsyncpa [#allocation13], 0 }
   0xb   :  { %30 = vsyncpa [#allocation5], 0  ;;  %s12392_s2 = smov [#allocation6]   ;;  %s12393_s26 = smov [#allocation9]  }
   0xc   :  { %s56_s25 = sshll.u32 %s12392_s2, 4  ;;  %s84_s27 = sshll.u32 %s12393_s26, 4  ;;  %s57_s25 = int_to_ptr.vmem [resolvable:$true] %s56_s25  ;;  %s85_s27 = int_to_ptr.vmem [resolvable:$true] %s84_s27 }
   0xd   :  { %s12250_s3 = scalar_lea.vmem %s57_s25, 8192  ;;  %p12255_p1 = scmp.lt.s32.totalorder %s57_s25, %s57_s25 }
   0xe   :  { %p12251_p0 = scmp.ne.s32.totalorder %s57_s25, %s12250_s3  ;;  %p12256_p2 = scmp.lt.s32.totalorder %s12250_s3, %s12250_s3 }
  0x10   :  { %p12257_p3 = por %p12256_p2, %p12255_p1 }
  0x12   :  { %p12258_p4 = pnand %p12257_p3, %p12251_p0 }
  0x14   :  { %12261 = shalt.err (!%p12258_p4)
}
  0x15   :  { %s12394_s28 = smov 128   ;;  %s12395_s29 = smov 8  }
  0x16   :  { %s15848_s30 = sld [smem:[#allocation57_spill]]  ;;  %s12270_s5 = scalar_lea.vmem %s85_s27, 8192 }
  0x17   :  { %p12271_p5 = scmp.ne.s32.totalorder %s85_s27, %s12270_s5  ;;  %p12275_p6 = scmp.lt.s32.totalorder %s85_s27, %s85_s27 }
  0x18   :  { %p12276_p7 = scmp.lt.s32.totalorder %s12270_s5, %s12270_s5 }
  0x1a   :  { %p12277_p8 = por %p12276_p7, %p12275_p6 }
  0x1c   :  { %62 = dma.hbm_to_vmem [thread:$0]  %s15848_s30, 8192, %s57_s25, [#allocation7], %s12394_s28, %s12394_s28, %s12395_s29  }
  0x1d   :  { %p12278_p9 = pnand %p12277_p8, %p12271_p5 }
  0x1f   :  { %12281 = shalt.err (!%p12278_p9)
}
  0x20   :  { %90 = dma.hbm_to_vmem [thread:$0]  %s15757_s9, 8192, %s85_s27, [#allocation10], %s12394_s28, %s12394_s28, %s12395_s29  }
  0x21   :  { %s12396_s1 = smov [#allocation3]   ;;  %s12397_s2 = smov [#allocation8]  }
  0x22   :  { %s42_s24 = sshll.u32 %s12396_s1, 4  ;;  %s70_s26 = sshll.u32 %s12397_s2, 4  ;;  %s43_s24 = int_to_ptr.vmem [resolvable:$true] %s42_s24  ;;  %s71_s26 = int_to_ptr.vmem [resolvable:$true] %s70_s26 }
  0x23   :  { %s12290_s25 = scalar_lea.vmem %s43_s24, 8192  ;;  %p12295_p11 = scmp.lt.s32.totalorder %s43_s24, %s43_s24 }
  0x24   :  { %p12291_p10 = scmp.ne.s32.totalorder %s43_s24, %s12290_s25  ;;  %p12296_p12 = scmp.lt.s32.totalorder %s12290_s25, %s12290_s25 }
  0x26   :  { %p12297_p13 = por %p12296_p12, %p12295_p11 }
  0x28   :  { %p12298_p0 = pnand %p12297_p13, %p12291_p10 }
  0x2a   :  { %12301 = shalt.err (!%p12298_p0)
}
  0x2b   :  { %s15849_s4 = sld [smem:[#allocation55_spill]]  ;;  %s12310_s9 = scalar_lea.vmem %s71_s26, 8192 }
  0x2c   :  { %p12311_p1 = scmp.ne.s32.totalorder %s71_s26, %s12310_s9  ;;  %p12315_p2 = scmp.lt.s32.totalorder %s71_s26, %s71_s26 }
  0x2d   :  { %p12316_p3 = scmp.lt.s32.totalorder %s12310_s9, %s12310_s9 }
  0x2f   :  { %p12317_p4 = por %p12316_p3, %p12315_p2 }
  0x31   :  { %48 = dma.hbm_to_vmem [thread:$0]  %s15849_s4, 8192, %s43_s24, [#allocation4], %s12394_s28, %s12394_s28, %s12395_s29  }
  0x32   :  { %p12318_p5 = pnand %p12317_p4, %p12311_p1 }
  0x34   :  { %12321 = shalt.err (!%p12318_p5)
}
  0x35   :  { %76 = dma.hbm_to_vmem [thread:$0]  %s15755_s7, 8192, %s71_s26, [#allocation7], %s12394_s28, %s12394_s28, %s12395_s29  }
  0x36   :  { %s12398_s5 = smov [#allocation11]   ;;  %s12399_s23 = smov [#allocation12]  }
  0x37   :  { %s98_s22 = sshll.u32 %s12398_s5, 4  ;;  %s112_s1 = sshll.u32 %s12399_s23, 4  ;;  %s99_s22 = int_to_ptr.vmem [resolvable:$true] %s98_s22  ;;  %s113_s1 = int_to_ptr.vmem [resolvable:$true] %s112_s1 }
  0x38   :  { %s12330_s24 = scalar_lea.vmem %s99_s22, 8192  ;;  %p12335_p7 = scmp.lt.s32.totalorder %s99_s22, %s99_s22 }
  0x39   :  { %p12331_p6 = scmp.ne.s32.totalorder %s99_s22, %s12330_s24  ;;  %p12336_p8 = scmp.lt.s32.totalorder %s12330_s24, %s12330_s24 }
  0x3b   :  { %p12337_p9 = por %p12336_p8, %p12335_p7 }
  0x3d   :  { %p12338_p10 = pnand %p12337_p9, %p12331_p6 }
  0x3f   :  { %12341 = shalt.err (!%p12338_p10)
}
  0x40   :  { %104 = dma.hbm_to_vmem [thread:$0]  %s15759_s11, 8192, %s99_s22, [#allocation10], %s12394_s28, %s12394_s28, %s12395_s29  }
  0x41   :  { %s12350_s7 = scalar_lea.vmem %s113_s1, 8192  ;;  %p12355_p12 = scmp.lt.s32.totalorder %s113_s1, %s113_s1 }
  0x42   :  { %p12351_p11 = scmp.ne.s32.totalorder %s113_s1, %s12350_s7  ;;  %p12356_p13 = scmp.lt.s32.totalorder %s12350_s7, %s12350_s7 }
  0x44   :  { %p12357_p0 = por %p12356_p13, %p12355_p12 }
  0x46   :  { %p12358_p1 = pnand %p12357_p0, %p12351_p11 }
  0x48   :  { %12361 = shalt.err (!%p12358_p1)
}
  0x49   :  { %118 = dma.hbm_to_vmem [thread:$0]  %s15761_s13, 8192, %s113_s1, [#allocation13], %s12394_s28, %s12394_s28, %s12395_s29  }
  0x4a   :  { %12382 = dma.done.wait [#allocation4], 8192  }
  0x4b   :  { %12383 = vsyncadd [#allocation4], 4294959104 }
  0x4c   :  { %12384 = dma.done.wait [#allocation7], 16384  }
  0x4d   :  { %12385 = vsyncadd [#allocation7], 4294950912 }
  0x4e   :  { %12386 = dma.done.wait [#allocation10], 16384  }
  0x4f   :  { %12387 = vsyncadd [#allocation10], 4294950912 }
  0x50   :  { %12388 = dma.done.wait [#allocation13], 8192  }
  0x51   :  { %12389 = vsyncadd [#allocation13], 4294959104  ;;  %v12400_v0 = vmov 0   ;;  %s15850_s4 = sld [smem:[#allocation52_spill]]  ;;  %v12605_v19 = vld [vmem:[#allocation3 + $0x78] sm:$0xff]  ;;  %v913_v21 = vld [vmem:[#allocation6 + $0x70] sm:$0xff]  ;;  %v15776_v34 = vlaneseq }
  0x52   :  { %11784 = vset.pattern.permute.xlu1 %v12400_v0  ;;  %11783 = vset.pattern.permute.xlu0 %v12400_v0  ;;  %s15851_s23 = sld [smem:[#allocation53_spill]]  ;;  %v914_v20 = vld [vmem:[#allocation6 + $0x78] sm:$0xff]  ;;  %v912_v22 = vld [vmem:[#allocation6 + $0x68] sm:$0xff]  ;;  %v911_v23 = vld [vmem:[#allocation6 + $0x60] sm:$0xff]  ;;  %vm537_vm0 = vcmask 130048   ;;  %v15774_v38 = vmov 0.0  }
  0x53   :  { %9922 = vmatprep.subr.mxu0 %v914_v20  ;;  %v910_v24 = vld [vmem:[#allocation6 + $0x58] sm:$0xff]  ;;  %v909_v25 = vld [vmem:[#allocation6 + $0x50] sm:$0xff]  ;;  %v908_v26 = vld [vmem:[#allocation6 + $0x48] sm:$0xff]  ;;  %v12609_v35 = vand.u32 127, %v15776_v34  ;;  %s15869_s9 = sld [smem:[#allocation56_spill]] }
  0x54   :  { %9923 = vmatpush3.msra.mxu0 %v914_v20  ;;  %v907_v27 = vld [vmem:[#allocation6 + $0x40] sm:$0xff]  ;;  %v906_v28 = vld [vmem:[#allocation6 + $0x38] sm:$0xff]  ;;  %v905_v29 = vld [vmem:[#allocation6 + $0x30] sm:$0xff]  ;;  %s15905_s30 = sld [smem:[#allocation54_spill]] }
  0x55   :  { %9924 = vmatprep.subr.mxu0 %v913_v21  ;;  %v904_v30 = vld [vmem:[#allocation6 + $0x28] sm:$0xff]  ;;  %v903_v31 = vld [vmem:[#allocation6 + $0x20] sm:$0xff]  ;;  %v902_v32 = vld [vmem:[#allocation6 + $0x18] sm:$0xff] }
  0x56   :  { %9925 = vmatpush3.msra.mxu0 %v913_v21  ;;  %v901_v33 = vld [vmem:[#allocation6 + $0x10] sm:$0xff]  ;;  %v744_v47 = vld [vmem:[#allocation3 + $0x68] sm:$0xff]  ;;  %v743_v50 = vld [vmem:[#allocation3 + $0x60] sm:$0xff] }
  0x57   :  { %v156_v1 = vld [vmem:[%s15850_s4 + $0x10] sm:$0xff]  ;;  %v154_v2 = vld [vmem:[%s15850_s4] sm:$0xff]  ;;  %v157_v3 = vld [vmem:[%s15850_s4 + $0x18] sm:$0xff]  ;;  %9926 = vmatprep.subr.mxu0 %v912_v22 }
  0x58   :  { %179 = vperm.xlu1 %11784, %v156_v1   ;;  %173 = vperm.xlu0 %11783, %v154_v2   ;;  %v155_v4 = vld [vmem:[%s15850_s4 + $0x8] sm:$0xff]  ;;  %v151_v6 = vld [vmem:[%s15851_s23] sm:$0xff]  ;;  %v161_v9 = vld [vmem:[%s15850_s4 + $0x38] sm:$0xff] }
  0x59   :  { %v152_v5 = vld [vmem:[%s15851_s23 + $0x8] sm:$0xff]  ;;  %v158_v8 = vld [vmem:[%s15850_s4 + $0x20] sm:$0xff]  ;;  %v160_v10 = vld [vmem:[%s15850_s4 + $0x30] sm:$0xff]  ;;  %9927 = vmatpush3.msra.mxu0 %v912_v22 }
  0x5a   :  { %v159_v7 = vld [vmem:[%s15850_s4 + $0x28] sm:$0xff]  ;;  %9838 = vmatprep.subr.mxu1 %v152_v5  ;;  %v162_v12 = vld [vmem:[%s15850_s4 + $0x40] sm:$0xff]  ;;  %v165_v13 = vld [vmem:[%s15850_s4 + $0x58] sm:$0xff]  ;;  %9928 = vmatprep.subr.mxu0 %v911_v23 }
  0x5b   :  { %9839 = vmatpush3.msra.mxu1 %v152_v5  ;;  %v163_v11 = vld [vmem:[%s15850_s4 + $0x48] sm:$0xff]  ;;  %v164_v14 = vld [vmem:[%s15850_s4 + $0x50] sm:$0xff]  ;;  %v166_v16 = vld [vmem:[%s15850_s4 + $0x60] sm:$0xff]  ;;  %9929 = vmatpush3.msra.mxu0 %v911_v23 }
  0x5c   :  { %182 = vperm.xlu1 %11784, %v157_v3   ;;  %176 = vperm.xlu0 %11783, %v155_v4   ;;  %v167_v15 = vld [vmem:[%s15850_s4 + $0x68] sm:$0xff]  ;;  %v169_v17 = vld [vmem:[%s15850_s4 + $0x78] sm:$0xff]  ;;  %v168_v18 = vld [vmem:[%s15850_s4 + $0x70] sm:$0xff] }
  0x5d   :  { %9840 = vmatprep.subr.mxu1 %v151_v6  ;;  %9930 = vmatprep.subr.mxu0 %v910_v24  ;;  %v745_v44 = vld [vmem:[#allocation3 + $0x70] sm:$0xff]  ;;  %v742_v53 = vld [vmem:[#allocation3 + $0x58] sm:$0xff]  ;;  %v740_v59 = vld [vmem:[#allocation3 + $0x48] sm:$0xff] }
  0x5e   :  { %9841 = vmatpush3.msra.mxu1 %v151_v6  ;;  %9931 = vmatpush3.msra.mxu0 %v910_v24  ;;  %v741_v56 = vld [vmem:[#allocation3 + $0x50] sm:$0xff]  ;;  %v739_v62 = vld [vmem:[#allocation3 + $0x40] sm:$0xff]  ;;  %v738_v1 = vld [vmem:[#allocation3 + $0x38] sm:$0xff] }
  0x5f   :  { %9866 = vmatprep.subr.mxu1 %v12605_v19  ;;  %9932 = vmatprep.subr.mxu0 %v909_v25  ;;  %v737_v4 = vld [vmem:[#allocation3 + $0x30] sm:$0xff]  ;;  %v731_v20 = vld [vmem:[#allocation3] sm:$0xff]  ;;  %v1082_v22 = vld [vmem:[#allocation8 + $0x78] sm:$0xff] }
  0x60   :  { %188 = vperm.xlu1 %11784, %v159_v7   ;;  %185 = vperm.xlu0 %11783, %v158_v8   ;;  %v736_v7 = vld [vmem:[#allocation3 + $0x28] sm:$0xff]  ;;  %v899_v21 = vld [vmem:[#allocation6] sm:$0xff] }
  0x61   :  { %9933 = vmatpush3.msra.mxu0 %v909_v25  ;;  %v1081_v25 = vld [vmem:[#allocation8 + $0x70] sm:$0xff] }
  0x62   :  { %9934 = vmatprep.subr.mxu0 %v908_v26 }
  0x63   :  { %9935 = vmatpush3.msra.mxu0 %v908_v26 }
  0x64   :  { %194 = vperm.xlu1 %11784, %v161_v9   ;;  %191 = vperm.xlu0 %11783, %v160_v10   ;;  %v735_v10 = vld [vmem:[#allocation3 + $0x20] sm:$0xff] }
  0x65   :  { %9936 = vmatprep.subr.mxu0 %v907_v27 }
  0x66   :  { %9937 = vmatpush3.msra.mxu0 %v907_v27 }
  0x67   :  { %9938 = vmatprep.subr.mxu0 %v906_v28 }
  0x68   :  { %200 = vperm.xlu1 %11784, %v163_v11   ;;  %197 = vperm.xlu0 %11783, %v162_v12  }
  0x69   :  { %9939 = vmatpush3.msra.mxu0 %v906_v28  ;;  %v1080_v28 = vld [vmem:[#allocation8 + $0x68] sm:$0xff] }
  0x6a   :  { %9940 = vmatprep.subr.mxu0 %v905_v29 }
  0x6b   :  { %9941 = vmatpush3.msra.mxu0 %v905_v29 }
  0x6c   :  { %206 = vperm.xlu1 %11784, %v165_v13   ;;  %203 = vperm.xlu0 %11783, %v164_v14   ;;  %v734_v13 = vld [vmem:[#allocation3 + $0x18] sm:$0xff] }
  0x6d   :  { %9942 = vmatprep.subr.mxu0 %v904_v30 }
  0x6e   :  { %9943 = vmatpush3.msra.mxu0 %v904_v30  ;;  %v1079_v30 = vld [vmem:[#allocation8 + $0x60] sm:$0xff] }
  0x6f   :  { %9944 = vmatprep.subr.mxu0 %v903_v31 }
  0x70   :  { %212 = vperm.xlu1 %11784, %v167_v15   ;;  %209 = vperm.xlu0 %11783, %v166_v16   ;;  %v733_v16 = vld [vmem:[#allocation3 + $0x10] sm:$0xff] }
  0x71   :  { %9945 = vmatpush3.msra.mxu0 %v903_v31 }
  0x72   :  { %9946 = vmatprep.subr.mxu0 %v902_v32 }
  0x73   :  { %9947 = vmatpush3.msra.mxu0 %v902_v32  ;;  %v1078_v32 = vld [vmem:[#allocation8 + $0x58] sm:$0xff] }
  0x74   :  { %218 = vperm.xlu1 %11784, %v169_v17   ;;  %215 = vperm.xlu0 %11783, %v168_v18   ;;  %v732_v18 = vld [vmem:[#allocation3 + $0x8] sm:$0xff] }
  0x75   :  { %9948 = vmatprep.subr.mxu0 %v901_v33 }
  0x76   :  { %9949 = vmatpush3.msra.mxu0 %v901_v33 }
  0xd3   :  { %v180_v36 = vpop.permute.xlu1 %179  ;;  %v174_v37 = vpop.permute.xlu0 %173 }
  0xd4   :  { %vm220_vm1 = vcmp.eq.s32.totalorder %v12609_v35, %v174_v37  ;;  %vm222_vm2 = vcmp.eq.s32.totalorder %v12609_v35, %v180_v36  ;;  %v1077_v36 = vld [vmem:[#allocation8 + $0x50] sm:$0xff] }
  0xd5   :  { %v12614_v39 = vsel %vm220_vm1, 1.0, %v15774_v38  ;;  %v12619_v42 = vsel %vm222_vm2, 1.0, %v15774_v38 }
  0xd6   :  { %15852 = vst [vmem:[#allocation20_spill] sm:$0xff] %v12614_v39  ;;  %9842 = vmatprep.mubr.msk.f32.mxu1 %vm537_vm0, %v12614_v39  ;;  %15853 = vst [vmem:[#allocation21_spill] sm:$0xff] %v12619_v42 }
  0xd7   :  { %v183_v40 = vpop.permute.xlu1 %182  ;;  %v177_v41 = vpop.permute.xlu0 %176 }
  0xd8   :  { %vm221_vm3 = vcmp.eq.s32.totalorder %v12609_v35, %v177_v41  ;;  %vm223_vm4 = vcmp.eq.s32.totalorder %v12609_v35, %v183_v40  ;;  %v1076_v40 = vld [vmem:[#allocation8 + $0x48] sm:$0xff] }
  0xd9   :  { %v12623_v43 = vsel %vm221_vm3, 1.0, %v15774_v38  ;;  %v12633_v48 = vsel %vm223_vm4, 1.0, %v15774_v38 }
  0xda   :  { %15854 = vst [vmem:[#allocation22_spill] sm:$0xff] %v12623_v43  ;;  %9843 = vmatmul.mubr.msk.f32.vlgmr.msra.gmra.mxu1 %vm537_vm0, %v12623_v43  ;;  %15855 = vst [vmem:[#allocation23_spill] sm:$0xff] %v12633_v48 }
  0xdb   :  { %v189_v45 = vpop.permute.xlu1 %188  ;;  %v186_v46 = vpop.permute.xlu0 %185  ;;  %9845 = vmatprep.mubr.msk.f32.mxu1 %vm537_vm0, %v12619_v42  ;;  %9867 = vmatpush3.msra.mxu1 %v12605_v19  ;;  %v900_v19 = vld [vmem:[#allocation6 + $0x8] sm:$0xff] }
  0xdc   :  { %vm224_vm5 = vcmp.eq.s32.totalorder %v12609_v35, %v186_v46  ;;  %9868 = vmatprep.subr.mxu1 %v745_v44  ;;  %vm225_vm6 = vcmp.eq.s32.totalorder %v12609_v35, %v189_v45  ;;  %9950 = vmatprep.subr.mxu0 %v900_v19  ;;  %v1074_v46 = vld [vmem:[#allocation8 + $0x38] sm:$0xff] }
  0xdd   :  { %v12636_v49 = vsel %vm224_vm5, 1.0, %v15774_v38  ;;  %9869 = vmatpush3.msra.mxu1 %v745_v44  ;;  %v12645_v54 = vsel %vm225_vm6, 1.0, %v15774_v38  ;;  %9951 = vmatpush3.msra.mxu0 %v900_v19  ;;  %v1075_v44 = vld [vmem:[#allocation8 + $0x40] sm:$0xff] }
  0xde   :  { %15856 = vst [vmem:[#allocation24_spill] sm:$0xff] %v12636_v49  ;;  %9846 = vmatmul.mubr.msk.f32.gmra.mxu1 %vm537_vm0, %v12633_v48  ;;  %9870 = vmatprep.subr.mxu1 %v744_v47  ;;  %15857 = vst [vmem:[#allocation25_spill] sm:$0xff] %v12645_v54 }
  0xdf   :  { %v195_v51 = vpop.permute.xlu1 %194  ;;  %v192_v52 = vpop.permute.xlu0 %191  ;;  %9848 = vmatprep.mubr.msk.f32.mxu1 %vm537_vm0, %v12636_v49  ;;  %9871 = vmatpush3.msra.mxu1 %v744_v47 }
  0xe0   :  { %vm226_vm7 = vcmp.eq.s32.totalorder %v12609_v35, %v192_v52  ;;  %9872 = vmatprep.subr.mxu1 %v743_v50  ;;  %vm227_vm8 = vcmp.eq.s32.totalorder %v12609_v35, %v195_v51  ;;  %9952 = vmatprep.subr.mxu0 %v899_v21  ;;  %v1072_v52 = vld [vmem:[#allocation8 + $0x28] sm:$0xff] }
  0xe1   :  { %v12648_v55 = vsel %vm226_vm7, 1.0, %v15774_v38  ;;  %9873 = vmatpush3.msra.mxu1 %v743_v50  ;;  %v12657_v60 = vsel %vm227_vm8, 1.0, %v15774_v38  ;;  %9953 = vmatpush3.msra.mxu0 %v899_v21  ;;  %v1073_v50 = vld [vmem:[#allocation8 + $0x30] sm:$0xff] }
  0xe2   :  { %15858 = vst [vmem:[#allocation26_spill] sm:$0xff] %v12648_v55  ;;  %9849 = vmatmul.mubr.msk.f32.gmra.mxu1 %vm537_vm0, %v12645_v54  ;;  %9874 = vmatprep.subr.mxu1 %v742_v53  ;;  %15859 = vst [vmem:[#allocation27_spill] sm:$0xff] %v12657_v60 }
  0xe3   :  { %v201_v57 = vpop.permute.xlu1 %200  ;;  %v198_v58 = vpop.permute.xlu0 %197  ;;  %9851 = vmatprep.mubr.msk.f32.mxu1 %vm537_vm0, %v12648_v55  ;;  %9875 = vmatpush3.msra.mxu1 %v742_v53 }
  0xe4   :  { %vm228_vm9 = vcmp.eq.s32.totalorder %v12609_v35, %v198_v58  ;;  %9876 = vmatprep.subr.mxu1 %v741_v56  ;;  %vm229_vm10 = vcmp.eq.s32.totalorder %v12609_v35, %v201_v57  ;;  %v1070_v58 = vld [vmem:[#allocation8 + $0x18] sm:$0xff] }
  0xe5   :  { %v12660_v61 = vsel %vm228_vm9, 1.0, %v15774_v38  ;;  %9877 = vmatpush3.msra.mxu1 %v741_v56  ;;  %v12669_v2 = vsel %vm229_vm10, 1.0, %v15774_v38  ;;  %v1071_v56 = vld [vmem:[#allocation8 + $0x20] sm:$0xff] }
  0xe6   :  { %15860 = vst [vmem:[#allocation28_spill] sm:$0xff] %v12660_v61  ;;  %9852 = vmatmul.mubr.msk.f32.gmra.mxu1 %vm537_vm0, %v12657_v60  ;;  %9878 = vmatprep.subr.mxu1 %v740_v59  ;;  %15861 = vst [vmem:[#allocation29_spill] sm:$0xff] %v12669_v2 }
  0xe7   :  { %v207_v63 = vpop.permute.xlu1 %206  ;;  %v204_v0 = vpop.permute.xlu0 %203  ;;  %9854 = vmatprep.mubr.msk.f32.mxu1 %vm537_vm0, %v12660_v61  ;;  %9879 = vmatpush3.msra.mxu1 %v740_v59 }
  0xe8   :  { %vm230_vm11 = vcmp.eq.s32.totalorder %v12609_v35, %v204_v0  ;;  %9880 = vmatprep.subr.mxu1 %v739_v62  ;;  %vm231_vm12 = vcmp.eq.s32.totalorder %v12609_v35, %v207_v63  ;;  %v1068_v0 = vld [vmem:[#allocation8 + $0x8] sm:$0xff] }
  0xe9   :  { %v12672_v3 = vsel %vm230_vm11, 1.0, %v15774_v38  ;;  %9881 = vmatpush3.msra.mxu1 %v739_v62  ;;  %v12681_v8 = vsel %vm231_vm12, 1.0, %v15774_v38  ;;  %v1069_v62 = vld [vmem:[#allocation8 + $0x10] sm:$0xff] }
  0xea   :  { %15862 = vst [vmem:[#allocation30_spill] sm:$0xff] %v12672_v3  ;;  %9855 = vmatmul.mubr.msk.f32.gmra.mxu1 %vm537_vm0, %v12669_v2  ;;  %9882 = vmatprep.subr.mxu1 %v738_v1  ;;  %15863 = vst [vmem:[#allocation31_spill] sm:$0xff] %v12681_v8 }
  0xeb   :  { %v213_v5 = vpop.permute.xlu1 %212  ;;  %v210_v6 = vpop.permute.xlu0 %209  ;;  %9857 = vmatprep.mubr.msk.f32.mxu1 %vm537_vm0, %v12672_v3  ;;  %9883 = vmatpush3.msra.mxu1 %v738_v1  ;;  %v1067_v1 = vld [vmem:[#allocation8] sm:$0xff] }
  0xec   :  { %vm232_vm13 = vcmp.eq.s32.totalorder %v12609_v35, %v210_v6  ;;  %9884 = vmatprep.subr.mxu1 %v737_v4  ;;  %vm233_vm14 = vcmp.eq.s32.totalorder %v12609_v35, %v213_v5 }
  0xed   :  { %v12684_v9 = vsel %vm232_vm13, 1.0, %v15774_v38  ;;  %9885 = vmatpush3.msra.mxu1 %v737_v4  ;;  %v12693_v14 = vsel %vm233_vm14, 1.0, %v15774_v38  ;;  %v12791_v4 = vld [vmem:[%s15869_s9] ss:$0 sm:$0xff] }
  0xee   :  { %15864 = vst [vmem:[#allocation32_spill] sm:$0xff] %v12684_v9  ;;  %9858 = vmatmul.mubr.msk.f32.gmra.mxu1 %vm537_vm0, %v12681_v8  ;;  %9886 = vmatprep.subr.mxu1 %v736_v7  ;;  %15865 = vst [vmem:[#allocation33_spill] sm:$0xff] %v12693_v14 }
  0xef   :  { %v219_v11 = vpop.permute.xlu1 %218  ;;  %v216_v12 = vpop.permute.xlu0 %215  ;;  %9860 = vmatprep.mubr.msk.f32.mxu1 %vm537_vm0, %v12684_v9  ;;  %9887 = vmatpush3.msra.mxu1 %v736_v7 }
  0xf0   :  { %vm234_vm15 = vcmp.eq.s32.totalorder %v12609_v35, %v216_v12  ;;  %9888 = vmatprep.subr.mxu1 %v735_v10  ;;  %vm235_vm1 = vcmp.eq.s32.totalorder %v12609_v35, %v219_v11 }
  0xf1   :  { %v12696_v15 = vsel %vm234_vm15, 1.0, %v15774_v38  ;;  %9889 = vmatpush3.msra.mxu1 %v735_v10  ;;  %v12704_v17 = vsel %vm235_vm1, 1.0, %v15774_v38 }
  0xf2   :  { %15866 = vst [vmem:[#allocation34_spill] sm:$0xff] %v12696_v15  ;;  %9861 = vmatmul.mubr.msk.f32.gmra.mxu1 %vm537_vm0, %v12693_v14  ;;  %9890 = vmatprep.subr.mxu1 %v734_v13  ;;  %15867 = vst [vmem:[#allocation35_spill] sm:$0xff] %v12704_v17 }
  0xf3   :  { %9863 = vmatprep.mubr.msk.f32.mxu1 %vm537_vm0, %v12696_v15  ;;  %9891 = vmatpush3.msra.mxu1 %v734_v13 }
  0xf4   :  { %9892 = vmatprep.subr.mxu1 %v733_v16 }
  0xf5   :  { %9893 = vmatpush3.msra.mxu1 %v733_v16 }
  0xf6   :  { %9864 = vmatmul.mubr.msk.f32.gmra.mxu1 %vm537_vm0, %v12704_v17  ;;  %9894 = vmatprep.subr.mxu1 %v732_v18 }
  0xf7   :  { %9895 = vmatpush3.msra.mxu1 %v732_v18 }
  0xf8   :  { %9896 = vmatprep.subr.mxu1 %v731_v20 }
  0xf9   :  { %9897 = vmatpush3.msra.mxu1 %v731_v20 }
  0xfa   :  { %9978 = vmatprep.subr.mxu1 %v1082_v22 }
 0x19a   :  { %v12708_v23 = vpop.f32.mrf.mxu1 }
 0x19c   :  { %v12710_v24 = vpop.f32.mrf.mxu1 }
 0x19d   :  { %9898 = vmatprep.mubr.f32.mxu1 %v12710_v24  ;;  %9954 = vmatprep.mubr.f32.mxu0 %v12710_v24 }
 0x19e   :  { %v12714_v26 = vpop.f32.mrf.mxu1  ;;  %9899 = vmatmul.mubr.f32.vlgmr.msra.gmra.mxu1 %v12708_v23  ;;  %9955 = vmatmul.mubr.f32.vlgmr.msra.gmra.mxu0 %v12708_v23 }
 0x19f   :  { %9979 = vmatpush3.msra.mxu1 %v1082_v22 }
 0x1a0   :  { %v12718_v27 = vpop.f32.mrf.mxu1  ;;  %9980 = vmatprep.subr.mxu1 %v1081_v25 }
 0x1a1   :  { %9901 = vmatprep.mubr.f32.mxu1 %v12718_v27  ;;  %9957 = vmatprep.mubr.f32.mxu0 %v12718_v27 }
 0x1a2   :  { %9981 = vmatpush3.msra.mxu1 %v1081_v25  ;;  %v12722_v29 = vpop.f32.mrf.mxu1  ;;  %9958 = vmatmul.mubr.f32.gmra.mxu0 %v12714_v26 }
 0x1a3   :  { %9902 = vmatmul.mubr.f32.gmra.mxu1 %v12714_v26  ;;  %9982 = vmatprep.subr.mxu1 %v1080_v28 }
 0x1a4   :  { %9983 = vmatpush3.msra.mxu1 %v1080_v28  ;;  %v12726_v31 = vpop.f32.mrf.mxu1 }
 0x1a5   :  { %9984 = vmatprep.subr.mxu1 %v1079_v30  ;;  %9904 = vmatprep.mubr.f32.mxu1 %v12726_v31 }
 0x1a6   :  { %9960 = vmatprep.mubr.f32.mxu0 %v12726_v31  ;;  %9985 = vmatpush3.msra.mxu1 %v1079_v30  ;;  %v12730_v33 = vpop.f32.mrf.mxu1 }
 0x1a7   :  { %9905 = vmatmul.mubr.f32.gmra.mxu1 %v12722_v29  ;;  %9961 = vmatmul.mubr.f32.gmra.mxu0 %v12722_v29 }
 0x1a8   :  { %9986 = vmatprep.subr.mxu1 %v1078_v32  ;;  %v12734_v37 = vpop.f32.mrf.mxu1 }
 0x1a9   :  { %9987 = vmatpush3.msra.mxu1 %v1078_v32  ;;  %9907 = vmatprep.mubr.f32.mxu1 %v12734_v37 }
 0x1aa   :  { %9988 = vmatprep.subr.mxu1 %v1077_v36  ;;  %9963 = vmatprep.mubr.f32.mxu0 %v12734_v37  ;;  %v12738_v41 = vpop.f32.mrf.mxu1 }
 0x1ab   :  { %9989 = vmatpush3.msra.mxu1 %v1077_v36  ;;  %9964 = vmatmul.mubr.f32.gmra.mxu0 %v12730_v33 }
 0x1ac   :  { %9908 = vmatmul.mubr.f32.gmra.mxu1 %v12730_v33  ;;  %9990 = vmatprep.subr.mxu1 %v1076_v40  ;;  %v12742_v45 = vpop.f32.mrf.mxu1 }
 0x1ad   :  { %9991 = vmatpush3.msra.mxu1 %v1076_v40  ;;  %9910 = vmatprep.mubr.f32.mxu1 %v12742_v45 }
 0x1ae   :  { %9992 = vmatprep.subr.mxu1 %v1075_v44  ;;  %9966 = vmatprep.mubr.f32.mxu0 %v12742_v45  ;;  %v12746_v47 = vpop.f32.mrf.mxu1 }
 0x1af   :  { %9993 = vmatpush3.msra.mxu1 %v1075_v44  ;;  %9967 = vmatmul.mubr.f32.gmra.mxu0 %v12738_v41 }
 0x1b0   :  { %9911 = vmatmul.mubr.f32.gmra.mxu1 %v12738_v41  ;;  %9994 = vmatprep.subr.mxu1 %v1074_v46  ;;  %v12750_v51 = vpop.f32.mrf.mxu1 }
 0x1b1   :  { %9995 = vmatpush3.msra.mxu1 %v1074_v46  ;;  %9913 = vmatprep.mubr.f32.mxu1 %v12750_v51 }
 0x1b2   :  { %9996 = vmatprep.subr.mxu1 %v1073_v50  ;;  %9969 = vmatprep.mubr.f32.mxu0 %v12750_v51  ;;  %v12754_v53 = vpop.f32.mrf.mxu1 }
 0x1b3   :  { %9997 = vmatpush3.msra.mxu1 %v1073_v50  ;;  %9970 = vmatmul.mubr.f32.gmra.mxu0 %v12746_v47 }
 0x1b4   :  { %9914 = vmatmul.mubr.f32.gmra.mxu1 %v12746_v47  ;;  %9998 = vmatprep.subr.mxu1 %v1072_v52  ;;  %v12758_v57 = vpop.f32.mrf.mxu1 }
 0x1b5   :  { %9999 = vmatpush3.msra.mxu1 %v1072_v52  ;;  %9916 = vmatprep.mubr.f32.mxu1 %v12758_v57 }
 0x1b6   :  { %10000 = vmatprep.subr.mxu1 %v1071_v56  ;;  %9972 = vmatprep.mubr.f32.mxu0 %v12758_v57  ;;  %v12762_v59 = vpop.f32.mrf.mxu1 }
 0x1b7   :  { %10001 = vmatpush3.msra.mxu1 %v1071_v56  ;;  %9973 = vmatmul.mubr.f32.gmra.mxu0 %v12754_v53 }
 0x1b8   :  { %9917 = vmatmul.mubr.f32.gmra.mxu1 %v12754_v53  ;;  %10002 = vmatprep.subr.mxu1 %v1070_v58  ;;  %v12766_v63 = vpop.f32.mrf.mxu1 }
 0x1b9   :  { %15868 = vst [vmem:[#allocation36_spill] sm:$0xff] %v12766_v63  ;;  %10003 = vmatpush3.msra.mxu1 %v1070_v58  ;;  %9919 = vmatprep.mubr.f32.mxu1 %v12766_v63 }
 0x1ba   :  { %10004 = vmatprep.subr.mxu1 %v1069_v62  ;;  %9975 = vmatprep.mubr.f32.mxu0 %v12766_v63 }
 0x1bb   :  { %10005 = vmatpush3.msra.mxu1 %v1069_v62  ;;  %9976 = vmatmul.mubr.f32.gmra.mxu0 %v12762_v59 }
 0x1bc   :  { %9920 = vmatmul.mubr.f32.gmra.mxu1 %v12762_v59  ;;  %10006 = vmatprep.subr.mxu1 %v1068_v0 }
 0x1bd   :  { %10007 = vmatpush3.msra.mxu1 %v1068_v0  ;;  %10010 = vmatprep.mubr.f32.mxu1 %v12710_v24 }
 0x1be   :  { %10008 = vmatprep.subr.mxu1 %v1067_v1 }
 0x1bf   :  { %10009 = vmatpush3.msra.mxu1 %v1067_v1 }
 0x1c0   :  { %10011 = vmatmul.mubr.f32.vlgmr.msra.gmra.mxu1 %v12708_v23 }
 0x1c1   :  { %10013 = vmatprep.mubr.f32.mxu1 %v12718_v27 }
 0x1c4   :  { %10014 = vmatmul.mubr.f32.gmra.mxu1 %v12714_v26 }
 0x1c5   :  { %10016 = vmatprep.mubr.f32.mxu1 %v12726_v31 }
 0x1c8   :  { %10017 = vmatmul.mubr.f32.gmra.mxu1 %v12722_v29 }
 0x1c9   :  { %10019 = vmatprep.mubr.f32.mxu1 %v12734_v37 }
 0x1cc   :  { %10020 = vmatmul.mubr.f32.gmra.mxu1 %v12730_v33 }
 0x1cd   :  { %10022 = vmatprep.mubr.f32.mxu1 %v12742_v45 }
 0x1d0   :  { %10023 = vmatmul.mubr.f32.gmra.mxu1 %v12738_v41 }
 0x1d1   :  { %10025 = vmatprep.mubr.f32.mxu1 %v12750_v51 }
 0x1d4   :  { %10026 = vmatmul.mubr.f32.gmra.mxu1 %v12746_v47 }
 0x1d5   :  { %10028 = vmatprep.mubr.f32.mxu1 %v12758_v57 }
 0x1d8   :  { %10029 = vmatmul.mubr.f32.gmra.mxu1 %v12754_v53 }
 0x1d9   :  { %10031 = vmatprep.mubr.f32.mxu1 %v12766_v63 }
 0x1dc   :  { %10032 = vmatmul.mubr.f32.gmra.mxu1 %v12762_v59 }
 0x25e   :  { %v9900_v5 = vpop.f32.mrf.mxu1  ;;  %v12793_v6 = vpop.f32.mrf.mxu0 }
 0x25f   :  { %v12796_v7 = vadd.f32 %v9900_v5, %v12791_v4 }
 0x260   :  { %v820_v10 = vpop.f32.mrf.mxu1  ;;  %v12798_v11 = vpop.f32.mrf.mxu0 }
 0x261   :  { %v821_v12 = vadd.f32 %v12791_v4, %v820_v10 }
 0x262   :  { %v12801_v13 = vpop.f32.mrf.mxu0 }
 0x263   :  { %v9903_v16 = vpop.f32.mrf.mxu1  ;;  %10066 = vmatprep.mubr.f32.mxu0 %v821_v12 }
 0x264   :  { %v12804_v18 = vadd.f32 %v9903_v16, %v12791_v4  ;;  %v12806_v19 = vpop.f32.mrf.mxu0 }
 0x265   :  { %v12808_v20 = vpop.f32.mrf.mxu1 }
 0x267   :  { %v9906_v21 = vpop.f32.mrf.mxu1  ;;  %v12810_v22 = vpop.f32.mrf.mxu0 }
 0x268   :  { %v12813_v25 = vadd.f32 %v9906_v21, %v12791_v4 }
 0x269   :  { %v12815_v28 = vpop.f32.mrf.mxu1  ;;  %v12817_v30 = vpop.f32.mrf.mxu0 }
 0x26b   :  { %v9965_v32 = vpop.f32.mrf.mxu0 }
 0x26c   :  { %v9909_v36 = vpop.f32.mrf.mxu1 }
 0x26d   :  { %v12820_v40 = vadd.f32 %v9909_v36, %v12791_v4  ;;  %v12822_v44 = vpop.f32.mrf.mxu0 }
 0x26e   :  { %v12824_v46 = vpop.f32.mrf.mxu1 }
 0x26f   :  { %v9968_v50 = vpop.f32.mrf.mxu0 }
 0x270   :  { %v9912_v52 = vpop.f32.mrf.mxu1 }
 0x271   :  { %v12827_v56 = vadd.f32 %v9912_v52, %v12791_v4  ;;  %v1028_v58 = vpop.f32.mrf.mxu0  ;;  %v12844_v52 = vld [vmem:[%s15754_s6] ss:$0 sm:$0xff] }
 0x272   :  { %v12829_v62 = vpop.f32.mrf.mxu1  ;;  %v1029_v42 = vadd.f32 %v12844_v52, %v1028_v58  ;;  %v1019_v58 = vadd.f32 %v12844_v52, %v12822_v44 }
 0x273   :  { %v9971_v0 = vpop.f32.mrf.mxu0 }
 0x274   :  { %v9915_v1 = vpop.f32.mrf.mxu1 }
 0x275   :  { %v12832_v5 = vadd.f32 %v9915_v1, %v12791_v4  ;;  %v1038_v10 = vpop.f32.mrf.mxu0 }
 0x276   :  { %v12834_v12 = vpop.f32.mrf.mxu1 }
 0x277   :  { %v9974_v16 = vpop.f32.mrf.mxu0 }
 0x278   :  { %v9918_v21 = vpop.f32.mrf.mxu1  ;;  %v1054_v2 = vadd.f32 %v9974_v16, %v12844_v52 }
 0x279   :  { %v12837_v36 = vadd.f32 %v9918_v21, %v12791_v4  ;;  %v1048_v38 = vpop.f32.mrf.mxu0 }
 0x27a   :  { %v12839_v34 = vpop.f32.mrf.mxu1 }
 0x27b   :  { %v9977_v17 = vpop.f32.mrf.mxu0 }
 0x27c   :  { %v9921_v15 = vpop.f32.mrf.mxu1  ;;  %v1064_v1 = vadd.f32 %v9977_v17, %v12844_v52 }
 0x27d   :  { %v12848_v14 = vadd.f32 %v9921_v15, %v12791_v4  ;;  %v1058_v9 = vpop.f32.mrf.mxu0  ;;  %v1049_v15 = vadd.f32 %v12844_v52, %v1048_v38  ;;  %v1034_v38 = vadd.f32 %v9968_v50, %v12844_v52 }
 0x27e   :  { %v12850_v8 = vpop.f32.mrf.mxu1  ;;  %v1059_v21 = vadd.f32 %v12844_v52, %v1058_v9  ;;  %10034 = vmatprep.subr.mxu0 %v1064_v1  ;;  %v1044_v9 = vadd.f32 %v9971_v0, %v12844_v52 }
 0x27f   :  { %10035 = vmatpush3.xpose.msra.mxu0 %v1064_v1 }
 0x280   :  { %v12853_v3 = vpop.f32.mrf.mxu1  ;;  %10036 = vmatprep.subr.mxu0 %v1059_v21 }
 0x282   :  { %v12856_v61 = vpop.f32.mrf.mxu1 }
 0x283   :  { %10037 = vmatpush3.xpose.msra.mxu0 %v1059_v21  ;;  %v1039_v21 = vadd.f32 %v12844_v52, %v1038_v10  ;;  %v12875_v10 = vld [vmem:[%s15756_s8] ss:$0 sm:$0xff] }
 0x284   :  { %v12858_v60 = vpop.f32.mrf.mxu1  ;;  %10038 = vmatprep.subr.mxu0 %v1054_v2 }
 0x286   :  { %v12861_v17 = vpop.f32.mrf.mxu1 }
 0x287   :  { %10039 = vmatpush3.xpose.msra.mxu0 %v1054_v2 }
 0x288   :  { %v12863_v55 = vpop.f32.mrf.mxu1  ;;  %10040 = vmatprep.subr.mxu0 %v1049_v15 }
 0x28a   :  { %v12866_v1 = vpop.f32.mrf.mxu1 }
 0x28b   :  { %10041 = vmatpush3.xpose.msra.mxu0 %v1049_v15  ;;  %v1024_v15 = vadd.f32 %v9965_v32, %v12844_v52  ;;  %v1014_v32 = vadd.f32 %v12810_v22, %v12844_v52 }
 0x28c   :  { %v10021_v16 = vpop.f32.mrf.mxu1  ;;  %10042 = vmatprep.subr.mxu0 %v1044_v9 }
 0x28e   :  { %v1186_v54 = vpop.f32.mrf.mxu1 }
 0x28f   :  { %10043 = vmatpush3.xpose.msra.mxu0 %v1044_v9 }
 0x290   :  { %v10024_v49 = vpop.f32.mrf.mxu1  ;;  %10044 = vmatprep.subr.mxu0 %v1039_v21 }
 0x291   :  { %v1202_v22 = vadd.f32 %v10024_v49, %v12875_v10  ;;  %v1187_v49 = vadd.f32 %v12875_v10, %v1186_v54  ;;  %v1172_v54 = vadd.f32 %v12858_v60, %v12875_v10  ;;  %v1157_v60 = vadd.f32 %v12875_v10, %v12856_v61 }
 0x292   :  { %v1196_v48 = vpop.f32.mrf.mxu1  ;;  %v851_v61 = vadd.f32 %v12791_v4, %v12824_v46 }
 0x293   :  { %10045 = vmatpush3.xpose.msra.mxu0 %v1039_v21 }
 0x294   :  { %v10027_v2 = vpop.f32.mrf.mxu1  ;;  %10046 = vmatprep.subr.mxu0 %v1034_v38 }
 0x295   :  { %v1212_v44 = vadd.f32 %v10027_v2, %v12875_v10  ;;  %v1197_v2 = vadd.f32 %v12875_v10, %v1196_v48  ;;  %v1182_v48 = vadd.f32 %v12863_v55, %v12875_v10  ;;  %v1167_v55 = vadd.f32 %v12875_v10, %v12861_v17 }
 0x296   :  { %v1206_v0 = vpop.f32.mrf.mxu1 }
 0x297   :  { %10047 = vmatpush3.xpose.msra.mxu0 %v1034_v38 }
 0x298   :  { %v10030_v43 = vpop.f32.mrf.mxu1  ;;  %10048 = vmatprep.subr.mxu0 %v1029_v42 }
 0x29a   :  { %v1216_v39 = vpop.f32.mrf.mxu1 }
 0x29b   :  { %10049 = vmatpush3.xpose.msra.mxu0 %v1029_v42  ;;  %v1222_v42 = vadd.f32 %v10030_v43, %v12875_v10  ;;  %v1217_v63 = vadd.f32 %v12875_v10, %v1216_v39  ;;  %v1207_v43 = vadd.f32 %v12875_v10, %v1206_v0  ;;  %v1004_v39 = vadd.f32 %v12801_v13, %v12844_v52 }
 0x29c   :  { %v10033_v50 = vpop.f32.mrf.mxu1  ;;  %10050 = vmatprep.subr.mxu0 %v1024_v15  ;;  %v994_v13 = vadd.f32 %v12793_v6, %v12844_v52  ;;  %v1162_v6 = vadd.f32 %v12853_v3, %v12875_v10  ;;  %v861_v3 = vadd.f32 %v12791_v4, %v12829_v62 }
 0x29d   :  { %v1232_v9 = vadd.f32 %v10033_v50, %v12875_v10 }
 0x29e   :  { %v1226_v21 = vpop.f32.mrf.mxu1 }
 0x29f   :  { %v1227_v38 = vadd.f32 %v12875_v10, %v1226_v21  ;;  %10090 = vmatprep.subr.mxu1 %v1232_v9  ;;  %10051 = vmatpush3.xpose.msra.mxu0 %v1024_v15  ;;  %v1009_v15 = vadd.f32 %v12844_v52, %v12817_v30  ;;  %v999_v30 = vadd.f32 %v12844_v52, %v12806_v19 }
 0x2a0   :  { %10091 = vmatpush3.msra.mxu1 %v1232_v9  ;;  %10052 = vmatprep.subr.mxu0 %v1019_v58  ;;  %v989_v19 = vadd.f32 %v12844_v52, %v12798_v11  ;;  %v831_v11 = vadd.f32 %v12791_v4, %v12808_v20  ;;  %v841_v52 = vadd.f32 %v12791_v4, %v12815_v28 }
 0x2a1   :  { %10092 = vmatprep.subr.mxu1 %v1227_v38  ;;  %v891_v20 = vadd.f32 %v12791_v4, %v12850_v8 }
 0x2a2   :  { %10093 = vmatpush3.msra.mxu1 %v1227_v38 }
 0x2a3   :  { %10094 = vmatprep.subr.mxu1 %v1222_v42  ;;  %10053 = vmatpush3.xpose.msra.mxu0 %v1019_v58 }
 0x2a4   :  { %10095 = vmatpush3.msra.mxu1 %v1222_v42  ;;  %10054 = vmatprep.subr.mxu0 %v1014_v32 }
 0x2a5   :  { %10096 = vmatprep.subr.mxu1 %v1217_v63 }
 0x2a6   :  { %10097 = vmatpush3.msra.mxu1 %v1217_v63  ;;  %v1192_v63 = vadd.f32 %v10021_v16, %v12875_v10  ;;  %v1177_v16 = vadd.f32 %v12875_v10, %v12866_v1 }
 0x2a7   :  { %10098 = vmatprep.subr.mxu1 %v1212_v44  ;;  %10055 = vmatpush3.xpose.msra.mxu0 %v1014_v32 }
 0x2a8   :  { %10099 = vmatpush3.msra.mxu1 %v1212_v44  ;;  %10056 = vmatprep.subr.mxu0 %v1009_v15 }
 0x2a9   :  { %10100 = vmatprep.subr.mxu1 %v1207_v43 }
 0x2aa   :  { %10101 = vmatpush3.msra.mxu1 %v1207_v43 }
 0x2ab   :  { %10102 = vmatprep.subr.mxu1 %v1202_v22  ;;  %10057 = vmatpush3.xpose.msra.mxu0 %v1009_v15 }
 0x2ac   :  { %10103 = vmatpush3.msra.mxu1 %v1202_v22  ;;  %10058 = vmatprep.subr.mxu0 %v1004_v39 }
 0x2ad   :  { %10104 = vmatprep.subr.mxu1 %v1197_v2 }
 0x2ae   :  { %10105 = vmatpush3.msra.mxu1 %v1197_v2 }
 0x2af   :  { %10106 = vmatprep.subr.mxu1 %v1192_v63  ;;  %10059 = vmatpush3.xpose.msra.mxu0 %v1004_v39 }
 0x2b0   :  { %10107 = vmatpush3.msra.mxu1 %v1192_v63  ;;  %10060 = vmatprep.subr.mxu0 %v999_v30 }
 0x2b1   :  { %10108 = vmatprep.subr.mxu1 %v1187_v49 }
 0x2b2   :  { %10109 = vmatpush3.msra.mxu1 %v1187_v49 }
 0x2b3   :  { %10110 = vmatprep.subr.mxu1 %v1182_v48  ;;  %10061 = vmatpush3.xpose.msra.mxu0 %v999_v30 }
 0x2b4   :  { %10111 = vmatpush3.msra.mxu1 %v1182_v48  ;;  %10062 = vmatprep.subr.mxu0 %v994_v13 }
 0x2b5   :  { %10112 = vmatprep.subr.mxu1 %v1177_v16 }
 0x2b6   :  { %10113 = vmatpush3.msra.mxu1 %v1177_v16 }
 0x2b7   :  { %10114 = vmatprep.subr.mxu1 %v1172_v54  ;;  %10063 = vmatpush3.xpose.msra.mxu0 %v994_v13 }
 0x2b8   :  { %10115 = vmatpush3.msra.mxu1 %v1172_v54  ;;  %10064 = vmatprep.subr.mxu0 %v989_v19 }
 0x2b9   :  { %10116 = vmatprep.subr.mxu1 %v1167_v55 }
 0x2ba   :  { %10117 = vmatpush3.msra.mxu1 %v1167_v55 }
 0x2bb   :  { %10118 = vmatprep.subr.mxu1 %v1162_v6  ;;  %10065 = vmatpush3.xpose.msra.mxu0 %v989_v19 }
 0x2bc   :  { %10119 = vmatpush3.msra.mxu1 %v1162_v6 }
 0x2bd   :  { %10120 = vmatprep.subr.mxu1 %v1157_v60 }
 0x2be   :  { %10121 = vmatpush3.msra.mxu1 %v1157_v60  ;;  %10067 = vmatmul.mubr.f32.vlgmr.msra.gmra.mxu0 %v12796_v7  ;;  %v871_v7 = vadd.f32 %v12791_v4, %v12834_v12 }
 0x2bf   :  { %10069 = vmatprep.mubr.f32.mxu0 %v831_v11 }
 0x2c2   :  { %10070 = vmatmul.mubr.f32.gmra.mxu0 %v12804_v18  ;;  %v881_v18 = vadd.f32 %v12791_v4, %v12839_v34 }
 0x2c3   :  { %10072 = vmatprep.mubr.f32.mxu0 %v841_v52 }
 0x2c6   :  { %10073 = vmatmul.mubr.f32.gmra.mxu0 %v12813_v25  ;;  %v15870_v25 = vlaneseq }
 0x2c7   :  { %10075 = vmatprep.mubr.f32.mxu0 %v851_v61 }
 0x2c8   :  { %v12936_v28 = vshrl.u32 %v15870_v25, 7 }
 0x2ca   :  { %10076 = vmatmul.mubr.f32.gmra.mxu0 %v12820_v40  ;;  %v270_v40 = vadd.s32 8, %v12936_v28  ;;  %v289_v34 = vand.u32 15, %v12936_v28  ;;  %v271_v62 = vadd.s32 16, %v12936_v28  ;;  %v272_v8 = vadd.s32 24, %v12936_v28 }
 0x2cb   :  { %10078 = vmatprep.mubr.f32.mxu0 %v861_v3  ;;  %v273_v4 = vadd.s32 32, %v12936_v28  ;;  %v274_v1 = vadd.s32 40, %v12936_v28  ;;  %v275_v50 = vadd.s32 48, %v12936_v28  ;;  %v276_v32 = vadd.s32 56, %v12936_v28 }
 0x2cc   :  { %v296_v46 = vand.u32 15, %v270_v40  ;;  %v277_v15 = vadd.s32 64, %v12936_v28  ;;  %v278_v30 = vadd.s32 72, %v12936_v28  ;;  %v279_v13 = vadd.s32 80, %v12936_v28 }
 0x2cd   :  { %v317_v10 = vand.u32 15, %v273_v4  ;;  %v324_v38 = vand.u32 15, %v274_v1  ;;  %v331_v44 = vand.u32 15, %v275_v50  ;;  %v338_v49 = vand.u32 15, %v276_v32 }
 0x2ce   :  { %10079 = vmatmul.mubr.f32.gmra.mxu0 %v12827_v56  ;;  %v12940_v56 = vand.u32 15, %v12609_v35  ;;  %v310_v35 = vand.u32 15, %v272_v8  ;;  %v345_v48 = vand.u32 15, %v277_v15  ;;  %v352_v60 = vand.u32 15, %v278_v30 }
 0x2cf   :  { %10081 = vmatprep.mubr.f32.mxu0 %v871_v7  ;;  %v280_v52 = vadd.s32 88, %v12936_v28  ;;  %v359_v61 = vand.u32 15, %v279_v13  ;;  %v281_v3 = vadd.s32 96, %v12936_v28 }
 0x2d0   :  { %vm490_vm2 = vcmp.eq.s32.totalorder %v296_v46, %v12940_v56  ;;  %vm489_vm3 = vcmp.eq.s32.totalorder %v289_v34, %v12940_v56  ;;  %vm492_vm5 = vcmp.eq.s32.totalorder %v310_v35, %v12940_v56  ;;  %vm493_vm6 = vcmp.eq.s32.totalorder %v317_v10, %v12940_v56 }
 0x2d1   :  { %vm494_vm7 = vcmp.eq.s32.totalorder %v324_v38, %v12940_v56  ;;  %vm495_vm8 = vcmp.eq.s32.totalorder %v331_v44, %v12940_v56  ;;  %vm496_vm9 = vcmp.eq.s32.totalorder %v338_v49, %v12940_v56  ;;  %vm497_vm10 = vcmp.eq.s32.totalorder %v345_v48, %v12940_v56 }
 0x2d2   :  { %10082 = vmatmul.mubr.f32.gmra.mxu0 %v12832_v5  ;;  %v12402_v5 = vmov -1e+30   ;;  %vm498_vm11 = vcmp.eq.s32.totalorder %v352_v60, %v12940_v56  ;;  %v366_v46 = vand.u32 15, %v280_v52  ;;  %vm499_vm12 = vcmp.eq.s32.totalorder %v359_v61, %v12940_v56 }
 0x2d3   :  { %10084 = vmatprep.mubr.f32.mxu0 %v881_v18  ;;  %v12949_v12 = vsel %vm490_vm2, 0.0, %v12402_v5  ;;  %v12952_v17 = vsel %vm489_vm3, 0.0, %v12402_v5  ;;  %v12976_v39 = vsel %vm492_vm5, 0.0, %v12402_v5  ;;  %v12980_v63 = vsel %vm493_vm6, 0.0, %v12402_v5 }
 0x2d4   :  { %v12993_v55 = vsel %vm494_vm7, 0.0, %v12402_v5  ;;  %v12996_v11 = vsel %vm495_vm8, 0.0, %v12402_v5  ;;  %v13011_v25 = vsel %vm496_vm9, 0.0, %v12402_v5  ;;  %v13015_v34 = vsel %vm497_vm10, 0.0, %v12402_v5 }
 0x2d5   :  { %v373_v8 = vand.u32 15, %v281_v3  ;;  %v13029_v1 = vsel %vm498_vm11, 0.0, %v12402_v5  ;;  %vm500_vm13 = vcmp.eq.s32.totalorder %v366_v46, %v12940_v56  ;;  %v13033_v50 = vsel %vm499_vm12, 0.0, %v12402_v5 }
 0x2d6   :  { %10085 = vmatmul.mubr.f32.gmra.mxu0 %v12837_v36  ;;  %vm12403_vm3 = vmmov 0  }
 0x2d7   :  { %10087 = vmatprep.mubr.f32.mxu0 %v891_v20  ;;  %vm501_vm14 = vcmp.eq.s32.totalorder %v373_v8, %v12940_v56 }
 0x2d8   :  { %v13049_v30 = vsel %vm501_vm14, 0.0, %v12402_v5 }
 0x2da   :  { %10088 = vmatmul.mubr.f32.gmra.mxu0 %v12848_v14  ;;  %v303_v14 = vand.u32 15, %v271_v62  ;;  %v282_v62 = vadd.s32 104, %v12936_v28 }
 0x2dc   :  { %vm491_vm4 = vcmp.eq.s32.totalorder %v303_v14, %v12940_v56  ;;  %v283_v14 = vadd.s32 112, %v12936_v28 }
 0x2dd   :  { %v12966_v42 = vsel %vm491_vm4, 0.0, %v12402_v5 }
 0x2de   :  { %v387_v38 = vand.u32 15, %v283_v14 }
 0x2e0   :  { %vm503_vm1 = vcmp.eq.s32.totalorder %v387_v38, %v12940_v56 }
 0x2e1   :  { %v13065_v60 = vsel %vm503_vm1, 0.0, %v12402_v5 }
 0x37e   :  { %v10068_v36 = vpop.f32.mrf.mxu0 }
 0x37f   :  { %v12956_v0 = vadd.f32 %v10068_v36, %v12949_v12 }
 0x380   :  { %v1317_v9 = vpop.f32.mrf.mxu0 }
 0x381   :  { %1398 = vmax.xlane.f32.xlu1 %v12956_v0  ;;  %v12962_v58 = vadd.f32 %v1317_v9, %v12952_v17  ;;  %v380_v9 = vand.u32 15, %v282_v62 }
 0x382   :  { %v10071_v21 = vpop.f32.mrf.mxu0 }
 0x383   :  { %1396 = vmax.xlane.f32.xlu0 %v12962_v58  ;;  %v12987_v54 = vadd.f32 %v10071_v21, %v12976_v39  ;;  %v284_v21 = vadd.s32 120, %v12936_v28  ;;  %vm502_vm15 = vcmp.eq.s32.totalorder %v380_v9, %v12940_v56 }
 0x384   :  { %v1327_v43 = vpop.f32.mrf.mxu0 }
 0x385   :  { %v12973_v22 = vadd.f32 %v1327_v43, %v12966_v42  ;;  %v13046_v43 = vsel %vm500_vm13, 0.0, %v12402_v5  ;;  %v394_v28 = vand.u32 15, %v284_v21 }
 0x386   :  { %v10074_v2 = vpop.f32.mrf.mxu0 }
 0x387   :  { %1400 = vmax.xlane.f32.xlu0 %v12973_v22  ;;  %v13005_v18 = vadd.f32 %v10074_v2, %v12993_v55  ;;  %vm504_vm2 = vcmp.eq.s32.totalorder %v394_v28, %v12940_v56 }
 0x388   :  { %v1337_v16 = vpop.f32.mrf.mxu0 }
 0x389   :  { %v12990_v19 = vadd.f32 %v1337_v16, %v12980_v63  ;;  %v13062_v16 = vsel %vm502_vm15, 0.0, %v12402_v5 }
 0x38a   :  { %v10077_v6 = vpop.f32.mrf.mxu0 }
 0x38b   :  { %1404 = vmax.xlane.f32.xlu1 %v12990_v19  ;;  %1402 = vmax.xlane.f32.xlu0 %v12987_v54  ;;  %v13023_v36 = vadd.f32 %v10077_v6, %v13011_v25 }
 0x38c   :  { %v1347_v7 = vpop.f32.mrf.mxu0 }
 0x38d   :  { %v13008_v20 = vadd.f32 %v1347_v7, %v12996_v11  ;;  %v13077_v7 = vsel %vm504_vm2, 0.0, %v12402_v5 }
 0x38e   :  { %v10080_v40 = vpop.f32.mrf.mxu0 }
 0x38f   :  { %1408 = vmax.xlane.f32.xlu1 %v13008_v20  ;;  %1406 = vmax.xlane.f32.xlu0 %v13005_v18  ;;  %v13040_v44 = vadd.f32 %v10080_v40, %v13029_v1 }
 0x390   :  { %v1357_v4 = vpop.f32.mrf.mxu0 }
 0x391   :  { %v13026_v35 = vadd.f32 %v1357_v4, %v13015_v34 }
 0x392   :  { %v10083_v10 = vpop.f32.mrf.mxu0 }
 0x393   :  { %1412 = vmax.xlane.f32.xlu1 %v13026_v35  ;;  %1410 = vmax.xlane.f32.xlu0 %v13023_v36  ;;  %v13056_v48 = vadd.f32 %v10083_v10, %v13046_v43 }
 0x394   :  { %v1367_v32 = vpop.f32.mrf.mxu0 }
 0x395   :  { %v13043_v15 = vadd.f32 %v1367_v32, %v13033_v50 }
 0x396   :  { %v10086_v2 = vpop.f32.mrf.mxu0 }
 0x397   :  { %1416 = vmax.xlane.f32.xlu1 %v13043_v15  ;;  %1414 = vmax.xlane.f32.xlu0 %v13040_v44  ;;  %v13071_v61 = vadd.f32 %v10086_v2, %v13062_v16 }
 0x398   :  { %v1377_v49 = vpop.f32.mrf.mxu0 }
 0x399   :  { %v13059_v13 = vadd.f32 %v1377_v49, %v13049_v30 }
 0x39a   :  { %v10089_v6 = vpop.f32.mrf.mxu0 }
 0x39b   :  { %1420 = vmax.xlane.f32.xlu1 %v13059_v13  ;;  %1418 = vmax.xlane.f32.xlu0 %v13056_v48  ;;  %v13082_v56 = vadd.f32 %v10089_v6, %v13077_v7 }
 0x39c   :  { %v1387_v52 = vpop.f32.mrf.mxu0 }
 0x39d   :  { %v13074_v3 = vadd.f32 %v1387_v52, %v13065_v60 }
 0x39f   :  { %1424 = vmax.xlane.f32.xlu1 %v13074_v3  ;;  %1422 = vmax.xlane.f32.xlu0 %v13071_v61 }
 0x3a3   :  { %1426 = vmax.xlane.f32.xlu0 %v13082_v56 }
 0x40a   :  { %v1399_v40 = vpop.xlane.xlu1 %1398 }
 0x40b   :  { %v1429_v46 = vsub.f32 %v12956_v0, %v1399_v40 }
 0x40c   :  { %v1397_v62 = vpop.xlane.xlu0 %1396 }
 0x40d   :  { %v1446_v8 = vmul.f32 1.442695, %v1429_v46  ;;  %v1428_v14 = vsub.f32 %v12962_v58, %v1397_v62 }
 0x40f   :  { %11785 = vpow2.f32 %v1446_v8  ;;  %v1444_v4 = vmul.f32 1.442695, %v1428_v14 }
 0x410   :  { %v1401_v5 = vpop.xlane.xlu0 %1400 }
 0x411   :  { %11787 = vpow2.f32 %v1444_v4  ;;  %v1430_v10 = vsub.f32 %v12973_v22, %v1401_v5 }
 0x413   :  { %v1448_v9 = vmul.f32 1.442695, %v1430_v10 }
 0x414   :  { %v1405_v21 = vpop.xlane.xlu1 %1404  ;;  %v1403_v38 = vpop.xlane.xlu0 %1402 }
 0x415   :  { %11789 = vpow2.f32 %v1448_v9  ;;  %v1432_v32 = vsub.f32 %v12990_v19, %v1405_v21  ;;  %v1431_v2 = vsub.f32 %v12987_v54, %v1403_v38 }
 0x417   :  { %v1452_v28 = vmul.f32 1.442695, %v1432_v32  ;;  %v1450_v0 = vmul.f32 1.442695, %v1431_v2 }
 0x418   :  { %v1409_v49 = vpop.xlane.xlu1 %1408  ;;  %v1407_v6 = vpop.xlane.xlu0 %1406 }
 0x419   :  { %11791 = vpow2.f32 %v1452_v28  ;;  %v1434_v58 = vsub.f32 %v13008_v20, %v1409_v49  ;;  %v1433_v52 = vsub.f32 %v13005_v18, %v1407_v6 }
 0x41a   :  { %11793 = vpow2.f32 %v1450_v0 }
 0x41b   :  { %v1456_v40 = vmul.f32 1.442695, %v1434_v58  ;;  %v1454_v22 = vmul.f32 1.442695, %v1433_v52 }
 0x41c   :  { %v11786_v46 = vpop.eup %11785  ;;  %v1413_v62 = vpop.xlane.xlu1 %1412 }
 0x41d   :  { %v1411_v8 = vpop.xlane.xlu0 %1410  ;;  %11795 = vpow2.f32 %v1456_v40  ;;  %v1436_v19 = vsub.f32 %v13026_v35, %v1413_v62  ;;  %1478 = vadd.xlane.f32.xlu0 %v11786_v46 }
 0x41e   :  { %v1435_v54 = vsub.f32 %v13023_v36, %v1411_v8  ;;  %v11788_v14 = vpop.eup %11787  ;;  %11797 = vpow2.f32 %v1454_v22 }
 0x41f   :  { %v1460_v4 = vmul.f32 1.442695, %v1436_v19  ;;  %1476 = vadd.xlane.f32.xlu1 %v11788_v14  ;;  %10122 = vmatprep.mubr.f32.mxu1 %v11788_v14 }
 0x420   :  { %v1458_v5 = vmul.f32 1.442695, %v1435_v54  ;;  %v1417_v20 = vpop.xlane.xlu1 %1416  ;;  %10123 = vmatmul.mubr.f32.vlgmr.msra.gmra.mxu1 %v11786_v46 }
 0x421   :  { %v1415_v18 = vpop.xlane.xlu0 %1414  ;;  %11799 = vpow2.f32 %v1460_v4  ;;  %v1438_v10 = vsub.f32 %v13043_v15, %v1417_v20 }
 0x422   :  { %v1437_v9 = vsub.f32 %v13040_v44, %v1415_v18  ;;  %v11790_v21 = vpop.eup %11789  ;;  %11801 = vpow2.f32 %v1458_v5 }
 0x423   :  { %v1464_v35 = vmul.f32 1.442695, %v1438_v10  ;;  %1480 = vadd.xlane.f32.xlu1 %v11790_v21  ;;  %10125 = vmatprep.mubr.f32.mxu1 %v11790_v21  ;;  %v1700_v10 = vld [vmem:[#allocation9 + $0x78] sm:$0xff]  ;;  %v1698_v21 = vld [vmem:[#allocation9 + $0x68] sm:$0xff] }
 0x424   :  { %v1462_v38 = vmul.f32 1.442695, %v1437_v9  ;;  %v1421_v36 = vpop.xlane.xlu1 %1420  ;;  %v1699_v9 = vld [vmem:[#allocation9 + $0x70] sm:$0xff]  ;;  %10146 = vmatprep.subr.mxu1 %v1700_v10 }
 0x425   :  { %v1419_v32 = vpop.xlane.xlu0 %1418  ;;  %11803 = vpow2.f32 %v1464_v35  ;;  %v1440_v2 = vsub.f32 %v13059_v13, %v1421_v36  ;;  %10147 = vmatpush3.msra.mxu1 %v1700_v10  ;;  %v1697_v35 = vld [vmem:[#allocation9 + $0x60] sm:$0xff]  ;;  %v1695_v36 = vld [vmem:[#allocation9 + $0x50] sm:$0xff] }
 0x426   :  { %v1439_v28 = vsub.f32 %v13056_v48, %v1419_v32  ;;  %v11792_v0 = vpop.eup %11791  ;;  %11805 = vpow2.f32 %v1462_v38  ;;  %10148 = vmatprep.subr.mxu1 %v1699_v9  ;;  %v1696_v38 = vld [vmem:[#allocation9 + $0x58] sm:$0xff]  ;;  %v1694_v32 = vld [vmem:[#allocation9 + $0x48] sm:$0xff] }
 0x427   :  { %v11794_v49 = vpop.eup %11793  ;;  %v1468_v6 = vmul.f32 1.442695, %v1440_v2  ;;  %1484 = vadd.xlane.f32.xlu1 %v11792_v0  ;;  %10149 = vmatpush3.msra.mxu1 %v1699_v9  ;;  %v1693_v2 = vld [vmem:[#allocation9 + $0x40] sm:$0xff] }
 0x428   :  { %v1466_v15 = vmul.f32 1.442695, %v1439_v28  ;;  %1482 = vadd.xlane.f32.xlu0 %v11794_v49  ;;  %10126 = vmatmul.mubr.f32.gmra.mxu1 %v11794_v49  ;;  %v1425_v44 = vpop.xlane.xlu1 %1424  ;;  %v1692_v28 = vld [vmem:[#allocation9 + $0x38] sm:$0xff]  ;;  %v1690_v49 = vld [vmem:[#allocation9 + $0x28] sm:$0xff] }
 0x429   :  { %v1423_v58 = vpop.xlane.xlu0 %1422  ;;  %11807 = vpow2.f32 %v1468_v6  ;;  %v1442_v52 = vsub.f32 %v13074_v3, %v1425_v44  ;;  %10128 = vmatprep.mubr.f32.mxu1 %v11792_v0  ;;  %10150 = vmatprep.subr.mxu1 %v1698_v21  ;;  %v1691_v0 = vld [vmem:[#allocation9 + $0x30] sm:$0xff]  ;;  %v1689_v6 = vld [vmem:[#allocation9 + $0x20] sm:$0xff] }
 0x42a   :  { %v1441_v40 = vsub.f32 %v13071_v61, %v1423_v58  ;;  %v11796_v22 = vpop.eup %11795  ;;  %11809 = vpow2.f32 %v1466_v15  ;;  %10151 = vmatpush3.msra.mxu1 %v1698_v21  ;;  %v1688_v15 = vld [vmem:[#allocation9 + $0x18] sm:$0xff]  ;;  %v1687_v44 = vld [vmem:[#allocation9 + $0x10] sm:$0xff]  ;;  %v1686_v58 = vld [vmem:[#allocation9 + $0x8] sm:$0xff] }
 0x42b   :  { %v11798_v13 = vpop.eup %11797  ;;  %v1472_v48 = vmul.f32 1.442695, %v1442_v52  ;;  %1488 = vadd.xlane.f32.xlu1 %v11796_v22  ;;  %10152 = vmatprep.subr.mxu1 %v1697_v35  ;;  %v1685_v52 = vld [vmem:[#allocation9] sm:$0xff] }
 0x42c   :  { %v1470_v46 = vmul.f32 1.442695, %v1441_v40  ;;  %1486 = vadd.xlane.f32.xlu0 %v11798_v13  ;;  %10129 = vmatmul.mubr.f32.gmra.mxu1 %v11798_v13 }
 0x42d   :  { %v1427_v62 = vpop.xlane.xlu0 %1426  ;;  %11811 = vpow2.f32 %v1472_v48  ;;  %10131 = vmatprep.mubr.f32.mxu1 %v11796_v22  ;;  %10153 = vmatpush3.msra.mxu1 %v1697_v35 }
 0x42e   :  { %v1443_v8 = vsub.f32 %v13082_v56, %v1427_v62  ;;  %v11800_v19 = vpop.eup %11799  ;;  %11813 = vpow2.f32 %v1470_v46  ;;  %10154 = vmatprep.subr.mxu1 %v1696_v38 }
 0x42f   :  { %v11802_v54 = vpop.eup %11801  ;;  %1492 = vadd.xlane.f32.xlu1 %v11800_v19  ;;  %10155 = vmatpush3.msra.mxu1 %v1696_v38 }
 0x430   :  { %v1474_v3 = vmul.f32 1.442695, %v1443_v8  ;;  %1490 = vadd.xlane.f32.xlu0 %v11802_v54  ;;  %10132 = vmatmul.mubr.f32.gmra.mxu1 %v11802_v54 }
 0x431   :  { %10134 = vmatprep.mubr.f32.mxu1 %v11800_v19  ;;  %10156 = vmatprep.subr.mxu1 %v1695_v36 }
 0x432   :  { %11815 = vpow2.f32 %v1474_v3  ;;  %v11804_v61 = vpop.eup %11803  ;;  %10157 = vmatpush3.msra.mxu1 %v1695_v36 }
 0x433   :  { %v11806_v14 = vpop.eup %11805  ;;  %1496 = vadd.xlane.f32.xlu1 %v11804_v61  ;;  %10158 = vmatprep.subr.mxu1 %v1694_v32 }
 0x434   :  { %1494 = vadd.xlane.f32.xlu0 %v11806_v14  ;;  %10135 = vmatmul.mubr.f32.gmra.mxu1 %v11806_v14 }
 0x435   :  { %10137 = vmatprep.mubr.f32.mxu1 %v11804_v61  ;;  %10159 = vmatpush3.msra.mxu1 %v1694_v32 }
 0x436   :  { %v11808_v4 = vpop.eup %11807  ;;  %10160 = vmatprep.subr.mxu1 %v1693_v2 }
 0x437   :  { %v11810_v5 = vpop.eup %11809  ;;  %1500 = vadd.xlane.f32.xlu1 %v11808_v4  ;;  %10161 = vmatpush3.msra.mxu1 %v1693_v2 }
 0x438   :  { %1498 = vadd.xlane.f32.xlu0 %v11810_v5  ;;  %10138 = vmatmul.mubr.f32.gmra.mxu1 %v11810_v5 }
 0x439   :  { %10140 = vmatprep.mubr.f32.mxu1 %v11808_v4  ;;  %10162 = vmatprep.subr.mxu1 %v1692_v28 }
 0x43a   :  { %v11812_v56 = vpop.eup %11811  ;;  %10163 = vmatpush3.msra.mxu1 %v1692_v28 }
 0x43b   :  { %v11814_v20 = vpop.eup %11813  ;;  %1504 = vadd.xlane.f32.xlu1 %v11812_v56  ;;  %10164 = vmatprep.subr.mxu1 %v1691_v0 }
 0x43c   :  { %1502 = vadd.xlane.f32.xlu0 %v11814_v20  ;;  %10141 = vmatmul.mubr.f32.gmra.mxu1 %v11814_v20 }
 0x43d   :  { %10143 = vmatprep.mubr.f32.mxu1 %v11812_v56  ;;  %10165 = vmatpush3.msra.mxu1 %v1691_v0 }
 0x43e   :  { %10166 = vmatprep.subr.mxu1 %v1690_v49 }
 0x43f   :  { %v11816_v18 = vpop.eup %11815  ;;  %10167 = vmatpush3.msra.mxu1 %v1690_v49 }
 0x440   :  { %1506 = vadd.xlane.f32.xlu0 %v11816_v18  ;;  %10144 = vmatmul.mubr.f32.gmra.mxu1 %v11816_v18 }
 0x441   :  { %10168 = vmatprep.subr.mxu1 %v1689_v6 }
 0x442   :  { %10169 = vmatpush3.msra.mxu1 %v1689_v6 }
 0x443   :  { %10170 = vmatprep.subr.mxu1 %v1688_v15 }
 0x444   :  { %10171 = vmatpush3.msra.mxu1 %v1688_v15 }
 0x445   :  { %10172 = vmatprep.subr.mxu1 %v1687_v44 }
 0x446   :  { %10173 = vmatpush3.msra.mxu1 %v1687_v44 }
 0x447   :  { %10174 = vmatprep.subr.mxu1 %v1686_v58 }
 0x448   :  { %10175 = vmatpush3.msra.mxu1 %v1686_v58 }
 0x449   :  { %10176 = vmatprep.subr.mxu1 %v1685_v52 }
 0x44a   :  { %10177 = vmatpush3.msra.mxu1 %v1685_v52 }
 0x4a6   :  { %v1479_v22 = vpop.xlane.xlu0 %1478 }
 0x4a8   :  { %v1477_v40 = vpop.xlane.xlu1 %1476 }
 0x4a9   :  { %11817 = vrcp.f32 %v1477_v40 }
 0x4aa   :  { %11819 = vrcp.f32 %v1479_v22 }
 0x4ac   :  { %v1481_v13 = vpop.xlane.xlu1 %1480 }
 0x4ad   :  { %11821 = vrcp.f32 %v1481_v13 }
 0x4b0   :  { %v1485_v46 = vpop.xlane.xlu1 %1484 }
 0x4b1   :  { %v1483_v48 = vpop.xlane.xlu0 %1482 }
 0x4b2   :  { %11823 = vrcp.f32 %v1483_v48 }
 0x4b3   :  { %11825 = vrcp.f32 %v1485_v46 }
 0x4b4   :  { %v1489_v8 = vpop.xlane.xlu1 %1488 }
 0x4b5   :  { %v1487_v62 = vpop.xlane.xlu0 %1486 }
 0x4b6   :  { %v11818_v14 = vpop.eup %11817  ;;  %11827 = vrcp.f32 %v1487_v62 }
 0x4b7   :  { %v11820_v5 = vpop.eup %11819  ;;  %11829 = vrcp.f32 %v1489_v8 }
 0x4b8   :  { %v1493_v54 = vpop.xlane.xlu1 %1492 }
 0x4b9   :  { %v1491_v19 = vpop.xlane.xlu0 %1490 }
 0x4ba   :  { %11831 = vrcp.f32 %v1491_v19  ;;  %v11822_v21 = vpop.eup %11821 }
 0x4bb   :  { %11833 = vrcp.f32 %v1493_v54 }
 0x4bc   :  { %v1497_v18 = vpop.xlane.xlu1 %1496 }
 0x4bd   :  { %v1495_v61 = vpop.xlane.xlu0 %1494 }
 0x4be   :  { %11835 = vrcp.f32 %v1495_v61 }
 0x4bf   :  { %v11824_v38 = vpop.eup %11823  ;;  %11837 = vrcp.f32 %v1497_v18 }
 0x4c0   :  { %v1501_v32 = vpop.xlane.xlu1 %1500  ;;  %v11826_v49 = vpop.eup %11825 }
 0x4c1   :  { %v1499_v10 = vpop.xlane.xlu0 %1498 }
 0x4c2   :  { %11839 = vrcp.f32 %v1499_v10 }
 0x4c3   :  { %v11828_v15 = vpop.eup %11827  ;;  %11841 = vrcp.f32 %v1501_v32 }
 0x4c4   :  { %v11830_v40 = vpop.eup %11829  ;;  %v1505_v22 = vpop.xlane.xlu1 %1504 }
 0x4c5   :  { %v1503_v0 = vpop.xlane.xlu0 %1502 }
 0x4c6   :  { %11843 = vrcp.f32 %v1503_v0 }
 0x4c7   :  { %v11832_v48 = vpop.eup %11831  ;;  %11845 = vrcp.f32 %v1505_v22 }
 0x4c8   :  { %v11834_v54 = vpop.eup %11833 }
 0x4c9   :  { %v1507_v46 = vpop.xlane.xlu0 %1506 }
 0x4ca   :  { %11847 = vrcp.f32 %v1507_v46 }
 0x4cb   :  { %v11836_v61 = vpop.eup %11835 }
 0x4e0   :  { %v10124_v3 = vpop.f32.mrf.mxu1 }
 0x4e1   :  { %v1670_v20 = vmul.f32 %v11820_v5, %v10124_v3 }
 0x4e2   :  { %v1574_v4 = vpop.f32.mrf.mxu1 }
 0x4e3   :  { %v1669_v56 = vmul.f32 %v11818_v14, %v1574_v4 }
 0x4e5   :  { %10178 = vmatprep.mubr.f32.mxu1 %v1669_v56  ;;  %v11838_v56 = vpop.eup %11837 }
 0x4e6   :  { %10179 = vmatmul.mubr.f32.vlgmr.msra.gmra.mxu1 %v1670_v20  ;;  %v11840_v18 = vpop.eup %11839 }
 0x4e8   :  { %v10127_v9 = vpop.f32.mrf.mxu1 }
 0x4e9   :  { %v1672_v2 = vmul.f32 %v11824_v38, %v10127_v9 }
 0x4ea   :  { %v1584_v35 = vpop.f32.mrf.mxu1 }
 0x4eb   :  { %v1671_v36 = vmul.f32 %v11822_v21, %v1584_v35  ;;  %v11842_v35 = vpop.eup %11841 }
 0x4ec   :  { %v10130_v28 = vpop.f32.mrf.mxu1 }
 0x4ed   :  { %10181 = vmatprep.mubr.f32.mxu1 %v1671_v36  ;;  %v1674_v58 = vmul.f32 %v11828_v15, %v10130_v28  ;;  %v11844_v36 = vpop.eup %11843 }
 0x4ee   :  { %v1594_v6 = vpop.f32.mrf.mxu1  ;;  %10182 = vmatmul.mubr.f32.gmra.mxu1 %v1672_v2  ;;  %v11846_v0 = vpop.eup %11845 }
 0x4ef   :  { %v1673_v44 = vmul.f32 %v11826_v49, %v1594_v6  ;;  %v11848_v6 = vpop.eup %11847 }
 0x4f0   :  { %v10133_v52 = vpop.f32.mrf.mxu1 }
 0x4f1   :  { %10184 = vmatprep.mubr.f32.mxu1 %v1673_v44  ;;  %v1676_v8 = vmul.f32 %v11832_v48, %v10133_v52 }
 0x4f2   :  { %v1604_v13 = vpop.f32.mrf.mxu1  ;;  %10185 = vmatmul.mubr.f32.gmra.mxu1 %v1674_v58  ;;  %v8636_v58 = vld [vmem:[%s15758_s10] ss:$0 sm:$0xff] }
 0x4f3   :  { %v1675_v62 = vmul.f32 %v11830_v40, %v1604_v13 }
 0x4f4   :  { %v10136_v19 = vpop.f32.mrf.mxu1 }
 0x4f5   :  { %10187 = vmatprep.mubr.f32.mxu1 %v1675_v62  ;;  %v1678_v4 = vmul.f32 %v11836_v61, %v10136_v19 }
 0x4f6   :  { %v1614_v3 = vpop.f32.mrf.mxu1  ;;  %10188 = vmatmul.mubr.f32.gmra.mxu1 %v1676_v8 }
 0x4f7   :  { %v1677_v14 = vmul.f32 %v11834_v54, %v1614_v3 }
 0x4f8   :  { %v10139_v5 = vpop.f32.mrf.mxu1 }
 0x4f9   :  { %10190 = vmatprep.mubr.f32.mxu1 %v1677_v14  ;;  %v1680_v9 = vmul.f32 %v11840_v18, %v10139_v5 }
 0x4fa   :  { %v1624_v20 = vpop.f32.mrf.mxu1  ;;  %10191 = vmatmul.mubr.f32.gmra.mxu1 %v1678_v4 }
 0x4fb   :  { %v1679_v10 = vmul.f32 %v11838_v56, %v1624_v20 }
 0x4fc   :  { %v10142_v21 = vpop.f32.mrf.mxu1 }
 0x4fd   :  { %10193 = vmatprep.mubr.f32.mxu1 %v1679_v10  ;;  %v1682_v2 = vmul.f32 %v11844_v36, %v10142_v21 }
 0x4fe   :  { %v1634_v38 = vpop.f32.mrf.mxu1  ;;  %10194 = vmatmul.mubr.f32.gmra.mxu1 %v1680_v9 }
 0x4ff   :  { %v1681_v32 = vmul.f32 %v11842_v35, %v1634_v38 }
 0x500   :  { %v10145_v28 = vpop.f32.mrf.mxu1 }
 0x501   :  { %10196 = vmatprep.mubr.f32.mxu1 %v1681_v32  ;;  %v1684_v44 = vmul.f32 %v11848_v6, %v10145_v28 }
 0x502   :  { %v1644_v49 = vpop.f32.mrf.mxu1  ;;  %10197 = vmatmul.mubr.f32.gmra.mxu1 %v1682_v2 }
 0x503   :  { %v1683_v15 = vmul.f32 %v11846_v0, %v1644_v49 }
 0x505   :  { %10199 = vmatprep.mubr.f32.mxu1 %v1683_v15 }
 0x506   :  { %10200 = vmatmul.mubr.f32.gmra.mxu1 %v1684_v44 }
 0x5a6   :  { %v10180_v52 = vpop.f32.mrf.mxu1 }
 0x5a7   :  { %v1780_v40 = vadd.f32 %v10180_v52, %v8636_v58 }
 0x5a8   :  { %v1774_v22 = vpop.f32.mrf.mxu1 }
 0x5a9   :  { %v1775_v13 = vadd.f32 %v8636_v58, %v1774_v22  ;;  %v13105_v48 = vadd.f32 %v12708_v23, %v1780_v40 }
 0x5ab   :  { %1871 = vadd.xlane.f32.xlu0 %v13105_v48  ;;  %v13109_v46 = vadd.f32 %v1775_v13, %v12710_v24  ;;  %v15871_v13 = vld [vmem:[#allocation36_spill] sm:$0xff] }
 0x5ad   :  { %1869 = vadd.xlane.f32.xlu1 %v13109_v46 }
 0x5ae   :  { %v10183_v62 = vpop.f32.mrf.mxu1 }
 0x5af   :  { %v1790_v8 = vadd.f32 %v10183_v62, %v8636_v58 }
 0x5b0   :  { %v1784_v19 = vpop.f32.mrf.mxu1 }
 0x5b1   :  { %v1785_v54 = vadd.f32 %v8636_v58, %v1784_v19  ;;  %v13113_v3 = vadd.f32 %v12714_v26, %v1790_v8  ;;  %v2106_v8 = vld [vmem:[#allocation11 + $0x70] sm:$0xff] }
 0x5b2   :  { %v10186_v61 = vpop.f32.mrf.mxu1 }
 0x5b3   :  { %v1800_v14 = vadd.f32 %v10186_v61, %v8636_v58  ;;  %1875 = vadd.xlane.f32.xlu0 %v13113_v3  ;;  %v13117_v23 = vadd.f32 %v1785_v54, %v12718_v27 }
 0x5b4   :  { %v1794_v4 = vpop.f32.mrf.mxu1 }
 0x5b5   :  { %v1795_v5 = vadd.f32 %v8636_v58, %v1794_v4  ;;  %1873 = vadd.xlane.f32.xlu1 %v13117_v23  ;;  %v13121_v24 = vadd.f32 %v12722_v29, %v1800_v14 }
 0x5b6   :  { %v10189_v56 = vpop.f32.mrf.mxu1 }
 0x5b7   :  { %v1810_v20 = vadd.f32 %v10189_v56, %v8636_v58  ;;  %1879 = vadd.xlane.f32.xlu0 %v13121_v24  ;;  %v13125_v26 = vadd.f32 %v1795_v5, %v12726_v31 }
 0x5b8   :  { %v1804_v18 = vpop.f32.mrf.mxu1 }
 0x5b9   :  { %v1805_v10 = vadd.f32 %v8636_v58, %v1804_v18  ;;  %1877 = vadd.xlane.f32.xlu1 %v13125_v26  ;;  %v13129_v27 = vadd.f32 %v12730_v33, %v1810_v20 }
 0x5ba   :  { %v10192_v9 = vpop.f32.mrf.mxu1 }
 0x5bb   :  { %v1820_v21 = vadd.f32 %v10192_v9, %v8636_v58  ;;  %1883 = vadd.xlane.f32.xlu0 %v13129_v27  ;;  %v13133_v29 = vadd.f32 %v1805_v10, %v12734_v37 }
 0x5bc   :  { %v1814_v35 = vpop.f32.mrf.mxu1 }
 0x5bd   :  { %v1815_v38 = vadd.f32 %v8636_v58, %v1814_v35  ;;  %1881 = vadd.xlane.f32.xlu1 %v13133_v29  ;;  %v13137_v31 = vadd.f32 %v12738_v41, %v1820_v21 }
 0x5be   :  { %v10195_v36 = vpop.f32.mrf.mxu1 }
 0x5bf   :  { %v1830_v32 = vadd.f32 %v10195_v36, %v8636_v58  ;;  %1887 = vadd.xlane.f32.xlu0 %v13137_v31  ;;  %v13141_v33 = vadd.f32 %v1815_v38, %v12742_v45 }
 0x5c0   :  { %v1824_v2 = vpop.f32.mrf.mxu1 }
 0x5c1   :  { %v1825_v28 = vadd.f32 %v8636_v58, %v1824_v2  ;;  %1885 = vadd.xlane.f32.xlu1 %v13141_v33  ;;  %v13145_v37 = vadd.f32 %v12746_v47, %v1830_v32 }
 0x5c2   :  { %v10198_v0 = vpop.f32.mrf.mxu1 }
 0x5c3   :  { %v1840_v49 = vadd.f32 %v10198_v0, %v8636_v58  ;;  %1891 = vadd.xlane.f32.xlu0 %v13145_v37  ;;  %v13149_v41 = vadd.f32 %v1825_v28, %v12750_v51 }
 0x5c4   :  { %v1834_v6 = vpop.f32.mrf.mxu1 }
 0x5c5   :  { %v1835_v15 = vadd.f32 %v8636_v58, %v1834_v6  ;;  %1889 = vadd.xlane.f32.xlu1 %v13149_v41  ;;  %v13153_v45 = vadd.f32 %v12754_v53, %v1840_v49  ;;  %v2107_v53 = vld [vmem:[#allocation11 + $0x78] sm:$0xff]  ;;  %v2104_v6 = vld [vmem:[#allocation11 + $0x60] sm:$0xff] }
 0x5c6   :  { %v10201_v44 = vpop.f32.mrf.mxu1  ;;  %10202 = vmatprep.subr.mxu0 %v2107_v53 }
 0x5c7   :  { %v1850_v52 = vadd.f32 %v10201_v44, %v8636_v58  ;;  %1895 = vadd.xlane.f32.xlu0 %v13153_v45  ;;  %v13157_v47 = vadd.f32 %v1835_v15, %v12758_v57  ;;  %10203 = vmatpush3.msra.mxu0 %v2107_v53  ;;  %v2105_v57 = vld [vmem:[#allocation11 + $0x68] sm:$0xff] }
 0x5c8   :  { %v1844_v40 = vpop.f32.mrf.mxu1  ;;  %10204 = vmatprep.subr.mxu0 %v2106_v8 }
 0x5c9   :  { %v1845_v22 = vadd.f32 %v8636_v58, %v1844_v40  ;;  %1893 = vadd.xlane.f32.xlu1 %v13157_v47  ;;  %v13161_v51 = vadd.f32 %v12762_v59, %v1850_v52  ;;  %10205 = vmatpush3.msra.mxu0 %v2106_v8  ;;  %v2103_v40 = vld [vmem:[#allocation11 + $0x58] sm:$0xff]  ;;  %v2102_v8 = vld [vmem:[#allocation11 + $0x50] sm:$0xff] }
 0x5ca   :  { %10206 = vmatprep.subr.mxu0 %v2105_v57 }
 0x5cb   :  { %1899 = vadd.xlane.f32.xlu0 %v13161_v51  ;;  %v13165_v62 = vadd.f32 %v1845_v22, %v15871_v13  ;;  %10207 = vmatpush3.msra.mxu0 %v2105_v57 }
 0x5cc   :  { %10208 = vmatprep.subr.mxu0 %v2104_v6 }
 0x5cd   :  { %1897 = vadd.xlane.f32.xlu1 %v13165_v62  ;;  %10209 = vmatpush3.msra.mxu0 %v2104_v6 }
 0x5ce   :  { %10210 = vmatprep.subr.mxu0 %v2103_v40 }
 0x5cf   :  { %10211 = vmatpush3.msra.mxu0 %v2103_v40 }
 0x5d0   :  { %10212 = vmatprep.subr.mxu0 %v2102_v8 }
 0x5d1   :  { %10213 = vmatpush3.msra.mxu0 %v2102_v8 }
 0x634   :  { %v1872_v58 = vpop.xlane.xlu0 %1871 }
 0x635   :  { %v1903_v19 = vmul.f32 0.0078125, %v1872_v58 }
 0x636   :  { %v1870_v59 = vpop.xlane.xlu1 %1869 }
 0x637   :  { %v1902_v54 = vmul.f32 0.0078125, %v1870_v59  ;;  %v13169_v61 = vsub.f32 %v13105_v48, %v1903_v19  ;;  %v2101_v59 = vld [vmem:[#allocation11 + $0x48] sm:$0xff] }
 0x638   :  { %10214 = vmatprep.subr.mxu0 %v2101_v59 }
 0x639   :  { %v1935_v14 = vmul.f32 %v13169_v61, %v13169_v61  ;;  %v13174_v4 = vsub.f32 %v13109_v46, %v1902_v54  ;;  %10215 = vmatpush3.msra.mxu0 %v2101_v59  ;;  %v2288_v59 = vld [vmem:[#allocation12 + $0x60] sm:$0xff] }
 0x63b   :  { %1952 = vadd.xlane.f32.xlu0 %v1935_v14  ;;  %v1934_v5 = vmul.f32 %v13174_v4, %v13174_v4 }
 0x63c   :  { %v1876_v56 = vpop.xlane.xlu0 %1875 }
 0x63d   :  { %v1905_v20 = vmul.f32 0.0078125, %v1876_v56  ;;  %1950 = vadd.xlane.f32.xlu1 %v1934_v5  ;;  %v2100_v56 = vld [vmem:[#allocation11 + $0x40] sm:$0xff] }
 0x63e   :  { %v1874_v18 = vpop.xlane.xlu1 %1873  ;;  %10216 = vmatprep.subr.mxu0 %v2100_v56 }
 0x63f   :  { %v1904_v10 = vmul.f32 0.0078125, %v1874_v18  ;;  %v13179_v9 = vsub.f32 %v13113_v3, %v1905_v20  ;;  %10217 = vmatpush3.msra.mxu0 %v2100_v56  ;;  %v2284_v56 = vld [vmem:[#allocation12 + $0x40] sm:$0xff] }
 0x640   :  { %v1880_v48 = vpop.xlane.xlu0 %1879 }
 0x641   :  { %v1907_v21 = vmul.f32 0.0078125, %v1880_v48  ;;  %v1937_v35 = vmul.f32 %v13179_v9, %v13179_v9  ;;  %v13184_v46 = vsub.f32 %v13117_v23, %v1904_v10  ;;  %v2099_v48 = vld [vmem:[#allocation11 + $0x38] sm:$0xff] }
 0x642   :  { %v1878_v38 = vpop.xlane.xlu1 %1877  ;;  %10218 = vmatprep.subr.mxu0 %v2099_v48 }
 0x643   :  { %v1906_v36 = vmul.f32 0.0078125, %v1878_v38  ;;  %1956 = vadd.xlane.f32.xlu0 %v1937_v35  ;;  %v1936_v32 = vmul.f32 %v13184_v46, %v13184_v46  ;;  %v13189_v2 = vsub.f32 %v13121_v24, %v1907_v21  ;;  %10219 = vmatpush3.msra.mxu0 %v2099_v48  ;;  %v2280_v48 = vld [vmem:[#allocation12 + $0x20] sm:$0xff] }
 0x644   :  { %v1884_v28 = vpop.xlane.xlu0 %1883 }
 0x645   :  { %v1909_v3 = vmul.f32 0.0078125, %v1884_v28  ;;  %1954 = vadd.xlane.f32.xlu1 %v1936_v32  ;;  %v1939_v0 = vmul.f32 %v13189_v2, %v13189_v2  ;;  %v13194_v49 = vsub.f32 %v13125_v26, %v1906_v36  ;;  %v2098_v36 = vld [vmem:[#allocation11 + $0x30] sm:$0xff] }
 0x646   :  { %v1882_v23 = vpop.xlane.xlu1 %1881  ;;  %10220 = vmatprep.subr.mxu0 %v2098_v36 }
 0x647   :  { %v1908_v15 = vmul.f32 0.0078125, %v1882_v23  ;;  %1960 = vadd.xlane.f32.xlu0 %v1939_v0  ;;  %v1938_v44 = vmul.f32 %v13194_v49, %v13194_v49  ;;  %v13199_v52 = vsub.f32 %v13129_v27, %v1909_v3  ;;  %10221 = vmatpush3.msra.mxu0 %v2098_v36  ;;  %v2097_v0 = vld [vmem:[#allocation11 + $0x28] sm:$0xff] }
 0x648   :  { %v1888_v24 = vpop.xlane.xlu0 %1887  ;;  %10222 = vmatprep.subr.mxu0 %v2097_v0 }
 0x649   :  { %v1911_v22 = vmul.f32 0.0078125, %v1888_v24  ;;  %1958 = vadd.xlane.f32.xlu1 %v1938_v44  ;;  %v1941_v26 = vmul.f32 %v13199_v52, %v13199_v52  ;;  %v13204_v13 = vsub.f32 %v13133_v29, %v1908_v15  ;;  %10223 = vmatpush3.msra.mxu0 %v2097_v0  ;;  %v2096_v44 = vld [vmem:[#allocation11 + $0x20] sm:$0xff] }
 0x64a   :  { %v1886_v53 = vpop.xlane.xlu1 %1885  ;;  %10224 = vmatprep.subr.mxu0 %v2096_v44 }
 0x64b   :  { %v1910_v57 = vmul.f32 0.0078125, %v1886_v53  ;;  %1964 = vadd.xlane.f32.xlu0 %v1941_v26  ;;  %v1940_v27 = vmul.f32 %v13204_v13, %v13204_v13  ;;  %v13209_v58 = vsub.f32 %v13137_v31, %v1911_v22  ;;  %10225 = vmatpush3.msra.mxu0 %v2096_v44  ;;  %v2095_v22 = vld [vmem:[#allocation11 + $0x18] sm:$0xff]  ;;  %v2094_v53 = vld [vmem:[#allocation11 + $0x10] sm:$0xff] }
 0x64c   :  { %v1892_v19 = vpop.xlane.xlu0 %1891  ;;  %10226 = vmatprep.subr.mxu0 %v2095_v22 }
 0x64d   :  { %v1913_v54 = vmul.f32 0.0078125, %v1892_v19  ;;  %1962 = vadd.xlane.f32.xlu1 %v1940_v27  ;;  %v1943_v29 = vmul.f32 %v13209_v58, %v13209_v58  ;;  %v13214_v14 = vsub.f32 %v13141_v33, %v1910_v57  ;;  %10227 = vmatpush3.msra.mxu0 %v2095_v22  ;;  %v2092_v57 = vld [vmem:[#allocation11] sm:$0xff]  ;;  %v2291_v27 = vld [vmem:[#allocation12 + $0x78] sm:$0xff]  ;;  %v2290_v19 = vld [vmem:[#allocation12 + $0x70] sm:$0xff] }
 0x64e   :  { %v1890_v5 = vpop.xlane.xlu1 %1889  ;;  %10228 = vmatprep.subr.mxu0 %v2094_v53  ;;  %10258 = vmatprep.subr.mxu1 %v2291_v27 }
 0x64f   :  { %v1912_v20 = vmul.f32 0.0078125, %v1890_v5  ;;  %1968 = vadd.xlane.f32.xlu0 %v1943_v29  ;;  %v1942_v31 = vmul.f32 %v13214_v14, %v13214_v14  ;;  %v13219_v18 = vsub.f32 %v13145_v37, %v1913_v54  ;;  %10229 = vmatpush3.msra.mxu0 %v2094_v53  ;;  %v2287_v54 = vld [vmem:[#allocation12 + $0x58] sm:$0xff]  ;;  %v2286_v29 = vld [vmem:[#allocation12 + $0x50] sm:$0xff]  ;;  %v2285_v5 = vld [vmem:[#allocation12 + $0x48] sm:$0xff] }
 0x650   :  { %v1896_v10 = vpop.xlane.xlu0 %1895  ;;  %10259 = vmatpush3.msra.mxu1 %v2291_v27 }
 0x651   :  { %v1915_v21 = vmul.f32 0.0078125, %v1896_v10  ;;  %1966 = vadd.xlane.f32.xlu1 %v1942_v31  ;;  %v1945_v33 = vmul.f32 %v13219_v18, %v13219_v18  ;;  %v13224_v35 = vsub.f32 %v13149_v41, %v1912_v20  ;;  %10260 = vmatprep.subr.mxu1 %v2290_v19  ;;  %v2283_v20 = vld [vmem:[#allocation12 + $0x38] sm:$0xff]  ;;  %v2282_v31 = vld [vmem:[#allocation12 + $0x30] sm:$0xff]  ;;  %v2281_v10 = vld [vmem:[#allocation12 + $0x28] sm:$0xff] }
 0x652   :  { %v1894_v38 = vpop.xlane.xlu1 %1893  ;;  %10261 = vmatpush3.msra.mxu1 %v2290_v19 }
 0x653   :  { %v1914_v32 = vmul.f32 0.0078125, %v1894_v38  ;;  %1972 = vadd.xlane.f32.xlu0 %v1945_v33  ;;  %v1944_v37 = vmul.f32 %v13224_v35, %v13224_v35  ;;  %v13229_v28 = vsub.f32 %v13153_v45, %v1915_v21 }
 0x654   :  { %v1900_v3 = vpop.xlane.xlu0 %1899 }
 0x655   :  { %v1917_v23 = vmul.f32 0.0078125, %v1900_v3  ;;  %1970 = vadd.xlane.f32.xlu1 %v1944_v37  ;;  %v1947_v41 = vmul.f32 %v13229_v28, %v13229_v28  ;;  %v13234_v6 = vsub.f32 %v13157_v47, %v1914_v32 }
 0x656   :  { %v1898_v15 = vpop.xlane.xlu1 %1897 }
 0x657   :  { %v1916_v24 = vmul.f32 0.0078125, %v1898_v15  ;;  %1976 = vadd.xlane.f32.xlu0 %v1947_v41  ;;  %v1946_v45 = vmul.f32 %v13234_v6, %v13234_v6  ;;  %v13239_v40 = vsub.f32 %v13161_v51, %v1917_v23  ;;  %v2093_v51 = vld [vmem:[#allocation11 + $0x8] sm:$0xff] }
 0x658   :  { %10230 = vmatprep.subr.mxu0 %v2093_v51 }
 0x659   :  { %1974 = vadd.xlane.f32.xlu1 %v1946_v45  ;;  %v1949_v47 = vmul.f32 %v13239_v40, %v13239_v40  ;;  %v13244_v26 = vsub.f32 %v13165_v62, %v1916_v24  ;;  %10231 = vmatpush3.msra.mxu0 %v2093_v51  ;;  %v2289_v62 = vld [vmem:[#allocation12 + $0x68] sm:$0xff] }
 0x65a   :  { %10232 = vmatprep.subr.mxu0 %v2092_v57  ;;  %10262 = vmatprep.subr.mxu1 %v2289_v62 }
 0x65b   :  { %1980 = vadd.xlane.f32.xlu0 %v1949_v47  ;;  %v1948_v8 = vmul.f32 %v13244_v26, %v13244_v26  ;;  %10233 = vmatpush3.msra.mxu0 %v2092_v57 }
 0x65c   :  { %10263 = vmatpush3.msra.mxu1 %v2289_v62 }
 0x65d   :  { %1978 = vadd.xlane.f32.xlu1 %v1948_v8  ;;  %10264 = vmatprep.subr.mxu1 %v2288_v59 }
 0x65e   :  { %10265 = vmatpush3.msra.mxu1 %v2288_v59 }
 0x65f   :  { %10266 = vmatprep.subr.mxu1 %v2287_v54 }
 0x660   :  { %10267 = vmatpush3.msra.mxu1 %v2287_v54  ;;  %v13251_v54 = vld [vmem:[%s15763_s15] ss:$0 sm:$0xff] }
 0x661   :  { %10268 = vmatprep.subr.mxu1 %v2286_v29 }
 0x662   :  { %10269 = vmatpush3.msra.mxu1 %v2286_v29 }
 0x663   :  { %10270 = vmatprep.subr.mxu1 %v2285_v5 }
 0x664   :  { %10271 = vmatpush3.msra.mxu1 %v2285_v5 }
 0x665   :  { %10272 = vmatprep.subr.mxu1 %v2284_v56 }
 0x666   :  { %10273 = vmatpush3.msra.mxu1 %v2284_v56 }
 0x667   :  { %10274 = vmatprep.subr.mxu1 %v2283_v20 }
 0x668   :  { %10275 = vmatpush3.msra.mxu1 %v2283_v20 }
 0x669   :  { %10276 = vmatprep.subr.mxu1 %v2282_v31 }
 0x66a   :  { %10277 = vmatpush3.msra.mxu1 %v2282_v31 }
 0x66b   :  { %10278 = vmatprep.subr.mxu1 %v2281_v10 }
 0x66c   :  { %10279 = vmatpush3.msra.mxu1 %v2281_v10 }
 0x66d   :  { %10280 = vmatprep.subr.mxu1 %v2280_v48 }
 0x66e   :  { %10281 = vmatpush3.msra.mxu1 %v2280_v48 }
 0x6c4   :  { %v1953_v21 = vpop.xlane.xlu0 %1952 }
 0x6c5   :  { %v1983_v33 = vmul.f32 0.0078125, %v1953_v21 }
 0x6c6   :  { %v1951_v38 = vpop.xlane.xlu1 %1950 }
 0x6c7   :  { %v1999_v36 = vadd.f32 1e-05, %v1983_v33  ;;  %v1982_v32 = vmul.f32 0.0078125, %v1951_v38 }
 0x6c9   :  { %11849 = vrsqrt.f32 %v1999_v36  ;;  %v1998_v37 = vadd.f32 1e-05, %v1982_v32  ;;  %v13260_v32 = vld [vmem:[%s15764_s16] ss:$0 sm:$0xff] }
 0x6cb   :  { %11851 = vrsqrt.f32 %v1998_v37 }
 0x6cc   :  { %v1957_v3 = vpop.xlane.xlu0 %1956 }
 0x6cd   :  { %v1985_v0 = vmul.f32 0.0078125, %v1957_v3 }
 0x6ce   :  { %v1955_v23 = vpop.xlane.xlu1 %1954 }
 0x6cf   :  { %v2001_v41 = vadd.f32 1e-05, %v1985_v0  ;;  %v1984_v15 = vmul.f32 0.0078125, %v1955_v23 }
 0x6d0   :  { %v1961_v44 = vpop.xlane.xlu0 %1960 }
 0x6d1   :  { %11853 = vrsqrt.f32 %v2001_v41  ;;  %v2000_v24 = vadd.f32 1e-05, %v1984_v15  ;;  %v1987_v45 = vmul.f32 0.0078125, %v1961_v44 }
 0x6d2   :  { %v1959_v22 = vpop.xlane.xlu1 %1958 }
 0x6d3   :  { %11855 = vrsqrt.f32 %v2000_v24  ;;  %v2003_v47 = vadd.f32 1e-05, %v1987_v45  ;;  %v1986_v53 = vmul.f32 0.0078125, %v1959_v22 }
 0x6d4   :  { %v1965_v8 = vpop.xlane.xlu0 %1964 }
 0x6d5   :  { %11857 = vrsqrt.f32 %v2003_v47  ;;  %v2002_v51 = vadd.f32 1e-05, %v1986_v53  ;;  %v1989_v57 = vmul.f32 0.0078125, %v1965_v8 }
 0x6d6   :  { %v11850_v27 = vpop.eup %11849  ;;  %v1963_v19 = vpop.xlane.xlu1 %1962 }
 0x6d7   :  { %11859 = vrsqrt.f32 %v2002_v51  ;;  %v2005_v62 = vadd.f32 1e-05, %v1989_v57  ;;  %v1988_v59 = vmul.f32 0.0078125, %v1963_v19  ;;  %v2031_v29 = vmul.f32 %v11850_v27, %v13169_v61 }
 0x6d8   :  { %v11852_v5 = vpop.eup %11851  ;;  %v1969_v56 = vpop.xlane.xlu0 %1968 }
 0x6d9   :  { %11861 = vrsqrt.f32 %v2005_v62  ;;  %v2004_v20 = vadd.f32 1e-05, %v1988_v59  ;;  %v1991_v31 = vmul.f32 0.0078125, %v1969_v56  ;;  %v2030_v10 = vmul.f32 %v11852_v5, %v13174_v4 }
 0x6da   :  { %v1967_v48 = vpop.xlane.xlu1 %1966  ;;  %v2054_v21 = vmul.f32 %v13251_v54, %v2031_v29 }
 0x6db   :  { %11863 = vrsqrt.f32 %v2004_v20  ;;  %v2007_v33 = vadd.f32 1e-05, %v1991_v31  ;;  %v1990_v38 = vmul.f32 0.0078125, %v1967_v48  ;;  %v2053_v36 = vmul.f32 %v13251_v54, %v2030_v10 }
 0x6dc   :  { %v1973_v61 = vpop.xlane.xlu0 %1972  ;;  %v13266_v41 = vadd.f32 %v13260_v32, %v2054_v21 }
 0x6dd   :  { %11865 = vrsqrt.f32 %v2007_v33  ;;  %v2006_v37 = vadd.f32 1e-05, %v1990_v38  ;;  %v1993_v3 = vmul.f32 0.0078125, %v1973_v61  ;;  %v13263_v0 = vadd.f32 %v13260_v32, %v2053_v36 }
 0x6de   :  { %v11854_v4 = vpop.eup %11853  ;;  %v1971_v23 = vpop.xlane.xlu1 %1970 }
 0x6df   :  { %11867 = vrsqrt.f32 %v2006_v37  ;;  %v2009_v15 = vadd.f32 1e-05, %v1993_v3  ;;  %v1992_v44 = vmul.f32 0.0078125, %v1971_v23  ;;  %10234 = vmatprep.mubr.f32.mxu0 %v13263_v0  ;;  %v2033_v24 = vmul.f32 %v11854_v4, %v13179_v9 }
 0x6e0   :  { %v11856_v45 = vpop.eup %11855  ;;  %v1977_v22 = vpop.xlane.xlu0 %1976  ;;  %10235 = vmatmul.mubr.f32.vlgmr.msra.gmra.mxu0 %v13266_v41 }
 0x6e1   :  { %11869 = vrsqrt.f32 %v2009_v15  ;;  %v2008_v47 = vadd.f32 1e-05, %v1992_v44  ;;  %v1995_v53 = vmul.f32 0.0078125, %v1977_v22  ;;  %v2032_v8 = vmul.f32 %v11856_v45, %v13184_v46 }
 0x6e2   :  { %v11858_v51 = vpop.eup %11857  ;;  %v1975_v57 = vpop.xlane.xlu1 %1974  ;;  %v2056_v27 = vmul.f32 %v13251_v54, %v2033_v24 }
 0x6e3   :  { %11871 = vrsqrt.f32 %v2008_v47  ;;  %v2011_v19 = vadd.f32 1e-05, %v1995_v53  ;;  %v1994_v62 = vmul.f32 0.0078125, %v1975_v57  ;;  %v2055_v59 = vmul.f32 %v13251_v54, %v2032_v8 }
 0x6e4   :  { %v11860_v29 = vpop.eup %11859  ;;  %v1981_v9 = vpop.xlane.xlu0 %1980  ;;  %v2035_v5 = vmul.f32 %v11858_v51, %v13189_v2  ;;  %v13279_v48 = vadd.f32 %v13260_v32, %v2056_v27 }
 0x6e5   :  { %11873 = vrsqrt.f32 %v2011_v19  ;;  %v2010_v56 = vadd.f32 1e-05, %v1994_v62  ;;  %v1997_v20 = vmul.f32 0.0078125, %v1981_v9  ;;  %v13276_v31 = vadd.f32 %v13260_v32, %v2055_v59 }
 0x6e6   :  { %v11862_v46 = vpop.eup %11861  ;;  %v1979_v10 = vpop.xlane.xlu1 %1978  ;;  %v2034_v21 = vmul.f32 %v11860_v29, %v13194_v49  ;;  %v2058_v33 = vmul.f32 %v13251_v54, %v2035_v5 }
 0x6e7   :  { %11875 = vrsqrt.f32 %v2010_v56  ;;  %v2013_v38 = vadd.f32 1e-05, %v1997_v20  ;;  %v1996_v36 = vmul.f32 0.0078125, %v1979_v10  ;;  %10237 = vmatprep.mubr.f32.mxu0 %v13276_v31  ;;  %v2037_v2 = vmul.f32 %v11862_v46, %v13199_v52 }
 0x6e8   :  { %v11864_v61 = vpop.eup %11863  ;;  %10238 = vmatmul.mubr.f32.gmra.mxu0 %v13279_v48  ;;  %v2057_v37 = vmul.f32 %v13251_v54, %v2034_v21  ;;  %v13292_v15 = vadd.f32 %v13260_v32, %v2058_v33 }
 0x6e9   :  { %11877 = vrsqrt.f32 %v2013_v38  ;;  %v2012_v3 = vadd.f32 1e-05, %v1996_v36  ;;  %v2036_v4 = vmul.f32 %v11864_v61, %v13204_v13  ;;  %v2060_v52 = vmul.f32 %v13251_v54, %v2037_v2 }
 0x6ea   :  { %v11866_v23 = vpop.eup %11865  ;;  %v13289_v49 = vadd.f32 %v13260_v32, %v2057_v37  ;;  %v2278_v37 = vld [vmem:[#allocation12 + $0x10] sm:$0xff] }
 0x6eb   :  { %11879 = vrsqrt.f32 %v2012_v3  ;;  %v2059_v44 = vmul.f32 %v13251_v54, %v2036_v4  ;;  %v2039_v24 = vmul.f32 %v11866_v23, %v13209_v58  ;;  %v13305_v53 = vadd.f32 %v13260_v32, %v2060_v52  ;;  %v2277_v3 = vld [vmem:[#allocation12 + $0x8] sm:$0xff]  ;;  %v8639_v4 = vld [vmem:[%s15760_s12] ss:$0 sm:$0xff] }
 0x6ec   :  { %v11868_v45 = vpop.eup %11867  ;;  %10240 = vmatprep.mubr.f32.mxu0 %v13289_v49 }
 0x6ed   :  { %10241 = vmatmul.mubr.f32.gmra.mxu0 %v13292_v15  ;;  %v13300_v13 = vadd.f32 %v13260_v32, %v2059_v44  ;;  %v2038_v22 = vmul.f32 %v11868_v45, %v13214_v14  ;;  %v2062_v58 = vmul.f32 %v13251_v54, %v2039_v24 }
 0x6ee   :  { %v11870_v47 = vpop.eup %11869 }
 0x6ef   :  { %10243 = vmatprep.mubr.f32.mxu0 %v13300_v13  ;;  %v2061_v8 = vmul.f32 %v13251_v54, %v2038_v22  ;;  %v2041_v51 = vmul.f32 %v11870_v47, %v13219_v18  ;;  %v13317_v62 = vadd.f32 %v13260_v32, %v2062_v58 }
 0x6f0   :  { %v11872_v57 = vpop.eup %11871 }
 0x6f1   :  { %10244 = vmatmul.mubr.f32.gmra.mxu0 %v13305_v53  ;;  %v13312_v27 = vadd.f32 %v13260_v32, %v2061_v8  ;;  %v2040_v14 = vmul.f32 %v11872_v57, %v13224_v35  ;;  %v2064_v29 = vmul.f32 %v13251_v54, %v2041_v51 }
 0x6f2   :  { %v11874_v19 = vpop.eup %11873 }
 0x6f3   :  { %10246 = vmatprep.mubr.f32.mxu0 %v13312_v27  ;;  %v2063_v59 = vmul.f32 %v13251_v54, %v2040_v14  ;;  %v2043_v18 = vmul.f32 %v11874_v19, %v13229_v28  ;;  %v13329_v20 = vadd.f32 %v13260_v32, %v2064_v29 }
 0x6f4   :  { %v11876_v9 = vpop.eup %11875 }
 0x6f5   :  { %10247 = vmatmul.mubr.f32.gmra.mxu0 %v13317_v62  ;;  %v13324_v5 = vadd.f32 %v13260_v32, %v2063_v59  ;;  %v2042_v35 = vmul.f32 %v11876_v9, %v13234_v6  ;;  %v2066_v10 = vmul.f32 %v13251_v54, %v2043_v18 }
 0x6f6   :  { %v11878_v56 = vpop.eup %11877 }
 0x6f7   :  { %10249 = vmatprep.mubr.f32.mxu0 %v13324_v5  ;;  %v2065_v46 = vmul.f32 %v13251_v54, %v2042_v35  ;;  %v2045_v28 = vmul.f32 %v11878_v56, %v13239_v40  ;;  %v13341_v38 = vadd.f32 %v13260_v32, %v2066_v10 }
 0x6f8   :  { %v11880_v21 = vpop.eup %11879 }
 0x6f9   :  { %10250 = vmatmul.mubr.f32.gmra.mxu0 %v13329_v20  ;;  %v13336_v33 = vadd.f32 %v13260_v32, %v2065_v46  ;;  %v2044_v6 = vmul.f32 %v11880_v21, %v13244_v26  ;;  %v2068_v2 = vmul.f32 %v13251_v54, %v2045_v28  ;;  %v2279_v26 = vld [vmem:[#allocation12 + $0x18] sm:$0xff] }
 0x6fa   :  { %10282 = vmatprep.subr.mxu1 %v2279_v26 }
 0x6fb   :  { %10252 = vmatprep.mubr.f32.mxu0 %v13336_v33  ;;  %v2067_v36 = vmul.f32 %v13251_v54, %v2044_v6  ;;  %v13351_v61 = vadd.f32 %v13260_v32, %v2068_v2  ;;  %10283 = vmatpush3.msra.mxu1 %v2279_v26  ;;  %v2276_v54 = vld [vmem:[#allocation12] sm:$0xff] }
 0x6fc   :  { %10284 = vmatprep.subr.mxu1 %v2278_v37 }
 0x6fd   :  { %10253 = vmatmul.mubr.f32.gmra.mxu0 %v13341_v38  ;;  %v13347_v40 = vadd.f32 %v13260_v32, %v2067_v36  ;;  %10285 = vmatpush3.msra.mxu1 %v2278_v37 }
 0x6fe   :  { %10286 = vmatprep.subr.mxu1 %v2277_v3 }
 0x6ff   :  { %10255 = vmatprep.mubr.f32.mxu0 %v13347_v40  ;;  %10287 = vmatpush3.msra.mxu1 %v2277_v3 }
 0x700   :  { %10288 = vmatprep.subr.mxu1 %v2276_v54 }
 0x701   :  { %10256 = vmatmul.mubr.f32.gmra.mxu0 %v13351_v61  ;;  %10289 = vmatpush3.msra.mxu1 %v2276_v54 }
 0x7a0   :  { %v10236_v32 = vpop.f32.mrf.mxu0 }
 0x7a1   :  { %v2187_v23 = vadd.f32 %v10236_v32, %v8639_v4 }
 0x7a2   :  { %v2181_v44 = vpop.f32.mrf.mxu0 }
 0x7a3   :  { %v2182_v52 = vadd.f32 %v8639_v4, %v2181_v44  ;;  %v2261_v45 = vmax.f32 %v2187_v23, 0.0 }
 0x7a5   :  { %v2260_v24 = vmax.f32 %v2182_v52, 0.0 }
 0x7a7   :  { %10290 = vmatprep.mubr.f32.mxu1 %v2260_v24 }
 0x7a8   :  { %v10239_v22 = vpop.f32.mrf.mxu0  ;;  %10291 = vmatmul.mubr.f32.vlgmr.msra.gmra.mxu1 %v2261_v45 }
 0x7a9   :  { %v2197_v47 = vadd.f32 %v10239_v22, %v8639_v4 }
 0x7aa   :  { %v2191_v8 = vpop.f32.mrf.mxu0 }
 0x7ab   :  { %v2192_v58 = vadd.f32 %v8639_v4, %v2191_v8  ;;  %v2263_v14 = vmax.f32 %v2197_v47, 0.0 }
 0x7ad   :  { %v2262_v51 = vmax.f32 %v2192_v58, 0.0  ;;  %v10242_v57 = vpop.f32.mrf.mxu0 }
 0x7ae   :  { %v2207_v19 = vadd.f32 %v10242_v57, %v8639_v4 }
 0x7af   :  { %v2201_v59 = vpop.f32.mrf.mxu0  ;;  %10293 = vmatprep.mubr.f32.mxu1 %v2262_v51 }
 0x7b0   :  { %v2202_v29 = vadd.f32 %v8639_v4, %v2201_v59  ;;  %10294 = vmatmul.mubr.f32.gmra.mxu1 %v2263_v14  ;;  %v2265_v35 = vmax.f32 %v2207_v19, 0.0 }
 0x7b1   :  { %v10245_v18 = vpop.f32.mrf.mxu0 }
 0x7b2   :  { %v2264_v9 = vmax.f32 %v2202_v29, 0.0  ;;  %v2217_v56 = vadd.f32 %v10245_v18, %v8639_v4 }
 0x7b3   :  { %v2211_v46 = vpop.f32.mrf.mxu0 }
 0x7b4   :  { %v2212_v10 = vadd.f32 %v8639_v4, %v2211_v46  ;;  %10296 = vmatprep.mubr.f32.mxu1 %v2264_v9  ;;  %v2267_v6 = vmax.f32 %v2217_v56, 0.0  ;;  %v8640_v9 = vld [vmem:[%s15762_s14] ss:$0 sm:$0xff] }
 0x7b5   :  { %v10248_v28 = vpop.f32.mrf.mxu0  ;;  %10297 = vmatmul.mubr.f32.gmra.mxu1 %v2265_v35 }
 0x7b6   :  { %v2266_v21 = vmax.f32 %v2212_v10, 0.0  ;;  %v2227_v36 = vadd.f32 %v10248_v28, %v8639_v4 }
 0x7b7   :  { %v2221_v2 = vpop.f32.mrf.mxu0 }
 0x7b8   :  { %v2222_v26 = vadd.f32 %v8639_v4, %v2221_v2  ;;  %10299 = vmatprep.mubr.f32.mxu1 %v2266_v21  ;;  %v2269_v54 = vmax.f32 %v2227_v36, 0.0 }
 0x7b9   :  { %v10251_v37 = vpop.f32.mrf.mxu0  ;;  %10300 = vmatmul.mubr.f32.gmra.mxu1 %v2267_v6 }
 0x7ba   :  { %v2268_v3 = vmax.f32 %v2222_v26, 0.0  ;;  %v2237_v32 = vadd.f32 %v10251_v37, %v8639_v4 }
 0x7bb   :  { %v2231_v23 = vpop.f32.mrf.mxu0 }
 0x7bc   :  { %v2232_v44 = vadd.f32 %v8639_v4, %v2231_v23  ;;  %10302 = vmatprep.mubr.f32.mxu1 %v2268_v3  ;;  %v2271_v45 = vmax.f32 %v2237_v32, 0.0 }
 0x7bd   :  { %v10254_v52 = vpop.f32.mrf.mxu0  ;;  %10303 = vmatmul.mubr.f32.gmra.mxu1 %v2269_v54 }
 0x7be   :  { %v2270_v24 = vmax.f32 %v2232_v44, 0.0  ;;  %v2247_v22 = vadd.f32 %v10254_v52, %v8639_v4 }
 0x7bf   :  { %v2241_v47 = vpop.f32.mrf.mxu0 }
 0x7c0   :  { %v2242_v8 = vadd.f32 %v8639_v4, %v2241_v47  ;;  %10305 = vmatprep.mubr.f32.mxu1 %v2270_v24  ;;  %v2273_v57 = vmax.f32 %v2247_v22, 0.0 }
 0x7c1   :  { %v10257_v58 = vpop.f32.mrf.mxu0  ;;  %10306 = vmatmul.mubr.f32.gmra.mxu1 %v2271_v45 }
 0x7c2   :  { %v2272_v51 = vmax.f32 %v2242_v8, 0.0  ;;  %v2257_v14 = vadd.f32 %v10257_v58, %v8639_v4 }
 0x7c3   :  { %v2251_v19 = vpop.f32.mrf.mxu0 }
 0x7c4   :  { %v2252_v59 = vadd.f32 %v8639_v4, %v2251_v19  ;;  %10308 = vmatprep.mubr.f32.mxu1 %v2272_v51  ;;  %v2275_v18 = vmax.f32 %v2257_v14, 0.0 }
 0x7c5   :  { %10309 = vmatmul.mubr.f32.gmra.mxu1 %v2273_v57 }
 0x7c6   :  { %v2274_v29 = vmax.f32 %v2252_v59, 0.0 }
 0x7c8   :  { %10311 = vmatprep.mubr.f32.mxu1 %v2274_v29 }
 0x7c9   :  { %10312 = vmatmul.mubr.f32.gmra.mxu1 %v2275_v18 }
 0x868   :  { %v10292_v35 = vpop.f32.mrf.mxu1 }
 0x869   :  { %v2371_v56 = vadd.f32 %v10292_v35, %v8640_v9 }
 0x86a   :  { %v2365_v46 = vpop.f32.mrf.mxu1 }
 0x86b   :  { %v2366_v10 = vadd.f32 %v8640_v9, %v2365_v46  ;;  %v13361_v28 = vadd.f32 %v2371_v56, %v13266_v41 }
 0x86d   :  { %2462 = vadd.xlane.f32.xlu0 %v13361_v28  ;;  %v13365_v4 = vadd.f32 %v2366_v10, %v13263_v0 }
 0x86f   :  { %2460 = vadd.xlane.f32.xlu1 %v13365_v4 }
 0x870   :  { %v10295_v21 = vpop.f32.mrf.mxu1 }
 0x871   :  { %v2381_v6 = vadd.f32 %v10295_v21, %v8640_v9 }
 0x872   :  { %v2375_v36 = vpop.f32.mrf.mxu1 }
 0x873   :  { %v2376_v2 = vadd.f32 %v8640_v9, %v2375_v36  ;;  %v13369_v26 = vadd.f32 %v2381_v6, %v13279_v48  ;;  %v2868_v6 = vld [vmem:[#allocation6 + $0xf8] sm:$0xff]  ;;  %v2697_v36 = vld [vmem:[#allocation3 + $0xf0] sm:$0xff] }
 0x874   :  { %10370 = vmatprep.subr.mxu1 %v2868_v6 }
 0x875   :  { %v10298_v37 = vpop.f32.mrf.mxu1  ;;  %2466 = vadd.xlane.f32.xlu0 %v13369_v26  ;;  %v13373_v41 = vadd.f32 %v2376_v2, %v13276_v31  ;;  %10371 = vmatpush3.msra.mxu1 %v2868_v6  ;;  %v2866_v2 = vld [vmem:[#allocation6 + $0xe8] sm:$0xff]  ;;  %v2864_v6 = vld [vmem:[#allocation6 + $0xd8] sm:$0xff] }
 0x876   :  { %v2391_v3 = vadd.f32 %v10298_v37, %v8640_v9 }
 0x877   :  { %v2385_v54 = vpop.f32.mrf.mxu1  ;;  %2464 = vadd.xlane.f32.xlu1 %v13373_v41 }
 0x878   :  { %v2386_v0 = vadd.f32 %v8640_v9, %v2385_v54  ;;  %v13377_v32 = vadd.f32 %v2391_v3, %v13292_v15 }
 0x879   :  { %v10301_v23 = vpop.f32.mrf.mxu1 }
 0x87a   :  { %v2401_v44 = vadd.f32 %v10301_v23, %v8640_v9  ;;  %2470 = vadd.xlane.f32.xlu0 %v13377_v32  ;;  %v13381_v48 = vadd.f32 %v2386_v0, %v13289_v49 }
 0x87b   :  { %v2395_v52 = vpop.f32.mrf.mxu1 }
 0x87c   :  { %v2396_v24 = vadd.f32 %v8640_v9, %v2395_v52  ;;  %2468 = vadd.xlane.f32.xlu1 %v13381_v48  ;;  %v13385_v31 = vadd.f32 %v2401_v44, %v13305_v53 }
 0x87d   :  { %v10304_v45 = vpop.f32.mrf.mxu1 }
 0x87e   :  { %v2411_v22 = vadd.f32 %v10304_v45, %v8640_v9  ;;  %2474 = vadd.xlane.f32.xlu0 %v13385_v31  ;;  %v13389_v15 = vadd.f32 %v2396_v24, %v13300_v13 }
 0x87f   :  { %v2405_v47 = vpop.f32.mrf.mxu1 }
 0x880   :  { %v2406_v8 = vadd.f32 %v8640_v9, %v2405_v47  ;;  %2472 = vadd.xlane.f32.xlu1 %v13389_v15  ;;  %v13393_v49 = vadd.f32 %v2411_v22, %v13317_v62 }
 0x881   :  { %v10307_v58 = vpop.f32.mrf.mxu1 }
 0x882   :  { %v2421_v51 = vadd.f32 %v10307_v58, %v8640_v9  ;;  %2478 = vadd.xlane.f32.xlu0 %v13393_v49  ;;  %v13397_v53 = vadd.f32 %v2406_v8, %v13312_v27 }
 0x883   :  { %v2415_v57 = vpop.f32.mrf.mxu1 }
 0x884   :  { %v2416_v14 = vadd.f32 %v8640_v9, %v2415_v57  ;;  %2476 = vadd.xlane.f32.xlu1 %v13397_v53  ;;  %v13401_v13 = vadd.f32 %v2421_v51, %v13329_v20 }
 0x885   :  { %v10310_v19 = vpop.f32.mrf.mxu1 }
 0x886   :  { %v2431_v59 = vadd.f32 %v10310_v19, %v8640_v9  ;;  %2482 = vadd.xlane.f32.xlu0 %v13401_v13  ;;  %v13405_v62 = vadd.f32 %v2416_v14, %v13324_v5 }
 0x887   :  { %v2425_v29 = vpop.f32.mrf.mxu1 }
 0x888   :  { %v2426_v18 = vadd.f32 %v8640_v9, %v2425_v29  ;;  %2480 = vadd.xlane.f32.xlu1 %v13405_v62  ;;  %v13409_v27 = vadd.f32 %v2431_v59, %v13341_v38  ;;  %v2698_v38 = vld [vmem:[#allocation3 + $0xf8] sm:$0xff] }
 0x889   :  { %v10313_v35 = vpop.f32.mrf.mxu1  ;;  %10314 = vmatprep.subr.mxu0 %v2698_v38 }
 0x88a   :  { %v2441_v56 = vadd.f32 %v10313_v35, %v8640_v9  ;;  %2486 = vadd.xlane.f32.xlu0 %v13409_v27  ;;  %v13413_v20 = vadd.f32 %v2426_v18, %v13336_v33  ;;  %v2867_v33 = vld [vmem:[#allocation6 + $0xf0] sm:$0xff]  ;;  %10315 = vmatpush3.msra.mxu0 %v2698_v38  ;;  %v2695_v35 = vld [vmem:[#allocation3 + $0xe0] sm:$0xff] }
 0x88b   :  { %v2435_v46 = vpop.f32.mrf.mxu1  ;;  %10316 = vmatprep.subr.mxu0 %v2697_v36  ;;  %10372 = vmatprep.subr.mxu1 %v2867_v33 }
 0x88c   :  { %v2436_v10 = vadd.f32 %v8640_v9, %v2435_v46  ;;  %2484 = vadd.xlane.f32.xlu1 %v13413_v20  ;;  %v13417_v5 = vadd.f32 %v2441_v56, %v13351_v61  ;;  %v2696_v9 = vld [vmem:[#allocation3 + $0xe8] sm:$0xff]  ;;  %10317 = vmatpush3.msra.mxu0 %v2697_v36  ;;  %v2865_v56 = vld [vmem:[#allocation6 + $0xe0] sm:$0xff] }
 0x88d   :  { %10373 = vmatpush3.msra.mxu1 %v2867_v33  ;;  %10318 = vmatprep.subr.mxu0 %v2696_v9 }
 0x88e   :  { %2490 = vadd.xlane.f32.xlu0 %v13417_v5  ;;  %v13421_v21 = vadd.f32 %v2436_v10, %v13347_v40  ;;  %10374 = vmatprep.subr.mxu1 %v2866_v2 }
 0x88f   :  { %10319 = vmatpush3.msra.mxu0 %v2696_v9  ;;  %10375 = vmatpush3.msra.mxu1 %v2866_v2  ;;  %v2693_v2 = vld [vmem:[#allocation3 + $0xd0] sm:$0xff] }
 0x890   :  { %2488 = vadd.xlane.f32.xlu1 %v13421_v21  ;;  %10320 = vmatprep.subr.mxu0 %v2695_v35 }
 0x891   :  { %10376 = vmatprep.subr.mxu1 %v2865_v56  ;;  %10321 = vmatpush3.msra.mxu0 %v2695_v35 }
 0x892   :  { %10377 = vmatpush3.msra.mxu1 %v2865_v56 }
 0x893   :  { %10378 = vmatprep.subr.mxu1 %v2864_v6 }
 0x894   :  { %10379 = vmatpush3.msra.mxu1 %v2864_v6 }
 0x8f6   :  { %v2463_v40 = vpop.xlane.xlu0 %2462 }
 0x8f7   :  { %v2493_v61 = vmul.f32 0.0078125, %v2463_v40  ;;  %v2863_v40 = vld [vmem:[#allocation6 + $0xd0] sm:$0xff] }
 0x8f8   :  { %v2461_v37 = vpop.xlane.xlu1 %2460  ;;  %10380 = vmatprep.subr.mxu1 %v2863_v40 }
 0x8f9   :  { %v13425_v3 = vsub.f32 %v13361_v28, %v2493_v61  ;;  %v2492_v54 = vmul.f32 0.0078125, %v2461_v37  ;;  %10381 = vmatpush3.msra.mxu1 %v2863_v40 }
 0x8fb   :  { %v2525_v0 = vmul.f32 %v13425_v3, %v13425_v3  ;;  %v13430_v23 = vsub.f32 %v13365_v4, %v2492_v54 }
 0x8fd   :  { %2542 = vadd.xlane.f32.xlu0 %v2525_v0  ;;  %v2524_v44 = vmul.f32 %v13430_v23, %v13430_v23  ;;  %v2692_v0 = vld [vmem:[#allocation3 + $0xc8] sm:$0xff] }
 0x8fe   :  { %v2467_v52 = vpop.xlane.xlu0 %2466 }
 0x8ff   :  { %v2495_v24 = vmul.f32 0.0078125, %v2467_v52  ;;  %2540 = vadd.xlane.f32.xlu1 %v2524_v44 }
 0x900   :  { %v2465_v45 = vpop.xlane.xlu1 %2464 }
 0x901   :  { %v13435_v22 = vsub.f32 %v13369_v26, %v2495_v24  ;;  %v2494_v28 = vmul.f32 0.0078125, %v2465_v45 }
 0x903   :  { %v2471_v47 = vpop.xlane.xlu0 %2470  ;;  %v2527_v8 = vmul.f32 %v13435_v22, %v13435_v22  ;;  %v13440_v58 = vsub.f32 %v13373_v41, %v2494_v28 }
 0x904   :  { %v2497_v4 = vmul.f32 0.0078125, %v2471_v47 }
 0x905   :  { %v2469_v51 = vpop.xlane.xlu1 %2468  ;;  %2546 = vadd.xlane.f32.xlu0 %v2527_v8  ;;  %v2526_v57 = vmul.f32 %v13440_v58, %v13440_v58 }
 0x906   :  { %v13445_v14 = vsub.f32 %v13377_v32, %v2497_v4  ;;  %v2496_v19 = vmul.f32 0.0078125, %v2469_v51  ;;  %v2861_v4 = vld [vmem:[#allocation6 + $0xc0] sm:$0xff] }
 0x907   :  { %v2475_v26 = vpop.xlane.xlu0 %2474  ;;  %2544 = vadd.xlane.f32.xlu1 %v2526_v57 }
 0x908   :  { %v13448_v59 = vsub.f32 %v13381_v48, %v2496_v19  ;;  %v2499_v29 = vmul.f32 0.0078125, %v2475_v26  ;;  %v2529_v41 = vmul.f32 %v13445_v14, %v13445_v14  ;;  %v2694_v48 = vld [vmem:[#allocation3 + $0xd8] sm:$0xff] }
 0x909   :  { %v2473_v18 = vpop.xlane.xlu1 %2472  ;;  %10322 = vmatprep.subr.mxu0 %v2694_v48  ;;  %v2690_v26 = vld [vmem:[#allocation3 + $0xb8] sm:$0xff] }
 0x90a   :  { %v13453_v46 = vsub.f32 %v13385_v31, %v2499_v29  ;;  %v2498_v10 = vmul.f32 0.0078125, %v2473_v18  ;;  %2550 = vadd.xlane.f32.xlu0 %v2529_v41  ;;  %v2528_v32 = vmul.f32 %v13448_v59, %v13448_v59  ;;  %10323 = vmatpush3.msra.mxu0 %v2694_v48  ;;  %v2860_v41 = vld [vmem:[#allocation6 + $0xb8] sm:$0xff] }
 0x90b   :  { %v2479_v38 = vpop.xlane.xlu0 %2478  ;;  %10324 = vmatprep.subr.mxu0 %v2693_v2 }
 0x90c   :  { %v13458_v36 = vsub.f32 %v13389_v15, %v2498_v10  ;;  %v2501_v33 = vmul.f32 0.0078125, %v2479_v38  ;;  %2548 = vadd.xlane.f32.xlu1 %v2528_v32  ;;  %v2531_v31 = vmul.f32 %v13453_v46, %v13453_v46  ;;  %10325 = vmatpush3.msra.mxu0 %v2693_v2  ;;  %v2689_v10 = vld [vmem:[#allocation3 + $0xb0] sm:$0xff]  ;;  %v2858_v2 = vld [vmem:[#allocation6 + $0xa8] sm:$0xff] }
 0x90d   :  { %v2477_v9 = vpop.xlane.xlu1 %2476  ;;  %10326 = vmatprep.subr.mxu0 %v2692_v0 }
 0x90e   :  { %v13463_v61 = vsub.f32 %v13393_v49, %v2501_v33  ;;  %v2500_v37 = vmul.f32 0.0078125, %v2477_v9  ;;  %2554 = vadd.xlane.f32.xlu0 %v2531_v31  ;;  %v2530_v15 = vmul.f32 %v13458_v36, %v13458_v36  ;;  %v2862_v49 = vld [vmem:[#allocation6 + $0xc8] sm:$0xff]  ;;  %10327 = vmatpush3.msra.mxu0 %v2692_v0  ;;  %v2686_v0 = vld [vmem:[#allocation3 + $0x98] sm:$0xff] }
 0x90f   :  { %v2483_v54 = vpop.xlane.xlu0 %2482  ;;  %10382 = vmatprep.subr.mxu1 %v2862_v49 }
 0x910   :  { %v13468_v44 = vsub.f32 %v13397_v53, %v2500_v37  ;;  %v2503_v52 = vmul.f32 0.0078125, %v2483_v54  ;;  %2552 = vadd.xlane.f32.xlu1 %v2530_v15  ;;  %v2533_v24 = vmul.f32 %v13463_v61, %v13463_v61  ;;  %v2691_v53 = vld [vmem:[#allocation3 + $0xc0] sm:$0xff]  ;;  %10383 = vmatpush3.msra.mxu1 %v2862_v49  ;;  %v2684_v49 = vld [vmem:[#allocation3 + $0x88] sm:$0xff] }
 0x911   :  { %v2481_v45 = vpop.xlane.xlu1 %2480  ;;  %10328 = vmatprep.subr.mxu0 %v2691_v53  ;;  %10384 = vmatprep.subr.mxu1 %v2861_v4  ;;  %v2857_v15 = vld [vmem:[#allocation6 + $0xa0] sm:$0xff] }
 0x912   :  { %v13473_v28 = vsub.f32 %v13401_v13, %v2503_v52  ;;  %v2502_v47 = vmul.f32 0.0078125, %v2481_v45  ;;  %2558 = vadd.xlane.f32.xlu0 %v2533_v24  ;;  %v2532_v8 = vmul.f32 %v13468_v44, %v13468_v44  ;;  %10329 = vmatpush3.msra.mxu0 %v2691_v53  ;;  %v2856_v52 = vld [vmem:[#allocation6 + $0x98] sm:$0xff]  ;;  %v2855_v24 = vld [vmem:[#allocation6 + $0x90] sm:$0xff]  ;;  %v2854_v45 = vld [vmem:[#allocation6 + $0x88] sm:$0xff] }
 0x913   :  { %v2487_v51 = vpop.xlane.xlu0 %2486  ;;  %10385 = vmatpush3.msra.mxu1 %v2861_v4  ;;  %10330 = vmatprep.subr.mxu0 %v2690_v26  ;;  %v13504_v53 = vld [vmem:[#allocation8 + $0xf8] sm:$0xff] }
 0x914   :  { %v13478_v57 = vsub.f32 %v13405_v62, %v2502_v47  ;;  %v2505_v19 = vmul.f32 0.0078125, %v2487_v51  ;;  %2556 = vadd.xlane.f32.xlu1 %v2532_v8  ;;  %v2535_v13 = vmul.f32 %v13473_v28, %v13473_v28  ;;  %10386 = vmatprep.subr.mxu1 %v2860_v41  ;;  %v2683_v47 = vld [vmem:[#allocation3 + $0x80] sm:$0xff] }
 0x915   :  { %v2485_v29 = vpop.xlane.xlu1 %2484  ;;  %10331 = vmatpush3.msra.mxu0 %v2690_v26  ;;  %10387 = vmatpush3.msra.mxu1 %v2860_v41  ;;  %v2853_v8 = vld [vmem:[#allocation6 + $0x80] sm:$0xff] }
 0x916   :  { %v13483_v18 = vsub.f32 %v13409_v27, %v2505_v19  ;;  %v2504_v35 = vmul.f32 0.0078125, %v2485_v29  ;;  %2562 = vadd.xlane.f32.xlu0 %v2535_v13  ;;  %v2534_v62 = vmul.f32 %v13478_v57, %v13478_v57  ;;  %v2859_v27 = vld [vmem:[#allocation6 + $0xb0] sm:$0xff]  ;;  %10332 = vmatprep.subr.mxu0 %v2689_v10 }
 0x917   :  { %v2491_v56 = vpop.xlane.xlu0 %2490  ;;  %10388 = vmatprep.subr.mxu1 %v2859_v27  ;;  %10333 = vmatpush3.msra.mxu0 %v2689_v10 }
 0x918   :  { %v13488_v32 = vsub.f32 %v13413_v20, %v2504_v35  ;;  %v2507_v38 = vmul.f32 0.0078125, %v2491_v56  ;;  %2560 = vadd.xlane.f32.xlu1 %v2534_v62  ;;  %v2537_v48 = vmul.f32 %v13483_v18, %v13483_v18  ;;  %v2688_v20 = vld [vmem:[#allocation3 + $0xa8] sm:$0xff]  ;;  %10389 = vmatpush3.msra.mxu1 %v2859_v27 }
 0x919   :  { %v2489_v6 = vpop.xlane.xlu1 %2488  ;;  %10334 = vmatprep.subr.mxu0 %v2688_v20  ;;  %10390 = vmatprep.subr.mxu1 %v2858_v2 }
 0x91a   :  { %v13493_v33 = vsub.f32 %v13417_v5, %v2507_v38  ;;  %v2506_v31 = vmul.f32 0.0078125, %v2489_v6  ;;  %2566 = vadd.xlane.f32.xlu0 %v2537_v48  ;;  %v2536_v9 = vmul.f32 %v13488_v32, %v13488_v32  ;;  %v2687_v5 = vld [vmem:[#allocation3 + $0xa0] sm:$0xff]  ;;  %10335 = vmatpush3.msra.mxu0 %v2688_v20 }
 0x91b   :  { %10391 = vmatpush3.msra.mxu1 %v2858_v2  ;;  %10336 = vmatprep.subr.mxu0 %v2687_v5 }
 0x91c   :  { %v13498_v40 = vsub.f32 %v13421_v21, %v2506_v31  ;;  %2564 = vadd.xlane.f32.xlu1 %v2536_v9  ;;  %v2539_v37 = vmul.f32 %v13493_v33, %v13493_v33  ;;  %10392 = vmatprep.subr.mxu1 %v2857_v15  ;;  %v2685_v21 = vld [vmem:[#allocation3 + $0x90] sm:$0xff] }
 0x91d   :  { %10337 = vmatpush3.msra.mxu0 %v2687_v5  ;;  %10393 = vmatpush3.msra.mxu1 %v2857_v15 }
 0x91e   :  { %2570 = vadd.xlane.f32.xlu0 %v2539_v37  ;;  %v2538_v54 = vmul.f32 %v13498_v40, %v13498_v40  ;;  %10338 = vmatprep.subr.mxu0 %v2686_v0 }
 0x91f   :  { %10394 = vmatprep.subr.mxu1 %v2856_v52  ;;  %10339 = vmatpush3.msra.mxu0 %v2686_v0 }
 0x920   :  { %2568 = vadd.xlane.f32.xlu1 %v2538_v54  ;;  %10395 = vmatpush3.msra.mxu1 %v2856_v52  ;;  %v13510_v54 = vld [vmem:[%s15765_s17] ss:$0 sm:$0xff] }
 0x921   :  { %10340 = vmatprep.subr.mxu0 %v2685_v21  ;;  %10396 = vmatprep.subr.mxu1 %v2855_v24 }
 0x922   :  { %10341 = vmatpush3.msra.mxu0 %v2685_v21  ;;  %10397 = vmatpush3.msra.mxu1 %v2855_v24 }
 0x923   :  { %10342 = vmatprep.subr.mxu0 %v2684_v49  ;;  %10398 = vmatprep.subr.mxu1 %v2854_v45 }
 0x924   :  { %10343 = vmatpush3.msra.mxu0 %v2684_v49  ;;  %10399 = vmatpush3.msra.mxu1 %v2854_v45 }
 0x925   :  { %10344 = vmatprep.subr.mxu0 %v2683_v47  ;;  %10400 = vmatprep.subr.mxu1 %v2853_v8 }
 0x926   :  { %10345 = vmatpush3.msra.mxu0 %v2683_v47  ;;  %10401 = vmatpush3.msra.mxu1 %v2853_v8 }
 0x927   :  { %10426 = vmatprep.subr.mxu0 %v13504_v53 }
 0x986   :  { %v2543_v4 = vpop.xlane.xlu0 %2542 }
 0x987   :  { %v2573_v51 = vmul.f32 0.0078125, %v2543_v4 }
 0x988   :  { %v2541_v19 = vpop.xlane.xlu1 %2540 }
 0x989   :  { %v2589_v13 = vadd.f32 1e-05, %v2573_v51  ;;  %v2572_v26 = vmul.f32 0.0078125, %v2541_v19 }
 0x98b   :  { %11881 = vrsqrt.f32 %v2589_v13  ;;  %v2588_v29 = vadd.f32 1e-05, %v2572_v26  ;;  %v13519_v13 = vld [vmem:[%s15766_s18] ss:$0 sm:$0xff] }
 0x98d   :  { %11883 = vrsqrt.f32 %v2588_v29 }
 0x98e   :  { %v2547_v41 = vpop.xlane.xlu0 %2546 }
 0x98f   :  { %v2575_v35 = vmul.f32 0.0078125, %v2547_v41 }
 0x990   :  { %v2545_v62 = vpop.xlane.xlu1 %2544 }
 0x991   :  { %v2591_v56 = vadd.f32 1e-05, %v2575_v35  ;;  %v2574_v10 = vmul.f32 0.0078125, %v2545_v62 }
 0x993   :  { %11885 = vrsqrt.f32 %v2591_v56  ;;  %v2590_v38 = vadd.f32 1e-05, %v2574_v10  ;;  %v2551_v48 = vpop.xlane.xlu0 %2550 }
 0x994   :  { %v2577_v27 = vmul.f32 0.0078125, %v2551_v48 }
 0x995   :  { %11887 = vrsqrt.f32 %v2590_v38  ;;  %v2549_v6 = vpop.xlane.xlu1 %2548  ;;  %v3037_v38 = vld [vmem:[#allocation8 + $0xf0] sm:$0xff] }
 0x996   :  { %v2593_v31 = vadd.f32 1e-05, %v2577_v27  ;;  %v2576_v9 = vmul.f32 0.0078125, %v2549_v6 }
 0x997   :  { %v2555_v20 = vpop.xlane.xlu0 %2554 }
 0x998   :  { %v11882_v2 = vpop.eup %11881  ;;  %11889 = vrsqrt.f32 %v2593_v31  ;;  %v2592_v37 = vadd.f32 1e-05, %v2576_v9  ;;  %v2579_v5 = vmul.f32 0.0078125, %v2555_v20 }
 0x999   :  { %v2553_v15 = vpop.xlane.xlu1 %2552  ;;  %v2621_v0 = vmul.f32 %v11882_v2, %v13425_v3 }
 0x99a   :  { %v11884_v52 = vpop.eup %11883  ;;  %11891 = vrsqrt.f32 %v2592_v37  ;;  %v2595_v21 = vadd.f32 1e-05, %v2579_v5  ;;  %v2578_v24 = vmul.f32 0.0078125, %v2553_v15  ;;  %v3036_v37 = vld [vmem:[#allocation8 + $0xe8] sm:$0xff] }
 0x99b   :  { %v2559_v49 = vpop.xlane.xlu0 %2558  ;;  %v2620_v45 = vmul.f32 %v11884_v52, %v13430_v23  ;;  %v2644_v4 = vmul.f32 %v13510_v54, %v2621_v0 }
 0x99c   :  { %11893 = vrsqrt.f32 %v2595_v21  ;;  %v2594_v47 = vadd.f32 1e-05, %v2578_v24  ;;  %v2581_v8 = vmul.f32 0.0078125, %v2559_v49  ;;  %v3035_v21 = vld [vmem:[#allocation8 + $0xe0] sm:$0xff] }
 0x99d   :  { %v2557_v51 = vpop.xlane.xlu1 %2556  ;;  %v2643_v19 = vmul.f32 %v13510_v54, %v2620_v45  ;;  %v13525_v56 = vadd.f32 %v13519_v13, %v2644_v4 }
 0x99e   :  { %11895 = vrsqrt.f32 %v2594_v47  ;;  %v2597_v3 = vadd.f32 1e-05, %v2581_v8  ;;  %v2580_v26 = vmul.f32 0.0078125, %v2557_v51 }
 0x99f   :  { %v2563_v29 = vpop.xlane.xlu0 %2562  ;;  %v13522_v41 = vadd.f32 %v13519_v13, %v2643_v19  ;;  %15873 = vst [vmem:[#allocation37_spill] sm:$0xff] %v13525_v56 }
 0x9a0   :  { %v11886_v23 = vpop.eup %11885  ;;  %11897 = vrsqrt.f32 %v2597_v3  ;;  %v2596_v35 = vadd.f32 1e-05, %v2580_v26  ;;  %v2583_v62 = vmul.f32 0.0078125, %v2563_v29  ;;  %v3034_v29 = vld [vmem:[#allocation8 + $0xd8] sm:$0xff] }
 0x9a1   :  { %15872 = vst [vmem:[#allocation36_spill] sm:$0xff] %v13522_v41  ;;  %v2561_v10 = vpop.xlane.xlu1 %2560  ;;  %10346 = vmatprep.mubr.f32.mxu0 %v13522_v41  ;;  %10402 = vmatprep.mubr.f32.mxu1 %v13522_v41  ;;  %v2623_v48 = vmul.f32 %v11886_v23, %v13435_v22 }
 0x9a2   :  { %v11888_v27 = vpop.eup %11887  ;;  %11899 = vrsqrt.f32 %v2596_v35  ;;  %v2599_v6 = vadd.f32 1e-05, %v2583_v62  ;;  %v2582_v31 = vmul.f32 0.0078125, %v2561_v10  ;;  %10347 = vmatmul.mubr.f32.vlgmr.msra.gmra.mxu0 %v13525_v56  ;;  %10403 = vmatmul.mubr.f32.vlgmr.msra.gmra.mxu1 %v13525_v56 }
 0x9a3   :  { %v2567_v9 = vpop.xlane.xlu0 %2566  ;;  %10427 = vmatpush3.msra.mxu0 %v13504_v53  ;;  %v2622_v20 = vmul.f32 %v11888_v27, %v13440_v58  ;;  %v2646_v2 = vmul.f32 %v13510_v54, %v2623_v48 }
 0x9a4   :  { %11901 = vrsqrt.f32 %v2599_v6  ;;  %v2598_v5 = vadd.f32 1e-05, %v2582_v31  ;;  %v2585_v15 = vmul.f32 0.0078125, %v2567_v9  ;;  %10428 = vmatprep.subr.mxu0 %v3037_v38  ;;  %v3033_v9 = vld [vmem:[#allocation8 + $0xd0] sm:$0xff] }
 0x9a5   :  { %v11890_v22 = vpop.eup %11889  ;;  %v2565_v0 = vpop.xlane.xlu1 %2564  ;;  %v2645_v52 = vmul.f32 %v13510_v54, %v2622_v20  ;;  %10429 = vmatpush3.msra.mxu0 %v3037_v38  ;;  %v13541_v8 = vadd.f32 %v13519_v13, %v2646_v2 }
 0x9a6   :  { %11903 = vrsqrt.f32 %v2598_v5  ;;  %v2601_v24 = vadd.f32 1e-05, %v2585_v15  ;;  %v2584_v49 = vmul.f32 0.0078125, %v2565_v0  ;;  %10430 = vmatprep.subr.mxu0 %v3036_v37  ;;  %v2625_v53 = vmul.f32 %v11890_v22, %v13445_v14  ;;  %v3032_v0 = vld [vmem:[#allocation8 + $0xc8] sm:$0xff] }
 0x9a7   :  { %v11892_v58 = vpop.eup %11891  ;;  %v2571_v45 = vpop.xlane.xlu0 %2570  ;;  %v13538_v47 = vadd.f32 %v13519_v13, %v2645_v52  ;;  %15875 = vst [vmem:[#allocation39_spill] sm:$0xff] %v13541_v8  ;;  %10431 = vmatpush3.msra.mxu0 %v3036_v37 }
 0x9a8   :  { %11905 = vrsqrt.f32 %v2601_v24  ;;  %v2600_v4 = vadd.f32 1e-05, %v2584_v49  ;;  %v2587_v51 = vmul.f32 0.0078125, %v2571_v45  ;;  %10432 = vmatprep.subr.mxu0 %v3035_v21  ;;  %v2624_v19 = vmul.f32 %v11892_v58, %v13448_v59 }
 0x9a9   :  { %15874 = vst [vmem:[#allocation38_spill] sm:$0xff] %v13538_v47  ;;  %v11894_v3 = vpop.eup %11893  ;;  %v2569_v26 = vpop.xlane.xlu1 %2568  ;;  %10349 = vmatprep.mubr.f32.mxu0 %v13538_v47  ;;  %10405 = vmatprep.mubr.f32.mxu1 %v13538_v47  ;;  %v2648_v14 = vmul.f32 %v13510_v54, %v2625_v53 }
 0x9aa   :  { %11907 = vrsqrt.f32 %v2600_v4  ;;  %v2603_v23 = vadd.f32 1e-05, %v2587_v51  ;;  %v2586_v35 = vmul.f32 0.0078125, %v2569_v26  ;;  %10350 = vmatmul.mubr.f32.gmra.mxu0 %v13541_v8  ;;  %10406 = vmatmul.mubr.f32.gmra.mxu1 %v13541_v8  ;;  %v2647_v62 = vmul.f32 %v13510_v54, %v2624_v19  ;;  %v3030_v4 = vld [vmem:[#allocation8 + $0xb8] sm:$0xff] }
 0x9ab   :  { %v11896_v10 = vpop.eup %11895  ;;  %10433 = vmatpush3.msra.mxu0 %v3035_v21  ;;  %v2627_v59 = vmul.f32 %v11894_v3, %v13453_v46  ;;  %v13556_v31 = vadd.f32 %v13519_v13, %v2648_v14 }
 0x9ac   :  { %11909 = vrsqrt.f32 %v2603_v23  ;;  %v2602_v38 = vadd.f32 1e-05, %v2586_v35  ;;  %v13552_v48 = vadd.f32 %v13519_v13, %v2647_v62  ;;  %10434 = vmatprep.subr.mxu0 %v3034_v29  ;;  %v2626_v27 = vmul.f32 %v11896_v10, %v13458_v36 }
 0x9ad   :  { %v11898_v6 = vpop.eup %11897  ;;  %15877 = vst [vmem:[#allocation41_spill] sm:$0xff] %v13556_v31  ;;  %10435 = vmatpush3.msra.mxu0 %v3034_v29  ;;  %v2650_v20 = vmul.f32 %v13510_v54, %v2627_v59 }
 0x9ae   :  { %15876 = vst [vmem:[#allocation40_spill] sm:$0xff] %v13552_v48  ;;  %11911 = vrsqrt.f32 %v2602_v38  ;;  %10352 = vmatprep.mubr.f32.mxu0 %v13552_v48  ;;  %10408 = vmatprep.mubr.f32.mxu1 %v13552_v48  ;;  %v2649_v46 = vmul.f32 %v13510_v54, %v2626_v27  ;;  %v2629_v2 = vmul.f32 %v11898_v6, %v13463_v61  ;;  %v3026_v6 = vld [vmem:[#allocation8 + $0x98] sm:$0xff] }
 0x9af   :  { %v11900_v37 = vpop.eup %11899  ;;  %10353 = vmatmul.mubr.f32.gmra.mxu0 %v13556_v31  ;;  %10409 = vmatmul.mubr.f32.gmra.mxu1 %v13556_v31  ;;  %v13570_v22 = vadd.f32 %v13519_v13, %v2650_v20 }
 0x9b0   :  { %10436 = vmatprep.subr.mxu0 %v3033_v9  ;;  %v13566_v36 = vadd.f32 %v13519_v13, %v2649_v46  ;;  %v2628_v5 = vmul.f32 %v11900_v37, %v13468_v44  ;;  %v2652_v52 = vmul.f32 %v13510_v54, %v2629_v2  ;;  %v3031_v44 = vld [vmem:[#allocation8 + $0xc0] sm:$0xff] }
 0x9b1   :  { %v11902_v15 = vpop.eup %11901  ;;  %10437 = vmatpush3.msra.mxu0 %v3033_v9  ;;  %15879 = vst [vmem:[#allocation43_spill] sm:$0xff] %v13570_v22  ;;  %v3023_v37 = vld [vmem:[#allocation8 + $0x80] sm:$0xff] }
 0x9b2   :  { %15878 = vst [vmem:[#allocation42_spill] sm:$0xff] %v13566_v36  ;;  %10355 = vmatprep.mubr.f32.mxu0 %v13566_v36  ;;  %10411 = vmatprep.mubr.f32.mxu1 %v13566_v36  ;;  %v2651_v61 = vmul.f32 %v13510_v54, %v2628_v5  ;;  %v2631_v21 = vmul.f32 %v11902_v15, %v13473_v28 }
 0x9b3   :  { %v11904_v24 = vpop.eup %11903  ;;  %10356 = vmatmul.mubr.f32.gmra.mxu0 %v13570_v22  ;;  %10412 = vmatmul.mubr.f32.gmra.mxu1 %v13570_v22  ;;  %v13586_v28 = vadd.f32 %v13519_v13, %v2652_v52 }
 0x9b4   :  { %10438 = vmatprep.subr.mxu0 %v3032_v0  ;;  %v13580_v49 = vadd.f32 %v13519_v13, %v2651_v61  ;;  %v2630_v53 = vmul.f32 %v11904_v24, %v13478_v57  ;;  %v2654_v45 = vmul.f32 %v13510_v54, %v2631_v21  ;;  %v3029_v57 = vld [vmem:[#allocation8 + $0xb0] sm:$0xff] }
 0x9b5   :  { %v11906_v58 = vpop.eup %11905  ;;  %10439 = vmatpush3.msra.mxu0 %v3032_v0  ;;  %15881 = vst [vmem:[#allocation45_spill] sm:$0xff] %v13586_v28 }
 0x9b6   :  { %15880 = vst [vmem:[#allocation44_spill] sm:$0xff] %v13580_v49  ;;  %10440 = vmatprep.subr.mxu0 %v3031_v44  ;;  %10358 = vmatprep.mubr.f32.mxu0 %v13580_v49  ;;  %v2653_v51 = vmul.f32 %v13510_v54, %v2630_v53  ;;  %v2633_v19 = vmul.f32 %v11906_v58, %v13483_v18  ;;  %v3028_v18 = vld [vmem:[#allocation8 + $0xa8] sm:$0xff] }
 0x9b7   :  { %v11908_v3 = vpop.eup %11907  ;;  %10414 = vmatprep.mubr.f32.mxu1 %v13580_v49  ;;  %10441 = vmatpush3.msra.mxu0 %v3031_v44  ;;  %v13598_v23 = vadd.f32 %v13519_v13, %v2654_v45 }
 0x9b8   :  { %10359 = vmatmul.mubr.f32.gmra.mxu0 %v13586_v28  ;;  %10415 = vmatmul.mubr.f32.gmra.mxu1 %v13586_v28  ;;  %v13594_v26 = vadd.f32 %v13519_v13, %v2653_v51  ;;  %v2632_v14 = vmul.f32 %v11908_v3, %v13488_v32  ;;  %v2656_v62 = vmul.f32 %v13510_v54, %v2633_v19  ;;  %v3027_v32 = vld [vmem:[#allocation8 + $0xa0] sm:$0xff] }
 0x9b9   :  { %v11910_v29 = vpop.eup %11909  ;;  %10442 = vmatprep.subr.mxu0 %v3030_v4  ;;  %15883 = vst [vmem:[#allocation47_spill] sm:$0xff] %v13598_v23 }
 0x9ba   :  { %15882 = vst [vmem:[#allocation46_spill] sm:$0xff] %v13594_v26  ;;  %10443 = vmatpush3.msra.mxu0 %v3030_v4  ;;  %10361 = vmatprep.mubr.f32.mxu0 %v13594_v26  ;;  %v2655_v35 = vmul.f32 %v13510_v54, %v2632_v14  ;;  %v2635_v10 = vmul.f32 %v11910_v29, %v13493_v33 }
 0x9bb   :  { %v11912_v59 = vpop.eup %11911  ;;  %10444 = vmatprep.subr.mxu0 %v3029_v57  ;;  %10417 = vmatprep.mubr.f32.mxu1 %v13594_v26  ;;  %v13613_v33 = vadd.f32 %v13519_v13, %v2656_v62 }
 0x9bc   :  { %10445 = vmatpush3.msra.mxu0 %v3029_v57  ;;  %10418 = vmatmul.mubr.f32.gmra.mxu1 %v13598_v23  ;;  %v13607_v38 = vadd.f32 %v13519_v13, %v2655_v35  ;;  %v2634_v27 = vmul.f32 %v11912_v59, %v13498_v40  ;;  %v2658_v20 = vmul.f32 %v13510_v54, %v2635_v10  ;;  %v3025_v40 = vld [vmem:[#allocation8 + $0x90] sm:$0xff] }
 0x9bd   :  { %10362 = vmatmul.mubr.f32.gmra.mxu0 %v13598_v23  ;;  %10446 = vmatprep.subr.mxu0 %v3028_v18  ;;  %15885 = vst [vmem:[#allocation49_spill] sm:$0xff] %v13613_v33 }
 0x9be   :  { %15884 = vst [vmem:[#allocation48_spill] sm:$0xff] %v13607_v38  ;;  %10447 = vmatpush3.msra.mxu0 %v3028_v18  ;;  %10364 = vmatprep.mubr.f32.mxu0 %v13607_v38  ;;  %v2657_v9 = vmul.f32 %v13510_v54, %v2634_v27  ;;  %v13625_v2 = vadd.f32 %v13519_v13, %v2658_v20  ;;  %v3024_v54 = vld [vmem:[#allocation8 + $0x88] sm:$0xff] }
 0x9bf   :  { %10448 = vmatprep.subr.mxu0 %v3027_v32  ;;  %10420 = vmatprep.mubr.f32.mxu1 %v13607_v38 }
 0x9c0   :  { %10449 = vmatpush3.msra.mxu0 %v3027_v32  ;;  %10421 = vmatmul.mubr.f32.gmra.mxu1 %v13613_v33  ;;  %v13620_v46 = vadd.f32 %v13519_v13, %v2657_v9  ;;  %15887 = vst [vmem:[#allocation51_spill] sm:$0xff] %v13625_v2  ;;  %v13649_v13 = vld [vmem:[%s15869_s9 + $0x1] ss:$0 sm:$0xff] }
 0x9c1   :  { %10365 = vmatmul.mubr.f32.gmra.mxu0 %v13613_v33  ;;  %10450 = vmatprep.subr.mxu0 %v3026_v6 }
 0x9c2   :  { %15886 = vst [vmem:[#allocation50_spill] sm:$0xff] %v13620_v46  ;;  %10451 = vmatpush3.msra.mxu0 %v3026_v6  ;;  %10367 = vmatprep.mubr.f32.mxu0 %v13620_v46 }
 0x9c3   :  { %10452 = vmatprep.subr.mxu0 %v3025_v40  ;;  %10423 = vmatprep.mubr.f32.mxu1 %v13620_v46 }
 0x9c4   :  { %10453 = vmatpush3.msra.mxu0 %v3025_v40  ;;  %10424 = vmatmul.mubr.f32.gmra.mxu1 %v13625_v2 }
 0x9c5   :  { %10368 = vmatmul.mubr.f32.gmra.mxu0 %v13625_v2  ;;  %10454 = vmatprep.subr.mxu0 %v3024_v54 }
 0x9c6   :  { %10455 = vmatpush3.msra.mxu0 %v3024_v54  ;;  %10458 = vmatprep.mubr.f32.mxu0 %v13522_v41 }
 0x9c7   :  { %10456 = vmatprep.subr.mxu0 %v3023_v37 }
 0x9c8   :  { %10457 = vmatpush3.msra.mxu0 %v3023_v37 }
 0x9c9   :  { %10459 = vmatmul.mubr.f32.vlgmr.msra.gmra.mxu0 %v13525_v56 }
 0x9ca   :  { %10461 = vmatprep.mubr.f32.mxu0 %v13538_v47 }
 0x9cd   :  { %10462 = vmatmul.mubr.f32.gmra.mxu0 %v13541_v8 }
 0x9ce   :  { %10464 = vmatprep.mubr.f32.mxu0 %v13552_v48 }
 0x9d1   :  { %10465 = vmatmul.mubr.f32.gmra.mxu0 %v13556_v31 }
 0x9d2   :  { %10467 = vmatprep.mubr.f32.mxu0 %v13566_v36 }
 0x9d5   :  { %10468 = vmatmul.mubr.f32.gmra.mxu0 %v13570_v22 }
 0x9d6   :  { %10470 = vmatprep.mubr.f32.mxu0 %v13580_v49 }
 0x9d9   :  { %10471 = vmatmul.mubr.f32.gmra.mxu0 %v13586_v28 }
 0x9da   :  { %10473 = vmatprep.mubr.f32.mxu0 %v13594_v26 }
 0x9dd   :  { %10474 = vmatmul.mubr.f32.gmra.mxu0 %v13598_v23 }
 0x9de   :  { %10476 = vmatprep.mubr.f32.mxu0 %v13607_v38 }
 0x9e1   :  { %10477 = vmatmul.mubr.f32.gmra.mxu0 %v13613_v33 }
 0x9e2   :  { %10479 = vmatprep.mubr.f32.mxu0 %v13620_v46 }
 0x9e5   :  { %10480 = vmatmul.mubr.f32.gmra.mxu0 %v13625_v2 }
 0xa62   :  { %v10348_v5 = vpop.f32.mrf.mxu0  ;;  %v13654_v0 = vpop.f32.mrf.mxu1 }
 0xa63   :  { %v13652_v15 = vadd.f32 %v10348_v5, %v13649_v13 }
 0xa64   :  { %v2773_v61 = vpop.f32.mrf.mxu0  ;;  %v13657_v21 = vpop.f32.mrf.mxu1 }
 0xa65   :  { %v2774_v52 = vadd.f32 %v13649_v13, %v2773_v61 }
 0xa67   :  { %10514 = vmatprep.mubr.f32.mxu1 %v2774_v52 }
 0xa6a   :  { %v10351_v24 = vpop.f32.mrf.mxu0  ;;  %v13659_v44 = vpop.f32.mrf.mxu1 }
 0xa6b   :  { %v13662_v53 = vadd.f32 %v10351_v24, %v13649_v13 }
 0xa6c   :  { %v13664_v58 = vpop.f32.mrf.mxu0  ;;  %v13666_v45 = vpop.f32.mrf.mxu1 }
 0xa6f   :  { %v10354_v4 = vpop.f32.mrf.mxu0  ;;  %v13668_v51 = vpop.f32.mrf.mxu1 }
 0xa70   :  { %v13671_v19 = vadd.f32 %v10354_v4, %v13649_v13 }
 0xa71   :  { %v13673_v3 = vpop.f32.mrf.mxu0  ;;  %v13675_v57 = vpop.f32.mrf.mxu1 }
 0xa73   :  { %v10357_v14 = vpop.f32.mrf.mxu0  ;;  %v10413_v29 = vpop.f32.mrf.mxu1 }
 0xa74   :  { %v13678_v18 = vadd.f32 %v10357_v14, %v13649_v13  ;;  %v13702_v14 = vld [vmem:[%s15754_s6 + $0x1] ss:$0 sm:$0xff] }
 0xa75   :  { %v13680_v35 = vpop.f32.mrf.mxu0  ;;  %v13682_v62 = vpop.f32.mrf.mxu1 }
 0xa78   :  { %v10360_v10 = vpop.f32.mrf.mxu0  ;;  %v10416_v59 = vpop.f32.mrf.mxu1 }
 0xa79   :  { %v13685_v32 = vadd.f32 %v10360_v10, %v13649_v13 }
 0xa7a   :  { %v13687_v27 = vpop.f32.mrf.mxu0  ;;  %v2983_v6 = vpop.f32.mrf.mxu1 }
 0xa7b   :  { %v2984_v47 = vadd.f32 %v13702_v14, %v2983_v6  ;;  %v2974_v6 = vadd.f32 %v13702_v14, %v13682_v62 }
 0xa7c   :  { %v10419_v9 = vpop.f32.mrf.mxu1 }
 0xa7d   :  { %v10363_v20 = vpop.f32.mrf.mxu0 }
 0xa7e   :  { %v13690_v40 = vadd.f32 %v10363_v20, %v13649_v13  ;;  %v2993_v54 = vpop.f32.mrf.mxu1 }
 0xa7f   :  { %v13692_v37 = vpop.f32.mrf.mxu0 }
 0xa80   :  { %v10422_v5 = vpop.f32.mrf.mxu1 }
 0xa81   :  { %v10366_v61 = vpop.f32.mrf.mxu0  ;;  %v3009_v23 = vadd.f32 %v10422_v5, %v13702_v14 }
 0xa82   :  { %v13695_v52 = vadd.f32 %v10366_v61, %v13649_v13  ;;  %v3003_v24 = vpop.f32.mrf.mxu1 }
 0xa83   :  { %v13697_v4 = vpop.f32.mrf.mxu0 }
 0xa84   :  { %v10425_v10 = vpop.f32.mrf.mxu1 }
 0xa85   :  { %v10369_v46 = vpop.f32.mrf.mxu0  ;;  %v3019_v20 = vadd.f32 %v10425_v10, %v13702_v14 }
 0xa86   :  { %v13706_v2 = vadd.f32 %v10369_v46, %v13649_v13  ;;  %v3013_v38 = vpop.f32.mrf.mxu1  ;;  %v3004_v46 = vadd.f32 %v13702_v14, %v3003_v24  ;;  %v2989_v24 = vadd.f32 %v10416_v59, %v13702_v14 }
 0xa87   :  { %v13708_v33 = vpop.f32.mrf.mxu0  ;;  %v3014_v61 = vadd.f32 %v13702_v14, %v3013_v38  ;;  %10482 = vmatprep.subr.mxu1 %v3019_v20  ;;  %v2999_v38 = vadd.f32 %v10419_v9, %v13702_v14 }
 0xa88   :  { %10483 = vmatpush3.xpose.msra.mxu1 %v3019_v20 }
 0xa89   :  { %v13711_v26 = vpop.f32.mrf.mxu0  ;;  %10484 = vmatprep.subr.mxu1 %v3014_v61 }
 0xa8b   :  { %v13714_v49 = vpop.f32.mrf.mxu0 }
 0xa8c   :  { %10485 = vmatpush3.xpose.msra.mxu1 %v3014_v61  ;;  %v2994_v61 = vadd.f32 %v13702_v14, %v2993_v54  ;;  %v13733_v54 = vld [vmem:[%s15756_s8 + $0x1] ss:$0 sm:$0xff] }
 0xa8d   :  { %v13716_v28 = vpop.f32.mrf.mxu0  ;;  %10486 = vmatprep.subr.mxu1 %v3009_v23 }
 0xa8f   :  { %v13719_v10 = vpop.f32.mrf.mxu0 }
 0xa90   :  { %10487 = vmatpush3.xpose.msra.mxu1 %v3009_v23 }
 0xa91   :  { %v13721_v36 = vpop.f32.mrf.mxu0  ;;  %10488 = vmatprep.subr.mxu1 %v3004_v46 }
 0xa93   :  { %v13724_v20 = vpop.f32.mrf.mxu0 }
 0xa94   :  { %10489 = vmatpush3.xpose.msra.mxu1 %v3004_v46  ;;  %v2979_v46 = vadd.f32 %v10413_v29, %v13702_v14  ;;  %v2969_v29 = vadd.f32 %v13668_v51, %v13702_v14 }
 0xa95   :  { %v10469_v5 = vpop.f32.mrf.mxu0  ;;  %10490 = vmatprep.subr.mxu1 %v2999_v38 }
 0xa97   :  { %v3143_v22 = vpop.f32.mrf.mxu0 }
 0xa98   :  { %10491 = vmatpush3.xpose.msra.mxu1 %v2999_v38 }
 0xa99   :  { %v10472_v48 = vpop.f32.mrf.mxu0  ;;  %10492 = vmatprep.subr.mxu1 %v2994_v61 }
 0xa9a   :  { %v3159_v51 = vadd.f32 %v10472_v48, %v13733_v54  ;;  %v3144_v48 = vadd.f32 %v13733_v54, %v3143_v22  ;;  %v3129_v22 = vadd.f32 %v13716_v28, %v13733_v54  ;;  %v3114_v28 = vadd.f32 %v13733_v54, %v13714_v49 }
 0xa9b   :  { %v3153_v31 = vpop.f32.mrf.mxu0  ;;  %v2804_v49 = vadd.f32 %v13649_v13, %v13680_v35 }
 0xa9c   :  { %10493 = vmatpush3.xpose.msra.mxu1 %v2994_v61 }
 0xa9d   :  { %v10475_v23 = vpop.f32.mrf.mxu0  ;;  %10494 = vmatprep.subr.mxu1 %v2989_v24 }
 0xa9e   :  { %v3169_v62 = vadd.f32 %v10475_v23, %v13733_v54  ;;  %v3154_v23 = vadd.f32 %v13733_v54, %v3153_v31  ;;  %v3139_v31 = vadd.f32 %v13721_v36, %v13733_v54  ;;  %v3124_v36 = vadd.f32 %v13733_v54, %v13719_v10 }
 0xa9f   :  { %v3163_v9 = vpop.f32.mrf.mxu0 }
 0xaa0   :  { %10495 = vmatpush3.xpose.msra.mxu1 %v2989_v24 }
 0xaa1   :  { %v10478_v8 = vpop.f32.mrf.mxu0  ;;  %10496 = vmatprep.subr.mxu1 %v2984_v47 }
 0xaa3   :  { %v3173_v41 = vpop.f32.mrf.mxu0 }
 0xaa4   :  { %10497 = vmatpush3.xpose.msra.mxu1 %v2984_v47  ;;  %v3179_v47 = vadd.f32 %v10478_v8, %v13733_v54  ;;  %v3174_v56 = vadd.f32 %v13733_v54, %v3173_v41  ;;  %v3164_v8 = vadd.f32 %v13733_v54, %v3163_v9  ;;  %v2959_v41 = vadd.f32 %v13659_v44, %v13702_v14 }
 0xaa5   :  { %v10481_v59 = vpop.f32.mrf.mxu0  ;;  %10498 = vmatprep.subr.mxu1 %v2979_v46  ;;  %v2949_v44 = vadd.f32 %v13654_v0, %v13702_v14  ;;  %v3119_v0 = vadd.f32 %v13711_v26, %v13733_v54  ;;  %v2814_v26 = vadd.f32 %v13649_v13, %v13687_v27 }
 0xaa6   :  { %v3189_v38 = vadd.f32 %v10481_v59, %v13733_v54 }
 0xaa7   :  { %v3183_v61 = vpop.f32.mrf.mxu0 }
 0xaa8   :  { %v3184_v24 = vadd.f32 %v13733_v54, %v3183_v61  ;;  %10538 = vmatprep.subr.mxu0 %v3189_v38  ;;  %10499 = vmatpush3.xpose.msra.mxu1 %v2979_v46  ;;  %v2964_v46 = vadd.f32 %v13702_v14, %v13675_v57  ;;  %v2954_v57 = vadd.f32 %v13702_v14, %v13666_v45 }
 0xaa9   :  { %10539 = vmatpush3.msra.mxu0 %v3189_v38  ;;  %10500 = vmatprep.subr.mxu1 %v2974_v6  ;;  %v2944_v45 = vadd.f32 %v13702_v14, %v13657_v21  ;;  %v2784_v21 = vadd.f32 %v13649_v13, %v13664_v58  ;;  %v2794_v14 = vadd.f32 %v13649_v13, %v13673_v3 }
 0xaaa   :  { %10540 = vmatprep.subr.mxu0 %v3184_v24  ;;  %v2844_v58 = vadd.f32 %v13649_v13, %v13708_v33 }
 0xaab   :  { %10541 = vmatpush3.msra.mxu0 %v3184_v24 }
 0xaac   :  { %10542 = vmatprep.subr.mxu0 %v3179_v47  ;;  %10501 = vmatpush3.xpose.msra.mxu1 %v2974_v6 }
 0xaad   :  { %10543 = vmatpush3.msra.mxu0 %v3179_v47  ;;  %10502 = vmatprep.subr.mxu1 %v2969_v29 }
 0xaae   :  { %10544 = vmatprep.subr.mxu0 %v3174_v56 }
 0xaaf   :  { %10545 = vmatpush3.msra.mxu0 %v3174_v56  ;;  %v3149_v56 = vadd.f32 %v10469_v5, %v13733_v54  ;;  %v3134_v5 = vadd.f32 %v13733_v54, %v13724_v20 }
 0xab0   :  { %10546 = vmatprep.subr.mxu0 %v3169_v62  ;;  %10503 = vmatpush3.xpose.msra.mxu1 %v2969_v29 }
 0xab1   :  { %10547 = vmatpush3.msra.mxu0 %v3169_v62  ;;  %10504 = vmatprep.subr.mxu1 %v2964_v46 }
 0xab2   :  { %10548 = vmatprep.subr.mxu0 %v3164_v8 }
 0xab3   :  { %10549 = vmatpush3.msra.mxu0 %v3164_v8 }
 0xab4   :  { %10550 = vmatprep.subr.mxu0 %v3159_v51  ;;  %10505 = vmatpush3.xpose.msra.mxu1 %v2964_v46 }
 0xab5   :  { %10551 = vmatpush3.msra.mxu0 %v3159_v51  ;;  %10506 = vmatprep.subr.mxu1 %v2959_v41 }
 0xab6   :  { %10552 = vmatprep.subr.mxu0 %v3154_v23 }
 0xab7   :  { %10553 = vmatpush3.msra.mxu0 %v3154_v23 }
 0xab8   :  { %10554 = vmatprep.subr.mxu0 %v3149_v56  ;;  %10507 = vmatpush3.xpose.msra.mxu1 %v2959_v41 }
 0xab9   :  { %10555 = vmatpush3.msra.mxu0 %v3149_v56  ;;  %10508 = vmatprep.subr.mxu1 %v2954_v57 }
 0xaba   :  { %10556 = vmatprep.subr.mxu0 %v3144_v48 }
 0xabb   :  { %10557 = vmatpush3.msra.mxu0 %v3144_v48 }
 0xabc   :  { %10558 = vmatprep.subr.mxu0 %v3139_v31  ;;  %10509 = vmatpush3.xpose.msra.mxu1 %v2954_v57 }
 0xabd   :  { %10559 = vmatpush3.msra.mxu0 %v3139_v31  ;;  %10510 = vmatprep.subr.mxu1 %v2949_v44 }
 0xabe   :  { %10560 = vmatprep.subr.mxu0 %v3134_v5 }
 0xabf   :  { %10561 = vmatpush3.msra.mxu0 %v3134_v5 }
 0xac0   :  { %10562 = vmatprep.subr.mxu0 %v3129_v22  ;;  %10511 = vmatpush3.xpose.msra.mxu1 %v2949_v44 }
 0xac1   :  { %10563 = vmatpush3.msra.mxu0 %v3129_v22  ;;  %10512 = vmatprep.subr.mxu1 %v2944_v45 }
 0xac2   :  { %10564 = vmatprep.subr.mxu0 %v3124_v36 }
 0xac3   :  { %10565 = vmatpush3.msra.mxu0 %v3124_v36 }
 0xac4   :  { %10566 = vmatprep.subr.mxu0 %v3119_v0  ;;  %10513 = vmatpush3.xpose.msra.mxu1 %v2944_v45 }
 0xac5   :  { %10567 = vmatpush3.msra.mxu0 %v3119_v0 }
 0xac6   :  { %10568 = vmatprep.subr.mxu0 %v3114_v28 }
 0xac7   :  { %10569 = vmatpush3.msra.mxu0 %v3114_v28  ;;  %10515 = vmatmul.mubr.f32.vlgmr.msra.gmra.mxu1 %v13652_v15  ;;  %v2824_v15 = vadd.f32 %v13649_v13, %v13692_v37 }
 0xac8   :  { %10517 = vmatprep.mubr.f32.mxu1 %v2784_v21 }
 0xacb   :  { %10518 = vmatmul.mubr.f32.gmra.mxu1 %v13662_v53  ;;  %v2834_v53 = vadd.f32 %v13649_v13, %v13697_v4 }
 0xacc   :  { %10520 = vmatprep.mubr.f32.mxu1 %v2794_v14 }
 0xacf   :  { %10521 = vmatmul.mubr.f32.gmra.mxu1 %v13671_v19 }
 0xad0   :  { %10523 = vmatprep.mubr.f32.mxu1 %v2804_v49 }
 0xad3   :  { %10524 = vmatmul.mubr.f32.gmra.mxu1 %v13678_v18 }
 0xad4   :  { %10526 = vmatprep.mubr.f32.mxu1 %v2814_v26 }
 0xad7   :  { %10527 = vmatmul.mubr.f32.gmra.mxu1 %v13685_v32 }
 0xad8   :  { %10529 = vmatprep.mubr.f32.mxu1 %v2824_v15 }
 0xadb   :  { %10530 = vmatmul.mubr.f32.gmra.mxu1 %v13690_v40 }
 0xadc   :  { %10532 = vmatprep.mubr.f32.mxu1 %v2834_v53 }
 0xadf   :  { %10533 = vmatmul.mubr.f32.gmra.mxu1 %v13695_v52 }
 0xae0   :  { %10535 = vmatprep.mubr.f32.mxu1 %v2844_v58 }
 0xae3   :  { %10536 = vmatmul.mubr.f32.gmra.mxu1 %v13706_v2 }
 0xb87   :  { %v10516_v19 = vpop.f32.mrf.mxu1 }
 0xb88   :  { %v3264_v3 = vadd.f32 %v10516_v19, %v12949_v12 }
 0xb89   :  { %v3258_v18 = vpop.f32.mrf.mxu1 }
 0xb8a   :  { %v3259_v35 = vadd.f32 %v3258_v18, %v12952_v17  ;;  %3339 = vmax.xlane.f32.xlu0 %v3264_v3 }
 0xb8b   :  { %v10519_v32 = vpop.f32.mrf.mxu1 }
 0xb8c   :  { %v3274_v27 = vadd.f32 %v10519_v32, %v12976_v39  ;;  %3337 = vmax.xlane.f32.xlu1 %v3259_v35 }
 0xb8d   :  { %v3268_v40 = vpop.f32.mrf.mxu1 }
 0xb8e   :  { %v3269_v37 = vadd.f32 %v3268_v40, %v12966_v42  ;;  %3343 = vmax.xlane.f32.xlu0 %v3274_v27 }
 0xb8f   :  { %v10522_v33 = vpop.f32.mrf.mxu1 }
 0xb90   :  { %v3284_v13 = vadd.f32 %v10522_v33, %v12993_v55  ;;  %3341 = vmax.xlane.f32.xlu1 %v3269_v37 }
 0xb91   :  { %v3278_v2 = vpop.f32.mrf.mxu1 }
 0xb92   :  { %v3279_v52 = vadd.f32 %v3278_v2, %v12980_v63  ;;  %3347 = vmax.xlane.f32.xlu0 %v3284_v13 }
 0xb93   :  { %v10525_v4 = vpop.f32.mrf.mxu1 }
 0xb94   :  { %v3294_v10 = vadd.f32 %v10525_v4, %v13011_v25  ;;  %3345 = vmax.xlane.f32.xlu1 %v3279_v52 }
 0xb95   :  { %v3288_v20 = vpop.f32.mrf.mxu1 }
 0xb96   :  { %v3289_v9 = vadd.f32 %v3288_v20, %v12996_v11  ;;  %3351 = vmax.xlane.f32.xlu0 %v3294_v10 }
 0xb97   :  { %v10528_v54 = vpop.f32.mrf.mxu1 }
 0xb98   :  { %v13802_v59 = vadd.f32 %v10528_v54, %v13029_v1  ;;  %3349 = vmax.xlane.f32.xlu1 %v3289_v9 }
 0xb99   :  { %v3298_v38 = vpop.f32.mrf.mxu1 }
 0xb9a   :  { %v3299_v6 = vadd.f32 %v3298_v38, %v13015_v34  ;;  %3355 = vmax.xlane.f32.xlu0 %v13802_v59 }
 0xb9b   :  { %v10531_v61 = vpop.f32.mrf.mxu1 }
 0xb9c   :  { %v13807_v24 = vadd.f32 %v10531_v61, %v13046_v43  ;;  %3353 = vmax.xlane.f32.xlu1 %v3299_v6 }
 0xb9d   :  { %v3308_v47 = vpop.f32.mrf.mxu1 }
 0xb9e   :  { %v13810_v29 = vadd.f32 %v3308_v47, %v13033_v50  ;;  %3359 = vmax.xlane.f32.xlu0 %v13807_v24 }
 0xb9f   :  { %v10534_v62 = vpop.f32.mrf.mxu1 }
 0xba0   :  { %v13814_v46 = vadd.f32 %v10534_v62, %v13062_v16  ;;  %3357 = vmax.xlane.f32.xlu1 %v13810_v29 }
 0xba1   :  { %v3318_v8 = vpop.f32.mrf.mxu1 }
 0xba2   :  { %v13818_v51 = vadd.f32 %v3318_v8, %v13049_v30  ;;  %3363 = vmax.xlane.f32.xlu0 %v13814_v46 }
 0xba3   :  { %v10537_v41 = vpop.f32.mrf.mxu1 }
 0xba4   :  { %v13822_v23 = vadd.f32 %v10537_v41, %v13077_v7  ;;  %3361 = vmax.xlane.f32.xlu1 %v13818_v51 }
 0xba5   :  { %v3328_v56 = vpop.f32.mrf.mxu1 }
 0xba6   :  { %v13826_v57 = vadd.f32 %v3328_v56, %v13065_v60  ;;  %3367 = vmax.xlane.f32.xlu0 %v13822_v23 }
 0xba8   :  { %3365 = vmax.xlane.f32.xlu1 %v13826_v57 }
 0xc13   :  { %v3340_v48 = vpop.xlane.xlu0 %3339 }
 0xc14   :  { %v3370_v31 = vsub.f32 %v3264_v3, %v3340_v48 }
 0xc15   :  { %v3338_v44 = vpop.xlane.xlu1 %3337 }
 0xc16   :  { %v3387_v5 = vmul.f32 1.442695, %v3370_v31  ;;  %v3369_v22 = vsub.f32 %v3259_v35, %v3338_v44 }
 0xc17   :  { %v3344_v45 = vpop.xlane.xlu0 %3343 }
 0xc18   :  { %11913 = vpow2.f32 %v3387_v5  ;;  %v3385_v36 = vmul.f32 1.442695, %v3369_v22  ;;  %v3372_v0 = vsub.f32 %v3274_v27, %v3344_v45 }
 0xc19   :  { %v3342_v28 = vpop.xlane.xlu1 %3341 }
 0xc1a   :  { %11915 = vpow2.f32 %v3385_v36  ;;  %v3371_v21 = vsub.f32 %v3269_v37, %v3342_v28  ;;  %v3391_v14 = vmul.f32 1.442695, %v3372_v0  ;;  %v3642_v0 = vld [vmem:[#allocation9 + $0xf8] sm:$0xff] }
 0xc1b   :  { %v3348_v49 = vpop.xlane.xlu0 %3347  ;;  %10594 = vmatprep.subr.mxu0 %v3642_v0 }
 0xc1c   :  { %v3389_v26 = vmul.f32 1.442695, %v3371_v21  ;;  %v3374_v15 = vsub.f32 %v3284_v13, %v3348_v49 }
 0xc1d   :  { %v3346_v53 = vpop.xlane.xlu1 %3345 }
 0xc1e   :  { %11917 = vpow2.f32 %v3389_v26  ;;  %v3373_v58 = vsub.f32 %v3279_v52, %v3346_v53  ;;  %v3395_v19 = vmul.f32 1.442695, %v3374_v15  ;;  %v3638_v53 = vld [vmem:[#allocation9 + $0xd8] sm:$0xff] }
 0xc1f   :  { %11919 = vpow2.f32 %v3391_v14  ;;  %v3352_v3 = vpop.xlane.xlu0 %3351 }
 0xc20   :  { %v3393_v18 = vmul.f32 1.442695, %v3373_v58  ;;  %v3376_v32 = vsub.f32 %v3294_v10, %v3352_v3  ;;  %v3637_v58 = vld [vmem:[#allocation9 + $0xd0] sm:$0xff] }
 0xc21   :  { %v3350_v35 = vpop.xlane.xlu1 %3349 }
 0xc22   :  { %11921 = vpow2.f32 %v3393_v18  ;;  %v3375_v40 = vsub.f32 %v3289_v9, %v3350_v35  ;;  %v3399_v27 = vmul.f32 1.442695, %v3376_v32  ;;  %v3636_v18 = vld [vmem:[#allocation9 + $0xc8] sm:$0xff]  ;;  %v3635_v32 = vld [vmem:[#allocation9 + $0xc0] sm:$0xff] }
 0xc23   :  { %11923 = vpow2.f32 %v3395_v19  ;;  %v3356_v33 = vpop.xlane.xlu0 %3355 }
 0xc24   :  { %v3397_v2 = vmul.f32 1.442695, %v3375_v40  ;;  %v3378_v37 = vsub.f32 %v13802_v59, %v3356_v33  ;;  %v3633_v33 = vld [vmem:[#allocation9 + $0xb0] sm:$0xff] }
 0xc25   :  { %v11914_v4 = vpop.eup %11913  ;;  %v3354_v20 = vpop.xlane.xlu1 %3353 }
 0xc26   :  { %11925 = vpow2.f32 %v3397_v2  ;;  %v3377_v13 = vsub.f32 %v3299_v6, %v3354_v20  ;;  %3419 = vadd.xlane.f32.xlu0 %v11914_v4  ;;  %v3403_v54 = vmul.f32 1.442695, %v3378_v37  ;;  %v3631_v20 = vld [vmem:[#allocation9 + $0xa0] sm:$0xff] }
 0xc27   :  { %v11916_v52 = vpop.eup %11915  ;;  %11927 = vpow2.f32 %v3399_v27  ;;  %v3360_v38 = vpop.xlane.xlu0 %3359  ;;  %v3634_v27 = vld [vmem:[#allocation9 + $0xb8] sm:$0xff] }
 0xc28   :  { %v3401_v61 = vmul.f32 1.442695, %v3377_v13  ;;  %v3380_v10 = vsub.f32 %v13807_v24, %v3360_v38  ;;  %10570 = vmatprep.mubr.f32.mxu0 %v11916_v52  ;;  %3417 = vadd.xlane.f32.xlu1 %v11916_v52  ;;  %v3630_v13 = vld [vmem:[#allocation9 + $0x98] sm:$0xff]  ;;  %v3629_v52 = vld [vmem:[#allocation9 + $0x90] sm:$0xff]  ;;  %v3627_v38 = vld [vmem:[#allocation9 + $0x80] sm:$0xff] }
 0xc29   :  { %v3358_v9 = vpop.xlane.xlu1 %3357  ;;  %10571 = vmatmul.mubr.f32.vlgmr.msra.gmra.mxu0 %v11914_v4  ;;  %v3632_v4 = vld [vmem:[#allocation9 + $0xa8] sm:$0xff] }
 0xc2a   :  { %11929 = vpow2.f32 %v3401_v61  ;;  %v3379_v47 = vsub.f32 %v13810_v29, %v3358_v9  ;;  %v3407_v62 = vmul.f32 1.442695, %v3380_v10  ;;  %10595 = vmatpush3.msra.mxu0 %v3642_v0 }
 0xc2b   :  { %v13833_v59 = vpop.eup %11917  ;;  %11931 = vpow2.f32 %v3403_v54  ;;  %v3364_v6 = vpop.xlane.xlu0 %3363  ;;  %v3628_v54 = vld [vmem:[#allocation9 + $0x88] sm:$0xff] }
 0xc2c   :  { %v13835_v8 = vpop.eup %11919  ;;  %v3405_v41 = vmul.f32 1.442695, %v3379_v47  ;;  %v3382_v56 = vsub.f32 %v13814_v46, %v3364_v6  ;;  %10573 = vmatprep.mubr.f32.mxu0 %v13833_v59 }
 0xc2d   :  { %v3362_v24 = vpop.xlane.xlu1 %3361  ;;  %10574 = vmatmul.mubr.f32.gmra.mxu0 %v13835_v8 }
 0xc2e   :  { %11933 = vpow2.f32 %v3405_v41  ;;  %v3381_v48 = vsub.f32 %v13818_v51, %v3362_v24  ;;  %v3411_v29 = vmul.f32 1.442695, %v3382_v56  ;;  %v3641_v51 = vld [vmem:[#allocation9 + $0xf0] sm:$0xff] }
 0xc2f   :  { %v13841_v31 = vpop.eup %11921  ;;  %11935 = vpow2.f32 %v3407_v62  ;;  %v3368_v44 = vpop.xlane.xlu0 %3367  ;;  %10596 = vmatprep.subr.mxu0 %v3641_v51 }
 0xc30   :  { %v13843_v5 = vpop.eup %11923  ;;  %v3409_v22 = vmul.f32 1.442695, %v3381_v48  ;;  %v3384_v45 = vsub.f32 %v13822_v23, %v3368_v44  ;;  %10576 = vmatprep.mubr.f32.mxu0 %v13841_v31  ;;  %v3640_v23 = vld [vmem:[#allocation9 + $0xe8] sm:$0xff]  ;;  %10597 = vmatpush3.msra.mxu0 %v3641_v51 }
 0xc31   :  { %10577 = vmatmul.mubr.f32.gmra.mxu0 %v13843_v5  ;;  %v3366_v46 = vpop.xlane.xlu1 %3365  ;;  %10598 = vmatprep.subr.mxu0 %v3640_v23 }
 0xc32   :  { %11937 = vpow2.f32 %v3409_v22  ;;  %v3383_v36 = vsub.f32 %v13826_v57, %v3366_v46  ;;  %v3415_v21 = vmul.f32 1.442695, %v3384_v45  ;;  %v3639_v57 = vld [vmem:[#allocation9 + $0xe0] sm:$0xff]  ;;  %10599 = vmatpush3.msra.mxu0 %v3640_v23 }
 0xc33   :  { %v13849_v28 = vpop.eup %11925  ;;  %11939 = vpow2.f32 %v3411_v29  ;;  %10600 = vmatprep.subr.mxu0 %v3639_v57 }
 0xc34   :  { %v13851_v14 = vpop.eup %11927  ;;  %v3413_v49 = vmul.f32 1.442695, %v3383_v36  ;;  %10579 = vmatprep.mubr.f32.mxu0 %v13849_v28  ;;  %10601 = vmatpush3.msra.mxu0 %v3639_v57 }
 0xc35   :  { %10580 = vmatmul.mubr.f32.gmra.mxu0 %v13851_v14  ;;  %10602 = vmatprep.subr.mxu0 %v3638_v53 }
 0xc36   :  { %11941 = vpow2.f32 %v3413_v49  ;;  %10603 = vmatpush3.msra.mxu0 %v3638_v53  ;;  %v13910_v53 = vld [vmem:[%s15758_s10 + $0x1] ss:$0 sm:$0xff] }
 0xc37   :  { %v13855_v26 = vpop.eup %11929  ;;  %11943 = vpow2.f32 %v3415_v21  ;;  %10604 = vmatprep.subr.mxu0 %v3637_v58 }
 0xc38   :  { %v13857_v15 = vpop.eup %11931  ;;  %10582 = vmatprep.mubr.f32.mxu0 %v13855_v26  ;;  %10605 = vmatpush3.msra.mxu0 %v3637_v58 }
 0xc39   :  { %10583 = vmatmul.mubr.f32.gmra.mxu0 %v13857_v15  ;;  %10606 = vmatprep.subr.mxu0 %v3636_v18 }
 0xc3a   :  { %10607 = vmatpush3.msra.mxu0 %v3636_v18 }
 0xc3b   :  { %v13861_v19 = vpop.eup %11933  ;;  %10608 = vmatprep.subr.mxu0 %v3635_v32 }
 0xc3c   :  { %v13863_v3 = vpop.eup %11935  ;;  %10585 = vmatprep.mubr.f32.mxu0 %v13861_v19  ;;  %10609 = vmatpush3.msra.mxu0 %v3635_v32 }
 0xc3d   :  { %10586 = vmatmul.mubr.f32.gmra.mxu0 %v13863_v3  ;;  %10610 = vmatprep.subr.mxu0 %v3634_v27 }
 0xc3e   :  { %10611 = vmatpush3.msra.mxu0 %v3634_v27  ;;  %v15888_v27 = vld [vmem:[#allocation37_spill] sm:$0xff] }
 0xc3f   :  { %v13867_v35 = vpop.eup %11937  ;;  %10612 = vmatprep.subr.mxu0 %v3633_v33 }
 0xc40   :  { %v13869_v40 = vpop.eup %11939  ;;  %10588 = vmatprep.mubr.f32.mxu0 %v13867_v35  ;;  %10613 = vmatpush3.msra.mxu0 %v3633_v33 }
 0xc41   :  { %10589 = vmatmul.mubr.f32.gmra.mxu0 %v13869_v40  ;;  %10614 = vmatprep.subr.mxu0 %v3632_v4 }
 0xc42   :  { %10615 = vmatpush3.msra.mxu0 %v3632_v4 }
 0xc43   :  { %v13873_v2 = vpop.eup %11941  ;;  %10616 = vmatprep.subr.mxu0 %v3631_v20 }
 0xc44   :  { %v13875_v37 = vpop.eup %11943  ;;  %10591 = vmatprep.mubr.f32.mxu0 %v13873_v2  ;;  %10617 = vmatpush3.msra.mxu0 %v3631_v20  ;;  %v15889_v20 = vld [vmem:[#allocation36_spill] sm:$0xff] }
 0xc45   :  { %10592 = vmatmul.mubr.f32.gmra.mxu0 %v13875_v37  ;;  %10618 = vmatprep.subr.mxu0 %v3630_v13 }
 0xc46   :  { %10619 = vmatpush3.msra.mxu0 %v3630_v13 }
 0xc47   :  { %10620 = vmatprep.subr.mxu0 %v3629_v52 }
 0xc48   :  { %10621 = vmatpush3.msra.mxu0 %v3629_v52 }
 0xc49   :  { %10622 = vmatprep.subr.mxu0 %v3628_v54 }
 0xc4a   :  { %10623 = vmatpush3.msra.mxu0 %v3628_v54 }
 0xc4b   :  { %10624 = vmatprep.subr.mxu0 %v3627_v38 }
 0xc4c   :  { %10625 = vmatpush3.msra.mxu0 %v3627_v38 }
 0xcaf   :  { %v3420_v10 = vpop.xlane.xlu0 %3419 }
 0xcb1   :  { %v3418_v61 = vpop.xlane.xlu1 %3417 }
 0xcb2   :  { %11945 = vrcp.f32 %v3418_v61 }
 0xcb3   :  { %11947 = vrcp.f32 %v3420_v10 }
 0xcbf   :  { %v11946_v47 = vpop.eup %11945 }
 0xcc0   :  { %v11948_v6 = vpop.eup %11947 }
 0xce9   :  { %v10572_v9 = vpop.f32.mrf.mxu0 }
 0xcea   :  { %v3611_v56 = vmul.f32 %v11948_v6, %v10572_v9 }
 0xceb   :  { %v3515_v62 = vpop.f32.mrf.mxu0 }
 0xcec   :  { %v3610_v41 = vmul.f32 %v11946_v47, %v3515_v62  ;;  %v4050_v47 = vld [vmem:[#allocation11 + $0xe8] sm:$0xff] }
 0xced   :  { %v13879_v24 = vpop.f32.mrf.mxu0 }
 0xcee   :  { %10626 = vmatprep.mubr.f32.mxu0 %v3610_v41 }
 0xcef   :  { %10627 = vmatmul.mubr.f32.vlgmr.msra.gmra.mxu0 %v3611_v56  ;;  %v13881_v48 = vpop.f32.mrf.mxu0  ;;  %v4049_v56 = vld [vmem:[#allocation11 + $0xe0] sm:$0xff] }
 0xcf1   :  { %v13883_v29 = vpop.f32.mrf.mxu0 }
 0xcf3   :  { %v13885_v44 = vpop.f32.mrf.mxu0 }
 0xcf5   :  { %v13887_v22 = vpop.f32.mrf.mxu0 }
 0xcf7   :  { %v13889_v45 = vpop.f32.mrf.mxu0 }
 0xcf9   :  { %v13891_v46 = vpop.f32.mrf.mxu0 }
 0xcfb   :  { %v13893_v36 = vpop.f32.mrf.mxu0 }
 0xcfd   :  { %v13895_v0 = vpop.f32.mrf.mxu0 }
 0xcff   :  { %v13897_v51 = vpop.f32.mrf.mxu0 }
 0xd01   :  { %v13899_v21 = vpop.f32.mrf.mxu0 }
 0xd03   :  { %v13901_v49 = vpop.f32.mrf.mxu0 }
 0xd05   :  { %v13903_v23 = vpop.f32.mrf.mxu0 }
 0xd07   :  { %v13905_v57 = vpop.f32.mrf.mxu0 }
 0xdaf   :  { %v10628_v58 = vpop.f32.mrf.mxu0 }
 0xdb0   :  { %v3723_v18 = vadd.f32 %v10628_v58, %v13910_v53 }
 0xdb1   :  { %v3717_v32 = vpop.f32.mrf.mxu0 }
 0xdb2   :  { %v3797_v33 = vadd.f32 %v3723_v18, %v15888_v27  ;;  %v3718_v4 = vadd.f32 %v13910_v53, %v3717_v32 }
 0xdb4   :  { %v3796_v13 = vadd.f32 %v3718_v4, %v15889_v20  ;;  %3814 = vadd.xlane.f32.xlu0 %v3797_v33  ;;  %v4047_v4 = vld [vmem:[#allocation11 + $0xd0] sm:$0xff] }
 0xdb6   :  { %3812 = vadd.xlane.f32.xlu1 %v3796_v13 }
 0xdb8   :  { %3423 = vadd.xlane.f32.xlu0 %v13835_v8  ;;  %v4051_v8 = vld [vmem:[#allocation11 + $0xf0] sm:$0xff] }
 0xdba   :  { %3421 = vadd.xlane.f32.xlu1 %v13833_v59  ;;  %v4052_v59 = vld [vmem:[#allocation11 + $0xf8] sm:$0xff] }
 0xdbb   :  { %10650 = vmatprep.subr.mxu1 %v4052_v59 }
 0xdbc   :  { %3427 = vadd.xlane.f32.xlu0 %v13843_v5  ;;  %10651 = vmatpush3.msra.mxu1 %v4052_v59 }
 0xdbd   :  { %10652 = vmatprep.subr.mxu1 %v4051_v8 }
 0xdbe   :  { %3425 = vadd.xlane.f32.xlu1 %v13841_v31  ;;  %10653 = vmatpush3.msra.mxu1 %v4051_v8 }
 0xdbf   :  { %10654 = vmatprep.subr.mxu1 %v4050_v47 }
 0xdc0   :  { %3431 = vadd.xlane.f32.xlu0 %v13851_v14  ;;  %10655 = vmatpush3.msra.mxu1 %v4050_v47  ;;  %v4037_v47 = vld [vmem:[#allocation11 + $0x80] sm:$0xff] }
 0xdc1   :  { %10656 = vmatprep.subr.mxu1 %v4049_v56 }
 0xdc2   :  { %3429 = vadd.xlane.f32.xlu1 %v13849_v28  ;;  %10657 = vmatpush3.msra.mxu1 %v4049_v56  ;;  %v4236_v56 = vld [vmem:[#allocation12 + $0xe8] sm:$0xff] }
 0xdc4   :  { %3435 = vadd.xlane.f32.xlu0 %v13857_v15 }
 0xdc6   :  { %3433 = vadd.xlane.f32.xlu1 %v13855_v26 }
 0xdc8   :  { %3439 = vadd.xlane.f32.xlu0 %v13863_v3 }
 0xdca   :  { %3437 = vadd.xlane.f32.xlu1 %v13861_v19 }
 0xdce   :  { %3441 = vadd.xlane.f32.xlu1 %v13867_v35 }
 0xdd2   :  { %3443 = vadd.xlane.f32.xlu1 %v13869_v40 }
 0xdd6   :  { %3445 = vadd.xlane.f32.xlu1 %v13873_v2 }
 0xe3d   :  { %v3815_v31 = vpop.xlane.xlu0 %3814 }
 0xe3e   :  { %v3845_v28 = vmul.f32 0.0078125, %v3815_v31  ;;  %v4045_v31 = vld [vmem:[#allocation11 + $0xc0] sm:$0xff] }
 0xe3f   :  { %v3813_v5 = vpop.xlane.xlu1 %3812 }
 0xe40   :  { %v3844_v14 = vmul.f32 0.0078125, %v3813_v5  ;;  %v13931_v3 = vsub.f32 %v3797_v33, %v3845_v28 }
 0xe41   :  { %v3424_v26 = vpop.xlane.xlu0 %3423 }
 0xe42   :  { %v13929_v15 = vsub.f32 %v3796_v13, %v3844_v14  ;;  %11949 = vrcp.f32 %v3424_v26  ;;  %v3877_v52 = vmul.f32 %v13931_v3, %v13931_v3 }
 0xe43   :  { %v3422_v19 = vpop.xlane.xlu1 %3421 }
 0xe44   :  { %11951 = vrcp.f32 %v3422_v19  ;;  %v3876_v35 = vmul.f32 %v13929_v15, %v13929_v15  ;;  %v4043_v19 = vld [vmem:[#allocation11 + $0xb0] sm:$0xff] }
 0xe45   :  { %v3428_v40 = vpop.xlane.xlu0 %3427 }
 0xe46   :  { %3892 = vadd.xlane.f32.xlu0 %v3876_v35  ;;  %11953 = vrcp.f32 %v3428_v40 }
 0xe47   :  { %v3426_v2 = vpop.xlane.xlu1 %3425 }
 0xe48   :  { %11955 = vrcp.f32 %v3426_v2 }
 0xe49   :  { %v3432_v54 = vpop.xlane.xlu0 %3431 }
 0xe4a   :  { %3894 = vadd.xlane.f32.xlu0 %v3877_v52  ;;  %11957 = vrcp.f32 %v3432_v54  ;;  %v4041_v54 = vld [vmem:[#allocation11 + $0xa0] sm:$0xff] }
 0xe4b   :  { %v3430_v38 = vpop.xlane.xlu1 %3429 }
 0xe4c   :  { %11959 = vrcp.f32 %v3430_v38  ;;  %v4040_v38 = vld [vmem:[#allocation11 + $0x98] sm:$0xff] }
 0xe4d   :  { %v3436_v61 = vpop.xlane.xlu0 %3435 }
 0xe4e   :  { %3447 = vadd.xlane.f32.xlu0 %v13875_v37  ;;  %11961 = vrcp.f32 %v3436_v61  ;;  %v4048_v37 = vld [vmem:[#allocation11 + $0xd8] sm:$0xff] }
 0xe4f   :  { %v3434_v10 = vpop.xlane.xlu1 %3433  ;;  %v11950_v9 = vpop.eup %11949  ;;  %10658 = vmatprep.subr.mxu1 %v4048_v37 }
 0xe50   :  { %11963 = vrcp.f32 %v3434_v10  ;;  %v3613_v18 = vmul.f32 %v11950_v9, %v13879_v24  ;;  %10659 = vmatpush3.msra.mxu1 %v4048_v37  ;;  %v4046_v24 = vld [vmem:[#allocation11 + $0xc8] sm:$0xff]  ;;  %v4039_v10 = vld [vmem:[#allocation11 + $0x90] sm:$0xff] }
 0xe51   :  { %v11952_v62 = vpop.eup %11951  ;;  %v3440_v6 = vpop.xlane.xlu0 %3439  ;;  %10660 = vmatprep.subr.mxu1 %v4047_v4  ;;  %v4038_v9 = vld [vmem:[#allocation11 + $0x88] sm:$0xff] }
 0xe52   :  { %v3612_v41 = vmul.f32 %v11952_v62, %v13881_v48  ;;  %11965 = vrcp.f32 %v3440_v6  ;;  %10661 = vmatpush3.msra.mxu1 %v4047_v4 }
 0xe53   :  { %v3438_v58 = vpop.xlane.xlu1 %3437  ;;  %v11954_v32 = vpop.eup %11953  ;;  %10662 = vmatprep.subr.mxu1 %v4046_v24 }
 0xe54   :  { %11967 = vrcp.f32 %v3438_v58  ;;  %10629 = vmatprep.mubr.f32.mxu0 %v3612_v41  ;;  %v3615_v20 = vmul.f32 %v11954_v32, %v13883_v29  ;;  %10663 = vmatpush3.msra.mxu1 %v4046_v24  ;;  %v4044_v29 = vld [vmem:[#allocation11 + $0xb8] sm:$0xff]  ;;  %v4237_v41 = vld [vmem:[#allocation12 + $0xf0] sm:$0xff]  ;;  %v4235_v58 = vld [vmem:[#allocation12 + $0xe0] sm:$0xff] }
 0xe55   :  { %v11956_v27 = vpop.eup %11955  ;;  %10630 = vmatmul.mubr.f32.gmra.mxu0 %v3613_v18  ;;  %10664 = vmatprep.subr.mxu1 %v4045_v31  ;;  %v4234_v18 = vld [vmem:[#allocation12 + $0xd8] sm:$0xff]  ;;  %v4232_v32 = vld [vmem:[#allocation12 + $0xc8] sm:$0xff] }
 0xe56   :  { %v3614_v33 = vmul.f32 %v11956_v27, %v13885_v44  ;;  %10665 = vmatpush3.msra.mxu1 %v4045_v31  ;;  %v13960_v31 = vld [vmem:[%s15764_s16 + $0x1] ss:$0 sm:$0xff] }
 0xe57   :  { %v3442_v48 = vpop.xlane.xlu1 %3441  ;;  %v11958_v13 = vpop.eup %11957  ;;  %10666 = vmatprep.subr.mxu1 %v4044_v29 }
 0xe58   :  { %11969 = vrcp.f32 %v3442_v48  ;;  %10632 = vmatprep.mubr.f32.mxu0 %v3614_v33  ;;  %v3617_v44 = vmul.f32 %v11958_v13, %v13887_v22  ;;  %10667 = vmatpush3.msra.mxu1 %v4044_v29  ;;  %v4042_v22 = vld [vmem:[#allocation11 + $0xa8] sm:$0xff] }
 0xe59   :  { %v11960_v59 = vpop.eup %11959  ;;  %10633 = vmatmul.mubr.f32.gmra.mxu0 %v3615_v20  ;;  %10668 = vmatprep.subr.mxu1 %v4043_v19 }
 0xe5a   :  { %v3616_v8 = vmul.f32 %v11960_v59, %v13889_v45  ;;  %10669 = vmatpush3.msra.mxu1 %v4043_v19  ;;  %v13954_v59 = vld [vmem:[%s15763_s15 + $0x1] ss:$0 sm:$0xff] }
 0xe5b   :  { %v3444_v5 = vpop.xlane.xlu1 %3443  ;;  %v11962_v28 = vpop.eup %11961  ;;  %10670 = vmatprep.subr.mxu1 %v4042_v22 }
 0xe5c   :  { %11971 = vrcp.f32 %v3444_v5  ;;  %10635 = vmatprep.mubr.f32.mxu0 %v3616_v8  ;;  %v3619_v45 = vmul.f32 %v11962_v28, %v13891_v46  ;;  %10671 = vmatpush3.msra.mxu1 %v4042_v22 }
 0xe5d   :  { %v11964_v14 = vpop.eup %11963  ;;  %10636 = vmatmul.mubr.f32.gmra.mxu0 %v3617_v44  ;;  %10672 = vmatprep.subr.mxu1 %v4041_v54 }
 0xe5e   :  { %v3618_v26 = vmul.f32 %v11964_v14, %v13893_v36  ;;  %10673 = vmatpush3.msra.mxu1 %v4041_v54 }
 0xe5f   :  { %v3446_v35 = vpop.xlane.xlu1 %3445  ;;  %v11966_v40 = vpop.eup %11965  ;;  %10674 = vmatprep.subr.mxu1 %v4040_v38 }
 0xe60   :  { %11973 = vrcp.f32 %v3446_v35  ;;  %10638 = vmatprep.mubr.f32.mxu0 %v3618_v26  ;;  %v3621_v36 = vmul.f32 %v11966_v40, %v13895_v0  ;;  %10675 = vmatpush3.msra.mxu1 %v4040_v38 }
 0xe61   :  { %v11968_v2 = vpop.eup %11967  ;;  %10639 = vmatmul.mubr.f32.gmra.mxu0 %v3619_v45  ;;  %10676 = vmatprep.subr.mxu1 %v4039_v10 }
 0xe62   :  { %v3620_v52 = vmul.f32 %v11968_v2, %v13897_v51  ;;  %10677 = vmatpush3.msra.mxu1 %v4039_v10 }
 0xe63   :  { %10678 = vmatprep.subr.mxu1 %v4038_v9 }
 0xe64   :  { %10641 = vmatprep.mubr.f32.mxu0 %v3620_v52  ;;  %10679 = vmatpush3.msra.mxu1 %v4038_v9  ;;  %v15891_v52 = vld [vmem:[#allocation38_spill] sm:$0xff] }
 0xe65   :  { %v11970_v46 = vpop.eup %11969  ;;  %10642 = vmatmul.mubr.f32.gmra.mxu0 %v3621_v36  ;;  %10680 = vmatprep.subr.mxu1 %v4037_v47 }
 0xe66   :  { %v3622_v61 = vmul.f32 %v11970_v46, %v13901_v49  ;;  %10681 = vmatpush3.msra.mxu1 %v4037_v47  ;;  %v4238_v49 = vld [vmem:[#allocation12 + $0xf8] sm:$0xff]  ;;  %v15892_v46 = vld [vmem:[#allocation41_spill] sm:$0xff] }
 0xe67   :  { %10706 = vmatprep.subr.mxu0 %v4238_v49 }
 0xe68   :  { %10644 = vmatprep.mubr.f32.mxu0 %v3622_v61  ;;  %10707 = vmatpush3.msra.mxu0 %v4238_v49 }
 0xe69   :  { %v11972_v51 = vpop.eup %11971  ;;  %10708 = vmatprep.subr.mxu0 %v4237_v41 }
 0xe6a   :  { %v3623_v0 = vmul.f32 %v11972_v51, %v13899_v21  ;;  %10709 = vmatpush3.msra.mxu0 %v4237_v41  ;;  %v4233_v21 = vld [vmem:[#allocation12 + $0xd0] sm:$0xff]  ;;  %v15893_v51 = vld [vmem:[#allocation40_spill] sm:$0xff] }
 0xe6b   :  { %10710 = vmatprep.subr.mxu0 %v4236_v56 }
 0xe6c   :  { %10645 = vmatmul.mubr.f32.gmra.mxu0 %v3623_v0 }
 0xe6d   :  { %v11974_v62 = vpop.eup %11973  ;;  %10711 = vmatpush3.msra.mxu0 %v4236_v56 }
 0xe6e   :  { %v3624_v6 = vmul.f32 %v11974_v62, %v13905_v57  ;;  %10712 = vmatprep.subr.mxu0 %v4235_v58  ;;  %v4231_v57 = vld [vmem:[#allocation12 + $0xc0] sm:$0xff] }
 0xe6f   :  { %10713 = vmatpush3.msra.mxu0 %v4235_v58  ;;  %v15895_v58 = vld [vmem:[#allocation42_spill] sm:$0xff] }
 0xe70   :  { %10647 = vmatprep.mubr.f32.mxu0 %v3624_v6  ;;  %10714 = vmatprep.subr.mxu0 %v4234_v18  ;;  %v15894_v6 = vld [vmem:[#allocation43_spill] sm:$0xff] }
 0xe71   :  { %10715 = vmatpush3.msra.mxu0 %v4234_v18 }
 0xe72   :  { %10716 = vmatprep.subr.mxu0 %v4233_v21 }
 0xe73   :  { %10717 = vmatpush3.msra.mxu0 %v4233_v21 }
 0xe74   :  { %10718 = vmatprep.subr.mxu0 %v4232_v32 }
 0xe75   :  { %10719 = vmatpush3.msra.mxu0 %v4232_v32 }
 0xe76   :  { %10720 = vmatprep.subr.mxu0 %v4231_v57 }
 0xe77   :  { %10721 = vmatpush3.msra.mxu0 %v4231_v57  ;;  %v15896_v57 = vld [vmem:[#allocation45_spill] sm:$0xff] }
 0xecf   :  { %v3893_v37 = vpop.xlane.xlu0 %3892 }
 0xed0   :  { %v3924_v27 = vmul.f32 0.0078125, %v3893_v37 }
 0xed2   :  { %v3940_v33 = vadd.f32 1e-05, %v3924_v27 }
 0xed3   :  { %v3895_v4 = vpop.xlane.xlu0 %3894 }
 0xed4   :  { %11975 = vrsqrt.f32 %v3940_v33  ;;  %v3925_v48 = vmul.f32 0.0078125, %v3895_v4  ;;  %v4230_v33 = vld [vmem:[#allocation12 + $0xb8] sm:$0xff] }
 0xed5   :  { %10722 = vmatprep.subr.mxu0 %v4230_v33 }
 0xed6   :  { %v3941_v20 = vadd.f32 1e-05, %v3925_v48  ;;  %v15897_v48 = vld [vmem:[#allocation44_spill] sm:$0xff]  ;;  %10723 = vmatpush3.msra.mxu0 %v4230_v33 }
 0xed7   :  { %v3448_v13 = vpop.xlane.xlu0 %3447 }
 0xed8   :  { %11977 = vrsqrt.f32 %v3941_v20 }
 0xed9   :  { %11979 = vrcp.f32 %v3448_v13 }
 0xee1   :  { %v11976_v24 = vpop.eup %11975 }
 0xee2   :  { %v3972_v8 = vmul.f32 %v11976_v24, %v13929_v15  ;;  %v4229_v24 = vld [vmem:[#allocation12 + $0xb0] sm:$0xff] }
 0xee3   :  { %10724 = vmatprep.subr.mxu0 %v4229_v24 }
 0xee4   :  { %v3996_v5 = vmul.f32 %v13954_v59, %v3972_v8  ;;  %10725 = vmatpush3.msra.mxu0 %v4229_v24  ;;  %v15903_v24 = vld [vmem:[#allocation51_spill] sm:$0xff] }
 0xee5   :  { %v11978_v44 = vpop.eup %11977 }
 0xee6   :  { %v11980_v28 = vpop.eup %11979  ;;  %v3973_v29 = vmul.f32 %v11978_v44, %v13931_v3  ;;  %v13965_v14 = vadd.f32 %v13960_v31, %v3996_v5  ;;  %v15890_v3 = vld [vmem:[#allocation39_spill] sm:$0xff] }
 0xee7   :  { %v3625_v26 = vmul.f32 %v11980_v28, %v13903_v23  ;;  %v15898_v5 = vld [vmem:[#allocation47_spill] sm:$0xff] }
 0xee8   :  { %v3997_v19 = vmul.f32 %v13954_v59, %v3973_v29  ;;  %10682 = vmatprep.mubr.f32.mxu1 %v13965_v14  ;;  %v4228_v29 = vld [vmem:[#allocation12 + $0xa8] sm:$0xff] }
 0xee9   :  { %10648 = vmatmul.mubr.f32.gmra.mxu0 %v3625_v26  ;;  %10726 = vmatprep.subr.mxu0 %v4228_v29  ;;  %v15899_v26 = vld [vmem:[#allocation46_spill] sm:$0xff] }
 0xeea   :  { %v13971_v15 = vadd.f32 %v13960_v31, %v3997_v19  ;;  %10727 = vmatpush3.msra.mxu0 %v4228_v29 }
 0xeec   :  { %10683 = vmatmul.mubr.f32.vlgmr.msra.gmra.mxu1 %v13971_v15 }
 0xf15   :  { %v10631_v35 = vpop.f32.mrf.mxu0 }
 0xf16   :  { %v3733_v45 = vadd.f32 %v10631_v35, %v13910_v53  ;;  %v4227_v35 = vld [vmem:[#allocation12 + $0xa0] sm:$0xff] }
 0xf17   :  { %v3727_v40 = vpop.f32.mrf.mxu0  ;;  %10728 = vmatprep.subr.mxu0 %v4227_v35 }
 0xf18   :  { %v13976_v22 = vadd.f32 %v3733_v45, %v15890_v3  ;;  %v3728_v2 = vadd.f32 %v13910_v53, %v3727_v40  ;;  %10729 = vmatpush3.msra.mxu0 %v4227_v35  ;;  %v4226_v40 = vld [vmem:[#allocation12 + $0x98] sm:$0xff] }
 0xf19   :  { %v10634_v23 = vpop.f32.mrf.mxu0  ;;  %10730 = vmatprep.subr.mxu0 %v4226_v40 }
 0xf1a   :  { %v13980_v54 = vadd.f32 %v3728_v2, %v15891_v52  ;;  %v3743_v36 = vadd.f32 %v10634_v23, %v13910_v53  ;;  %3818 = vadd.xlane.f32.xlu0 %v13976_v22  ;;  %10731 = vmatpush3.msra.mxu0 %v4226_v40  ;;  %v4225_v23 = vld [vmem:[#allocation12 + $0x90] sm:$0xff] }
 0xf1b   :  { %v3737_v38 = vpop.f32.mrf.mxu0  ;;  %v15900_v52 = vld [vmem:[#allocation49_spill] sm:$0xff]  ;;  %10732 = vmatprep.subr.mxu0 %v4225_v23 }
 0xf1c   :  { %v13985_v61 = vadd.f32 %v3743_v36, %v15892_v46  ;;  %v3738_v10 = vadd.f32 %v13910_v53, %v3737_v38  ;;  %3816 = vadd.xlane.f32.xlu1 %v13980_v54  ;;  %10733 = vmatpush3.msra.mxu0 %v4225_v23  ;;  %v4224_v46 = vld [vmem:[#allocation12 + $0x88] sm:$0xff] }
 0xf1d   :  { %v10637_v9 = vpop.f32.mrf.mxu0  ;;  %10734 = vmatprep.subr.mxu0 %v4224_v46 }
 0xf1e   :  { %v13990_v47 = vadd.f32 %v3738_v10, %v15893_v51  ;;  %v3753_v0 = vadd.f32 %v10637_v9, %v13910_v53  ;;  %3822 = vadd.xlane.f32.xlu0 %v13985_v61  ;;  %v15901_v10 = vld [vmem:[#allocation48_spill] sm:$0xff]  ;;  %10735 = vmatpush3.msra.mxu0 %v4224_v46 }
 0xf1f   :  { %v3747_v62 = vpop.f32.mrf.mxu0  ;;  %v4223_v51 = vld [vmem:[#allocation12 + $0x80] sm:$0xff] }
 0xf20   :  { %v13995_v49 = vadd.f32 %v3753_v0, %v15894_v6  ;;  %v3748_v41 = vadd.f32 %v13910_v53, %v3747_v62  ;;  %3820 = vadd.xlane.f32.xlu1 %v13990_v47  ;;  %10736 = vmatprep.subr.mxu0 %v4223_v51  ;;  %v15902_v0 = vmov 0.0  }
 0xf21   :  { %v10640_v56 = vpop.f32.mrf.mxu0  ;;  %10737 = vmatpush3.msra.mxu0 %v4223_v51 }
 0xf22   :  { %v14000_v18 = vadd.f32 %v3748_v41, %v15895_v58  ;;  %v3763_v21 = vadd.f32 %v10640_v56, %v13910_v53  ;;  %3826 = vadd.xlane.f32.xlu0 %v13995_v49  ;;  %10762 = vmatprep.subr.mxu0 %v15902_v0 }
 0xf23   :  { %v3757_v32 = vpop.f32.mrf.mxu0 }
 0xf24   :  { %v14005_v37 = vadd.f32 %v3763_v21, %v15896_v57  ;;  %v3758_v27 = vadd.f32 %v13910_v53, %v3757_v32  ;;  %3824 = vadd.xlane.f32.xlu1 %v14000_v18 }
 0xf25   :  { %v10643_v4 = vpop.f32.mrf.mxu0 }
 0xf26   :  { %v14010_v20 = vadd.f32 %v3758_v27, %v15897_v48  ;;  %v3773_v13 = vadd.f32 %v10643_v4, %v13910_v53  ;;  %3830 = vadd.xlane.f32.xlu0 %v14005_v37  ;;  %v14039_v4 = vld [vmem:[%s15760_s12 + $0x1] ss:$0 sm:$0xff] }
 0xf27   :  { %v3767_v8 = vpop.f32.mrf.mxu0 }
 0xf28   :  { %v14015_v44 = vadd.f32 %v3773_v13, %v15898_v5  ;;  %v3768_v28 = vadd.f32 %v13910_v53, %v3767_v8  ;;  %3828 = vadd.xlane.f32.xlu1 %v14010_v20 }
 0xf2a   :  { %v14020_v19 = vadd.f32 %v3768_v28, %v15899_v26  ;;  %3834 = vadd.xlane.f32.xlu0 %v14015_v44 }
 0xf2c   :  { %3832 = vadd.xlane.f32.xlu1 %v14020_v19  ;;  %v10646_v45 = vpop.f32.mrf.mxu0 }
 0xf2d   :  { %v3783_v3 = vadd.f32 %v10646_v45, %v13910_v53  ;;  %v15904_v45 = vld [vmem:[#allocation50_spill] sm:$0xff] }
 0xf2e   :  { %v3777_v2 = vpop.f32.mrf.mxu0 }
 0xf2f   :  { %v14026_v36 = vadd.f32 %v3783_v3, %v15900_v52  ;;  %v3778_v38 = vadd.f32 %v13910_v53, %v3777_v2 }
 0xf31   :  { %v14030_v9 = vadd.f32 %v3778_v38, %v15901_v10  ;;  %3838 = vadd.xlane.f32.xlu0 %v14026_v36 }
 0xf33   :  { %3836 = vadd.xlane.f32.xlu1 %v14030_v9 }
 0xfa3   :  { %v3819_v62 = vpop.xlane.xlu0 %3818 }
 0xfa4   :  { %v3847_v56 = vmul.f32 0.0078125, %v3819_v62 }
 0xfa5   :  { %v3817_v6 = vpop.xlane.xlu1 %3816 }
 0xfa6   :  { %v3846_v32 = vmul.f32 0.0078125, %v3817_v6  ;;  %v14042_v48 = vsub.f32 %v13976_v22, %v3847_v56 }
 0xfa7   :  { %v3823_v41 = vpop.xlane.xlu0 %3822 }
 0xfa8   :  { %v3849_v13 = vmul.f32 0.0078125, %v3823_v41  ;;  %v14049_v26 = vsub.f32 %v13980_v54, %v3846_v32  ;;  %v3879_v54 = vmul.f32 %v14042_v48, %v14042_v48 }
 0xfa9   :  { %v10649_v58 = vpop.f32.mrf.mxu0  ;;  %v3821_v21 = vpop.xlane.xlu1 %3820 }
 0xfaa   :  { %v3793_v57 = vadd.f32 %v10649_v58, %v13910_v53  ;;  %v3848_v35 = vmul.f32 0.0078125, %v3821_v21  ;;  %v14058_v52 = vsub.f32 %v13985_v61, %v3849_v13  ;;  %v3878_v6 = vmul.f32 %v14049_v26, %v14049_v26 }
 0xfab   :  { %v3787_v27 = vpop.f32.mrf.mxu0  ;;  %v3827_v33 = vpop.xlane.xlu0 %3826 }
 0xfac   :  { %v14045_v8 = vadd.f32 %v3793_v57, %v15903_v24  ;;  %v3788_v5 = vadd.f32 %v13910_v53, %v3787_v27  ;;  %v10684_v28 = vpop.f32.mrf.mxu1  ;;  %v3851_v53 = vmul.f32 0.0078125, %v3827_v33  ;;  %v14064_v10 = vsub.f32 %v13990_v47, %v3848_v35 }
 0xfad   :  { %v3825_v29 = vpop.xlane.xlu1 %3824  ;;  %v4133_v3 = vadd.f32 %v10684_v28, %v14039_v4  ;;  %v3881_v56 = vmul.f32 %v14058_v52, %v14058_v52 }
 0xfae   :  { %v14052_v40 = vadd.f32 %v3788_v5, %v15904_v45  ;;  %3842 = vadd.xlane.f32.xlu0 %v14045_v8  ;;  %v4127_v22 = vpop.f32.mrf.mxu1  ;;  %v3850_v62 = vmul.f32 0.0078125, %v3825_v29  ;;  %v14069_v61 = vsub.f32 %v13995_v49, %v3851_v53  ;;  %v3880_v32 = vmul.f32 %v14064_v10, %v14064_v10 }
 0xfaf   :  { %v4128_v2 = vadd.f32 %v14039_v4, %v4127_v22  ;;  %v3831_v23 = vpop.xlane.xlu0 %3830  ;;  %v4207_v51 = vmax.f32 %v4133_v3, 0.0 }
 0xfb0   :  { %3840 = vadd.xlane.f32.xlu1 %v14052_v40  ;;  %v3853_v41 = vmul.f32 0.0078125, %v3831_v23  ;;  %v14074_v47 = vsub.f32 %v14000_v18, %v3850_v62  ;;  %v3883_v33 = vmul.f32 %v14069_v61, %v14069_v61 }
 0xfb1   :  { %v4206_v38 = vmax.f32 %v4128_v2, 0.0  ;;  %v3829_v46 = vpop.xlane.xlu1 %3828 }
 0xfb2   :  { %3898 = vadd.xlane.f32.xlu0 %v3879_v54  ;;  %v3852_v21 = vmul.f32 0.0078125, %v3829_v46  ;;  %v14079_v27 = vsub.f32 %v14005_v37, %v3853_v41  ;;  %v3882_v5 = vmul.f32 %v14074_v47, %v14074_v47 }
 0xfb3   :  { %10738 = vmatprep.mubr.f32.mxu0 %v4206_v38  ;;  %v3835_v58 = vpop.xlane.xlu0 %3834 }
 0xfb4   :  { %3896 = vadd.xlane.f32.xlu1 %v3878_v6  ;;  %10739 = vmatmul.mubr.f32.vlgmr.msra.gmra.mxu0 %v4207_v51  ;;  %v3855_v49 = vmul.f32 0.0078125, %v3835_v58  ;;  %v14084_v13 = vsub.f32 %v14010_v20, %v3852_v21  ;;  %v3885_v35 = vmul.f32 %v14079_v27, %v14079_v27 }
 0xfb5   :  { %v3833_v57 = vpop.xlane.xlu1 %3832 }
 0xfb6   :  { %3902 = vadd.xlane.f32.xlu0 %v3881_v56  ;;  %v3854_v24 = vmul.f32 0.0078125, %v3833_v57  ;;  %v14089_v28 = vsub.f32 %v14015_v44, %v3855_v49  ;;  %v3884_v3 = vmul.f32 %v14084_v13, %v14084_v13 }
 0xfb8   :  { %3900 = vadd.xlane.f32.xlu1 %v3880_v32  ;;  %v14094_v45 = vsub.f32 %v14020_v19, %v3854_v24  ;;  %v3887_v44 = vmul.f32 %v14089_v28, %v14089_v28 }
 0xfba   :  { %3906 = vadd.xlane.f32.xlu0 %v3883_v33  ;;  %v3839_v18 = vpop.xlane.xlu0 %3838  ;;  %v3886_v19 = vmul.f32 %v14094_v45, %v14094_v45 }
 0xfbb   :  { %v3857_v29 = vmul.f32 0.0078125, %v3839_v18 }
 0xfbc   :  { %3904 = vadd.xlane.f32.xlu1 %v3882_v5  ;;  %v3837_v37 = vpop.xlane.xlu1 %3836 }
 0xfbd   :  { %v3856_v20 = vmul.f32 0.0078125, %v3837_v37  ;;  %v14099_v22 = vsub.f32 %v14026_v36, %v3857_v29 }
 0xfbe   :  { %3910 = vadd.xlane.f32.xlu0 %v3885_v35 }
 0xfbf   :  { %v14104_v2 = vsub.f32 %v14030_v9, %v3856_v20  ;;  %v3889_v23 = vmul.f32 %v14099_v22, %v14099_v22 }
 0xfc0   :  { %3908 = vadd.xlane.f32.xlu1 %v3884_v3 }
 0xfc1   :  { %v3888_v36 = vmul.f32 %v14104_v2, %v14104_v2 }
 0xfc2   :  { %3914 = vadd.xlane.f32.xlu0 %v3887_v44 }
 0xfc4   :  { %3912 = vadd.xlane.f32.xlu1 %v3886_v19 }
 0xfc6   :  { %3918 = vadd.xlane.f32.xlu0 %v3889_v23 }
 0xfc8   :  { %3916 = vadd.xlane.f32.xlu1 %v3888_v36 }
0x1037   :  { %v3843_v53 = vpop.xlane.xlu0 %3842 }
0x1038   :  { %v3859_v54 = vmul.f32 0.0078125, %v3843_v53 }
0x1039   :  { %v3841_v38 = vpop.xlane.xlu1 %3840 }
0x103a   :  { %v14113_v46 = vsub.f32 %v14045_v8, %v3859_v54  ;;  %v3858_v9 = vmul.f32 0.0078125, %v3841_v38 }
0x103b   :  { %v3899_v51 = vpop.xlane.xlu0 %3898 }
0x103c   :  { %v14116_v62 = vsub.f32 %v14052_v40, %v3858_v9  ;;  %v3927_v6 = vmul.f32 0.0078125, %v3899_v51  ;;  %v3891_v41 = vmul.f32 %v14113_v46, %v14113_v46 }
0x103d   :  { %v3897_v56 = vpop.xlane.xlu1 %3896 }
0x103e   :  { %v3943_v58 = vadd.f32 1e-05, %v3927_v6  ;;  %v3926_v21 = vmul.f32 0.0078125, %v3897_v56  ;;  %3922 = vadd.xlane.f32.xlu0 %v3891_v41  ;;  %v3890_v32 = vmul.f32 %v14116_v62, %v14116_v62 }
0x103f   :  { %v3903_v57 = vpop.xlane.xlu0 %3902 }
0x1040   :  { %11981 = vrsqrt.f32 %v3943_v58  ;;  %v3942_v8 = vadd.f32 1e-05, %v3926_v21  ;;  %v3929_v49 = vmul.f32 0.0078125, %v3903_v57  ;;  %3920 = vadd.xlane.f32.xlu1 %v3890_v32 }
0x1041   :  { %v3901_v33 = vpop.xlane.xlu1 %3900 }
0x1042   :  { %11983 = vrsqrt.f32 %v3942_v8  ;;  %v3945_v40 = vadd.f32 1e-05, %v3929_v49  ;;  %v3928_v24 = vmul.f32 0.0078125, %v3901_v33 }
0x1043   :  { %v3907_v18 = vpop.xlane.xlu0 %3906 }
0x1044   :  { %11985 = vrsqrt.f32 %v3945_v40  ;;  %v3944_v5 = vadd.f32 1e-05, %v3928_v24  ;;  %v3931_v29 = vmul.f32 0.0078125, %v3907_v18 }
0x1045   :  { %v3905_v37 = vpop.xlane.xlu1 %3904 }
0x1046   :  { %11987 = vrsqrt.f32 %v3944_v5  ;;  %v3947_v35 = vadd.f32 1e-05, %v3931_v29  ;;  %v3930_v20 = vmul.f32 0.0078125, %v3905_v37 }
0x1047   :  { %v3911_v3 = vpop.xlane.xlu0 %3910 }
0x1048   :  { %11989 = vrsqrt.f32 %v3947_v35  ;;  %v3946_v44 = vadd.f32 1e-05, %v3930_v20  ;;  %v3933_v19 = vmul.f32 0.0078125, %v3911_v3 }
0x1049   :  { %v3909_v23 = vpop.xlane.xlu1 %3908 }
0x104a   :  { %11991 = vrsqrt.f32 %v3946_v44  ;;  %v3949_v36 = vadd.f32 1e-05, %v3933_v19  ;;  %v3932_v53 = vmul.f32 0.0078125, %v3909_v23 }
0x104b   :  { %v3915_v54 = vpop.xlane.xlu0 %3914 }
0x104c   :  { %11993 = vrsqrt.f32 %v3949_v36  ;;  %v3948_v38 = vadd.f32 1e-05, %v3932_v53  ;;  %v3935_v9 = vmul.f32 0.0078125, %v3915_v54 }
0x104d   :  { %v11982_v51 = vpop.eup %11981  ;;  %v3913_v6 = vpop.xlane.xlu1 %3912 }
0x104e   :  { %11995 = vrsqrt.f32 %v3948_v38  ;;  %v3951_v41 = vadd.f32 1e-05, %v3935_v9  ;;  %v3934_v56 = vmul.f32 0.0078125, %v3913_v6  ;;  %v3975_v58 = vmul.f32 %v11982_v51, %v14042_v48 }
0x104f   :  { %v11984_v21 = vpop.eup %11983  ;;  %v3919_v32 = vpop.xlane.xlu0 %3918 }
0x1050   :  { %11997 = vrsqrt.f32 %v3951_v41  ;;  %v3950_v57 = vadd.f32 1e-05, %v3934_v56  ;;  %v3937_v8 = vmul.f32 0.0078125, %v3919_v32  ;;  %v3974_v49 = vmul.f32 %v11984_v21, %v14049_v26 }
0x1051   :  { %v11986_v33 = vpop.eup %11985  ;;  %v3917_v40 = vpop.xlane.xlu1 %3916  ;;  %v3999_v24 = vmul.f32 %v13954_v59, %v3975_v58 }
0x1052   :  { %11999 = vrsqrt.f32 %v3950_v57  ;;  %v3953_v18 = vadd.f32 1e-05, %v3937_v8  ;;  %v3936_v5 = vmul.f32 0.0078125, %v3917_v40  ;;  %v3998_v29 = vmul.f32 %v13954_v59, %v3974_v49 }
0x1053   :  { %v11988_v37 = vpop.eup %11987  ;;  %v3977_v35 = vmul.f32 %v11986_v33, %v14058_v52  ;;  %v4023_v26 = vadd.f32 %v13960_v31, %v3999_v24 }
0x1054   :  { %12001 = vrsqrt.f32 %v3953_v18  ;;  %v3952_v48 = vadd.f32 1e-05, %v3936_v5  ;;  %v4022_v20 = vadd.f32 %v13960_v31, %v3998_v29  ;;  %v3976_v3 = vmul.f32 %v11988_v37, %v14064_v10 }
0x1055   :  { %v11990_v44 = vpop.eup %11989  ;;  %v4001_v19 = vmul.f32 %v13954_v59, %v3977_v35 }
0x1056   :  { %12003 = vrsqrt.f32 %v3952_v48  ;;  %10685 = vmatprep.mubr.f32.mxu1 %v4022_v20  ;;  %v4000_v23 = vmul.f32 %v13954_v59, %v3976_v3  ;;  %v3979_v36 = vmul.f32 %v11990_v44, %v14069_v61 }
0x1057   :  { %v11992_v53 = vpop.eup %11991  ;;  %10686 = vmatmul.mubr.f32.gmra.mxu1 %v4023_v26  ;;  %v4025_v10 = vadd.f32 %v13960_v31, %v4001_v19 }
0x1058   :  { %v4024_v52 = vadd.f32 %v13960_v31, %v4000_v23  ;;  %v3978_v54 = vmul.f32 %v11992_v53, %v14074_v47  ;;  %v4003_v9 = vmul.f32 %v13954_v59, %v3979_v36 }
0x1059   :  { %v11994_v38 = vpop.eup %11993 }
0x105a   :  { %10688 = vmatprep.mubr.f32.mxu1 %v4024_v52  ;;  %v4002_v51 = vmul.f32 %v13954_v59, %v3978_v54  ;;  %v3981_v6 = vmul.f32 %v11994_v38, %v14079_v27  ;;  %v4027_v21 = vadd.f32 %v13960_v31, %v4003_v9 }
0x105b   :  { %v11996_v41 = vpop.eup %11995  ;;  %10689 = vmatmul.mubr.f32.gmra.mxu1 %v4025_v10 }
0x105c   :  { %v4026_v61 = vadd.f32 %v13960_v31, %v4002_v51  ;;  %v3980_v56 = vmul.f32 %v11996_v41, %v14084_v13  ;;  %v4005_v47 = vmul.f32 %v13954_v59, %v3981_v6 }
0x105d   :  { %v11998_v58 = vpop.eup %11997 }
0x105e   :  { %10691 = vmatprep.mubr.f32.mxu1 %v4026_v61  ;;  %v4004_v32 = vmul.f32 %v13954_v59, %v3980_v56  ;;  %v3983_v57 = vmul.f32 %v11998_v58, %v14089_v28  ;;  %v4029_v40 = vadd.f32 %v13960_v31, %v4005_v47 }
0x105f   :  { %v12000_v8 = vpop.eup %11999  ;;  %10692 = vmatmul.mubr.f32.gmra.mxu1 %v4027_v21 }
0x1060   :  { %v4028_v27 = vadd.f32 %v13960_v31, %v4004_v32  ;;  %v3982_v49 = vmul.f32 %v12000_v8, %v14094_v45  ;;  %v4007_v13 = vmul.f32 %v13954_v59, %v3983_v57 }
0x1061   :  { %v12002_v33 = vpop.eup %12001 }
0x1062   :  { %10694 = vmatprep.mubr.f32.mxu1 %v4028_v27  ;;  %v4006_v24 = vmul.f32 %v13954_v59, %v3982_v49  ;;  %v3985_v18 = vmul.f32 %v12002_v33, %v14099_v22  ;;  %v4031_v37 = vadd.f32 %v13960_v31, %v4007_v13  ;;  %v8658_v22 = vld [vmem:[%s15762_s14 + $0x1] ss:$0 sm:$0xff] }
0x1063   :  { %v12004_v5 = vpop.eup %12003  ;;  %10695 = vmatmul.mubr.f32.gmra.mxu1 %v4029_v40 }
0x1064   :  { %v4030_v28 = vadd.f32 %v13960_v31, %v4006_v24  ;;  %v3984_v29 = vmul.f32 %v12004_v5, %v14104_v2  ;;  %v4009_v45 = vmul.f32 %v13954_v59, %v3985_v18 }
0x1066   :  { %10697 = vmatprep.mubr.f32.mxu1 %v4030_v28  ;;  %v4008_v35 = vmul.f32 %v13954_v59, %v3984_v29  ;;  %v4033_v20 = vadd.f32 %v13960_v31, %v4009_v45 }
0x1067   :  { %10698 = vmatmul.mubr.f32.gmra.mxu1 %v4031_v37 }
0x1068   :  { %v4032_v48 = vadd.f32 %v13960_v31, %v4008_v35 }
0x106a   :  { %10700 = vmatprep.mubr.f32.mxu1 %v4032_v48 }
0x106b   :  { %10701 = vmatmul.mubr.f32.gmra.mxu1 %v4033_v20 }
0x1074   :  { %v10740_v3 = vpop.f32.mrf.mxu0 }
0x1075   :  { %v4319_v2 = vadd.f32 %v10740_v3, %v8658_v22 }
0x1076   :  { %v4313_v44 = vpop.f32.mrf.mxu0 }
0x1077   :  { %v4379_v26 = vadd.f32 %v4319_v2, %v13971_v15  ;;  %v4314_v19 = vadd.f32 %v8658_v22, %v4313_v44 }
0x1079   :  { %v4378_v23 = vadd.f32 %v4314_v19, %v13965_v14  ;;  %4382 = vadd.xlane.f32.xlu1 %v4379_v26 }
0x107b   :  { %4380 = vadd.xlane.f32.xlu0 %v4378_v23 }
0x10c7   :  { %v3923_v36 = vpop.xlane.xlu0 %3922 }
0x10c8   :  { %v3939_v53 = vmul.f32 0.0078125, %v3923_v36 }
0x10c9   :  { %v3921_v52 = vpop.xlane.xlu1 %3920 }
0x10ca   :  { %v3955_v54 = vadd.f32 1e-05, %v3939_v53  ;;  %v3938_v38 = vmul.f32 0.0078125, %v3921_v52 }
0x10cc   :  { %12005 = vrsqrt.f32 %v3955_v54  ;;  %v3954_v10 = vadd.f32 1e-05, %v3938_v38 }
0x10ce   :  { %12007 = vrsqrt.f32 %v3954_v10 }
0x10d9   :  { %v12006_v9 = vpop.eup %12005 }
0x10da   :  { %v3987_v51 = vmul.f32 %v12006_v9, %v14113_v46 }
0x10db   :  { %v12008_v6 = vpop.eup %12007 }
0x10dc   :  { %v3986_v41 = vmul.f32 %v12008_v6, %v14116_v62  ;;  %v4011_v15 = vmul.f32 %v13954_v59, %v3987_v51 }
0x10de   :  { %v4010_v14 = vmul.f32 %v13954_v59, %v3986_v41  ;;  %v4035_v56 = vadd.f32 %v13960_v31, %v4011_v15 }
0x10e0   :  { %v4034_v61 = vadd.f32 %v13960_v31, %v4010_v14 }
0x10e2   :  { %10703 = vmatprep.mubr.f32.mxu1 %v4034_v61  ;;  %v4672_v61 = vld [vmem:[#allocation3 + $0x178] sm:$0xff] }
0x10e3   :  { %10704 = vmatmul.mubr.f32.gmra.mxu1 %v4035_v56  ;;  %v4671_v56 = vld [vmem:[#allocation3 + $0x170] sm:$0xff]  ;;  %10797 = vmatprep.subr.mxu1 %v4672_v61 }
0x10e4   :  { %10798 = vmatpush3.msra.mxu1 %v4672_v61  ;;  %v4835_v61 = vld [vmem:[#allocation6 + $0x140] sm:$0xff] }
0x10e5   :  { %10799 = vmatprep.subr.mxu1 %v4671_v56 }
0x10e6   :  { %10800 = vmatpush3.msra.mxu1 %v4671_v56  ;;  %v15913_v56 = vld [vmem:[#allocation27_spill] sm:$0xff] }
0x1102   :  { %v4383_v58 = vpop.xlane.xlu1 %4382 }
0x1103   :  { %v4385_v21 = vmul.f32 0.0078125, %v4383_v58  ;;  %v4670_v58 = vld [vmem:[#allocation3 + $0x168] sm:$0xff] }
0x1104   :  { %v4381_v47 = vpop.xlane.xlu0 %4380  ;;  %10801 = vmatprep.subr.mxu1 %v4670_v58 }
0x1105   :  { %v14169_v32 = vsub.f32 %v4379_v26, %v4385_v21  ;;  %v4384_v57 = vmul.f32 0.0078125, %v4381_v47  ;;  %v4669_v21 = vld [vmem:[#allocation3 + $0x160] sm:$0xff]  ;;  %10802 = vmatpush3.msra.mxu1 %v4670_v58  ;;  %v4668_v47 = vld [vmem:[#allocation3 + $0x158] sm:$0xff] }
0x1106   :  { %10803 = vmatprep.subr.mxu1 %v4669_v21  ;;  %v15914_v58 = vld [vmem:[#allocation28_spill] sm:$0xff] }
0x1107   :  { %v14171_v46 = vsub.f32 %v4378_v23, %v4384_v57  ;;  %v4389_v62 = vmul.f32 %v14169_v32, %v14169_v32  ;;  %10804 = vmatpush3.msra.mxu1 %v4669_v21  ;;  %v4667_v57 = vld [vmem:[#allocation3 + $0x150] sm:$0xff]  ;;  %v4834_v21 = vld [vmem:[#allocation6 + $0x138] sm:$0xff] }
0x1108   :  { %10805 = vmatprep.subr.mxu1 %v4668_v47 }
0x1109   :  { %4392 = vadd.xlane.f32.xlu1 %v4389_v62  ;;  %v4388_v59 = vmul.f32 %v14171_v46, %v14171_v46  ;;  %10806 = vmatpush3.msra.mxu1 %v4668_v47  ;;  %v4666_v62 = vld [vmem:[#allocation3 + $0x148] sm:$0xff]  ;;  %v4833_v47 = vld [vmem:[#allocation6 + $0x130] sm:$0xff] }
0x110a   :  { %10807 = vmatprep.subr.mxu1 %v4667_v57 }
0x110b   :  { %4390 = vadd.xlane.f32.xlu0 %v4388_v59  ;;  %10808 = vmatpush3.msra.mxu1 %v4667_v57  ;;  %v4665_v59 = vld [vmem:[#allocation3 + $0x140] sm:$0xff]  ;;  %v15915_v57 = vld [vmem:[#allocation29_spill] sm:$0xff] }
0x110c   :  { %10809 = vmatprep.subr.mxu1 %v4666_v62 }
0x110d   :  { %10810 = vmatpush3.msra.mxu1 %v4666_v62  ;;  %v15916_v62 = vld [vmem:[#allocation30_spill] sm:$0xff] }
0x110e   :  { %10811 = vmatprep.subr.mxu1 %v4665_v59 }
0x110f   :  { %10812 = vmatpush3.msra.mxu1 %v4665_v59  ;;  %v15917_v59 = vld [vmem:[#allocation31_spill] sm:$0xff] }
0x1117   :  { %v10687_v8 = vpop.f32.mrf.mxu1 }
0x1118   :  { %v4143_v31 = vadd.f32 %v10687_v8, %v14039_v4  ;;  %v4664_v8 = vld [vmem:[#allocation3 + $0x138] sm:$0xff] }
0x1119   :  { %v4137_v27 = vpop.f32.mrf.mxu1  ;;  %10813 = vmatprep.subr.mxu1 %v4664_v8 }
0x111a   :  { %v4138_v49 = vadd.f32 %v14039_v4, %v4137_v27  ;;  %v4209_v13 = vmax.f32 %v4143_v31, 0.0  ;;  %v4663_v31 = vld [vmem:[#allocation3 + $0x130] sm:$0xff]  ;;  %10814 = vmatpush3.msra.mxu1 %v4664_v8  ;;  %v15918_v8 = vld [vmem:[#allocation32_spill] sm:$0xff] }
0x111b   :  { %v10690_v33 = vpop.f32.mrf.mxu1  ;;  %10815 = vmatprep.subr.mxu1 %v4663_v31 }
0x111c   :  { %v4208_v40 = vmax.f32 %v4138_v49, 0.0  ;;  %v4153_v24 = vadd.f32 %v10690_v33, %v14039_v4  ;;  %10816 = vmatpush3.msra.mxu1 %v4663_v31  ;;  %v15919_v31 = vld [vmem:[#allocation33_spill] sm:$0xff] }
0x111d   :  { %v4147_v18 = vpop.f32.mrf.mxu1 }
0x111e   :  { %v4148_v5 = vadd.f32 %v14039_v4, %v4147_v18  ;;  %10741 = vmatprep.mubr.f32.mxu0 %v4208_v40  ;;  %v4211_v37 = vmax.f32 %v4153_v24, 0.0 }
0x111f   :  { %v10693_v28 = vpop.f32.mrf.mxu1  ;;  %10742 = vmatmul.mubr.f32.gmra.mxu0 %v4209_v13 }
0x1120   :  { %v4210_v29 = vmax.f32 %v4148_v5, 0.0  ;;  %v4163_v45 = vadd.f32 %v10693_v28, %v14039_v4  ;;  %v8660_v28 = vld [vmem:[%s15765_s17 + $0x1] ss:$0 sm:$0xff] }
0x1121   :  { %v4157_v35 = vpop.f32.mrf.mxu1 }
0x1122   :  { %v4158_v48 = vadd.f32 %v14039_v4, %v4157_v35  ;;  %10744 = vmatprep.mubr.f32.mxu0 %v4210_v29  ;;  %v4213_v3 = vmax.f32 %v4163_v45, 0.0 }
0x1123   :  { %v10696_v20 = vpop.f32.mrf.mxu1  ;;  %10745 = vmatmul.mubr.f32.gmra.mxu0 %v4211_v37 }
0x1124   :  { %v4212_v22 = vmax.f32 %v4158_v48, 0.0  ;;  %v4173_v2 = vadd.f32 %v10696_v20, %v14039_v4  ;;  %v8662_v20 = vld [vmem:[%s15766_s18 + $0x1] ss:$0 sm:$0xff] }
0x1125   :  { %v4167_v44 = vpop.f32.mrf.mxu1 }
0x1126   :  { %v4168_v26 = vadd.f32 %v14039_v4, %v4167_v44  ;;  %10747 = vmatprep.mubr.f32.mxu0 %v4212_v22  ;;  %v4215_v36 = vmax.f32 %v4173_v2, 0.0 }
0x1127   :  { %v10699_v19 = vpop.f32.mrf.mxu1  ;;  %10748 = vmatmul.mubr.f32.gmra.mxu0 %v4213_v3 }
0x1128   :  { %v4214_v23 = vmax.f32 %v4168_v26, 0.0  ;;  %v4183_v53 = vadd.f32 %v10699_v19, %v14039_v4 }
0x1129   :  { %v4177_v52 = vpop.f32.mrf.mxu1 }
0x112a   :  { %v4178_v54 = vadd.f32 %v14039_v4, %v4177_v52  ;;  %10750 = vmatprep.mubr.f32.mxu0 %v4214_v23  ;;  %v4217_v9 = vmax.f32 %v4183_v53, 0.0  ;;  %v15907_v53 = vld [vmem:[#allocation22_spill] sm:$0xff]  ;;  %v15908_v52 = vld [vmem:[#allocation21_spill] sm:$0xff] }
0x112b   :  { %v10702_v38 = vpop.f32.mrf.mxu1  ;;  %10751 = vmatmul.mubr.f32.gmra.mxu0 %v4215_v36  ;;  %v4841_v36 = vld [vmem:[#allocation6 + $0x170] sm:$0xff] }
0x112c   :  { %v4216_v10 = vmax.f32 %v4178_v54, 0.0  ;;  %v4193_v51 = vadd.f32 %v10702_v38, %v14039_v4  ;;  %v4840_v54 = vld [vmem:[#allocation6 + $0x168] sm:$0xff]  ;;  %v4839_v38 = vld [vmem:[#allocation6 + $0x160] sm:$0xff] }
0x112d   :  { %v4187_v6 = vpop.f32.mrf.mxu1 }
0x112e   :  { %v4188_v41 = vadd.f32 %v14039_v4, %v4187_v6  ;;  %10753 = vmatprep.mubr.f32.mxu0 %v4216_v10  ;;  %v4219_v14 = vmax.f32 %v4193_v51, 0.0  ;;  %v15909_v10 = vld [vmem:[#allocation23_spill] sm:$0xff]  ;;  %v4837_v6 = vld [vmem:[#allocation6 + $0x150] sm:$0xff] }
0x112f   :  { %10754 = vmatmul.mubr.f32.gmra.mxu0 %v4217_v9  ;;  %v15910_v9 = vld [vmem:[#allocation24_spill] sm:$0xff]  ;;  %v4838_v51 = vld [vmem:[#allocation6 + $0x158] sm:$0xff] }
0x1130   :  { %v4218_v15 = vmax.f32 %v4188_v41, 0.0  ;;  %v15911_v41 = vld [vmem:[#allocation25_spill] sm:$0xff] }
0x1132   :  { %10756 = vmatprep.mubr.f32.mxu0 %v4218_v15  ;;  %v15912_v15 = vld [vmem:[#allocation26_spill] sm:$0xff] }
0x1133   :  { %10757 = vmatmul.mubr.f32.gmra.mxu0 %v4219_v14  ;;  %v4836_v14 = vld [vmem:[#allocation6 + $0x148] sm:$0xff] }
0x1192   :  { %v4393_v27 = vpop.xlane.xlu1 %4392 }
0x1193   :  { %v4395_v49 = vmul.f32 0.0078125, %v4393_v27  ;;  %v15920_v27 = vld [vmem:[#allocation34_spill] sm:$0xff] }
0x1194   :  { %v4391_v33 = vpop.xlane.xlu0 %4390 }
0x1195   :  { %v4397_v40 = vadd.f32 1e-05, %v4395_v49  ;;  %v4394_v13 = vmul.f32 0.0078125, %v4391_v33  ;;  %v15921_v49 = vld [vmem:[#allocation35_spill] sm:$0xff] }
0x1197   :  { %12009 = vrsqrt.f32 %v4397_v40  ;;  %v4396_v24 = vadd.f32 1e-05, %v4394_v13 }
0x1199   :  { %12011 = vrsqrt.f32 %v4396_v24 }
0x11a3   :  { %v10705_v18 = vpop.f32.mrf.mxu1 }
0x11a4   :  { %v12010_v5 = vpop.eup %12009  ;;  %v4203_v29 = vadd.f32 %v10705_v18, %v14039_v4 }
0x11a5   :  { %v4197_v37 = vpop.f32.mrf.mxu1  ;;  %v4401_v45 = vmul.f32 %v12010_v5, %v14169_v32  ;;  %v15906_v32 = vld [vmem:[#allocation20_spill] sm:$0xff] }
0x11a6   :  { %v12012_v35 = vpop.eup %12011  ;;  %v4198_v48 = vadd.f32 %v14039_v4, %v4197_v37  ;;  %v4221_v44 = vmax.f32 %v4203_v29, 0.0  ;;  %v153_v4 = vld [vmem:[%s15905_s30] sm:$0x3]  ;;  %v4662_v29 = vld [vmem:[#allocation3 + $0x128] sm:$0xff] }
0x11a7   :  { %v4411_v22 = vmul.f32 %v8660_v28, %v4401_v45  ;;  %v4400_v3 = vmul.f32 %v12012_v35, %v14171_v46  ;;  %v4842_v46 = vld [vmem:[#allocation6 + $0x178] sm:$0xff]  ;;  %v4832_v37 = vld [vmem:[#allocation6 + $0x128] sm:$0xff]  ;;  %10817 = vmatprep.subr.mxu1 %v4662_v29  ;;  %v4661_v35 = vld [vmem:[#allocation3 + $0x120] sm:$0xff] }
0x11a8   :  { %v4220_v2 = vmax.f32 %v4198_v48, 0.0  ;;  %10818 = vmatpush3.msra.mxu1 %v4662_v29  ;;  %v4831_v48 = vld [vmem:[#allocation6 + $0x120] sm:$0xff]  ;;  %v5000_v29 = vld [vmem:[#allocation8 + $0x118] sm:$0xff] }
0x11a9   :  { %v4421_v26 = vadd.f32 %v8662_v20, %v4411_v22  ;;  %v4410_v19 = vmul.f32 %v8660_v28, %v4400_v3  ;;  %10819 = vmatprep.subr.mxu1 %v4661_v35  ;;  %v4660_v22 = vld [vmem:[#allocation3 + $0x118] sm:$0xff] }
0x11aa   :  { %10759 = vmatprep.mubr.f32.mxu0 %v4220_v2  ;;  %10820 = vmatpush3.msra.mxu1 %v4661_v35  ;;  %v4830_v3 = vld [vmem:[#allocation6 + $0x118] sm:$0xff] }
0x11ab   :  { %10760 = vmatmul.mubr.f32.gmra.mxu0 %v4221_v44  ;;  %v4420_v23 = vadd.f32 %v8662_v20, %v4410_v19  ;;  %10821 = vmatprep.subr.mxu1 %v4660_v22  ;;  %v4659_v44 = vld [vmem:[#allocation3 + $0x110] sm:$0xff] }
0x11ac   :  { %10763 = vmatpush3.msra.mxu0 %v4421_v26  ;;  %10766 = vmatprep.mubr.msk.f32.mxu0 %vm12403_vm3, %v15902_v0 }
0x11ad   :  { %10764 = vmatprep.subr.mxu0 %v15902_v0  ;;  %10822 = vmatpush3.msra.mxu1 %v4660_v22  ;;  %v14323_v22 = vld [vmem:[%s15869_s9 + $0x2] ss:$0 sm:$0xff] }
0x11ae   :  { %10765 = vmatpush3.msra.mxu0 %v4420_v23  ;;  %10823 = vmatprep.subr.mxu1 %v4659_v44 }
0x11af   :  { %10767 = vmatmul.mubr.msk.f32.vlgmr.msra.gmra.mxu0 %vm537_vm0, %v153_v4  ;;  %10769 = vmatprep.subr.mxu0 %v4421_v26  ;;  %v4828_v4 = vld [vmem:[#allocation6 + $0x108] sm:$0xff] }
0x11b0   :  { %10770 = vmatpush3.msra.mxu0 %v4421_v26  ;;  %10773 = vmatprep.mubr.msk.f32.mxu0 %vm537_vm0, %v15906_v32  ;;  %v4829_v26 = vld [vmem:[#allocation6 + $0x110] sm:$0xff] }
0x11b1   :  { %10771 = vmatprep.subr.mxu0 %v4420_v23  ;;  %10824 = vmatpush3.msra.mxu1 %v4659_v44 }
0x11b2   :  { %10772 = vmatpush3.msra.mxu0 %v4420_v23  ;;  %v4658_v23 = vld [vmem:[#allocation3 + $0x108] sm:$0xff] }
0x11b3   :  { %10774 = vmatmul.mubr.msk.f32.vlgmr.msra.gmra.mxu0 %vm537_vm0, %v15907_v53  ;;  %10853 = vmatprep.subr.mxu0 %v4842_v46  ;;  %v5012_v53 = vld [vmem:[#allocation8 + $0x178] sm:$0xff] }
0x11b4   :  { %10776 = vmatprep.mubr.msk.f32.mxu0 %vm537_vm0, %v15908_v52  ;;  %10854 = vmatpush3.msra.mxu0 %v4842_v46  ;;  %v4657_v46 = vld [vmem:[#allocation3 + $0x100] sm:$0xff] }
0x11b5   :  { %10855 = vmatprep.subr.mxu0 %v4841_v36  ;;  %10825 = vmatprep.subr.mxu1 %v4658_v23 }
0x11b6   :  { %10856 = vmatpush3.msra.mxu0 %v4841_v36  ;;  %10826 = vmatpush3.msra.mxu1 %v4658_v23  ;;  %v4827_v36 = vld [vmem:[#allocation6 + $0x100] sm:$0xff] }
0x11b7   :  { %10777 = vmatmul.mubr.msk.f32.gmra.mxu0 %vm537_vm0, %v15909_v10  ;;  %10857 = vmatprep.subr.mxu0 %v4840_v54 }
0x11b8   :  { %10779 = vmatprep.mubr.msk.f32.mxu0 %vm537_vm0, %v15910_v9  ;;  %10858 = vmatpush3.msra.mxu0 %v4840_v54 }
0x11b9   :  { %10859 = vmatprep.subr.mxu0 %v4839_v38  ;;  %10827 = vmatprep.subr.mxu1 %v4657_v46 }
0x11ba   :  { %10860 = vmatpush3.msra.mxu0 %v4839_v38  ;;  %10828 = vmatpush3.msra.mxu1 %v4657_v46 }
0x11bb   :  { %10780 = vmatmul.mubr.msk.f32.gmra.mxu0 %vm537_vm0, %v15911_v41  ;;  %10861 = vmatprep.subr.mxu0 %v4838_v51 }
0x11bc   :  { %10782 = vmatprep.mubr.msk.f32.mxu0 %vm537_vm0, %v15912_v15  ;;  %10862 = vmatpush3.msra.mxu0 %v4838_v51 }
0x11bd   :  { %10863 = vmatprep.subr.mxu0 %v4837_v6  ;;  %10909 = vmatprep.subr.mxu1 %v5012_v53 }
0x11be   :  { %10864 = vmatpush3.msra.mxu0 %v4837_v6  ;;  %v5011_v6 = vld [vmem:[#allocation8 + $0x170] sm:$0xff] }
0x11bf   :  { %10783 = vmatmul.mubr.msk.f32.gmra.mxu0 %vm537_vm0, %v15913_v56  ;;  %10865 = vmatprep.subr.mxu0 %v4836_v14  ;;  %v5009_v56 = vld [vmem:[#allocation8 + $0x160] sm:$0xff] }
0x11c0   :  { %10785 = vmatprep.mubr.msk.f32.mxu0 %vm537_vm0, %v15914_v58  ;;  %10866 = vmatpush3.msra.mxu0 %v4836_v14  ;;  %v5010_v14 = vld [vmem:[#allocation8 + $0x168] sm:$0xff] }
0x11c1   :  { %10867 = vmatprep.subr.mxu0 %v4835_v61 }
0x11c2   :  { %10868 = vmatpush3.msra.mxu0 %v4835_v61 }
0x11c3   :  { %10786 = vmatmul.mubr.msk.f32.gmra.mxu0 %vm537_vm0, %v15915_v57  ;;  %10869 = vmatprep.subr.mxu0 %v4834_v21  ;;  %v5007_v57 = vld [vmem:[#allocation8 + $0x150] sm:$0xff] }
0x11c4   :  { %10788 = vmatprep.mubr.msk.f32.mxu0 %vm537_vm0, %v15916_v62  ;;  %10870 = vmatpush3.msra.mxu0 %v4834_v21  ;;  %v5008_v21 = vld [vmem:[#allocation8 + $0x158] sm:$0xff] }
0x11c5   :  { %10871 = vmatprep.subr.mxu0 %v4833_v47 }
0x11c6   :  { %10872 = vmatpush3.msra.mxu0 %v4833_v47 }
0x11c7   :  { %10789 = vmatmul.mubr.msk.f32.gmra.mxu0 %vm537_vm0, %v15917_v59  ;;  %10873 = vmatprep.subr.mxu0 %v4832_v37  ;;  %v5006_v59 = vld [vmem:[#allocation8 + $0x148] sm:$0xff] }
0x11c8   :  { %10791 = vmatprep.mubr.msk.f32.mxu0 %vm537_vm0, %v15918_v8  ;;  %10874 = vmatpush3.msra.mxu0 %v4832_v37 }
0x11c9   :  { %10875 = vmatprep.subr.mxu0 %v4831_v48 }
0x11ca   :  { %10876 = vmatpush3.msra.mxu0 %v4831_v48  ;;  %v4998_v48 = vld [vmem:[#allocation8 + $0x108] sm:$0xff] }
0x11cb   :  { %10792 = vmatmul.mubr.msk.f32.gmra.mxu0 %vm537_vm0, %v15919_v31  ;;  %10877 = vmatprep.subr.mxu0 %v4830_v3  ;;  %v5005_v31 = vld [vmem:[#allocation8 + $0x140] sm:$0xff] }
0x11cc   :  { %10794 = vmatprep.mubr.msk.f32.mxu0 %vm537_vm0, %v15920_v27  ;;  %10878 = vmatpush3.msra.mxu0 %v4830_v3 }
0x11cd   :  { %10879 = vmatprep.subr.mxu0 %v4829_v26 }
0x11ce   :  { %10880 = vmatpush3.msra.mxu0 %v4829_v26 }
0x11cf   :  { %10795 = vmatmul.mubr.msk.f32.gmra.mxu0 %vm537_vm0, %v15921_v49  ;;  %10881 = vmatprep.subr.mxu0 %v4828_v4  ;;  %v5004_v49 = vld [vmem:[#allocation8 + $0x138] sm:$0xff] }
0x11d0   :  { %10882 = vmatpush3.msra.mxu0 %v4828_v4 }
0x11d1   :  { %10883 = vmatprep.subr.mxu0 %v4827_v36 }
0x11d2   :  { %10884 = vmatpush3.msra.mxu0 %v4827_v36 }
0x11df   :  { %v10743_v33 = vpop.f32.mrf.mxu0 }
0x11e1   :  { %v4323_v40 = vpop.f32.mrf.mxu0 }
0x11e2   :  { %v5003_v40 = vld [vmem:[#allocation8 + $0x130] sm:$0xff] }
0x11e3   :  { %v10746_v13 = vpop.f32.mrf.mxu0 }
0x11e5   :  { %v4331_v24 = vpop.f32.mrf.mxu0 }
0x11e6   :  { %v5002_v24 = vld [vmem:[#allocation8 + $0x128] sm:$0xff] }
0x11e7   :  { %v10749_v18 = vpop.f32.mrf.mxu0 }
0x11e9   :  { %v4339_v5 = vpop.f32.mrf.mxu0 }
0x11ea   :  { %v5001_v5 = vld [vmem:[#allocation8 + $0x120] sm:$0xff] }
0x11eb   :  { %v10752_v28 = vpop.f32.mrf.mxu0 }
0x11ed   :  { %v4347_v45 = vpop.f32.mrf.mxu0 }
0x11ee   :  { %v4999_v45 = vld [vmem:[#allocation8 + $0x110] sm:$0xff] }
0x11ef   :  { %v10755_v20 = vpop.f32.mrf.mxu0 }
0x11f0   :  { %v4997_v20 = vld [vmem:[#allocation8 + $0x100] sm:$0xff] }
0x11f1   :  { %v4355_v2 = vpop.f32.mrf.mxu0 }
0x11f3   :  { %v10758_v19 = vpop.f32.mrf.mxu0 }
0x11f5   :  { %v4363_v32 = vpop.f32.mrf.mxu0 }
0x126b   :  { %v10761_v52 = vpop.f32.mrf.mxu0 }
0x126d   :  { %v4371_v54 = vpop.f32.mrf.mxu0 }
0x126f   :  { %v14238_v38 = vpop.f32.mrf.mxu0 }
0x1270   :  { %15922 = vst [vmem:[#allocation37_spill] sm:$0xff] %v14238_v38 }
0x1271   :  { %v10768_v10 = vpop.f32.mrf.mxu0 }
0x1273   :  { %v14240_v9 = vpop.f32.mrf.mxu0 }
0x1274   :  { %15923 = vst [vmem:[#allocation36_spill] sm:$0xff] %v14240_v9 }
0x1275   :  { %v14242_v51 = vpop.f32.mrf.mxu0 }
0x1276   :  { %15924 = vst [vmem:[#allocation39_spill] sm:$0xff] %v14242_v51  ;;  %10829 = vmatprep.mubr.f32.mxu1 %v14242_v51  ;;  %10885 = vmatprep.mubr.f32.mxu0 %v14242_v51 }
0x1277   :  { %v14246_v41 = vpop.f32.mrf.mxu0  ;;  %10830 = vmatmul.mubr.f32.vlgmr.msra.gmra.mxu1 %v14240_v9  ;;  %10886 = vmatmul.mubr.f32.vlgmr.msra.gmra.mxu0 %v14240_v9 }
0x1278   :  { %15925 = vst [vmem:[#allocation38_spill] sm:$0xff] %v14246_v41  ;;  %10910 = vmatpush3.msra.mxu1 %v5012_v53 }
0x1279   :  { %v14250_v15 = vpop.f32.mrf.mxu0  ;;  %10911 = vmatprep.subr.mxu1 %v5011_v6 }
0x127a   :  { %15926 = vst [vmem:[#allocation41_spill] sm:$0xff] %v14250_v15  ;;  %10832 = vmatprep.mubr.f32.mxu1 %v14250_v15  ;;  %10888 = vmatprep.mubr.f32.mxu0 %v14250_v15 }
0x127b   :  { %10912 = vmatpush3.msra.mxu1 %v5011_v6  ;;  %v14254_v61 = vpop.f32.mrf.mxu0  ;;  %10889 = vmatmul.mubr.f32.gmra.mxu0 %v14246_v41 }
0x127c   :  { %15927 = vst [vmem:[#allocation40_spill] sm:$0xff] %v14254_v61  ;;  %10833 = vmatmul.mubr.f32.gmra.mxu1 %v14246_v41  ;;  %10913 = vmatprep.subr.mxu1 %v5010_v14 }
0x127d   :  { %10914 = vmatpush3.msra.mxu1 %v5010_v14  ;;  %v14258_v58 = vpop.f32.mrf.mxu0 }
0x127e   :  { %15928 = vst [vmem:[#allocation43_spill] sm:$0xff] %v14258_v58  ;;  %10915 = vmatprep.subr.mxu1 %v5009_v56  ;;  %10835 = vmatprep.mubr.f32.mxu1 %v14258_v58 }
0x127f   :  { %10891 = vmatprep.mubr.f32.mxu0 %v14258_v58  ;;  %10916 = vmatpush3.msra.mxu1 %v5009_v56  ;;  %v14262_v47 = vpop.f32.mrf.mxu0 }
0x1280   :  { %15929 = vst [vmem:[#allocation42_spill] sm:$0xff] %v14262_v47  ;;  %10836 = vmatmul.mubr.f32.gmra.mxu1 %v14254_v61  ;;  %10892 = vmatmul.mubr.f32.gmra.mxu0 %v14254_v61 }
0x1281   :  { %10917 = vmatprep.subr.mxu1 %v5008_v21  ;;  %v14266_v62 = vpop.f32.mrf.mxu0 }
0x1282   :  { %15930 = vst [vmem:[#allocation45_spill] sm:$0xff] %v14266_v62  ;;  %10918 = vmatpush3.msra.mxu1 %v5008_v21  ;;  %10838 = vmatprep.mubr.f32.mxu1 %v14266_v62 }
0x1283   :  { %10919 = vmatprep.subr.mxu1 %v5007_v57  ;;  %10894 = vmatprep.mubr.f32.mxu0 %v14266_v62  ;;  %v14270_v8 = vpop.f32.mrf.mxu0 }
0x1284   :  { %15931 = vst [vmem:[#allocation44_spill] sm:$0xff] %v14270_v8  ;;  %10920 = vmatpush3.msra.mxu1 %v5007_v57  ;;  %10895 = vmatmul.mubr.f32.gmra.mxu0 %v14262_v47 }
0x1285   :  { %10839 = vmatmul.mubr.f32.gmra.mxu1 %v14262_v47  ;;  %10921 = vmatprep.subr.mxu1 %v5006_v59  ;;  %v14274_v27 = vpop.f32.mrf.mxu0 }
0x1286   :  { %15932 = vst [vmem:[#allocation47_spill] sm:$0xff] %v14274_v27  ;;  %10922 = vmatpush3.msra.mxu1 %v5006_v59  ;;  %10841 = vmatprep.mubr.f32.mxu1 %v14274_v27 }
0x1287   :  { %10923 = vmatprep.subr.mxu1 %v5005_v31  ;;  %10897 = vmatprep.mubr.f32.mxu0 %v14274_v27  ;;  %v14278_v33 = vpop.f32.mrf.mxu0 }
0x1288   :  { %15933 = vst [vmem:[#allocation46_spill] sm:$0xff] %v14278_v33  ;;  %10924 = vmatpush3.msra.mxu1 %v5005_v31  ;;  %10898 = vmatmul.mubr.f32.gmra.mxu0 %v14270_v8 }
0x1289   :  { %10842 = vmatmul.mubr.f32.gmra.mxu1 %v14270_v8  ;;  %10925 = vmatprep.subr.mxu1 %v5004_v49  ;;  %v14282_v13 = vpop.f32.mrf.mxu0 }
0x128a   :  { %15934 = vst [vmem:[#allocation49_spill] sm:$0xff] %v14282_v13  ;;  %10926 = vmatpush3.msra.mxu1 %v5004_v49  ;;  %10844 = vmatprep.mubr.f32.mxu1 %v14282_v13 }
0x128b   :  { %10927 = vmatprep.subr.mxu1 %v5003_v40  ;;  %10900 = vmatprep.mubr.f32.mxu0 %v14282_v13  ;;  %v14286_v18 = vpop.f32.mrf.mxu0 }
0x128c   :  { %15935 = vst [vmem:[#allocation48_spill] sm:$0xff] %v14286_v18  ;;  %10928 = vmatpush3.msra.mxu1 %v5003_v40  ;;  %10901 = vmatmul.mubr.f32.gmra.mxu0 %v14278_v33 }
0x128d   :  { %10845 = vmatmul.mubr.f32.gmra.mxu1 %v14278_v33  ;;  %10929 = vmatprep.subr.mxu1 %v5002_v24  ;;  %v14290_v28 = vpop.f32.mrf.mxu0 }
0x128e   :  { %15936 = vst [vmem:[#allocation51_spill] sm:$0xff] %v14290_v28  ;;  %10930 = vmatpush3.msra.mxu1 %v5002_v24  ;;  %10847 = vmatprep.mubr.f32.mxu1 %v14290_v28 }
0x128f   :  { %10931 = vmatprep.subr.mxu1 %v5001_v5  ;;  %10903 = vmatprep.mubr.f32.mxu0 %v14290_v28  ;;  %v14294_v37 = vpop.f32.mrf.mxu0 }
0x1290   :  { %15937 = vst [vmem:[#allocation50_spill] sm:$0xff] %v14294_v37  ;;  %10932 = vmatpush3.msra.mxu1 %v5001_v5  ;;  %10904 = vmatmul.mubr.f32.gmra.mxu0 %v14286_v18 }
0x1291   :  { %10848 = vmatmul.mubr.f32.gmra.mxu1 %v14286_v18  ;;  %10933 = vmatprep.subr.mxu1 %v5000_v29  ;;  %v14298_v35 = vpop.f32.mrf.mxu0 }
0x1292   :  { %15938 = vst [vmem:[#allocation20_spill] sm:$0xff] %v14298_v35  ;;  %10934 = vmatpush3.msra.mxu1 %v5000_v29  ;;  %10850 = vmatprep.mubr.f32.mxu1 %v14298_v35 }
0x1293   :  { %10935 = vmatprep.subr.mxu1 %v4999_v45  ;;  %10906 = vmatprep.mubr.f32.mxu0 %v14298_v35 }
0x1294   :  { %10936 = vmatpush3.msra.mxu1 %v4999_v45  ;;  %10907 = vmatmul.mubr.f32.gmra.mxu0 %v14294_v37 }
0x1295   :  { %10851 = vmatmul.mubr.f32.gmra.mxu1 %v14294_v37  ;;  %10937 = vmatprep.subr.mxu1 %v4998_v48 }
0x1296   :  { %10938 = vmatpush3.msra.mxu1 %v4998_v48  ;;  %10941 = vmatprep.mubr.f32.mxu1 %v14242_v51 }
0x1297   :  { %10939 = vmatprep.subr.mxu1 %v4997_v20 }
0x1298   :  { %10940 = vmatpush3.msra.mxu1 %v4997_v20 }
0x1299   :  { %10942 = vmatmul.mubr.f32.vlgmr.msra.gmra.mxu1 %v14240_v9 }
0x129a   :  { %10944 = vmatprep.mubr.f32.mxu1 %v14250_v15 }
0x129d   :  { %10945 = vmatmul.mubr.f32.gmra.mxu1 %v14246_v41 }
0x129e   :  { %10947 = vmatprep.mubr.f32.mxu1 %v14258_v58 }
0x12a1   :  { %10948 = vmatmul.mubr.f32.gmra.mxu1 %v14254_v61 }
0x12a2   :  { %10950 = vmatprep.mubr.f32.mxu1 %v14266_v62 }
0x12a5   :  { %10951 = vmatmul.mubr.f32.gmra.mxu1 %v14262_v47 }
0x12a6   :  { %10953 = vmatprep.mubr.f32.mxu1 %v14274_v27 }
0x12a9   :  { %10954 = vmatmul.mubr.f32.gmra.mxu1 %v14270_v8 }
0x12aa   :  { %10956 = vmatprep.mubr.f32.mxu1 %v14282_v13 }
0x12ad   :  { %10957 = vmatmul.mubr.f32.gmra.mxu1 %v14278_v33 }
0x12ae   :  { %10959 = vmatprep.mubr.f32.mxu1 %v14290_v28 }
0x12b1   :  { %10960 = vmatmul.mubr.f32.gmra.mxu1 %v14286_v18 }
0x12b2   :  { %10962 = vmatprep.mubr.f32.mxu1 %v14298_v35 }
0x12b5   :  { %10963 = vmatmul.mubr.f32.gmra.mxu1 %v14294_v37 }
0x1337   :  { %v10831_v3 = vpop.f32.mrf.mxu1  ;;  %v14325_v2 = vpop.f32.mrf.mxu0 }
0x1338   :  { %v14328_v44 = vadd.f32 %v10831_v3, %v14323_v22 }
0x1339   :  { %v4747_v26 = vpop.f32.mrf.mxu1  ;;  %v14330_v19 = vpop.f32.mrf.mxu0 }
0x133a   :  { %v4748_v23 = vadd.f32 %v14323_v22, %v4747_v26 }
0x133b   :  { %v14333_v4 = vpop.f32.mrf.mxu0 }
0x133c   :  { %v10834_v32 = vpop.f32.mrf.mxu1  ;;  %10997 = vmatprep.mubr.f32.mxu0 %v4748_v23 }
0x133d   :  { %v14336_v46 = vadd.f32 %v10834_v32, %v14323_v22  ;;  %v14338_v36 = vpop.f32.mrf.mxu0 }
0x133e   :  { %v14340_v53 = vpop.f32.mrf.mxu1 }
0x1340   :  { %v10837_v52 = vpop.f32.mrf.mxu1  ;;  %v14342_v54 = vpop.f32.mrf.mxu0 }
0x1341   :  { %v14345_v10 = vadd.f32 %v10837_v52, %v14323_v22 }
0x1342   :  { %v14347_v6 = vpop.f32.mrf.mxu1  ;;  %v14349_v14 = vpop.f32.mrf.mxu0 }
0x1344   :  { %v10896_v56 = vpop.f32.mrf.mxu0 }
0x1345   :  { %v10840_v21 = vpop.f32.mrf.mxu1 }
0x1346   :  { %v14352_v57 = vadd.f32 %v10840_v21, %v14323_v22  ;;  %v14354_v59 = vpop.f32.mrf.mxu0 }
0x1347   :  { %v14356_v31 = vpop.f32.mrf.mxu1 }
0x1348   :  { %v10899_v49 = vpop.f32.mrf.mxu0 }
0x1349   :  { %v10843_v40 = vpop.f32.mrf.mxu1 }
0x134a   :  { %v14359_v24 = vadd.f32 %v10843_v40, %v14323_v22  ;;  %v4957_v5 = vpop.f32.mrf.mxu0  ;;  %v14376_v40 = vld [vmem:[%s15754_s6 + $0x2] ss:$0 sm:$0xff] }
0x134b   :  { %v14361_v29 = vpop.f32.mrf.mxu1  ;;  %v4958_v15 = vadd.f32 %v14376_v40, %v4957_v5  ;;  %v4948_v5 = vadd.f32 %v14376_v40, %v14354_v59 }
0x134c   :  { %v10902_v45 = vpop.f32.mrf.mxu0 }
0x134d   :  { %v10846_v48 = vpop.f32.mrf.mxu1 }
0x134e   :  { %v14364_v20 = vadd.f32 %v10846_v48, %v14323_v22  ;;  %v4967_v3 = vpop.f32.mrf.mxu0 }
0x134f   :  { %v14366_v26 = vpop.f32.mrf.mxu1 }
0x1350   :  { %v10905_v23 = vpop.f32.mrf.mxu0 }
0x1351   :  { %v10849_v32 = vpop.f32.mrf.mxu1  ;;  %v4983_v33 = vadd.f32 %v10905_v23, %v14376_v40 }
0x1352   :  { %v14369_v52 = vadd.f32 %v10849_v32, %v14323_v22  ;;  %v4977_v21 = vpop.f32.mrf.mxu0 }
0x1353   :  { %v14371_v38 = vpop.f32.mrf.mxu1 }
0x1354   :  { %v10908_v0 = vpop.f32.mrf.mxu0 }
0x1355   :  { %v10852_v35 = vpop.f32.mrf.mxu1  ;;  %v4993_v48 = vadd.f32 %v10908_v0, %v14376_v40  ;;  %v4978_v0 = vadd.f32 %v14376_v40, %v4977_v21  ;;  %v4963_v21 = vadd.f32 %v10899_v49, %v14376_v40 }
0x1356   :  { %v14380_v37 = vadd.f32 %v10852_v35, %v14323_v22  ;;  %v4987_v28 = vpop.f32.mrf.mxu0 }
0x1357   :  { %v14382_v18 = vpop.f32.mrf.mxu1  ;;  %v4988_v32 = vadd.f32 %v14376_v40, %v4987_v28  ;;  %10965 = vmatprep.subr.mxu0 %v4993_v48  ;;  %v4973_v28 = vadd.f32 %v10902_v45, %v14376_v40 }
0x1358   :  { %10966 = vmatpush3.xpose.msra.mxu0 %v4993_v48 }
0x1359   :  { %v14385_v13 = vpop.f32.mrf.mxu1  ;;  %10967 = vmatprep.subr.mxu0 %v4988_v32 }
0x135b   :  { %v14388_v27 = vpop.f32.mrf.mxu1 }
0x135c   :  { %10968 = vmatpush3.xpose.msra.mxu0 %v4988_v32  ;;  %v4968_v32 = vadd.f32 %v14376_v40, %v4967_v3  ;;  %v14407_v3 = vld [vmem:[%s15756_s8 + $0x2] ss:$0 sm:$0xff] }
0x135d   :  { %v14390_v8 = vpop.f32.mrf.mxu1  ;;  %10969 = vmatprep.subr.mxu0 %v4983_v33 }
0x135f   :  { %v14393_v35 = vpop.f32.mrf.mxu1 }
0x1360   :  { %10970 = vmatpush3.xpose.msra.mxu0 %v4983_v33 }
0x1361   :  { %v14395_v62 = vpop.f32.mrf.mxu1  ;;  %10971 = vmatprep.subr.mxu0 %v4978_v0 }
0x1363   :  { %v14398_v48 = vpop.f32.mrf.mxu1 }
0x1364   :  { %10972 = vmatpush3.xpose.msra.mxu0 %v4978_v0  ;;  %v4953_v0 = vadd.f32 %v10896_v56, %v14376_v40  ;;  %v4943_v56 = vadd.f32 %v14342_v54, %v14376_v40 }
0x1365   :  { %v10952_v23 = vpop.f32.mrf.mxu1  ;;  %10973 = vmatprep.subr.mxu0 %v4973_v28 }
0x1367   :  { %v5117_v47 = vpop.f32.mrf.mxu1 }
0x1368   :  { %10974 = vmatpush3.xpose.msra.mxu0 %v4973_v28 }
0x1369   :  { %v10955_v58 = vpop.f32.mrf.mxu1  ;;  %10975 = vmatprep.subr.mxu0 %v4968_v32 }
0x136a   :  { %v5133_v54 = vadd.f32 %v10955_v58, %v14407_v3  ;;  %v5118_v58 = vadd.f32 %v14407_v3, %v5117_v47  ;;  %v5103_v47 = vadd.f32 %v14390_v8, %v14407_v3  ;;  %v5088_v8 = vadd.f32 %v14407_v3, %v14388_v27 }
0x136b   :  { %v5127_v61 = vpop.f32.mrf.mxu1  ;;  %v4778_v27 = vadd.f32 %v14323_v22, %v14356_v31 }
0x136c   :  { %10976 = vmatpush3.xpose.msra.mxu0 %v4968_v32 }
0x136d   :  { %v10958_v33 = vpop.f32.mrf.mxu1  ;;  %10977 = vmatprep.subr.mxu0 %v4963_v21 }
0x136e   :  { %v5143_v59 = vadd.f32 %v10958_v33, %v14407_v3  ;;  %v5128_v33 = vadd.f32 %v14407_v3, %v5127_v61  ;;  %v5113_v61 = vadd.f32 %v14395_v62, %v14407_v3  ;;  %v5098_v62 = vadd.f32 %v14407_v3, %v14393_v35 }
0x136f   :  { %v5137_v45 = vpop.f32.mrf.mxu1 }
0x1370   :  { %10978 = vmatpush3.xpose.msra.mxu0 %v4963_v21 }
0x1371   :  { %v10961_v41 = vpop.f32.mrf.mxu1  ;;  %10979 = vmatprep.subr.mxu0 %v4958_v15 }
0x1373   :  { %v5147_v51 = vpop.f32.mrf.mxu1 }
0x1374   :  { %10980 = vmatpush3.xpose.msra.mxu0 %v4958_v15  ;;  %v5153_v15 = vadd.f32 %v10961_v41, %v14407_v3  ;;  %v5148_v9 = vadd.f32 %v14407_v3, %v5147_v51  ;;  %v5138_v41 = vadd.f32 %v14407_v3, %v5137_v45  ;;  %v4933_v51 = vadd.f32 %v14333_v4, %v14376_v40 }
0x1375   :  { %v10964_v49 = vpop.f32.mrf.mxu1  ;;  %10981 = vmatprep.subr.mxu0 %v4953_v0  ;;  %v4923_v4 = vadd.f32 %v14325_v2, %v14376_v40  ;;  %v5093_v2 = vadd.f32 %v14385_v13, %v14407_v3  ;;  %v4788_v13 = vadd.f32 %v14323_v22, %v14361_v29 }
0x1376   :  { %v5163_v28 = vadd.f32 %v10964_v49, %v14407_v3 }
0x1377   :  { %v5157_v32 = vpop.f32.mrf.mxu1 }
0x1378   :  { %v5158_v21 = vadd.f32 %v14407_v3, %v5157_v32  ;;  %11021 = vmatprep.subr.mxu1 %v5163_v28  ;;  %10982 = vmatpush3.xpose.msra.mxu0 %v4953_v0  ;;  %v4938_v0 = vadd.f32 %v14376_v40, %v14349_v14  ;;  %v4928_v14 = vadd.f32 %v14376_v40, %v14338_v36 }
0x1379   :  { %11022 = vmatpush3.msra.mxu1 %v5163_v28  ;;  %10983 = vmatprep.subr.mxu0 %v4948_v5  ;;  %v4918_v36 = vadd.f32 %v14376_v40, %v14330_v19  ;;  %v4758_v19 = vadd.f32 %v14323_v22, %v14340_v53  ;;  %v4768_v40 = vadd.f32 %v14323_v22, %v14347_v6 }
0x137a   :  { %11023 = vmatprep.subr.mxu1 %v5158_v21  ;;  %v4818_v53 = vadd.f32 %v14323_v22, %v14382_v18 }
0x137b   :  { %11024 = vmatpush3.msra.mxu1 %v5158_v21 }
0x137c   :  { %11025 = vmatprep.subr.mxu1 %v5153_v15  ;;  %10984 = vmatpush3.xpose.msra.mxu0 %v4948_v5 }
0x137d   :  { %11026 = vmatpush3.msra.mxu1 %v5153_v15  ;;  %10985 = vmatprep.subr.mxu0 %v4943_v56 }
0x137e   :  { %11027 = vmatprep.subr.mxu1 %v5148_v9 }
0x137f   :  { %11028 = vmatpush3.msra.mxu1 %v5148_v9  ;;  %v5123_v9 = vadd.f32 %v10952_v23, %v14407_v3  ;;  %v5108_v23 = vadd.f32 %v14407_v3, %v14398_v48 }
0x1380   :  { %11029 = vmatprep.subr.mxu1 %v5143_v59  ;;  %10986 = vmatpush3.xpose.msra.mxu0 %v4943_v56 }
0x1381   :  { %11030 = vmatpush3.msra.mxu1 %v5143_v59  ;;  %10987 = vmatprep.subr.mxu0 %v4938_v0 }
0x1382   :  { %11031 = vmatprep.subr.mxu1 %v5138_v41 }
0x1383   :  { %11032 = vmatpush3.msra.mxu1 %v5138_v41 }
0x1384   :  { %11033 = vmatprep.subr.mxu1 %v5133_v54  ;;  %10988 = vmatpush3.xpose.msra.mxu0 %v4938_v0 }
0x1385   :  { %11034 = vmatpush3.msra.mxu1 %v5133_v54  ;;  %10989 = vmatprep.subr.mxu0 %v4933_v51 }
0x1386   :  { %11035 = vmatprep.subr.mxu1 %v5128_v33 }
0x1387   :  { %11036 = vmatpush3.msra.mxu1 %v5128_v33 }
0x1388   :  { %11037 = vmatprep.subr.mxu1 %v5123_v9  ;;  %10990 = vmatpush3.xpose.msra.mxu0 %v4933_v51 }
0x1389   :  { %11038 = vmatpush3.msra.mxu1 %v5123_v9  ;;  %10991 = vmatprep.subr.mxu0 %v4928_v14 }
0x138a   :  { %11039 = vmatprep.subr.mxu1 %v5118_v58 }
0x138b   :  { %11040 = vmatpush3.msra.mxu1 %v5118_v58 }
0x138c   :  { %11041 = vmatprep.subr.mxu1 %v5113_v61  ;;  %10992 = vmatpush3.xpose.msra.mxu0 %v4928_v14 }
0x138d   :  { %11042 = vmatpush3.msra.mxu1 %v5113_v61  ;;  %10993 = vmatprep.subr.mxu0 %v4923_v4 }
0x138e   :  { %11043 = vmatprep.subr.mxu1 %v5108_v23 }
0x138f   :  { %11044 = vmatpush3.msra.mxu1 %v5108_v23 }
0x1390   :  { %11045 = vmatprep.subr.mxu1 %v5103_v47  ;;  %10994 = vmatpush3.xpose.msra.mxu0 %v4923_v4 }
0x1391   :  { %11046 = vmatpush3.msra.mxu1 %v5103_v47  ;;  %10995 = vmatprep.subr.mxu0 %v4918_v36 }
0x1392   :  { %11047 = vmatprep.subr.mxu1 %v5098_v62 }
0x1393   :  { %11048 = vmatpush3.msra.mxu1 %v5098_v62 }
0x1394   :  { %11049 = vmatprep.subr.mxu1 %v5093_v2  ;;  %10996 = vmatpush3.xpose.msra.mxu0 %v4918_v36 }
0x1395   :  { %11050 = vmatpush3.msra.mxu1 %v5093_v2 }
0x1396   :  { %11051 = vmatprep.subr.mxu1 %v5088_v8 }
0x1397   :  { %11052 = vmatpush3.msra.mxu1 %v5088_v8  ;;  %10998 = vmatmul.mubr.f32.vlgmr.msra.gmra.mxu0 %v14328_v44  ;;  %v4798_v44 = vadd.f32 %v14323_v22, %v14366_v26 }
0x1398   :  { %11000 = vmatprep.mubr.f32.mxu0 %v4758_v19 }
0x139b   :  { %11001 = vmatmul.mubr.f32.gmra.mxu0 %v14336_v46  ;;  %v4808_v46 = vadd.f32 %v14323_v22, %v14371_v38 }
0x139c   :  { %11003 = vmatprep.mubr.f32.mxu0 %v4768_v40 }
0x139f   :  { %11004 = vmatmul.mubr.f32.gmra.mxu0 %v14345_v10 }
0x13a0   :  { %11006 = vmatprep.mubr.f32.mxu0 %v4778_v27 }
0x13a3   :  { %11007 = vmatmul.mubr.f32.gmra.mxu0 %v14352_v57 }
0x13a4   :  { %11009 = vmatprep.mubr.f32.mxu0 %v4788_v13 }
0x13a7   :  { %11010 = vmatmul.mubr.f32.gmra.mxu0 %v14359_v24 }
0x13a8   :  { %11012 = vmatprep.mubr.f32.mxu0 %v4798_v44 }
0x13ab   :  { %11013 = vmatmul.mubr.f32.gmra.mxu0 %v14364_v20 }
0x13ac   :  { %11015 = vmatprep.mubr.f32.mxu0 %v4808_v46 }
0x13af   :  { %11016 = vmatmul.mubr.f32.gmra.mxu0 %v14369_v52 }
0x13b0   :  { %11018 = vmatprep.mubr.f32.mxu0 %v4818_v53 }
0x13b3   :  { %11019 = vmatmul.mubr.f32.gmra.mxu0 %v14380_v37 }
0x1457   :  { %v10999_v10 = vpop.f32.mrf.mxu0 }
0x1458   :  { %v5238_v6 = vadd.f32 %v10999_v10, %v12949_v12 }
0x1459   :  { %v5232_v57 = vpop.f32.mrf.mxu0 }
0x145a   :  { %v5233_v31 = vadd.f32 %v5232_v57, %v12952_v17  ;;  %5313 = vmax.xlane.f32.xlu0 %v5238_v6 }
0x145b   :  { %v11002_v24 = vpop.f32.mrf.mxu0 }
0x145c   :  { %v5248_v38 = vadd.f32 %v11002_v24, %v12976_v39  ;;  %5311 = vmax.xlane.f32.xlu1 %v5233_v31 }
0x145d   :  { %v5242_v29 = vpop.f32.mrf.mxu0 }
0x145e   :  { %v5243_v20 = vadd.f32 %v5242_v29, %v12966_v42  ;;  %5317 = vmax.xlane.f32.xlu0 %v5248_v38 }
0x145f   :  { %v11005_v18 = vpop.f32.mrf.mxu0 }
0x1460   :  { %v5258_v22 = vadd.f32 %v11005_v18, %v12993_v55  ;;  %5315 = vmax.xlane.f32.xlu1 %v5243_v20 }
0x1461   :  { %v5252_v37 = vpop.f32.mrf.mxu0 }
0x1462   :  { %v5253_v26 = vadd.f32 %v5252_v37, %v12980_v63  ;;  %5321 = vmax.xlane.f32.xlu0 %v5258_v22 }
0x1463   :  { %v11008_v52 = vpop.f32.mrf.mxu0 }
0x1464   :  { %v5268_v35 = vadd.f32 %v11008_v52, %v13011_v25  ;;  %5319 = vmax.xlane.f32.xlu1 %v5253_v26 }
0x1465   :  { %v5262_v48 = vpop.f32.mrf.mxu0 }
0x1466   :  { %v5263_v45 = vadd.f32 %v5262_v48, %v12996_v11  ;;  %5325 = vmax.xlane.f32.xlu0 %v5268_v35 }
0x1467   :  { %v11011_v3 = vpop.f32.mrf.mxu0 }
0x1468   :  { %v5278_v49 = vadd.f32 %v11011_v3, %v13029_v1  ;;  %5323 = vmax.xlane.f32.xlu1 %v5263_v45 }
0x1469   :  { %v5272_v28 = vpop.f32.mrf.mxu0 }
0x146a   :  { %v14477_v5 = vadd.f32 %v5272_v28, %v13015_v34  ;;  %5329 = vmax.xlane.f32.xlu0 %v5278_v49 }
0x146b   :  { %v11014_v32 = vpop.f32.mrf.mxu0 }
0x146c   :  { %v14480_v21 = vadd.f32 %v11014_v32, %v13046_v43  ;;  %5327 = vmax.xlane.f32.xlu1 %v14477_v5 }
0x146d   :  { %v5282_v15 = vpop.f32.mrf.mxu0 }
0x146e   :  { %v14484_v56 = vadd.f32 %v5282_v15, %v13033_v50  ;;  %5333 = vmax.xlane.f32.xlu0 %v14480_v21 }
0x146f   :  { %v11017_v59 = vpop.f32.mrf.mxu0 }
0x1470   :  { %v14488_v0 = vadd.f32 %v11017_v59, %v13062_v16  ;;  %5331 = vmax.xlane.f32.xlu1 %v14484_v56 }
0x1471   :  { %v5292_v41 = vpop.f32.mrf.mxu0 }
0x1472   :  { %v14492_v54 = vadd.f32 %v5292_v41, %v13049_v30  ;;  %5337 = vmax.xlane.f32.xlu0 %v14488_v0 }
0x1473   :  { %v11020_v51 = vpop.f32.mrf.mxu0 }
0x1474   :  { %v14496_v33 = vadd.f32 %v11020_v51, %v13077_v7  ;;  %5335 = vmax.xlane.f32.xlu1 %v14492_v54 }
0x1475   :  { %v5302_v9 = vpop.f32.mrf.mxu0 }
0x1476   :  { %v14500_v14 = vadd.f32 %v5302_v9, %v13065_v60  ;;  %5341 = vmax.xlane.f32.xlu0 %v14496_v33 }
0x1478   :  { %5339 = vmax.xlane.f32.xlu1 %v14500_v14 }
0x14e3   :  { %v5314_v58 = vpop.xlane.xlu0 %5313 }
0x14e4   :  { %v5344_v61 = vsub.f32 %v5238_v6, %v5314_v58 }
0x14e5   :  { %v5312_v4 = vpop.xlane.xlu1 %5311 }
0x14e6   :  { %v5361_v23 = vmul.f32 1.442695, %v5344_v61  ;;  %v5343_v47 = vsub.f32 %v5233_v31, %v5312_v4 }
0x14e7   :  { %v5318_v36 = vpop.xlane.xlu0 %5317 }
0x14e8   :  { %12013 = vpow2.f32 %v5361_v23  ;;  %v5359_v62 = vmul.f32 1.442695, %v5343_v47  ;;  %v5346_v2 = vsub.f32 %v5248_v38, %v5318_v36 }
0x14e9   :  { %v5316_v8 = vpop.xlane.xlu1 %5315 }
0x14ea   :  { %12015 = vpow2.f32 %v5359_v62  ;;  %v5365_v19 = vmul.f32 1.442695, %v5346_v2  ;;  %v5345_v40 = vsub.f32 %v5243_v20, %v5316_v8 }
0x14eb   :  { %v5322_v27 = vpop.xlane.xlu0 %5321 }
0x14ec   :  { %12017 = vpow2.f32 %v5365_v19  ;;  %v5363_v13 = vmul.f32 1.442695, %v5345_v40  ;;  %v5348_v44 = vsub.f32 %v5258_v22, %v5322_v27 }
0x14ed   :  { %v5320_v46 = vpop.xlane.xlu1 %5319 }
0x14ee   :  { %12019 = vpow2.f32 %v5363_v13  ;;  %v5369_v53 = vmul.f32 1.442695, %v5348_v44  ;;  %v5347_v10 = vsub.f32 %v5253_v26, %v5320_v46 }
0x14ef   :  { %v5326_v6 = vpop.xlane.xlu0 %5325 }
0x14f0   :  { %12021 = vpow2.f32 %v5369_v53  ;;  %v5367_v57 = vmul.f32 1.442695, %v5347_v10  ;;  %v5350_v31 = vsub.f32 %v5268_v35, %v5326_v6  ;;  %v5616_v10 = vld [vmem:[#allocation9 + $0x178] sm:$0xff]  ;;  %v5615_v6 = vld [vmem:[#allocation9 + $0x170] sm:$0xff] }
0x14f1   :  { %v5324_v24 = vpop.xlane.xlu1 %5323  ;;  %11077 = vmatprep.subr.mxu1 %v5616_v10 }
0x14f2   :  { %12023 = vpow2.f32 %v5367_v57  ;;  %v5373_v29 = vmul.f32 1.442695, %v5350_v31  ;;  %v5349_v38 = vsub.f32 %v5263_v45, %v5324_v24  ;;  %v5614_v57 = vld [vmem:[#allocation9 + $0x168] sm:$0xff]  ;;  %v5613_v31 = vld [vmem:[#allocation9 + $0x160] sm:$0xff]  ;;  %v5612_v24 = vld [vmem:[#allocation9 + $0x158] sm:$0xff] }
0x14f3   :  { %v5330_v18 = vpop.xlane.xlu0 %5329 }
0x14f4   :  { %12025 = vpow2.f32 %v5373_v29  ;;  %v5371_v37 = vmul.f32 1.442695, %v5349_v38  ;;  %v5352_v20 = vsub.f32 %v5278_v49, %v5330_v18  ;;  %v5611_v29 = vld [vmem:[#allocation9 + $0x150] sm:$0xff]  ;;  %v5610_v38 = vld [vmem:[#allocation9 + $0x148] sm:$0xff]  ;;  %v5609_v18 = vld [vmem:[#allocation9 + $0x140] sm:$0xff] }
0x14f5   :  { %v12014_v52 = vpop.eup %12013  ;;  %v5328_v48 = vpop.xlane.xlu1 %5327 }
0x14f6   :  { %12027 = vpow2.f32 %v5371_v37  ;;  %v5377_v22 = vmul.f32 1.442695, %v5352_v20  ;;  %v5351_v3 = vsub.f32 %v14477_v5, %v5328_v48  ;;  %5393 = vadd.xlane.f32.xlu0 %v12014_v52  ;;  %v5608_v37 = vld [vmem:[#allocation9 + $0x138] sm:$0xff]  ;;  %v5607_v20 = vld [vmem:[#allocation9 + $0x130] sm:$0xff]  ;;  %v5605_v48 = vld [vmem:[#allocation9 + $0x120] sm:$0xff] }
0x14f7   :  { %v12016_v26 = vpop.eup %12015  ;;  %v5334_v28 = vpop.xlane.xlu0 %5333 }
0x14f8   :  { %12029 = vpow2.f32 %v5377_v22  ;;  %v5375_v32 = vmul.f32 1.442695, %v5351_v3  ;;  %v5354_v35 = vsub.f32 %v14480_v21, %v5334_v28  ;;  %11053 = vmatprep.mubr.f32.mxu1 %v12016_v26  ;;  %5391 = vadd.xlane.f32.xlu1 %v12016_v26  ;;  %v5604_v22 = vld [vmem:[#allocation9 + $0x118] sm:$0xff]  ;;  %v5603_v3 = vld [vmem:[#allocation9 + $0x110] sm:$0xff]  ;;  %v5602_v26 = vld [vmem:[#allocation9 + $0x108] sm:$0xff] }
0x14f9   :  { %v12018_v45 = vpop.eup %12017  ;;  %v5332_v15 = vpop.xlane.xlu1 %5331  ;;  %11054 = vmatmul.mubr.f32.vlgmr.msra.gmra.mxu1 %v12014_v52  ;;  %v5606_v52 = vld [vmem:[#allocation9 + $0x128] sm:$0xff]  ;;  %v5601_v28 = vld [vmem:[#allocation9 + $0x100] sm:$0xff] }
0x14fa   :  { %12031 = vpow2.f32 %v5375_v32  ;;  %v5381_v49 = vmul.f32 1.442695, %v5354_v35  ;;  %v5353_v59 = vsub.f32 %v14484_v56, %v5332_v15  ;;  %5397 = vadd.xlane.f32.xlu0 %v12018_v45  ;;  %11078 = vmatpush3.msra.mxu1 %v5616_v10 }
0x14fb   :  { %v12020_v41 = vpop.eup %12019  ;;  %v5338_v51 = vpop.xlane.xlu0 %5337  ;;  %11079 = vmatprep.subr.mxu1 %v5615_v6 }
0x14fc   :  { %12033 = vpow2.f32 %v5381_v49  ;;  %v5379_v5 = vmul.f32 1.442695, %v5353_v59  ;;  %v5356_v9 = vsub.f32 %v14488_v0, %v5338_v51  ;;  %11056 = vmatprep.mubr.f32.mxu1 %v12020_v41  ;;  %5395 = vadd.xlane.f32.xlu1 %v12020_v41 }
0x14fd   :  { %v12022_v58 = vpop.eup %12021  ;;  %v5336_v21 = vpop.xlane.xlu1 %5335  ;;  %11057 = vmatmul.mubr.f32.gmra.mxu1 %v12018_v45 }
0x14fe   :  { %12035 = vpow2.f32 %v5379_v5  ;;  %v5385_v61 = vmul.f32 1.442695, %v5356_v9  ;;  %v5355_v4 = vsub.f32 %v14492_v54, %v5336_v21  ;;  %5401 = vadd.xlane.f32.xlu0 %v12022_v58  ;;  %11080 = vmatpush3.msra.mxu1 %v5615_v6 }
0x14ff   :  { %v12024_v23 = vpop.eup %12023  ;;  %v5342_v47 = vpop.xlane.xlu0 %5341  ;;  %11081 = vmatprep.subr.mxu1 %v5614_v57 }
0x1500   :  { %12037 = vpow2.f32 %v5385_v61  ;;  %v5383_v56 = vmul.f32 1.442695, %v5355_v4  ;;  %v5358_v36 = vsub.f32 %v14496_v33, %v5342_v47  ;;  %11059 = vmatprep.mubr.f32.mxu1 %v12024_v23  ;;  %5399 = vadd.xlane.f32.xlu1 %v12024_v23 }
0x1501   :  { %v12026_v62 = vpop.eup %12025  ;;  %11060 = vmatmul.mubr.f32.gmra.mxu1 %v12022_v58  ;;  %v5340_v0 = vpop.xlane.xlu1 %5339 }
0x1502   :  { %12039 = vpow2.f32 %v5383_v56  ;;  %v5389_v2 = vmul.f32 1.442695, %v5358_v36  ;;  %v5357_v8 = vsub.f32 %v14500_v14, %v5340_v0  ;;  %5405 = vadd.xlane.f32.xlu0 %v12026_v62  ;;  %11082 = vmatpush3.msra.mxu1 %v5614_v57 }
0x1503   :  { %v12028_v19 = vpop.eup %12027  ;;  %11083 = vmatprep.subr.mxu1 %v5613_v31 }
0x1504   :  { %12041 = vpow2.f32 %v5389_v2  ;;  %v5387_v54 = vmul.f32 1.442695, %v5357_v8  ;;  %11062 = vmatprep.mubr.f32.mxu1 %v12028_v19  ;;  %5403 = vadd.xlane.f32.xlu1 %v12028_v19 }
0x1505   :  { %v12030_v40 = vpop.eup %12029  ;;  %11063 = vmatmul.mubr.f32.gmra.mxu1 %v12026_v62 }
0x1506   :  { %12043 = vpow2.f32 %v5387_v54  ;;  %5409 = vadd.xlane.f32.xlu0 %v12030_v40  ;;  %11084 = vmatpush3.msra.mxu1 %v5613_v31 }
0x1507   :  { %v12032_v33 = vpop.eup %12031  ;;  %11085 = vmatprep.subr.mxu1 %v5612_v24 }
0x1508   :  { %11065 = vmatprep.mubr.f32.mxu1 %v12032_v33  ;;  %5407 = vadd.xlane.f32.xlu1 %v12032_v33 }
0x1509   :  { %v12034_v27 = vpop.eup %12033  ;;  %11066 = vmatmul.mubr.f32.gmra.mxu1 %v12030_v40 }
0x150a   :  { %5413 = vadd.xlane.f32.xlu0 %v12034_v27  ;;  %11086 = vmatpush3.msra.mxu1 %v5612_v24 }
0x150b   :  { %v12036_v13 = vpop.eup %12035  ;;  %11087 = vmatprep.subr.mxu1 %v5611_v29 }
0x150c   :  { %11068 = vmatprep.mubr.f32.mxu1 %v12036_v13  ;;  %5411 = vadd.xlane.f32.xlu1 %v12036_v13 }
0x150d   :  { %v12038_v14 = vpop.eup %12037  ;;  %11069 = vmatmul.mubr.f32.gmra.mxu1 %v12034_v27 }
0x150e   :  { %5417 = vadd.xlane.f32.xlu0 %v12038_v14  ;;  %11088 = vmatpush3.msra.mxu1 %v5611_v29 }
0x150f   :  { %v12040_v44 = vpop.eup %12039  ;;  %11089 = vmatprep.subr.mxu1 %v5610_v38 }
0x1510   :  { %11071 = vmatprep.mubr.f32.mxu1 %v12040_v44  ;;  %5415 = vadd.xlane.f32.xlu1 %v12040_v44 }
0x1511   :  { %v12042_v46 = vpop.eup %12041  ;;  %11072 = vmatmul.mubr.f32.gmra.mxu1 %v12038_v14 }
0x1512   :  { %5421 = vadd.xlane.f32.xlu0 %v12042_v46  ;;  %11090 = vmatpush3.msra.mxu1 %v5610_v38 }
0x1513   :  { %v12044_v53 = vpop.eup %12043  ;;  %11091 = vmatprep.subr.mxu1 %v5609_v18 }
0x1514   :  { %5419 = vadd.xlane.f32.xlu1 %v12044_v53  ;;  %11074 = vmatprep.mubr.f32.mxu1 %v12044_v53 }
0x1515   :  { %11075 = vmatmul.mubr.f32.gmra.mxu1 %v12042_v46 }
0x1516   :  { %11092 = vmatpush3.msra.mxu1 %v5609_v18 }
0x1517   :  { %11093 = vmatprep.subr.mxu1 %v5608_v37 }
0x1518   :  { %11094 = vmatpush3.msra.mxu1 %v5608_v37 }
0x1519   :  { %11095 = vmatprep.subr.mxu1 %v5607_v20 }
0x151a   :  { %11096 = vmatpush3.msra.mxu1 %v5607_v20 }
0x151b   :  { %11097 = vmatprep.subr.mxu1 %v5606_v52 }
0x151c   :  { %11098 = vmatpush3.msra.mxu1 %v5606_v52 }
0x151d   :  { %11099 = vmatprep.subr.mxu1 %v5605_v48 }
0x151e   :  { %11100 = vmatpush3.msra.mxu1 %v5605_v48 }
0x151f   :  { %11101 = vmatprep.subr.mxu1 %v5604_v22 }
0x1520   :  { %11102 = vmatpush3.msra.mxu1 %v5604_v22 }
0x1521   :  { %11103 = vmatprep.subr.mxu1 %v5603_v3 }
0x1522   :  { %11104 = vmatpush3.msra.mxu1 %v5603_v3 }
0x1523   :  { %11105 = vmatprep.subr.mxu1 %v5602_v26 }
0x1524   :  { %11106 = vmatpush3.msra.mxu1 %v5602_v26 }
0x1525   :  { %11107 = vmatprep.subr.mxu1 %v5601_v28 }
0x1526   :  { %11108 = vmatpush3.msra.mxu1 %v5601_v28 }
0x157f   :  { %v5394_v35 = vpop.xlane.xlu0 %5393 }
0x1581   :  { %v5392_v32 = vpop.xlane.xlu1 %5391 }
0x1582   :  { %12045 = vrcp.f32 %v5392_v32 }
0x1583   :  { %v5398_v15 = vpop.xlane.xlu0 %5397  ;;  %12047 = vrcp.f32 %v5394_v35 }
0x1585   :  { %v5396_v45 = vpop.xlane.xlu1 %5395 }
0x1586   :  { %12049 = vrcp.f32 %v5396_v45 }
0x1587   :  { %v5402_v59 = vpop.xlane.xlu0 %5401  ;;  %12051 = vrcp.f32 %v5398_v15 }
0x1589   :  { %v5400_v49 = vpop.xlane.xlu1 %5399 }
0x158a   :  { %12053 = vrcp.f32 %v5400_v49 }
0x158b   :  { %v5406_v51 = vpop.xlane.xlu0 %5405  ;;  %12055 = vrcp.f32 %v5402_v59 }
0x158d   :  { %v5404_v41 = vpop.xlane.xlu1 %5403 }
0x158e   :  { %12057 = vrcp.f32 %v5404_v41 }
0x158f   :  { %v5410_v9 = vpop.xlane.xlu0 %5409  ;;  %v12046_v21 = vpop.eup %12045  ;;  %12059 = vrcp.f32 %v5406_v51 }
0x1590   :  { %v12048_v23 = vpop.eup %12047 }
0x1591   :  { %v5408_v5 = vpop.xlane.xlu1 %5407 }
0x1592   :  { %12061 = vrcp.f32 %v5408_v5 }
0x1593   :  { %v5414_v47 = vpop.xlane.xlu0 %5413  ;;  %v12050_v0 = vpop.eup %12049  ;;  %12063 = vrcp.f32 %v5410_v9 }
0x1594   :  { %v12052_v8 = vpop.eup %12051 }
0x1595   :  { %v5412_v61 = vpop.xlane.xlu1 %5411 }
0x1596   :  { %12065 = vrcp.f32 %v5412_v61 }
0x1597   :  { %v5418_v27 = vpop.xlane.xlu0 %5417  ;;  %v12054_v13 = vpop.eup %12053  ;;  %12067 = vrcp.f32 %v5414_v47 }
0x1598   :  { %v12056_v44 = vpop.eup %12055 }
0x1599   :  { %v5416_v54 = vpop.xlane.xlu1 %5415 }
0x159a   :  { %12069 = vrcp.f32 %v5416_v54 }
0x159b   :  { %v12058_v6 = vpop.eup %12057  ;;  %12071 = vrcp.f32 %v5418_v27  ;;  %v5422_v29 = vpop.xlane.xlu0 %5421 }
0x159c   :  { %v12060_v24 = vpop.eup %12059 }
0x159d   :  { %v5420_v57 = vpop.xlane.xlu1 %5419 }
0x159e   :  { %12073 = vrcp.f32 %v5420_v57 }
0x159f   :  { %v12062_v20 = vpop.eup %12061  ;;  %12075 = vrcp.f32 %v5422_v29 }
0x15a0   :  { %v12064_v48 = vpop.eup %12063 }
0x15a3   :  { %v12066_v28 = vpop.eup %12065 }
0x15a4   :  { %v12068_v35 = vpop.eup %12067 }
0x15a7   :  { %v12070_v59 = vpop.eup %12069 }
0x15a8   :  { %v12072_v51 = vpop.eup %12071 }
0x15b9   :  { %v11055_v58 = vpop.f32.mrf.mxu1 }
0x15ba   :  { %v5585_v36 = vmul.f32 %v12048_v23, %v11055_v58 }
0x15bb   :  { %v5489_v4 = vpop.f32.mrf.mxu1 }
0x15bc   :  { %v5584_v56 = vmul.f32 %v12046_v21, %v5489_v4  ;;  %v12074_v21 = vpop.eup %12073 }
0x15bd   :  { %v11058_v62 = vpop.f32.mrf.mxu1  ;;  %v12076_v4 = vpop.eup %12075 }
0x15be   :  { %11109 = vmatprep.mubr.f32.mxu1 %v5584_v56  ;;  %v5587_v40 = vmul.f32 %v12052_v8, %v11058_v62  ;;  %v8687_v56 = vld [vmem:[%s15758_s10 + $0x2] ss:$0 sm:$0xff] }
0x15bf   :  { %v5499_v2 = vpop.f32.mrf.mxu1  ;;  %11110 = vmatmul.mubr.f32.vlgmr.msra.gmra.mxu1 %v5585_v36 }
0x15c0   :  { %v5586_v19 = vmul.f32 %v12050_v0, %v5499_v2  ;;  %v15939_v2 = vld [vmem:[#allocation36_spill] sm:$0xff] }
0x15c1   :  { %v11061_v33 = vpop.f32.mrf.mxu1 }
0x15c2   :  { %11112 = vmatprep.mubr.f32.mxu1 %v5586_v19  ;;  %v5589_v53 = vmul.f32 %v12056_v44, %v11061_v33 }
0x15c3   :  { %v5509_v14 = vpop.f32.mrf.mxu1  ;;  %11113 = vmatmul.mubr.f32.gmra.mxu1 %v5587_v40  ;;  %v15940_v40 = vld [vmem:[#allocation39_spill] sm:$0xff] }
0x15c4   :  { %v5588_v46 = vmul.f32 %v12054_v13, %v5509_v14  ;;  %v15941_v14 = vld [vmem:[#allocation38_spill] sm:$0xff] }
0x15c5   :  { %v11064_v10 = vpop.f32.mrf.mxu1 }
0x15c6   :  { %11115 = vmatprep.mubr.f32.mxu1 %v5588_v46  ;;  %v5591_v18 = vmul.f32 %v12060_v24, %v11064_v10  ;;  %v15942_v10 = vld [vmem:[#allocation41_spill] sm:$0xff]  ;;  %v15943_v24 = vld [vmem:[#allocation40_spill] sm:$0xff] }
0x15c7   :  { %v5519_v31 = vpop.f32.mrf.mxu1  ;;  %11116 = vmatmul.mubr.f32.gmra.mxu1 %v5589_v53 }
0x15c8   :  { %v5590_v38 = vmul.f32 %v12058_v6, %v5519_v31 }
0x15c9   :  { %v11067_v37 = vpop.f32.mrf.mxu1 }
0x15ca   :  { %11118 = vmatprep.mubr.f32.mxu1 %v5590_v38  ;;  %v5593_v3 = vmul.f32 %v12064_v48, %v11067_v37  ;;  %v15944_v37 = vld [vmem:[#allocation43_spill] sm:$0xff] }
0x15cb   :  { %v5529_v52 = vpop.f32.mrf.mxu1  ;;  %11119 = vmatmul.mubr.f32.gmra.mxu1 %v5591_v18 }
0x15cc   :  { %v5592_v22 = vmul.f32 %v12062_v20, %v5529_v52 }
0x15cd   :  { %v11070_v26 = vpop.f32.mrf.mxu1 }
0x15ce   :  { %11121 = vmatprep.mubr.f32.mxu1 %v5592_v22  ;;  %v5595_v15 = vmul.f32 %v12068_v35, %v11070_v26  ;;  %v15945_v22 = vld [vmem:[#allocation42_spill] sm:$0xff] }
0x15cf   :  { %v5539_v32 = vpop.f32.mrf.mxu1  ;;  %11122 = vmatmul.mubr.f32.gmra.mxu1 %v5593_v3 }
0x15d0   :  { %v5594_v45 = vmul.f32 %v12066_v28, %v5539_v32  ;;  %v15946_v32 = vld [vmem:[#allocation45_spill] sm:$0xff] }
0x15d1   :  { %v11073_v49 = vpop.f32.mrf.mxu1 }
0x15d2   :  { %11124 = vmatprep.mubr.f32.mxu1 %v5594_v45  ;;  %v5597_v9 = vmul.f32 %v12072_v51, %v11073_v49  ;;  %v15947_v49 = vld [vmem:[#allocation44_spill] sm:$0xff] }
0x15d3   :  { %v5549_v41 = vpop.f32.mrf.mxu1  ;;  %11125 = vmatmul.mubr.f32.gmra.mxu1 %v5595_v15 }
0x15d4   :  { %v5596_v5 = vmul.f32 %v12070_v59, %v5549_v41 }
0x15d5   :  { %v11076_v58 = vpop.f32.mrf.mxu1 }
0x15d6   :  { %11127 = vmatprep.mubr.f32.mxu1 %v5596_v5  ;;  %v5599_v47 = vmul.f32 %v12076_v4, %v11076_v58  ;;  %v15948_v5 = vld [vmem:[#allocation47_spill] sm:$0xff] }
0x15d7   :  { %v5559_v61 = vpop.f32.mrf.mxu1  ;;  %11128 = vmatmul.mubr.f32.gmra.mxu1 %v5597_v9 }
0x15d8   :  { %v5598_v23 = vmul.f32 %v12074_v21, %v5559_v61  ;;  %v15949_v61 = vld [vmem:[#allocation46_spill] sm:$0xff] }
0x15da   :  { %11130 = vmatprep.mubr.f32.mxu1 %v5598_v23 }
0x15db   :  { %11131 = vmatmul.mubr.f32.gmra.mxu1 %v5599_v47 }
0x167f   :  { %v11111_v36 = vpop.f32.mrf.mxu1 }
0x1680   :  { %v5697_v62 = vadd.f32 %v11111_v36, %v8687_v56  ;;  %v15950_v36 = vld [vmem:[#allocation49_spill] sm:$0xff] }
0x1681   :  { %v5691_v0 = vpop.f32.mrf.mxu1 }
0x1682   :  { %v14515_v8 = vadd.f32 %v15939_v2, %v5697_v62  ;;  %v5692_v19 = vadd.f32 %v8687_v56, %v5691_v0 }
0x1683   :  { %v11114_v54 = vpop.f32.mrf.mxu1 }
0x1684   :  { %v14518_v33 = vadd.f32 %v5692_v19, %v15940_v40  ;;  %v5707_v27 = vadd.f32 %v11114_v54, %v8687_v56  ;;  %5788 = vadd.xlane.f32.xlu0 %v14515_v8  ;;  %v15951_v19 = vld [vmem:[#allocation48_spill] sm:$0xff] }
0x1685   :  { %v5701_v13 = vpop.f32.mrf.mxu1 }
0x1686   :  { %v14522_v44 = vadd.f32 %v15941_v14, %v5707_v27  ;;  %v5702_v46 = vadd.f32 %v8687_v56, %v5701_v13  ;;  %5786 = vadd.xlane.f32.xlu1 %v14518_v33  ;;  %v15952_v13 = vld [vmem:[#allocation51_spill] sm:$0xff] }
0x1687   :  { %v11117_v53 = vpop.f32.mrf.mxu1 }
0x1688   :  { %v14526_v6 = vadd.f32 %v5702_v46, %v15942_v10  ;;  %v5717_v57 = vadd.f32 %v11117_v53, %v8687_v56  ;;  %5792 = vadd.xlane.f32.xlu0 %v14522_v44  ;;  %v15953_v10 = vld [vmem:[#allocation50_spill] sm:$0xff] }
0x1689   :  { %v5711_v31 = vpop.f32.mrf.mxu1 }
0x168a   :  { %v14530_v29 = vadd.f32 %v15943_v24, %v5717_v57  ;;  %v5712_v38 = vadd.f32 %v8687_v56, %v5711_v31  ;;  %5790 = vadd.xlane.f32.xlu1 %v14526_v6  ;;  %v15954_v24 = vld [vmem:[#allocation20_spill] sm:$0xff] }
0x168b   :  { %v11120_v18 = vpop.f32.mrf.mxu1 }
0x168c   :  { %v14534_v20 = vadd.f32 %v5712_v38, %v15944_v37  ;;  %v5727_v52 = vadd.f32 %v11120_v18, %v8687_v56  ;;  %5796 = vadd.xlane.f32.xlu0 %v14530_v29  ;;  %v6026_v18 = vld [vmem:[#allocation11 + $0x178] sm:$0xff]  ;;  %v6025_v37 = vld [vmem:[#allocation11 + $0x170] sm:$0xff] }
0x168d   :  { %v5721_v48 = vpop.f32.mrf.mxu1  ;;  %11133 = vmatprep.subr.mxu0 %v6026_v18 }
0x168e   :  { %v14538_v3 = vadd.f32 %v15945_v22, %v5727_v52  ;;  %v5722_v26 = vadd.f32 %v8687_v56, %v5721_v48  ;;  %5794 = vadd.xlane.f32.xlu1 %v14534_v20  ;;  %11134 = vmatpush3.msra.mxu0 %v6026_v18  ;;  %v6024_v52 = vld [vmem:[#allocation11 + $0x168] sm:$0xff] }
0x168f   :  { %v11123_v28 = vpop.f32.mrf.mxu1  ;;  %11135 = vmatprep.subr.mxu0 %v6025_v37 }
0x1690   :  { %v14542_v35 = vadd.f32 %v5722_v26, %v15946_v32  ;;  %v5737_v45 = vadd.f32 %v11123_v28, %v8687_v56  ;;  %5800 = vadd.xlane.f32.xlu0 %v14538_v3  ;;  %11136 = vmatpush3.msra.mxu0 %v6025_v37 }
0x1691   :  { %v5731_v15 = vpop.f32.mrf.mxu1  ;;  %11137 = vmatprep.subr.mxu0 %v6024_v52 }
0x1692   :  { %v14546_v59 = vadd.f32 %v15947_v49, %v5737_v45  ;;  %v5732_v41 = vadd.f32 %v8687_v56, %v5731_v15  ;;  %5798 = vadd.xlane.f32.xlu1 %v14542_v35  ;;  %11138 = vmatpush3.msra.mxu0 %v6024_v52 }
0x1693   :  { %v11126_v51 = vpop.f32.mrf.mxu1 }
0x1694   :  { %v14550_v9 = vadd.f32 %v5732_v41, %v15948_v5  ;;  %v5747_v58 = vadd.f32 %v11126_v51, %v8687_v56  ;;  %5804 = vadd.xlane.f32.xlu0 %v14546_v59 }
0x1695   :  { %v5741_v21 = vpop.f32.mrf.mxu1 }
0x1696   :  { %v14554_v4 = vadd.f32 %v15949_v61, %v5747_v58  ;;  %v5742_v23 = vadd.f32 %v8687_v56, %v5741_v21  ;;  %5802 = vadd.xlane.f32.xlu1 %v14550_v9 }
0x1697   :  { %v11129_v47 = vpop.f32.mrf.mxu1 }
0x1698   :  { %v14558_v62 = vadd.f32 %v5742_v23, %v15950_v36  ;;  %v5757_v0 = vadd.f32 %v11129_v47, %v8687_v56  ;;  %5808 = vadd.xlane.f32.xlu0 %v14554_v4 }
0x1699   :  { %v5751_v2 = vpop.f32.mrf.mxu1 }
0x169a   :  { %v14562_v54 = vadd.f32 %v15951_v19, %v5757_v0  ;;  %v5752_v40 = vadd.f32 %v8687_v56, %v5751_v2  ;;  %5806 = vadd.xlane.f32.xlu1 %v14558_v62 }
0x169b   :  { %v11132_v27 = vpop.f32.mrf.mxu1 }
0x169c   :  { %v14566_v14 = vadd.f32 %v5752_v40, %v15952_v13  ;;  %v5767_v46 = vadd.f32 %v11132_v27, %v8687_v56  ;;  %5812 = vadd.xlane.f32.xlu0 %v14562_v54 }
0x169d   :  { %v5761_v53 = vpop.f32.mrf.mxu1 }
0x169e   :  { %v14570_v57 = vadd.f32 %v15953_v10, %v5767_v46  ;;  %v5762_v31 = vadd.f32 %v8687_v56, %v5761_v53  ;;  %5810 = vadd.xlane.f32.xlu1 %v14566_v14 }
0x16a0   :  { %v14574_v38 = vadd.f32 %v5762_v31, %v15954_v24  ;;  %5816 = vadd.xlane.f32.xlu0 %v14570_v57  ;;  %v6023_v24 = vld [vmem:[#allocation11 + $0x160] sm:$0xff] }
0x16a1   :  { %11139 = vmatprep.subr.mxu0 %v6023_v24 }
0x16a2   :  { %5814 = vadd.xlane.f32.xlu1 %v14574_v38  ;;  %11140 = vmatpush3.msra.mxu0 %v6023_v24  ;;  %v6014_v24 = vld [vmem:[#allocation11 + $0x118] sm:$0xff] }
0x170d   :  { %v5789_v48 = vpop.xlane.xlu0 %5788 }
0x170e   :  { %v5819_v56 = vmul.f32 0.0078125, %v5789_v48 }
0x170f   :  { %v5787_v22 = vpop.xlane.xlu1 %5786 }
0x1710   :  { %v14579_v26 = vsub.f32 %v14515_v8, %v5819_v56  ;;  %v5818_v28 = vmul.f32 0.0078125, %v5787_v22 }
0x1711   :  { %v5793_v32 = vpop.xlane.xlu0 %5792 }
0x1712   :  { %v14582_v45 = vsub.f32 %v14518_v33, %v5818_v28  ;;  %v5821_v15 = vmul.f32 0.0078125, %v5793_v32  ;;  %v5851_v49 = vmul.f32 %v14579_v26, %v14579_v26  ;;  %v6021_v28 = vld [vmem:[#allocation11 + $0x150] sm:$0xff] }
0x1713   :  { %v5791_v41 = vpop.xlane.xlu1 %5790 }
0x1714   :  { %v14587_v51 = vsub.f32 %v14522_v44, %v5821_v15  ;;  %v5820_v5 = vmul.f32 0.0078125, %v5791_v41  ;;  %5868 = vadd.xlane.f32.xlu0 %v5851_v49  ;;  %v5850_v58 = vmul.f32 %v14582_v45, %v14582_v45  ;;  %v6020_v41 = vld [vmem:[#allocation11 + $0x148] sm:$0xff] }
0x1715   :  { %v5797_v8 = vpop.xlane.xlu0 %5796 }
0x1716   :  { %v14592_v21 = vsub.f32 %v14526_v6, %v5820_v5  ;;  %v5823_v61 = vmul.f32 0.0078125, %v5797_v8  ;;  %5866 = vadd.xlane.f32.xlu1 %v5850_v58  ;;  %v5853_v33 = vmul.f32 %v14587_v51, %v14587_v51 }
0x1717   :  { %v5795_v23 = vpop.xlane.xlu1 %5794 }
0x1718   :  { %v14597_v47 = vsub.f32 %v14530_v29, %v5823_v61  ;;  %v5822_v44 = vmul.f32 0.0078125, %v5795_v23  ;;  %5872 = vadd.xlane.f32.xlu0 %v5853_v33  ;;  %v5852_v36 = vmul.f32 %v14592_v21, %v14592_v21  ;;  %v6019_v61 = vld [vmem:[#allocation11 + $0x140] sm:$0xff] }
0x1719   :  { %v5801_v0 = vpop.xlane.xlu0 %5800 }
0x171a   :  { %v14602_v2 = vsub.f32 %v14534_v20, %v5822_v44  ;;  %v5825_v6 = vmul.f32 0.0078125, %v5801_v0  ;;  %5870 = vadd.xlane.f32.xlu1 %v5852_v36  ;;  %v5855_v19 = vmul.f32 %v14597_v47, %v14597_v47  ;;  %v6018_v36 = vld [vmem:[#allocation11 + $0x138] sm:$0xff] }
0x171b   :  { %v5799_v40 = vpop.xlane.xlu1 %5798 }
0x171c   :  { %v14607_v27 = vsub.f32 %v14538_v3, %v5825_v6  ;;  %v5824_v29 = vmul.f32 0.0078125, %v5799_v40  ;;  %5876 = vadd.xlane.f32.xlu0 %v5855_v19  ;;  %v5854_v13 = vmul.f32 %v14602_v2, %v14602_v2  ;;  %v6017_v40 = vld [vmem:[#allocation11 + $0x130] sm:$0xff] }
0x171d   :  { %v5805_v46 = vpop.xlane.xlu0 %5804 }
0x171e   :  { %v14612_v53 = vsub.f32 %v14542_v35, %v5824_v29  ;;  %v5827_v20 = vmul.f32 0.0078125, %v5805_v46  ;;  %5874 = vadd.xlane.f32.xlu1 %v5854_v13  ;;  %v5857_v10 = vmul.f32 %v14607_v27, %v14607_v27  ;;  %v6022_v35 = vld [vmem:[#allocation11 + $0x158] sm:$0xff] }
0x171f   :  { %v5803_v31 = vpop.xlane.xlu1 %5802  ;;  %11141 = vmatprep.subr.mxu0 %v6022_v35 }
0x1720   :  { %v14617_v18 = vsub.f32 %v14546_v59, %v5827_v20  ;;  %v5826_v3 = vmul.f32 0.0078125, %v5803_v31  ;;  %5880 = vadd.xlane.f32.xlu0 %v5857_v10  ;;  %v5856_v37 = vmul.f32 %v14612_v53, %v14612_v53  ;;  %11142 = vmatpush3.msra.mxu0 %v6022_v35  ;;  %v6015_v31 = vld [vmem:[#allocation11 + $0x120] sm:$0xff]  ;;  %v6211_v35 = vld [vmem:[#allocation12 + $0x170] sm:$0xff] }
0x1721   :  { %v5809_v52 = vpop.xlane.xlu0 %5808  ;;  %11143 = vmatprep.subr.mxu0 %v6021_v28 }
0x1722   :  { %v14622_v48 = vsub.f32 %v14550_v9, %v5826_v3  ;;  %v5829_v56 = vmul.f32 0.0078125, %v5809_v52  ;;  %5878 = vadd.xlane.f32.xlu1 %v5856_v37  ;;  %v5859_v22 = vmul.f32 %v14617_v18, %v14617_v18  ;;  %11144 = vmatpush3.msra.mxu0 %v6021_v28  ;;  %v6013_v3 = vld [vmem:[#allocation11 + $0x110] sm:$0xff]  ;;  %v6011_v37 = vld [vmem:[#allocation11 + $0x100] sm:$0xff]  ;;  %v6212_v52 = vld [vmem:[#allocation12 + $0x178] sm:$0xff] }
0x1723   :  { %v5807_v59 = vpop.xlane.xlu1 %5806  ;;  %11145 = vmatprep.subr.mxu0 %v6020_v41  ;;  %11189 = vmatprep.subr.mxu1 %v6212_v52  ;;  %v6207_v28 = vld [vmem:[#allocation12 + $0x150] sm:$0xff] }
0x1724   :  { %v14627_v32 = vsub.f32 %v14554_v4, %v5829_v56  ;;  %v5828_v15 = vmul.f32 0.0078125, %v5807_v59  ;;  %5884 = vadd.xlane.f32.xlu0 %v5859_v22  ;;  %v5858_v49 = vmul.f32 %v14622_v48, %v14622_v48  ;;  %11146 = vmatpush3.msra.mxu0 %v6020_v41  ;;  %v6210_v56 = vld [vmem:[#allocation12 + $0x168] sm:$0xff]  ;;  %v6209_v22 = vld [vmem:[#allocation12 + $0x160] sm:$0xff]  ;;  %v6208_v59 = vld [vmem:[#allocation12 + $0x158] sm:$0xff] }
0x1725   :  { %v5813_v9 = vpop.xlane.xlu0 %5812  ;;  %11147 = vmatprep.subr.mxu0 %v6019_v61  ;;  %11190 = vmatpush3.msra.mxu1 %v6212_v52  ;;  %v6203_v41 = vld [vmem:[#allocation12 + $0x130] sm:$0xff] }
0x1726   :  { %v14632_v5 = vsub.f32 %v14558_v62, %v5828_v15  ;;  %v5831_v58 = vmul.f32 0.0078125, %v5813_v9  ;;  %5882 = vadd.xlane.f32.xlu1 %v5858_v49  ;;  %v5861_v8 = vmul.f32 %v14627_v32, %v14627_v32  ;;  %11148 = vmatpush3.msra.mxu0 %v6019_v61  ;;  %v6206_v15 = vld [vmem:[#allocation12 + $0x148] sm:$0xff]  ;;  %v6205_v49 = vld [vmem:[#allocation12 + $0x140] sm:$0xff]  ;;  %v6204_v9 = vld [vmem:[#allocation12 + $0x138] sm:$0xff] }
0x1727   :  { %v5811_v4 = vpop.xlane.xlu1 %5810  ;;  %11149 = vmatprep.subr.mxu0 %v6018_v36  ;;  %11191 = vmatprep.subr.mxu1 %v6211_v35 }
0x1728   :  { %v14637_v33 = vsub.f32 %v14562_v54, %v5831_v58  ;;  %v5830_v23 = vmul.f32 0.0078125, %v5811_v4  ;;  %5888 = vadd.xlane.f32.xlu0 %v5861_v8  ;;  %v5860_v44 = vmul.f32 %v14632_v5, %v14632_v5  ;;  %11150 = vmatpush3.msra.mxu0 %v6018_v36  ;;  %v6202_v58 = vld [vmem:[#allocation12 + $0x128] sm:$0xff]  ;;  %v6201_v8 = vld [vmem:[#allocation12 + $0x120] sm:$0xff] }
0x1729   :  { %v5817_v62 = vpop.xlane.xlu0 %5816  ;;  %11151 = vmatprep.subr.mxu0 %v6017_v40  ;;  %11192 = vmatpush3.msra.mxu1 %v6211_v35 }
0x172a   :  { %v14642_v0 = vsub.f32 %v14566_v14, %v5830_v23  ;;  %v5833_v6 = vmul.f32 0.0078125, %v5817_v62  ;;  %5886 = vadd.xlane.f32.xlu1 %v5860_v44  ;;  %v5863_v19 = vmul.f32 %v14637_v33, %v14637_v33  ;;  %11152 = vmatpush3.msra.mxu0 %v6017_v40  ;;  %v6016_v14 = vld [vmem:[#allocation11 + $0x128] sm:$0xff] }
0x172b   :  { %v5815_v54 = vpop.xlane.xlu1 %5814  ;;  %11153 = vmatprep.subr.mxu0 %v6016_v14  ;;  %11193 = vmatprep.subr.mxu1 %v6210_v56 }
0x172c   :  { %v14647_v29 = vsub.f32 %v14570_v57, %v5833_v6  ;;  %v5832_v13 = vmul.f32 0.0078125, %v5815_v54  ;;  %5892 = vadd.xlane.f32.xlu0 %v5863_v19  ;;  %v5862_v46 = vmul.f32 %v14642_v0, %v14642_v0  ;;  %11154 = vmatpush3.msra.mxu0 %v6016_v14 }
0x172d   :  { %11155 = vmatprep.subr.mxu0 %v6015_v31  ;;  %11194 = vmatpush3.msra.mxu1 %v6210_v56 }
0x172e   :  { %v14652_v20 = vsub.f32 %v14574_v38, %v5832_v13  ;;  %5890 = vadd.xlane.f32.xlu1 %v5862_v46  ;;  %v5865_v10 = vmul.f32 %v14647_v29, %v14647_v29  ;;  %11156 = vmatpush3.msra.mxu0 %v6015_v31  ;;  %v6012_v38 = vld [vmem:[#allocation11 + $0x108] sm:$0xff] }
0x172f   :  { %11157 = vmatprep.subr.mxu0 %v6014_v24  ;;  %11195 = vmatprep.subr.mxu1 %v6209_v22 }
0x1730   :  { %5896 = vadd.xlane.f32.xlu0 %v5865_v10  ;;  %v5864_v57 = vmul.f32 %v14652_v20, %v14652_v20  ;;  %11158 = vmatpush3.msra.mxu0 %v6014_v24 }
0x1731   :  { %11159 = vmatprep.subr.mxu0 %v6013_v3  ;;  %11196 = vmatpush3.msra.mxu1 %v6209_v22 }
0x1732   :  { %5894 = vadd.xlane.f32.xlu1 %v5864_v57  ;;  %11160 = vmatpush3.msra.mxu0 %v6013_v3 }
0x1733   :  { %11161 = vmatprep.subr.mxu0 %v6012_v38  ;;  %11197 = vmatprep.subr.mxu1 %v6208_v59 }
0x1734   :  { %11162 = vmatpush3.msra.mxu0 %v6012_v38  ;;  %11198 = vmatpush3.msra.mxu1 %v6208_v59 }
0x1735   :  { %11163 = vmatprep.subr.mxu0 %v6011_v37  ;;  %11199 = vmatprep.subr.mxu1 %v6207_v28 }
0x1736   :  { %11164 = vmatpush3.msra.mxu0 %v6011_v37  ;;  %11200 = vmatpush3.msra.mxu1 %v6207_v28 }
0x1737   :  { %11201 = vmatprep.subr.mxu1 %v6206_v15 }
0x1738   :  { %11202 = vmatpush3.msra.mxu1 %v6206_v15 }
0x1739   :  { %11203 = vmatprep.subr.mxu1 %v6205_v49 }
0x173a   :  { %11204 = vmatpush3.msra.mxu1 %v6205_v49 }
0x173b   :  { %11205 = vmatprep.subr.mxu1 %v6204_v9 }
0x173c   :  { %11206 = vmatpush3.msra.mxu1 %v6204_v9  ;;  %v14661_v9 = vld [vmem:[%s15763_s15 + $0x2] ss:$0 sm:$0xff] }
0x173d   :  { %11207 = vmatprep.subr.mxu1 %v6203_v41 }
0x173e   :  { %11208 = vmatpush3.msra.mxu1 %v6203_v41 }
0x173f   :  { %11209 = vmatprep.subr.mxu1 %v6202_v58 }
0x1740   :  { %11210 = vmatpush3.msra.mxu1 %v6202_v58 }
0x1741   :  { %11211 = vmatprep.subr.mxu1 %v6201_v8 }
0x1742   :  { %11212 = vmatpush3.msra.mxu1 %v6201_v8 }
0x179d   :  { %v5869_v4 = vpop.xlane.xlu0 %5868 }
0x179e   :  { %v5899_v61 = vmul.f32 0.0078125, %v5869_v4 }
0x179f   :  { %v5867_v23 = vpop.xlane.xlu1 %5866 }
0x17a0   :  { %v5915_v44 = vadd.f32 1e-05, %v5899_v61  ;;  %v5898_v62 = vmul.f32 0.0078125, %v5867_v23 }
0x17a1   :  { %v5873_v36 = vpop.xlane.xlu0 %5872 }
0x17a2   :  { %12077 = vrsqrt.f32 %v5915_v44  ;;  %v5914_v6 = vadd.f32 1e-05, %v5898_v62  ;;  %v5901_v19 = vmul.f32 0.0078125, %v5873_v36 }
0x17a3   :  { %v5871_v54 = vpop.xlane.xlu1 %5870 }
0x17a4   :  { %12079 = vrsqrt.f32 %v5914_v6  ;;  %v5917_v40 = vadd.f32 1e-05, %v5901_v19  ;;  %v5900_v13 = vmul.f32 0.0078125, %v5871_v54 }
0x17a5   :  { %v5877_v46 = vpop.xlane.xlu0 %5876 }
0x17a6   :  { %12081 = vrsqrt.f32 %v5917_v40  ;;  %v5916_v14 = vadd.f32 1e-05, %v5900_v13  ;;  %v5903_v10 = vmul.f32 0.0078125, %v5877_v46 }
0x17a7   :  { %v5875_v31 = vpop.xlane.xlu1 %5874 }
0x17a8   :  { %12083 = vrsqrt.f32 %v5916_v14  ;;  %v5919_v57 = vadd.f32 1e-05, %v5903_v10  ;;  %v5902_v24 = vmul.f32 0.0078125, %v5875_v31 }
0x17a9   :  { %v5881_v3 = vpop.xlane.xlu0 %5880 }
0x17aa   :  { %12085 = vrsqrt.f32 %v5919_v57  ;;  %v5918_v38 = vadd.f32 1e-05, %v5902_v24  ;;  %v5905_v37 = vmul.f32 0.0078125, %v5881_v3 }
0x17ab   :  { %v5879_v52 = vpop.xlane.xlu1 %5878 }
0x17ac   :  { %12087 = vrsqrt.f32 %v5918_v38  ;;  %v5921_v35 = vadd.f32 1e-05, %v5905_v37  ;;  %v5904_v56 = vmul.f32 0.0078125, %v5879_v52 }
0x17ad   :  { %v5885_v22 = vpop.xlane.xlu0 %5884 }
0x17ae   :  { %12089 = vrsqrt.f32 %v5921_v35  ;;  %v5920_v59 = vadd.f32 1e-05, %v5904_v56  ;;  %v5907_v28 = vmul.f32 0.0078125, %v5885_v22 }
0x17af   :  { %v12078_v15 = vpop.eup %12077  ;;  %v5883_v49 = vpop.xlane.xlu1 %5882 }
0x17b0   :  { %v5947_v41 = vmul.f32 %v12078_v15, %v14579_v26  ;;  %12091 = vrsqrt.f32 %v5920_v59  ;;  %v5923_v58 = vadd.f32 1e-05, %v5907_v28  ;;  %v5906_v8 = vmul.f32 0.0078125, %v5883_v49  ;;  %v14669_v26 = vld [vmem:[%s15764_s16 + $0x2] ss:$0 sm:$0xff] }
0x17b1   :  { %v12080_v4 = vpop.eup %12079  ;;  %v5889_v61 = vpop.xlane.xlu0 %5888 }
0x17b2   :  { %12093 = vrsqrt.f32 %v5923_v58  ;;  %v5922_v23 = vadd.f32 1e-05, %v5906_v8  ;;  %v5909_v44 = vmul.f32 0.0078125, %v5889_v61  ;;  %v5971_v36 = vmul.f32 %v14661_v9, %v5947_v41 }
0x17b3   :  { %v12082_v62 = vpop.eup %12081  ;;  %v5887_v6 = vpop.xlane.xlu1 %5886  ;;  %v5946_v19 = vmul.f32 %v12080_v4, %v14582_v45 }
0x17b4   :  { %12095 = vrsqrt.f32 %v5922_v23  ;;  %v5925_v54 = vadd.f32 1e-05, %v5909_v44  ;;  %v5908_v40 = vmul.f32 0.0078125, %v5887_v6  ;;  %v5949_v10 = vmul.f32 %v12082_v62, %v14587_v51 }
0x17b5   :  { %v12084_v13 = vpop.eup %12083  ;;  %v5893_v46 = vpop.xlane.xlu0 %5892  ;;  %v5970_v14 = vmul.f32 %v14661_v9, %v5946_v19  ;;  %v14678_v37 = vadd.f32 %v14669_v26, %v5971_v36 }
0x17b6   :  { %12097 = vrsqrt.f32 %v5925_v54  ;;  %v5924_v31 = vadd.f32 1e-05, %v5908_v40  ;;  %v5911_v57 = vmul.f32 0.0078125, %v5893_v46  ;;  %v5948_v24 = vmul.f32 %v12084_v13, %v14592_v21 }
0x17b7   :  { %v12086_v45 = vpop.eup %12085  ;;  %v5891_v3 = vpop.xlane.xlu1 %5890  ;;  %v14675_v38 = vadd.f32 %v14669_v26, %v5970_v14  ;;  %v5973_v52 = vmul.f32 %v14661_v9, %v5949_v10 }
0x17b8   :  { %12099 = vrsqrt.f32 %v5924_v31  ;;  %v5927_v35 = vadd.f32 1e-05, %v5911_v57  ;;  %v5910_v56 = vmul.f32 0.0078125, %v5891_v3  ;;  %v5972_v51 = vmul.f32 %v14661_v9, %v5948_v24 }
0x17b9   :  { %v12088_v22 = vpop.eup %12087  ;;  %11165 = vmatprep.mubr.f32.mxu0 %v14675_v38  ;;  %v5897_v59 = vpop.xlane.xlu0 %5896  ;;  %v5951_v21 = vmul.f32 %v12086_v45, %v14597_v47  ;;  %v14689_v8 = vadd.f32 %v14669_v26, %v5973_v52 }
0x17ba   :  { %12101 = vrsqrt.f32 %v5927_v35  ;;  %v5926_v28 = vadd.f32 1e-05, %v5910_v56  ;;  %v5913_v15 = vmul.f32 0.0078125, %v5897_v59  ;;  %11166 = vmatmul.mubr.f32.vlgmr.msra.gmra.mxu0 %v14678_v37  ;;  %v14686_v49 = vadd.f32 %v14669_v26, %v5972_v51 }
0x17bb   :  { %v12090_v41 = vpop.eup %12089  ;;  %v5895_v58 = vpop.xlane.xlu1 %5894  ;;  %v5950_v4 = vmul.f32 %v12088_v22, %v14602_v2  ;;  %v5975_v61 = vmul.f32 %v14661_v9, %v5951_v21 }
0x17bc   :  { %12103 = vrsqrt.f32 %v5926_v28  ;;  %v5929_v23 = vadd.f32 1e-05, %v5913_v15  ;;  %v5912_v47 = vmul.f32 0.0078125, %v5895_v58  ;;  %11168 = vmatprep.mubr.f32.mxu0 %v14686_v49  ;;  %v5953_v44 = vmul.f32 %v12090_v41, %v14607_v27 }
0x17bd   :  { %v12092_v62 = vpop.eup %12091  ;;  %v5974_v36 = vmul.f32 %v14661_v9, %v5950_v4  ;;  %v14702_v40 = vadd.f32 %v14669_v26, %v5975_v61 }
0x17be   :  { %12105 = vrsqrt.f32 %v5929_v23  ;;  %v5928_v6 = vadd.f32 1e-05, %v5912_v47  ;;  %11169 = vmatmul.mubr.f32.gmra.mxu0 %v14689_v8  ;;  %v5952_v19 = vmul.f32 %v12092_v62, %v14612_v53  ;;  %v5977_v27 = vmul.f32 %v14661_v9, %v5953_v44 }
0x17bf   :  { %v12094_v54 = vpop.eup %12093  ;;  %v14699_v2 = vadd.f32 %v14669_v26, %v5974_v36  ;;  %v6199_v36 = vld [vmem:[#allocation12 + $0x110] sm:$0xff] }
0x17c0   :  { %12107 = vrsqrt.f32 %v5928_v6  ;;  %v5976_v13 = vmul.f32 %v14661_v9, %v5952_v19  ;;  %v5955_v46 = vmul.f32 %v12094_v54, %v14617_v18  ;;  %v14715_v57 = vadd.f32 %v14669_v26, %v5977_v27  ;;  %v6198_v6 = vld [vmem:[#allocation12 + $0x108] sm:$0xff]  ;;  %v8693_v19 = vld [vmem:[%s15760_s12 + $0x2] ss:$0 sm:$0xff] }
0x17c1   :  { %v12096_v14 = vpop.eup %12095  ;;  %11171 = vmatprep.mubr.f32.mxu0 %v14699_v2 }
0x17c2   :  { %11172 = vmatmul.mubr.f32.gmra.mxu0 %v14702_v40  ;;  %v14710_v53 = vadd.f32 %v14669_v26, %v5976_v13  ;;  %v5954_v10 = vmul.f32 %v12096_v14, %v14622_v48  ;;  %v5979_v18 = vmul.f32 %v14661_v9, %v5955_v46 }
0x17c3   :  { %v12098_v31 = vpop.eup %12097 }
0x17c4   :  { %11174 = vmatprep.mubr.f32.mxu0 %v14710_v53  ;;  %v5978_v24 = vmul.f32 %v14661_v9, %v5954_v10  ;;  %v5957_v45 = vmul.f32 %v12098_v31, %v14627_v32  ;;  %v14727_v56 = vadd.f32 %v14669_v26, %v5979_v18 }
0x17c5   :  { %v12100_v3 = vpop.eup %12099 }
0x17c6   :  { %11175 = vmatmul.mubr.f32.gmra.mxu0 %v14715_v57  ;;  %v14722_v52 = vadd.f32 %v14669_v26, %v5978_v24  ;;  %v5956_v48 = vmul.f32 %v12100_v3, %v14632_v5  ;;  %v5981_v22 = vmul.f32 %v14661_v9, %v5957_v45 }
0x17c7   :  { %v12102_v35 = vpop.eup %12101 }
0x17c8   :  { %11177 = vmatprep.mubr.f32.mxu0 %v14722_v52  ;;  %v5980_v51 = vmul.f32 %v14661_v9, %v5956_v48  ;;  %v5959_v32 = vmul.f32 %v12102_v35, %v14637_v33  ;;  %v14739_v15 = vadd.f32 %v14669_v26, %v5981_v22 }
0x17c9   :  { %v12104_v59 = vpop.eup %12103 }
0x17ca   :  { %11178 = vmatmul.mubr.f32.gmra.mxu0 %v14727_v56  ;;  %v14734_v21 = vadd.f32 %v14669_v26, %v5980_v51  ;;  %v5958_v5 = vmul.f32 %v12104_v59, %v14642_v0  ;;  %v5983_v58 = vmul.f32 %v14661_v9, %v5959_v32 }
0x17cb   :  { %v12106_v28 = vpop.eup %12105 }
0x17cc   :  { %11180 = vmatprep.mubr.f32.mxu0 %v14734_v21  ;;  %v5982_v41 = vmul.f32 %v14661_v9, %v5958_v5  ;;  %v5961_v33 = vmul.f32 %v12106_v28, %v14647_v29  ;;  %v14751_v23 = vadd.f32 %v14669_v26, %v5983_v58 }
0x17cd   :  { %v12108_v4 = vpop.eup %12107 }
0x17ce   :  { %11181 = vmatmul.mubr.f32.gmra.mxu0 %v14739_v15  ;;  %v14746_v61 = vadd.f32 %v14669_v26, %v5982_v41  ;;  %v5960_v0 = vmul.f32 %v12108_v4, %v14652_v20  ;;  %v5985_v44 = vmul.f32 %v14661_v9, %v5961_v33  ;;  %v6200_v20 = vld [vmem:[#allocation12 + $0x118] sm:$0xff] }
0x17cf   :  { %11213 = vmatprep.subr.mxu1 %v6200_v20 }
0x17d0   :  { %11183 = vmatprep.mubr.f32.mxu0 %v14746_v61  ;;  %v5984_v47 = vmul.f32 %v14661_v9, %v5960_v0  ;;  %v14761_v62 = vadd.f32 %v14669_v26, %v5985_v44  ;;  %11214 = vmatpush3.msra.mxu1 %v6200_v20  ;;  %v6197_v9 = vld [vmem:[#allocation12 + $0x100] sm:$0xff] }
0x17d1   :  { %11215 = vmatprep.subr.mxu1 %v6199_v36 }
0x17d2   :  { %11184 = vmatmul.mubr.f32.gmra.mxu0 %v14751_v23  ;;  %v14757_v29 = vadd.f32 %v14669_v26, %v5984_v47  ;;  %11216 = vmatpush3.msra.mxu1 %v6199_v36 }
0x17d3   :  { %11217 = vmatprep.subr.mxu1 %v6198_v6 }
0x17d4   :  { %11186 = vmatprep.mubr.f32.mxu0 %v14757_v29  ;;  %11218 = vmatpush3.msra.mxu1 %v6198_v6 }
0x17d5   :  { %11219 = vmatprep.subr.mxu1 %v6197_v9 }
0x17d6   :  { %11187 = vmatmul.mubr.f32.gmra.mxu0 %v14761_v62  ;;  %11220 = vmatpush3.msra.mxu1 %v6197_v9 }
0x187a   :  { %v11167_v26 = vpop.f32.mrf.mxu0 }
0x187b   :  { %v6107_v54 = vadd.f32 %v11167_v26, %v8693_v19 }
0x187c   :  { %v6101_v13 = vpop.f32.mrf.mxu0 }
0x187d   :  { %v6102_v27 = vadd.f32 %v8693_v19, %v6101_v13  ;;  %v6181_v10 = vmax.f32 %v6107_v54, 0.0 }
0x187e   :  { %v11170_v46 = vpop.f32.mrf.mxu0 }
0x187f   :  { %v6180_v14 = vmax.f32 %v6102_v27, 0.0  ;;  %v6117_v31 = vadd.f32 %v11170_v46, %v8693_v19 }
0x1880   :  { %v6111_v24 = vpop.f32.mrf.mxu0 }
0x1881   :  { %v6112_v18 = vadd.f32 %v8693_v19, %v6111_v24  ;;  %11221 = vmatprep.mubr.f32.mxu1 %v6180_v14  ;;  %v6183_v48 = vmax.f32 %v6117_v31, 0.0 }
0x1882   :  { %v11173_v45 = vpop.f32.mrf.mxu0  ;;  %11222 = vmatmul.mubr.f32.vlgmr.msra.gmra.mxu1 %v6181_v10 }
0x1883   :  { %v6182_v3 = vmax.f32 %v6112_v18, 0.0  ;;  %v6127_v35 = vadd.f32 %v11173_v45, %v8693_v19 }
0x1884   :  { %v6121_v51 = vpop.f32.mrf.mxu0 }
0x1885   :  { %v6122_v22 = vadd.f32 %v8693_v19, %v6121_v51  ;;  %11224 = vmatprep.mubr.f32.mxu1 %v6182_v3  ;;  %v6185_v5 = vmax.f32 %v6127_v35, 0.0 }
0x1886   :  { %v11176_v32 = vpop.f32.mrf.mxu0  ;;  %11225 = vmatmul.mubr.f32.gmra.mxu1 %v6183_v48 }
0x1887   :  { %v6184_v59 = vmax.f32 %v6122_v22, 0.0  ;;  %v6137_v28 = vadd.f32 %v11176_v32, %v8693_v19 }
0x1888   :  { %v6131_v41 = vpop.f32.mrf.mxu0 }
0x1889   :  { %v6132_v58 = vadd.f32 %v8693_v19, %v6131_v41  ;;  %11227 = vmatprep.mubr.f32.mxu1 %v6184_v59  ;;  %v6187_v0 = vmax.f32 %v6137_v28, 0.0  ;;  %v8695_v59 = vld [vmem:[%s15762_s14 + $0x2] ss:$0 sm:$0xff] }
0x188a   :  { %v11179_v33 = vpop.f32.mrf.mxu0  ;;  %11228 = vmatmul.mubr.f32.gmra.mxu1 %v6185_v5 }
0x188b   :  { %v6186_v4 = vmax.f32 %v6132_v58, 0.0  ;;  %v6147_v47 = vadd.f32 %v11179_v33, %v8693_v19 }
0x188c   :  { %v6141_v44 = vpop.f32.mrf.mxu0 }
0x188d   :  { %v6142_v20 = vadd.f32 %v8693_v19, %v6141_v44  ;;  %11230 = vmatprep.mubr.f32.mxu1 %v6186_v4  ;;  %v6189_v9 = vmax.f32 %v6147_v47, 0.0 }
0x188e   :  { %v11182_v36 = vpop.f32.mrf.mxu0  ;;  %11231 = vmatmul.mubr.f32.gmra.mxu1 %v6187_v0 }
0x188f   :  { %v6188_v6 = vmax.f32 %v6142_v20, 0.0  ;;  %v6157_v26 = vadd.f32 %v11182_v36, %v8693_v19 }
0x1890   :  { %v6151_v54 = vpop.f32.mrf.mxu0 }
0x1891   :  { %v6152_v13 = vadd.f32 %v8693_v19, %v6151_v54  ;;  %11233 = vmatprep.mubr.f32.mxu1 %v6188_v6  ;;  %v6191_v14 = vmax.f32 %v6157_v26, 0.0 }
0x1892   :  { %v11185_v27 = vpop.f32.mrf.mxu0  ;;  %11234 = vmatmul.mubr.f32.gmra.mxu1 %v6189_v9 }
0x1893   :  { %v6190_v46 = vmax.f32 %v6152_v13, 0.0  ;;  %v6167_v10 = vadd.f32 %v11185_v27, %v8693_v19 }
0x1894   :  { %v6161_v31 = vpop.f32.mrf.mxu0 }
0x1895   :  { %v6162_v24 = vadd.f32 %v8693_v19, %v6161_v31  ;;  %11236 = vmatprep.mubr.f32.mxu1 %v6190_v46  ;;  %v6193_v3 = vmax.f32 %v6167_v10, 0.0 }
0x1896   :  { %v11188_v18 = vpop.f32.mrf.mxu0  ;;  %11237 = vmatmul.mubr.f32.gmra.mxu1 %v6191_v14 }
0x1897   :  { %v6192_v45 = vmax.f32 %v6162_v24, 0.0  ;;  %v6177_v48 = vadd.f32 %v11188_v18, %v8693_v19 }
0x1898   :  { %v6171_v35 = vpop.f32.mrf.mxu0 }
0x1899   :  { %v6172_v51 = vadd.f32 %v8693_v19, %v6171_v35  ;;  %11239 = vmatprep.mubr.f32.mxu1 %v6192_v45  ;;  %v6195_v32 = vmax.f32 %v6177_v48, 0.0 }
0x189a   :  { %11240 = vmatmul.mubr.f32.gmra.mxu1 %v6193_v3 }
0x189b   :  { %v6194_v22 = vmax.f32 %v6172_v51, 0.0 }
0x189d   :  { %11242 = vmatprep.mubr.f32.mxu1 %v6194_v22 }
0x189e   :  { %11243 = vmatmul.mubr.f32.gmra.mxu1 %v6195_v32 }
0x1942   :  { %v11223_v5 = vpop.f32.mrf.mxu1 }
0x1943   :  { %v6293_v28 = vadd.f32 %v11223_v5, %v8695_v59 }
0x1944   :  { %v6287_v41 = vpop.f32.mrf.mxu1 }
0x1945   :  { %v14771_v58 = vadd.f32 %v6293_v28, %v14678_v37  ;;  %v6288_v33 = vadd.f32 %v8695_v59, %v6287_v41 }
0x1946   :  { %v11226_v4 = vpop.f32.mrf.mxu1 }
0x1947   :  { %v14774_v19 = vadd.f32 %v6288_v33, %v14675_v38  ;;  %v6303_v0 = vadd.f32 %v11226_v4, %v8695_v59  ;;  %6384 = vadd.xlane.f32.xlu0 %v14771_v58  ;;  %v6622_v4 = vld [vmem:[#allocation3 + $0x1f8] sm:$0xff] }
0x1948   :  { %v6297_v47 = vpop.f32.mrf.mxu1  ;;  %11245 = vmatprep.subr.mxu0 %v6622_v4 }
0x1949   :  { %v14778_v44 = vadd.f32 %v6303_v0, %v14689_v8  ;;  %v6298_v20 = vadd.f32 %v8695_v59, %v6297_v47  ;;  %6382 = vadd.xlane.f32.xlu1 %v14774_v19  ;;  %v6621_v0 = vld [vmem:[#allocation3 + $0x1f0] sm:$0xff]  ;;  %11246 = vmatpush3.msra.mxu0 %v6622_v4 }
0x194a   :  { %v11229_v36 = vpop.f32.mrf.mxu1  ;;  %v6791_v47 = vld [vmem:[#allocation6 + $0x1f0] sm:$0xff]  ;;  %11247 = vmatprep.subr.mxu0 %v6621_v0 }
0x194b   :  { %v14782_v6 = vadd.f32 %v6298_v20, %v14686_v49  ;;  %v6313_v37 = vadd.f32 %v11229_v36, %v8695_v59  ;;  %6388 = vadd.xlane.f32.xlu0 %v14778_v44  ;;  %v6790_v20 = vld [vmem:[#allocation6 + $0x1e8] sm:$0xff]  ;;  %11248 = vmatpush3.msra.mxu0 %v6621_v0  ;;  %v6789_v0 = vld [vmem:[#allocation6 + $0x1e0] sm:$0xff] }
0x194c   :  { %v6307_v9 = vpop.f32.mrf.mxu1 }
0x194d   :  { %v14786_v38 = vadd.f32 %v6313_v37, %v14702_v40  ;;  %v6308_v26 = vadd.f32 %v8695_v59, %v6307_v9  ;;  %6386 = vadd.xlane.f32.xlu1 %v14782_v6 }
0x194e   :  { %v11232_v54 = vpop.f32.mrf.mxu1 }
0x194f   :  { %v14790_v8 = vadd.f32 %v6308_v26, %v14699_v2  ;;  %v6323_v13 = vadd.f32 %v11232_v54, %v8695_v59  ;;  %6392 = vadd.xlane.f32.xlu0 %v14786_v38 }
0x1950   :  { %v6317_v27 = vpop.f32.mrf.mxu1 }
0x1951   :  { %v14794_v49 = vadd.f32 %v6323_v13, %v14715_v57  ;;  %v6318_v46 = vadd.f32 %v8695_v59, %v6317_v27  ;;  %6390 = vadd.xlane.f32.xlu1 %v14790_v8 }
0x1952   :  { %v11235_v14 = vpop.f32.mrf.mxu1 }
0x1953   :  { %v14798_v40 = vadd.f32 %v6318_v46, %v14710_v53  ;;  %v6333_v10 = vadd.f32 %v11235_v14, %v8695_v59  ;;  %6396 = vadd.xlane.f32.xlu0 %v14794_v49 }
0x1954   :  { %v6327_v31 = vpop.f32.mrf.mxu1 }
0x1955   :  { %v14802_v2 = vadd.f32 %v6333_v10, %v14727_v56  ;;  %v6328_v24 = vadd.f32 %v8695_v59, %v6327_v31  ;;  %6394 = vadd.xlane.f32.xlu1 %v14798_v40 }
0x1956   :  { %v11238_v18 = vpop.f32.mrf.mxu1 }
0x1957   :  { %v14806_v57 = vadd.f32 %v6328_v24, %v14722_v52  ;;  %v6343_v45 = vadd.f32 %v11238_v18, %v8695_v59  ;;  %6400 = vadd.xlane.f32.xlu0 %v14802_v2 }
0x1958   :  { %v6337_v3 = vpop.f32.mrf.mxu1 }
0x1959   :  { %v14810_v53 = vadd.f32 %v6343_v45, %v14739_v15  ;;  %v6338_v48 = vadd.f32 %v8695_v59, %v6337_v3  ;;  %6398 = vadd.xlane.f32.xlu1 %v14806_v57 }
0x195a   :  { %v11241_v35 = vpop.f32.mrf.mxu1 }
0x195b   :  { %v14814_v56 = vadd.f32 %v6338_v48, %v14734_v21  ;;  %v6353_v51 = vadd.f32 %v11241_v35, %v8695_v59  ;;  %6404 = vadd.xlane.f32.xlu0 %v14810_v53 }
0x195c   :  { %v6347_v22 = vpop.f32.mrf.mxu1 }
0x195d   :  { %v14818_v52 = vadd.f32 %v6353_v51, %v14751_v23  ;;  %v6348_v32 = vadd.f32 %v8695_v59, %v6347_v22  ;;  %6402 = vadd.xlane.f32.xlu1 %v14814_v56 }
0x195e   :  { %v11244_v5 = vpop.f32.mrf.mxu1 }
0x195f   :  { %v14822_v15 = vadd.f32 %v6348_v32, %v14746_v61  ;;  %v6363_v28 = vadd.f32 %v11244_v5, %v8695_v59  ;;  %6408 = vadd.xlane.f32.xlu0 %v14818_v52  ;;  %v6792_v61 = vld [vmem:[#allocation6 + $0x1f8] sm:$0xff] }
0x1960   :  { %v6357_v41 = vpop.f32.mrf.mxu1  ;;  %11301 = vmatprep.subr.mxu1 %v6792_v61 }
0x1961   :  { %v14826_v21 = vadd.f32 %v6363_v28, %v14761_v62  ;;  %v6358_v33 = vadd.f32 %v8695_v59, %v6357_v41  ;;  %6406 = vadd.xlane.f32.xlu1 %v14822_v15  ;;  %11302 = vmatpush3.msra.mxu1 %v6792_v61  ;;  %v6620_v62 = vld [vmem:[#allocation3 + $0x1e8] sm:$0xff]  ;;  %v6619_v61 = vld [vmem:[#allocation3 + $0x1e0] sm:$0xff] }
0x1962   :  { %11303 = vmatprep.subr.mxu1 %v6791_v47  ;;  %11249 = vmatprep.subr.mxu0 %v6620_v62 }
0x1963   :  { %v14830_v23 = vadd.f32 %v6358_v33, %v14757_v29  ;;  %6412 = vadd.xlane.f32.xlu0 %v14826_v21  ;;  %11304 = vmatpush3.msra.mxu1 %v6791_v47 }
0x1964   :  { %11305 = vmatprep.subr.mxu1 %v6790_v20  ;;  %11250 = vmatpush3.msra.mxu0 %v6620_v62 }
0x1965   :  { %6410 = vadd.xlane.f32.xlu1 %v14830_v23  ;;  %11306 = vmatpush3.msra.mxu1 %v6790_v20 }
0x1966   :  { %11251 = vmatprep.subr.mxu0 %v6619_v61  ;;  %11307 = vmatprep.subr.mxu1 %v6789_v0 }
0x1967   :  { %11252 = vmatpush3.msra.mxu0 %v6619_v61  ;;  %11308 = vmatpush3.msra.mxu1 %v6789_v0 }
0x19d0   :  { %v6385_v29 = vpop.xlane.xlu0 %6384 }
0x19d1   :  { %v6415_v59 = vmul.f32 0.0078125, %v6385_v29  ;;  %v6788_v29 = vld [vmem:[#allocation6 + $0x1d8] sm:$0xff] }
0x19d2   :  { %v6383_v36 = vpop.xlane.xlu1 %6382  ;;  %11309 = vmatprep.subr.mxu1 %v6788_v29 }
0x19d3   :  { %v14835_v37 = vsub.f32 %v14771_v58, %v6415_v59  ;;  %v6414_v9 = vmul.f32 0.0078125, %v6383_v36  ;;  %11310 = vmatpush3.msra.mxu1 %v6788_v29  ;;  %v6782_v29 = vld [vmem:[#allocation6 + $0x1a8] sm:$0xff] }
0x19d4   :  { %v6389_v26 = vpop.xlane.xlu0 %6388 }
0x19d5   :  { %v14838_v54 = vsub.f32 %v14774_v19, %v6414_v9  ;;  %v6417_v13 = vmul.f32 0.0078125, %v6389_v26  ;;  %v6447_v27 = vmul.f32 %v14835_v37, %v14835_v37  ;;  %v6617_v26 = vld [vmem:[#allocation3 + $0x1d0] sm:$0xff] }
0x19d6   :  { %v6387_v46 = vpop.xlane.xlu1 %6386 }
0x19d7   :  { %v14843_v14 = vsub.f32 %v14778_v44, %v6417_v13  ;;  %v6416_v10 = vmul.f32 0.0078125, %v6387_v46  ;;  %6464 = vadd.xlane.f32.xlu0 %v6447_v27  ;;  %v6446_v31 = vmul.f32 %v14838_v54, %v14838_v54  ;;  %v6787_v13 = vld [vmem:[#allocation6 + $0x1d0] sm:$0xff] }
0x19d8   :  { %v6393_v58 = vpop.xlane.xlu0 %6392  ;;  %11311 = vmatprep.subr.mxu1 %v6787_v13 }
0x19d9   :  { %v14848_v24 = vsub.f32 %v14782_v6, %v6416_v10  ;;  %v6419_v18 = vmul.f32 0.0078125, %v6393_v58  ;;  %6462 = vadd.xlane.f32.xlu1 %v6446_v31  ;;  %v6449_v19 = vmul.f32 %v14843_v14, %v14843_v14  ;;  %v6616_v31 = vld [vmem:[#allocation3 + $0x1c8] sm:$0xff]  ;;  %11312 = vmatpush3.msra.mxu1 %v6787_v13  ;;  %v6609_v13 = vld [vmem:[#allocation3 + $0x190] sm:$0xff] }
0x19da   :  { %v6391_v45 = vpop.xlane.xlu1 %6390  ;;  %v6786_v58 = vld [vmem:[#allocation6 + $0x1c8] sm:$0xff] }
0x19db   :  { %v14853_v3 = vsub.f32 %v14786_v38, %v6419_v18  ;;  %v6418_v44 = vmul.f32 0.0078125, %v6391_v45  ;;  %6468 = vadd.xlane.f32.xlu0 %v6449_v19  ;;  %v6448_v48 = vmul.f32 %v14848_v24, %v14848_v24  ;;  %11313 = vmatprep.subr.mxu1 %v6786_v58 }
0x19dc   :  { %v6397_v35 = vpop.xlane.xlu0 %6396  ;;  %11314 = vmatpush3.msra.mxu1 %v6786_v58  ;;  %v6777_v58 = vld [vmem:[#allocation6 + $0x180] sm:$0xff] }
0x19dd   :  { %v14858_v51 = vsub.f32 %v14790_v8, %v6418_v44  ;;  %v6421_v6 = vmul.f32 0.0078125, %v6397_v35  ;;  %6466 = vadd.xlane.f32.xlu1 %v6448_v48  ;;  %v6451_v22 = vmul.f32 %v14853_v3, %v14853_v3  ;;  %v6615_v44 = vld [vmem:[#allocation3 + $0x1c0] sm:$0xff] }
0x19de   :  { %v6395_v32 = vpop.xlane.xlu1 %6394  ;;  %v6785_v35 = vld [vmem:[#allocation6 + $0x1c0] sm:$0xff] }
0x19df   :  { %v14863_v5 = vsub.f32 %v14794_v49, %v6421_v6  ;;  %v6420_v38 = vmul.f32 0.0078125, %v6395_v32  ;;  %6472 = vadd.xlane.f32.xlu0 %v6451_v22  ;;  %v6450_v28 = vmul.f32 %v14858_v51, %v14858_v51  ;;  %11315 = vmatprep.subr.mxu1 %v6785_v35 }
0x19e0   :  { %v6401_v41 = vpop.xlane.xlu0 %6400  ;;  %11316 = vmatpush3.msra.mxu1 %v6785_v35 }
0x19e1   :  { %v14868_v33 = vsub.f32 %v14798_v40, %v6420_v38  ;;  %v6423_v8 = vmul.f32 0.0078125, %v6401_v41  ;;  %6470 = vadd.xlane.f32.xlu1 %v6450_v28  ;;  %v6453_v4 = vmul.f32 %v14863_v5, %v14863_v5  ;;  %v6618_v40 = vld [vmem:[#allocation3 + $0x1d8] sm:$0xff] }
0x19e2   :  { %v6399_v47 = vpop.xlane.xlu1 %6398  ;;  %11253 = vmatprep.subr.mxu0 %v6618_v40  ;;  %v6614_v38 = vld [vmem:[#allocation3 + $0x1b8] sm:$0xff] }
0x19e3   :  { %v14873_v49 = vsub.f32 %v14802_v2, %v6423_v8  ;;  %v6422_v62 = vmul.f32 0.0078125, %v6399_v47  ;;  %6476 = vadd.xlane.f32.xlu0 %v6453_v4  ;;  %v6452_v20 = vmul.f32 %v14868_v33, %v14868_v33  ;;  %11254 = vmatpush3.msra.mxu0 %v6618_v40 }
0x19e4   :  { %v6405_v59 = vpop.xlane.xlu0 %6404  ;;  %11255 = vmatprep.subr.mxu0 %v6617_v26 }
0x19e5   :  { %v14878_v36 = vsub.f32 %v14806_v57, %v6422_v62  ;;  %v6425_v9 = vmul.f32 0.0078125, %v6405_v59  ;;  %6474 = vadd.xlane.f32.xlu1 %v6452_v20  ;;  %v6455_v2 = vmul.f32 %v14873_v49, %v14873_v49  ;;  %11256 = vmatpush3.msra.mxu0 %v6617_v26  ;;  %v6783_v62 = vld [vmem:[#allocation6 + $0x1b0] sm:$0xff]  ;;  %v6780_v26 = vld [vmem:[#allocation6 + $0x198] sm:$0xff] }
0x19e6   :  { %v6403_v27 = vpop.xlane.xlu1 %6402  ;;  %11257 = vmatprep.subr.mxu0 %v6616_v31 }
0x19e7   :  { %v14883_v46 = vsub.f32 %v14810_v53, %v6425_v9  ;;  %v6424_v10 = vmul.f32 0.0078125, %v6403_v27  ;;  %6480 = vadd.xlane.f32.xlu0 %v6455_v2  ;;  %v6454_v57 = vmul.f32 %v14878_v36, %v14878_v36  ;;  %11258 = vmatpush3.msra.mxu0 %v6616_v31  ;;  %v6611_v9 = vld [vmem:[#allocation3 + $0x1a0] sm:$0xff]  ;;  %v6779_v27 = vld [vmem:[#allocation6 + $0x190] sm:$0xff] }
0x19e8   :  { %v6409_v18 = vpop.xlane.xlu0 %6408  ;;  %11259 = vmatprep.subr.mxu0 %v6615_v44  ;;  %v6781_v2 = vld [vmem:[#allocation6 + $0x1a0] sm:$0xff] }
0x19e9   :  { %v14888_v19 = vsub.f32 %v14814_v56, %v6424_v10  ;;  %v6427_v45 = vmul.f32 0.0078125, %v6409_v18  ;;  %6478 = vadd.xlane.f32.xlu1 %v6454_v57  ;;  %v6457_v53 = vmul.f32 %v14883_v46, %v14883_v46  ;;  %11260 = vmatpush3.msra.mxu0 %v6615_v44  ;;  %v6608_v10 = vld [vmem:[#allocation3 + $0x188] sm:$0xff]  ;;  %v6607_v31 = vld [vmem:[#allocation3 + $0x180] sm:$0xff]  ;;  %v14914_v18 = vld [vmem:[#allocation8 + $0x1f8] sm:$0xff] }
0x19ea   :  { %v6407_v48 = vpop.xlane.xlu1 %6406  ;;  %11261 = vmatprep.subr.mxu0 %v6614_v38  ;;  %v6778_v57 = vld [vmem:[#allocation6 + $0x188] sm:$0xff] }
0x19eb   :  { %v14893_v6 = vsub.f32 %v14818_v52, %v6427_v45  ;;  %v6426_v22 = vmul.f32 0.0078125, %v6407_v48  ;;  %6484 = vadd.xlane.f32.xlu0 %v6457_v53  ;;  %v6456_v56 = vmul.f32 %v14888_v19, %v14888_v19  ;;  %v6784_v52 = vld [vmem:[#allocation6 + $0x1b8] sm:$0xff]  ;;  %11262 = vmatpush3.msra.mxu0 %v6614_v38 }
0x19ec   :  { %v6413_v32 = vpop.xlane.xlu0 %6412  ;;  %11317 = vmatprep.subr.mxu1 %v6784_v52 }
0x19ed   :  { %v14898_v28 = vsub.f32 %v14822_v15, %v6426_v22  ;;  %v6429_v41 = vmul.f32 0.0078125, %v6413_v32  ;;  %6482 = vadd.xlane.f32.xlu1 %v6456_v56  ;;  %v6459_v8 = vmul.f32 %v14893_v6, %v14893_v6  ;;  %v6613_v15 = vld [vmem:[#allocation3 + $0x1b0] sm:$0xff]  ;;  %11318 = vmatpush3.msra.mxu1 %v6784_v52 }
0x19ee   :  { %v6411_v4 = vpop.xlane.xlu1 %6410  ;;  %11263 = vmatprep.subr.mxu0 %v6613_v15  ;;  %11319 = vmatprep.subr.mxu1 %v6783_v62 }
0x19ef   :  { %v14903_v61 = vsub.f32 %v14826_v21, %v6429_v41  ;;  %v6428_v0 = vmul.f32 0.0078125, %v6411_v4  ;;  %6488 = vadd.xlane.f32.xlu0 %v6459_v8  ;;  %v6458_v47 = vmul.f32 %v14898_v28, %v14898_v28  ;;  %v6612_v21 = vld [vmem:[#allocation3 + $0x1a8] sm:$0xff]  ;;  %11264 = vmatpush3.msra.mxu0 %v6613_v15 }
0x19f0   :  { %11320 = vmatpush3.msra.mxu1 %v6783_v62  ;;  %11265 = vmatprep.subr.mxu0 %v6612_v21 }
0x19f1   :  { %v14908_v20 = vsub.f32 %v14830_v23, %v6428_v0  ;;  %6486 = vadd.xlane.f32.xlu1 %v6458_v47  ;;  %v6461_v40 = vmul.f32 %v14903_v61, %v14903_v61  ;;  %11321 = vmatprep.subr.mxu1 %v6782_v29  ;;  %v6610_v23 = vld [vmem:[#allocation3 + $0x198] sm:$0xff] }
0x19f2   :  { %11266 = vmatpush3.msra.mxu0 %v6612_v21  ;;  %11322 = vmatpush3.msra.mxu1 %v6782_v29 }
0x19f3   :  { %6492 = vadd.xlane.f32.xlu0 %v6461_v40  ;;  %v6460_v59 = vmul.f32 %v14908_v20, %v14908_v20  ;;  %11267 = vmatprep.subr.mxu0 %v6611_v9 }
0x19f4   :  { %11323 = vmatprep.subr.mxu1 %v6781_v2  ;;  %11268 = vmatpush3.msra.mxu0 %v6611_v9 }
0x19f5   :  { %6490 = vadd.xlane.f32.xlu1 %v6460_v59  ;;  %11324 = vmatpush3.msra.mxu1 %v6781_v2 }
0x19f6   :  { %11269 = vmatprep.subr.mxu0 %v6610_v23  ;;  %11325 = vmatprep.subr.mxu1 %v6780_v26 }
0x19f7   :  { %11270 = vmatpush3.msra.mxu0 %v6610_v23  ;;  %11326 = vmatpush3.msra.mxu1 %v6780_v26 }
0x19f8   :  { %11271 = vmatprep.subr.mxu0 %v6609_v13  ;;  %11327 = vmatprep.subr.mxu1 %v6779_v27 }
0x19f9   :  { %11272 = vmatpush3.msra.mxu0 %v6609_v13  ;;  %11328 = vmatpush3.msra.mxu1 %v6779_v27 }
0x19fa   :  { %11273 = vmatprep.subr.mxu0 %v6608_v10  ;;  %11329 = vmatprep.subr.mxu1 %v6778_v57 }
0x19fb   :  { %11274 = vmatpush3.msra.mxu0 %v6608_v10  ;;  %11330 = vmatpush3.msra.mxu1 %v6778_v57  ;;  %v14920_v57 = vld [vmem:[%s15765_s17 + $0x2] ss:$0 sm:$0xff] }
0x19fc   :  { %11275 = vmatprep.subr.mxu0 %v6607_v31  ;;  %11331 = vmatprep.subr.mxu1 %v6777_v58 }
0x19fd   :  { %11276 = vmatpush3.msra.mxu0 %v6607_v31  ;;  %11332 = vmatpush3.msra.mxu1 %v6777_v58 }
0x19fe   :  { %11357 = vmatprep.subr.mxu0 %v14914_v18 }
0x1a60   :  { %v6465_v45 = vpop.xlane.xlu0 %6464 }
0x1a61   :  { %v6495_v53 = vmul.f32 0.0078125, %v6465_v45 }
0x1a62   :  { %v6463_v44 = vpop.xlane.xlu1 %6462 }
0x1a63   :  { %v6511_v48 = vadd.f32 1e-05, %v6495_v53  ;;  %v6494_v35 = vmul.f32 0.0078125, %v6463_v44 }
0x1a64   :  { %v6469_v22 = vpop.xlane.xlu0 %6468 }
0x1a65   :  { %12109 = vrsqrt.f32 %v6511_v48  ;;  %v6510_v56 = vadd.f32 1e-05, %v6494_v35  ;;  %v6497_v32 = vmul.f32 0.0078125, %v6469_v22 }
0x1a66   :  { %v6467_v38 = vpop.xlane.xlu1 %6466 }
0x1a67   :  { %12111 = vrsqrt.f32 %v6510_v56  ;;  %v6513_v41 = vadd.f32 1e-05, %v6497_v32  ;;  %v6496_v8 = vmul.f32 0.0078125, %v6467_v38 }
0x1a68   :  { %v6473_v52 = vpop.xlane.xlu0 %6472 }
0x1a69   :  { %12113 = vrsqrt.f32 %v6513_v41  ;;  %v6512_v4 = vadd.f32 1e-05, %v6496_v8  ;;  %v6499_v0 = vmul.f32 0.0078125, %v6473_v52 }
0x1a6a   :  { %v6471_v47 = vpop.xlane.xlu1 %6470 }
0x1a6b   :  { %12115 = vrsqrt.f32 %v6512_v4  ;;  %v6515_v15 = vadd.f32 1e-05, %v6499_v0  ;;  %v6498_v62 = vmul.f32 0.0078125, %v6471_v47 }
0x1a6c   :  { %v6477_v40 = vpop.xlane.xlu0 %6476 }
0x1a6d   :  { %12117 = vrsqrt.f32 %v6515_v15  ;;  %v6514_v21 = vadd.f32 1e-05, %v6498_v62  ;;  %v6501_v29 = vmul.f32 0.0078125, %v6477_v40 }
0x1a6e   :  { %v6475_v59 = vpop.xlane.xlu1 %6474 }
0x1a6f   :  { %12119 = vrsqrt.f32 %v6514_v21  ;;  %v6517_v9 = vadd.f32 1e-05, %v6501_v29  ;;  %v6500_v2 = vmul.f32 0.0078125, %v6475_v59 }
0x1a70   :  { %v6481_v23 = vpop.xlane.xlu0 %6480 }
0x1a71   :  { %12121 = vrsqrt.f32 %v6517_v9  ;;  %v6516_v26 = vadd.f32 1e-05, %v6500_v2  ;;  %v6503_v13 = vmul.f32 0.0078125, %v6481_v23 }
0x1a72   :  { %v12110_v27 = vpop.eup %12109  ;;  %v6479_v10 = vpop.xlane.xlu1 %6478 }
0x1a73   :  { %v6543_v31 = vmul.f32 %v12110_v27, %v14835_v37  ;;  %12123 = vrsqrt.f32 %v6516_v26  ;;  %v6519_v58 = vadd.f32 1e-05, %v6503_v13  ;;  %v6502_v45 = vmul.f32 0.0078125, %v6479_v10  ;;  %v14928_v37 = vld [vmem:[%s15766_s18 + $0x2] ss:$0 sm:$0xff]  ;;  %v6961_v13 = vld [vmem:[#allocation8 + $0x1f0] sm:$0xff] }
0x1a74   :  { %v12112_v53 = vpop.eup %12111  ;;  %v6485_v44 = vpop.xlane.xlu0 %6484 }
0x1a75   :  { %12125 = vrsqrt.f32 %v6519_v58  ;;  %v6518_v48 = vadd.f32 1e-05, %v6502_v45  ;;  %v6505_v35 = vmul.f32 0.0078125, %v6485_v44  ;;  %v6567_v56 = vmul.f32 %v14920_v57, %v6543_v31 }
0x1a76   :  { %v12114_v22 = vpop.eup %12113  ;;  %v6483_v32 = vpop.xlane.xlu1 %6482  ;;  %v6542_v38 = vmul.f32 %v12112_v53, %v14838_v54 }
0x1a77   :  { %12127 = vrsqrt.f32 %v6518_v48  ;;  %v6521_v41 = vadd.f32 1e-05, %v6505_v35  ;;  %v6504_v8 = vmul.f32 0.0078125, %v6483_v32  ;;  %v6545_v47 = vmul.f32 %v12114_v22, %v14843_v14  ;;  %v6960_v22 = vld [vmem:[#allocation8 + $0x1e8] sm:$0xff] }
0x1a78   :  { %v12116_v52 = vpop.eup %12115  ;;  %v6489_v4 = vpop.xlane.xlu0 %6488  ;;  %v6566_v0 = vmul.f32 %v14920_v57, %v6542_v38  ;;  %v14937_v59 = vadd.f32 %v14928_v37, %v6567_v56 }
0x1a79   :  { %12129 = vrsqrt.f32 %v6521_v41  ;;  %v6520_v15 = vadd.f32 1e-05, %v6504_v8  ;;  %v6507_v62 = vmul.f32 0.0078125, %v6489_v4  ;;  %v6544_v40 = vmul.f32 %v12116_v52, %v14848_v24  ;;  %v6959_v41 = vld [vmem:[#allocation8 + $0x1e0] sm:$0xff] }
0x1a7a   :  { %v12118_v54 = vpop.eup %12117  ;;  %v6487_v21 = vpop.xlane.xlu1 %6486  ;;  %v14934_v29 = vadd.f32 %v14928_v37, %v6566_v0  ;;  %v6569_v9 = vmul.f32 %v14920_v57, %v6545_v47 }
0x1a7b   :  { %12131 = vrsqrt.f32 %v6520_v15  ;;  %v6523_v2 = vadd.f32 1e-05, %v6507_v62  ;;  %v6506_v23 = vmul.f32 0.0078125, %v6487_v21  ;;  %v6568_v14 = vmul.f32 %v14920_v57, %v6544_v40  ;;  %v6958_v15 = vld [vmem:[#allocation8 + $0x1d8] sm:$0xff] }
0x1a7c   :  { %15955 = vst [vmem:[#allocation22_spill] sm:$0xff] %v14934_v29  ;;  %v12120_v26 = vpop.eup %12119  ;;  %11277 = vmatprep.mubr.f32.mxu0 %v14934_v29  ;;  %11333 = vmatprep.mubr.f32.mxu1 %v14934_v29  ;;  %v6493_v24 = vpop.xlane.xlu0 %6492  ;;  %v6547_v27 = vmul.f32 %v12118_v54, %v14853_v3  ;;  %v14953_v35 = vadd.f32 %v14928_v37, %v6569_v9  ;;  %v6957_v9 = vld [vmem:[#allocation8 + $0x1d0] sm:$0xff] }
0x1a7d   :  { %12133 = vrsqrt.f32 %v6523_v2  ;;  %v6522_v10 = vadd.f32 1e-05, %v6506_v23  ;;  %v6509_v31 = vmul.f32 0.0078125, %v6493_v24  ;;  %11278 = vmatmul.mubr.f32.vlgmr.msra.gmra.mxu0 %v14937_v59  ;;  %11334 = vmatmul.mubr.f32.vlgmr.msra.gmra.mxu1 %v14937_v59  ;;  %v14947_v58 = vadd.f32 %v14928_v37, %v6568_v14  ;;  %v6956_v14 = vld [vmem:[#allocation8 + $0x1c8] sm:$0xff] }
0x1a7e   :  { %v12122_v45 = vpop.eup %12121  ;;  %11358 = vmatpush3.msra.mxu0 %v14914_v18  ;;  %v6491_v53 = vpop.xlane.xlu1 %6490  ;;  %v6546_v44 = vmul.f32 %v12120_v26, %v14858_v51  ;;  %15957 = vst [vmem:[#allocation23_spill] sm:$0xff] %v14953_v35  ;;  %v6571_v18 = vmul.f32 %v14920_v57, %v6547_v27 }
0x1a7f   :  { %15956 = vst [vmem:[#allocation21_spill] sm:$0xff] %v14947_v58  ;;  %12135 = vrsqrt.f32 %v6522_v10  ;;  %v6525_v48 = vadd.f32 1e-05, %v6509_v31  ;;  %11359 = vmatprep.subr.mxu0 %v6961_v13  ;;  %v6508_v3 = vmul.f32 0.0078125, %v6491_v53  ;;  %11280 = vmatprep.mubr.f32.mxu0 %v14947_v58  ;;  %v6549_v51 = vmul.f32 %v12122_v45, %v14863_v5  ;;  %v6955_v10 = vld [vmem:[#allocation8 + $0x1c0] sm:$0xff]  ;;  %v6954_v53 = vld [vmem:[#allocation8 + $0x1b8] sm:$0xff] }
0x1a80   :  { %v12124_v56 = vpop.eup %12123  ;;  %11336 = vmatprep.mubr.f32.mxu1 %v14947_v58  ;;  %11360 = vmatpush3.msra.mxu0 %v6961_v13  ;;  %v6570_v32 = vmul.f32 %v14920_v57, %v6546_v44  ;;  %v14968_v5 = vadd.f32 %v14928_v37, %v6571_v18 }
0x1a81   :  { %12137 = vrsqrt.f32 %v6525_v48  ;;  %v6524_v38 = vadd.f32 1e-05, %v6508_v3  ;;  %11281 = vmatmul.mubr.f32.gmra.mxu0 %v14953_v35  ;;  %11337 = vmatmul.mubr.f32.gmra.mxu1 %v14953_v35  ;;  %v6548_v8 = vmul.f32 %v12124_v56, %v14868_v33  ;;  %v6573_v62 = vmul.f32 %v14920_v57, %v6549_v51  ;;  %v6953_v56 = vld [vmem:[#allocation8 + $0x1b0] sm:$0xff]  ;;  %v6952_v51 = vld [vmem:[#allocation8 + $0x1a8] sm:$0xff] }
0x1a82   :  { %v12126_v52 = vpop.eup %12125  ;;  %11361 = vmatprep.subr.mxu0 %v6960_v22  ;;  %v14963_v4 = vadd.f32 %v14928_v37, %v6570_v32  ;;  %15959 = vst [vmem:[#allocation25_spill] sm:$0xff] %v14968_v5 }
0x1a83   :  { %12139 = vrsqrt.f32 %v6524_v38  ;;  %11362 = vmatpush3.msra.mxu0 %v6960_v22  ;;  %v6572_v0 = vmul.f32 %v14920_v57, %v6548_v8  ;;  %v6551_v33 = vmul.f32 %v12126_v52, %v14873_v49  ;;  %v14983_v23 = vadd.f32 %v14928_v37, %v6573_v62  ;;  %v6951_v52 = vld [vmem:[#allocation8 + $0x1a0] sm:$0xff]  ;;  %v6949_v62 = vld [vmem:[#allocation8 + $0x190] sm:$0xff] }
0x1a84   :  { %15958 = vst [vmem:[#allocation24_spill] sm:$0xff] %v14963_v4  ;;  %v12128_v47 = vpop.eup %12127  ;;  %11363 = vmatprep.subr.mxu0 %v6959_v41  ;;  %11283 = vmatprep.mubr.f32.mxu0 %v14963_v4 }
0x1a85   :  { %11339 = vmatprep.mubr.f32.mxu1 %v14963_v4  ;;  %11364 = vmatpush3.msra.mxu0 %v6959_v41  ;;  %v14974_v40 = vadd.f32 %v14928_v37, %v6572_v0  ;;  %v6550_v54 = vmul.f32 %v12128_v47, %v14878_v36  ;;  %15961 = vst [vmem:[#allocation27_spill] sm:$0xff] %v14983_v23  ;;  %v6950_v47 = vld [vmem:[#allocation8 + $0x198] sm:$0xff] }
0x1a86   :  { %v12130_v21 = vpop.eup %12129  ;;  %11284 = vmatmul.mubr.f32.gmra.mxu0 %v14968_v5  ;;  %11340 = vmatmul.mubr.f32.gmra.mxu1 %v14968_v5  ;;  %v6575_v36 = vmul.f32 %v14920_v57, %v6551_v33 }
0x1a87   :  { %15960 = vst [vmem:[#allocation26_spill] sm:$0xff] %v14974_v40  ;;  %11365 = vmatprep.subr.mxu0 %v6958_v15  ;;  %11286 = vmatprep.mubr.f32.mxu0 %v14974_v40  ;;  %v6574_v2 = vmul.f32 %v14920_v57, %v6550_v54  ;;  %v6553_v26 = vmul.f32 %v12130_v21, %v14883_v46  ;;  %v6947_v54 = vld [vmem:[#allocation8 + $0x180] sm:$0xff] }
0x1a88   :  { %v12132_v49 = vpop.eup %12131  ;;  %11366 = vmatpush3.msra.mxu0 %v6958_v15  ;;  %11342 = vmatprep.mubr.f32.mxu1 %v14974_v40  ;;  %v14996_v46 = vadd.f32 %v14928_v37, %v6575_v36 }
0x1a89   :  { %11367 = vmatprep.subr.mxu0 %v6957_v9  ;;  %v14988_v24 = vadd.f32 %v14928_v37, %v6574_v2  ;;  %v6552_v13 = vmul.f32 %v12132_v49, %v14888_v19  ;;  %v6577_v19 = vmul.f32 %v14920_v57, %v6553_v26 }
0x1a8a   :  { %v12134_v27 = vpop.eup %12133  ;;  %11368 = vmatpush3.msra.mxu0 %v6957_v9  ;;  %11343 = vmatmul.mubr.f32.gmra.mxu1 %v14983_v23  ;;  %15963 = vst [vmem:[#allocation29_spill] sm:$0xff] %v14996_v46 }
0x1a8b   :  { %15962 = vst [vmem:[#allocation28_spill] sm:$0xff] %v14988_v24  ;;  %11287 = vmatmul.mubr.f32.gmra.mxu0 %v14983_v23  ;;  %11369 = vmatprep.subr.mxu0 %v6956_v14  ;;  %v6576_v31 = vmul.f32 %v14920_v57, %v6552_v13  ;;  %v6555_v44 = vmul.f32 %v12134_v27, %v14893_v6 }
0x1a8c   :  { %v12136_v45 = vpop.eup %12135  ;;  %11370 = vmatpush3.msra.mxu0 %v6956_v14  ;;  %11289 = vmatprep.mubr.f32.mxu0 %v14988_v24  ;;  %v15010_v6 = vadd.f32 %v14928_v37, %v6577_v19 }
0x1a8d   :  { %11371 = vmatprep.subr.mxu0 %v6955_v10  ;;  %11345 = vmatprep.mubr.f32.mxu1 %v14988_v24  ;;  %v15002_v48 = vadd.f32 %v14928_v37, %v6576_v31  ;;  %v6554_v3 = vmul.f32 %v12136_v45, %v14898_v28  ;;  %v6579_v28 = vmul.f32 %v14920_v57, %v6555_v44 }
0x1a8e   :  { %v12138_v22 = vpop.eup %12137  ;;  %11372 = vmatpush3.msra.mxu0 %v6955_v10  ;;  %11346 = vmatmul.mubr.f32.gmra.mxu1 %v14996_v46  ;;  %15965 = vst [vmem:[#allocation31_spill] sm:$0xff] %v15010_v6 }
0x1a8f   :  { %15964 = vst [vmem:[#allocation30_spill] sm:$0xff] %v15002_v48  ;;  %11290 = vmatmul.mubr.f32.gmra.mxu0 %v14996_v46  ;;  %11373 = vmatprep.subr.mxu0 %v6954_v53  ;;  %v6578_v32 = vmul.f32 %v14920_v57, %v6554_v3  ;;  %v6557_v38 = vmul.f32 %v12138_v22, %v14903_v61 }
0x1a90   :  { %v12140_v18 = vpop.eup %12139  ;;  %11374 = vmatpush3.msra.mxu0 %v6954_v53  ;;  %11292 = vmatprep.mubr.f32.mxu0 %v15002_v48  ;;  %v15024_v61 = vadd.f32 %v14928_v37, %v6579_v28 }
0x1a91   :  { %11375 = vmatprep.subr.mxu0 %v6953_v56  ;;  %11348 = vmatprep.mubr.f32.mxu1 %v15002_v48  ;;  %v15016_v41 = vadd.f32 %v14928_v37, %v6578_v32  ;;  %v6556_v8 = vmul.f32 %v12140_v18, %v14908_v20  ;;  %v6581_v15 = vmul.f32 %v14920_v57, %v6557_v38 }
0x1a92   :  { %11376 = vmatpush3.msra.mxu0 %v6953_v56  ;;  %11349 = vmatmul.mubr.f32.gmra.mxu1 %v15010_v6  ;;  %15967 = vst [vmem:[#allocation33_spill] sm:$0xff] %v15024_v61 }
0x1a93   :  { %15966 = vst [vmem:[#allocation32_spill] sm:$0xff] %v15016_v41  ;;  %11293 = vmatmul.mubr.f32.gmra.mxu0 %v15010_v6  ;;  %11377 = vmatprep.subr.mxu0 %v6952_v51  ;;  %v6580_v0 = vmul.f32 %v14920_v57, %v6556_v8  ;;  %v15035_v33 = vadd.f32 %v14928_v37, %v6581_v15  ;;  %v6948_v57 = vld [vmem:[#allocation8 + $0x188] sm:$0xff] }
0x1a94   :  { %11378 = vmatpush3.msra.mxu0 %v6952_v51  ;;  %11295 = vmatprep.mubr.f32.mxu0 %v15016_v41 }
0x1a95   :  { %11379 = vmatprep.subr.mxu0 %v6951_v52  ;;  %11351 = vmatprep.mubr.f32.mxu1 %v15016_v41  ;;  %v15029_v20 = vadd.f32 %v14928_v37, %v6580_v0  ;;  %15969 = vst [vmem:[#allocation35_spill] sm:$0xff] %v15035_v33  ;;  %v8701_v37 = vld [vmem:[%s15869_s9 + $0x3] ss:$0 sm:$0xff] }
0x1a96   :  { %11380 = vmatpush3.msra.mxu0 %v6951_v52  ;;  %11352 = vmatmul.mubr.f32.gmra.mxu1 %v15024_v61 }
0x1a97   :  { %15968 = vst [vmem:[#allocation34_spill] sm:$0xff] %v15029_v20  ;;  %11296 = vmatmul.mubr.f32.gmra.mxu0 %v15024_v61  ;;  %11381 = vmatprep.subr.mxu0 %v6950_v47 }
0x1a98   :  { %11382 = vmatpush3.msra.mxu0 %v6950_v47  ;;  %11298 = vmatprep.mubr.f32.mxu0 %v15029_v20 }
0x1a99   :  { %11383 = vmatprep.subr.mxu0 %v6949_v62  ;;  %11354 = vmatprep.mubr.f32.mxu1 %v15029_v20 }
0x1a9a   :  { %11384 = vmatpush3.msra.mxu0 %v6949_v62  ;;  %11355 = vmatmul.mubr.f32.gmra.mxu1 %v15035_v33 }
0x1a9b   :  { %11299 = vmatmul.mubr.f32.gmra.mxu0 %v15035_v33  ;;  %11385 = vmatprep.subr.mxu0 %v6948_v57 }
0x1a9c   :  { %11386 = vmatpush3.msra.mxu0 %v6948_v57  ;;  %11389 = vmatprep.mubr.f32.mxu0 %v14934_v29 }
0x1a9d   :  { %11387 = vmatprep.subr.mxu0 %v6947_v54 }
0x1a9e   :  { %11388 = vmatpush3.msra.mxu0 %v6947_v54 }
0x1a9f   :  { %11390 = vmatmul.mubr.f32.vlgmr.msra.gmra.mxu0 %v14937_v59 }
0x1aa0   :  { %11392 = vmatprep.mubr.f32.mxu0 %v14947_v58 }
0x1aa3   :  { %11393 = vmatmul.mubr.f32.gmra.mxu0 %v14953_v35 }
0x1aa4   :  { %11395 = vmatprep.mubr.f32.mxu0 %v14963_v4 }
0x1aa7   :  { %11396 = vmatmul.mubr.f32.gmra.mxu0 %v14968_v5 }
0x1aa8   :  { %11398 = vmatprep.mubr.f32.mxu0 %v14974_v40 }
0x1aab   :  { %11399 = vmatmul.mubr.f32.gmra.mxu0 %v14983_v23 }
0x1aac   :  { %11401 = vmatprep.mubr.f32.mxu0 %v14988_v24 }
0x1aaf   :  { %11402 = vmatmul.mubr.f32.gmra.mxu0 %v14996_v46 }
0x1ab0   :  { %11404 = vmatprep.mubr.f32.mxu0 %v15002_v48 }
0x1ab3   :  { %11405 = vmatmul.mubr.f32.gmra.mxu0 %v15010_v6 }
0x1ab4   :  { %11407 = vmatprep.mubr.f32.mxu0 %v15016_v41 }
0x1ab7   :  { %11408 = vmatmul.mubr.f32.gmra.mxu0 %v15024_v61 }
0x1ab8   :  { %11410 = vmatprep.mubr.f32.mxu0 %v15029_v20 }
0x1abb   :  { %11411 = vmatmul.mubr.f32.gmra.mxu0 %v15035_v33 }
0x1b3d   :  { %v11279_v21 = vpop.f32.mrf.mxu0  ;;  %v15059_v9 = vpop.f32.mrf.mxu1 }
0x1b3e   :  { %v15061_v2 = vadd.f32 %v11279_v21, %v8701_v37 }
0x1b3f   :  { %v6697_v49 = vpop.f32.mrf.mxu0  ;;  %v15063_v14 = vpop.f32.mrf.mxu1 }
0x1b40   :  { %v6698_v36 = vadd.f32 %v8701_v37, %v6697_v49 }
0x1b41   :  { %v11282_v26 = vpop.f32.mrf.mxu0  ;;  %v15065_v13 = vpop.f32.mrf.mxu1 }
0x1b42   :  { %v15067_v27 = vadd.f32 %v11282_v26, %v8701_v37  ;;  %11445 = vmatprep.mubr.f32.mxu1 %v6698_v36 }
0x1b43   :  { %v6707_v10 = vpop.f32.mrf.mxu0  ;;  %v15069_v31 = vpop.f32.mrf.mxu1 }
0x1b44   :  { %v15071_v45 = vadd.f32 %v8701_v37, %v6707_v10 }
0x1b46   :  { %v11285_v53 = vpop.f32.mrf.mxu0  ;;  %v15073_v19 = vpop.f32.mrf.mxu1 }
0x1b47   :  { %v15075_v44 = vadd.f32 %v11285_v53, %v8701_v37 }
0x1b48   :  { %v6717_v3 = vpop.f32.mrf.mxu0  ;;  %v15077_v22 = vpop.f32.mrf.mxu1 }
0x1b49   :  { %v15079_v56 = vadd.f32 %v8701_v37, %v6717_v3 }
0x1b4a   :  { %v15081_v32 = vpop.f32.mrf.mxu1 }
0x1b4b   :  { %v11288_v18 = vpop.f32.mrf.mxu0 }
0x1b4c   :  { %v15083_v51 = vadd.f32 %v11288_v18, %v8701_v37  ;;  %v15085_v28 = vpop.f32.mrf.mxu1 }
0x1b4d   :  { %v6727_v38 = vpop.f32.mrf.mxu0 }
0x1b4e   :  { %v15087_v8 = vadd.f32 %v8701_v37, %v6727_v38  ;;  %v11347_v52 = vpop.f32.mrf.mxu1 }
0x1b4f   :  { %v11291_v0 = vpop.f32.mrf.mxu0 }
0x1b50   :  { %v15089_v47 = vadd.f32 %v11291_v0, %v8701_v37  ;;  %v6907_v15 = vpop.f32.mrf.mxu1  ;;  %v15102_v0 = vld [vmem:[%s15754_s6 + $0x3] ss:$0 sm:$0xff] }
0x1b51   :  { %v6737_v62 = vpop.f32.mrf.mxu0  ;;  %v6908_v5 = vadd.f32 %v15102_v0, %v6907_v15  ;;  %v6898_v15 = vadd.f32 %v15102_v0, %v15085_v28 }
0x1b52   :  { %v15091_v57 = vadd.f32 %v8701_v37, %v6737_v62  ;;  %v11350_v54 = vpop.f32.mrf.mxu1 }
0x1b53   :  { %v11294_v21 = vpop.f32.mrf.mxu0 }
0x1b54   :  { %v15093_v49 = vadd.f32 %v11294_v21, %v8701_v37  ;;  %v6917_v36 = vpop.f32.mrf.mxu1 }
0x1b55   :  { %v6747_v26 = vpop.f32.mrf.mxu0 }
0x1b56   :  { %v15095_v10 = vadd.f32 %v8701_v37, %v6747_v26  ;;  %v11353_v53 = vpop.f32.mrf.mxu1 }
0x1b57   :  { %v11297_v3 = vpop.f32.mrf.mxu0 }
0x1b58   :  { %v15097_v18 = vadd.f32 %v11297_v3, %v8701_v37  ;;  %v6927_v38 = vpop.f32.mrf.mxu1 }
0x1b59   :  { %v6757_v20 = vpop.f32.mrf.mxu0 }
0x1b5a   :  { %v15104_v62 = vadd.f32 %v8701_v37, %v6757_v20  ;;  %v11356_v33 = vpop.f32.mrf.mxu1  ;;  %v6933_v20 = vadd.f32 %v11353_v53, %v15102_v0  ;;  %v6918_v53 = vadd.f32 %v15102_v0, %v6917_v36 }
0x1b5b   :  { %v11300_v21 = vpop.f32.mrf.mxu0  ;;  %v6943_v41 = vadd.f32 %v11356_v33, %v15102_v0  ;;  %v6928_v33 = vadd.f32 %v15102_v0, %v6927_v38  ;;  %v6913_v38 = vadd.f32 %v11347_v52, %v15102_v0 }
0x1b5c   :  { %v15107_v61 = vadd.f32 %v11300_v21, %v8701_v37  ;;  %v6937_v26 = vpop.f32.mrf.mxu1 }
0x1b5d   :  { %v6767_v48 = vpop.f32.mrf.mxu0  ;;  %v6938_v3 = vadd.f32 %v15102_v0, %v6937_v26  ;;  %11413 = vmatprep.subr.mxu1 %v6943_v41 }
0x1b5e   :  { %v15110_v6 = vadd.f32 %v8701_v37, %v6767_v48  ;;  %11414 = vmatpush3.xpose.msra.mxu1 %v6943_v41  ;;  %v6923_v48 = vadd.f32 %v11350_v54, %v15102_v0 }
0x1b5f   :  { %v15112_v24 = vpop.f32.mrf.mxu0  ;;  %11415 = vmatprep.subr.mxu1 %v6938_v3 }
0x1b61   :  { %v15115_v46 = vpop.f32.mrf.mxu0 }
0x1b62   :  { %11416 = vmatpush3.xpose.msra.mxu1 %v6938_v3 }
0x1b63   :  { %v15117_v40 = vpop.f32.mrf.mxu0  ;;  %11417 = vmatprep.subr.mxu1 %v6933_v20 }
0x1b65   :  { %v15120_v21 = vpop.f32.mrf.mxu0 }
0x1b66   :  { %11418 = vmatpush3.xpose.msra.mxu1 %v6933_v20 }
0x1b67   :  { %v15122_v26 = vpop.f32.mrf.mxu0  ;;  %11419 = vmatprep.subr.mxu1 %v6928_v33 }
0x1b69   :  { %v15125_v41 = vpop.f32.mrf.mxu0 }
0x1b6a   :  { %11420 = vmatpush3.xpose.msra.mxu1 %v6928_v33  ;;  %v6903_v33 = vadd.f32 %v15081_v32, %v15102_v0  ;;  %v6893_v32 = vadd.f32 %v15073_v19, %v15102_v0  ;;  %v6883_v19 = vadd.f32 %v15065_v13, %v15102_v0  ;;  %v6873_v13 = vadd.f32 %v15059_v9, %v15102_v0 }
0x1b6b   :  { %v11400_v37 = vpop.f32.mrf.mxu0  ;;  %11421 = vmatprep.subr.mxu1 %v6923_v48 }
0x1b6d   :  { %v7067_v3 = vpop.f32.mrf.mxu0 }
0x1b6e   :  { %11422 = vmatpush3.xpose.msra.mxu1 %v6923_v48  ;;  %v15135_v48 = vld [vmem:[%s15756_s8 + $0x3] ss:$0 sm:$0xff]  ;;  %s12404_s8 = smov [#allocation14]  }
0x1b6f   :  { %v11403_v23 = vpop.f32.mrf.mxu0  ;;  %11423 = vmatprep.subr.mxu1 %v6918_v53  ;;  %v7043_v9 = vadd.f32 %v15112_v24, %v15135_v48  ;;  %s8589_s7 = sshll.u32 %s12404_s8, 4  ;;  %s8590_s7 = int_to_ptr.vmem [resolvable:$true] %s8589_s7 }
0x1b70   :  { %p12367_p3 = scmp.lt.s32.totalorder %s8590_s7, %s8590_s7 }
0x1b71   :  { %v7077_v4 = vpop.f32.mrf.mxu0 }
0x1b72   :  { %11424 = vmatpush3.xpose.msra.mxu1 %v6918_v53 }
0x1b73   :  { %v11406_v20 = vpop.f32.mrf.mxu0  ;;  %11425 = vmatprep.subr.mxu1 %v6913_v38 }
0x1b74   :  { %v7093_v28 = vadd.f32 %v11406_v20, %v15135_v48  ;;  %v7078_v20 = vadd.f32 %v15135_v48, %v7077_v4  ;;  %v7063_v4 = vadd.f32 %v15122_v26, %v15135_v48  ;;  %v7048_v26 = vadd.f32 %v15135_v48, %v15120_v21 }
0x1b75   :  { %v7087_v54 = vpop.f32.mrf.mxu0 }
0x1b76   :  { %11426 = vmatpush3.xpose.msra.mxu1 %v6913_v38 }
0x1b77   :  { %v11409_v58 = vpop.f32.mrf.mxu0  ;;  %11427 = vmatprep.subr.mxu1 %v6908_v5 }
0x1b79   :  { %v7097_v36 = vpop.f32.mrf.mxu0 }
0x1b7a   :  { %11428 = vmatpush3.xpose.msra.mxu1 %v6908_v5  ;;  %v7103_v5 = vadd.f32 %v11409_v58, %v15135_v48  ;;  %v7098_v29 = vadd.f32 %v15135_v48, %v7097_v36  ;;  %v7088_v58 = vadd.f32 %v15135_v48, %v7087_v54 }
0x1b7b   :  { %v11412_v52 = vpop.f32.mrf.mxu0  ;;  %11429 = vmatprep.subr.mxu1 %v6903_v33 }
0x1b7c   :  { %v7113_v53 = vadd.f32 %v11412_v52, %v15135_v48 }
0x1b7d   :  { %v7107_v38 = vpop.f32.mrf.mxu0 }
0x1b7e   :  { %v7108_v35 = vadd.f32 %v15135_v48, %v7107_v38  ;;  %11469 = vmatprep.subr.mxu0 %v7113_v53  ;;  %11430 = vmatpush3.xpose.msra.mxu1 %v6903_v33  ;;  %v6888_v33 = vadd.f32 %v15102_v0, %v15077_v22  ;;  %v6878_v22 = vadd.f32 %v15102_v0, %v15069_v31 }
0x1b7f   :  { %11470 = vmatpush3.msra.mxu0 %v7113_v53  ;;  %11431 = vmatprep.subr.mxu1 %v6898_v15  ;;  %v7053_v31 = vadd.f32 %v15117_v40, %v15135_v48  ;;  %v7038_v40 = vadd.f32 %v15135_v48, %v15115_v46 }
0x1b80   :  { %11471 = vmatprep.subr.mxu0 %v7108_v35 }
0x1b81   :  { %11472 = vmatpush3.msra.mxu0 %v7108_v35  ;;  %v7083_v35 = vadd.f32 %v11403_v23, %v15135_v48  ;;  %v7068_v23 = vadd.f32 %v15135_v48, %v7067_v3  ;;  %v6868_v3 = vadd.f32 %v15102_v0, %v15063_v14 }
0x1b82   :  { %11473 = vmatprep.subr.mxu0 %v7103_v5  ;;  %11432 = vmatpush3.xpose.msra.mxu1 %v6898_v15 }
0x1b83   :  { %11474 = vmatpush3.msra.mxu0 %v7103_v5  ;;  %11433 = vmatprep.subr.mxu1 %v6893_v32 }
0x1b84   :  { %11475 = vmatprep.subr.mxu0 %v7098_v29 }
0x1b85   :  { %11476 = vmatpush3.msra.mxu0 %v7098_v29  ;;  %v7073_v29 = vadd.f32 %v11400_v37, %v15135_v48  ;;  %v7058_v37 = vadd.f32 %v15135_v48, %v15125_v41 }
0x1b86   :  { %11477 = vmatprep.subr.mxu0 %v7093_v28  ;;  %11434 = vmatpush3.xpose.msra.mxu1 %v6893_v32 }
0x1b87   :  { %11478 = vmatpush3.msra.mxu0 %v7093_v28  ;;  %11435 = vmatprep.subr.mxu1 %v6888_v33 }
0x1b88   :  { %11479 = vmatprep.subr.mxu0 %v7088_v58 }
0x1b89   :  { %11480 = vmatpush3.msra.mxu0 %v7088_v58 }
0x1b8a   :  { %11481 = vmatprep.subr.mxu0 %v7083_v35  ;;  %11436 = vmatpush3.xpose.msra.mxu1 %v6888_v33 }
0x1b8b   :  { %11482 = vmatpush3.msra.mxu0 %v7083_v35  ;;  %11437 = vmatprep.subr.mxu1 %v6883_v19 }
0x1b8c   :  { %11483 = vmatprep.subr.mxu0 %v7078_v20 }
0x1b8d   :  { %11484 = vmatpush3.msra.mxu0 %v7078_v20 }
0x1b8e   :  { %11485 = vmatprep.subr.mxu0 %v7073_v29  ;;  %11438 = vmatpush3.xpose.msra.mxu1 %v6883_v19 }
0x1b8f   :  { %11486 = vmatpush3.msra.mxu0 %v7073_v29  ;;  %11439 = vmatprep.subr.mxu1 %v6878_v22 }
0x1b90   :  { %11487 = vmatprep.subr.mxu0 %v7068_v23 }
0x1b91   :  { %11488 = vmatpush3.msra.mxu0 %v7068_v23 }
0x1b92   :  { %11489 = vmatprep.subr.mxu0 %v7063_v4  ;;  %11440 = vmatpush3.xpose.msra.mxu1 %v6878_v22 }
0x1b93   :  { %11490 = vmatpush3.msra.mxu0 %v7063_v4  ;;  %11441 = vmatprep.subr.mxu1 %v6873_v13 }
0x1b94   :  { %11491 = vmatprep.subr.mxu0 %v7058_v37 }
0x1b95   :  { %11492 = vmatpush3.msra.mxu0 %v7058_v37 }
0x1b96   :  { %11493 = vmatprep.subr.mxu0 %v7053_v31  ;;  %11442 = vmatpush3.xpose.msra.mxu1 %v6873_v13 }
0x1b97   :  { %11494 = vmatpush3.msra.mxu0 %v7053_v31  ;;  %11443 = vmatprep.subr.mxu1 %v6868_v3 }
0x1b98   :  { %11495 = vmatprep.subr.mxu0 %v7048_v26 }
0x1b99   :  { %11496 = vmatpush3.msra.mxu0 %v7048_v26 }
0x1b9a   :  { %11497 = vmatprep.subr.mxu0 %v7043_v9  ;;  %11444 = vmatpush3.xpose.msra.mxu1 %v6868_v3 }
0x1b9b   :  { %11498 = vmatpush3.msra.mxu0 %v7043_v9 }
0x1b9c   :  { %11499 = vmatprep.subr.mxu0 %v7038_v40 }
0x1b9d   :  { %11500 = vmatpush3.msra.mxu0 %v7038_v40  ;;  %11446 = vmatmul.mubr.f32.vlgmr.msra.gmra.mxu1 %v15061_v2 }
0x1b9e   :  { %11448 = vmatprep.mubr.f32.mxu1 %v15071_v45 }
0x1ba1   :  { %11449 = vmatmul.mubr.f32.gmra.mxu1 %v15067_v27 }
0x1ba2   :  { %11451 = vmatprep.mubr.f32.mxu1 %v15079_v56 }
0x1ba5   :  { %11452 = vmatmul.mubr.f32.gmra.mxu1 %v15075_v44 }
0x1ba6   :  { %11454 = vmatprep.mubr.f32.mxu1 %v15087_v8 }
0x1ba9   :  { %11455 = vmatmul.mubr.f32.gmra.mxu1 %v15083_v51 }
0x1baa   :  { %11457 = vmatprep.mubr.f32.mxu1 %v15091_v57 }
0x1bad   :  { %11458 = vmatmul.mubr.f32.gmra.mxu1 %v15089_v47 }
0x1bae   :  { %11460 = vmatprep.mubr.f32.mxu1 %v15095_v10 }
0x1bb1   :  { %11461 = vmatmul.mubr.f32.gmra.mxu1 %v15093_v49 }
0x1bb2   :  { %11463 = vmatprep.mubr.f32.mxu1 %v15104_v62 }
0x1bb5   :  { %11464 = vmatmul.mubr.f32.gmra.mxu1 %v15097_v18 }
0x1bb6   :  { %11466 = vmatprep.mubr.f32.mxu1 %v15110_v6 }
0x1bb9   :  { %11467 = vmatmul.mubr.f32.gmra.mxu1 %v15107_v61 }
0x1c5d   :  { %v11447_v24 = vpop.f32.mrf.mxu1 }
0x1c5e   :  { %v7188_v46 = vadd.f32 %v11447_v24, %v12949_v12 }
0x1c5f   :  { %v7182_v2 = vpop.f32.mrf.mxu1 }
0x1c60   :  { %v7183_v14 = vadd.f32 %v7182_v2, %v12952_v17  ;;  %7263 = vmax.xlane.f32.xlu0 %v7188_v46 }
0x1c61   :  { %v11450_v27 = vpop.f32.mrf.mxu1 }
0x1c62   :  { %v7198_v45 = vadd.f32 %v11450_v27, %v12976_v39  ;;  %7261 = vmax.xlane.f32.xlu1 %v7183_v14 }
0x1c63   :  { %v7192_v44 = vpop.f32.mrf.mxu1 }
0x1c64   :  { %v7193_v56 = vadd.f32 %v7192_v44, %v12966_v42  ;;  %7267 = vmax.xlane.f32.xlu0 %v7198_v45 }
0x1c65   :  { %v11453_v51 = vpop.f32.mrf.mxu1 }
0x1c66   :  { %v7208_v6 = vadd.f32 %v11453_v51, %v12993_v55  ;;  %7265 = vmax.xlane.f32.xlu1 %v7193_v56 }
0x1c67   :  { %v7202_v61 = vpop.f32.mrf.mxu1 }
0x1c68   :  { %v7203_v8 = vadd.f32 %v7202_v61, %v12980_v63  ;;  %7271 = vmax.xlane.f32.xlu0 %v7208_v6 }
0x1c69   :  { %v11456_v12 = vpop.f32.mrf.mxu1 }
0x1c6a   :  { %v7218_v17 = vadd.f32 %v11456_v12, %v13011_v25  ;;  %7269 = vmax.xlane.f32.xlu1 %v7203_v8 }
0x1c6b   :  { %v7212_v47 = vpop.f32.mrf.mxu1 }
0x1c6c   :  { %v7213_v39 = vadd.f32 %v7212_v47, %v12996_v11  ;;  %7275 = vmax.xlane.f32.xlu0 %v7218_v17 }
0x1c6d   :  { %v11459_v57 = vpop.f32.mrf.mxu1 }
0x1c6e   :  { %v15197_v42 = vadd.f32 %v11459_v57, %v13029_v1  ;;  %7273 = vmax.xlane.f32.xlu1 %v7213_v39 }
0x1c6f   :  { %v7222_v49 = vpop.f32.mrf.mxu1 }
0x1c70   :  { %v7223_v55 = vadd.f32 %v7222_v49, %v13015_v34  ;;  %7279 = vmax.xlane.f32.xlu0 %v15197_v42 }
0x1c71   :  { %v11462_v63 = vpop.f32.mrf.mxu1 }
0x1c72   :  { %v15202_v10 = vadd.f32 %v11462_v63, %v13046_v43  ;;  %7277 = vmax.xlane.f32.xlu1 %v7223_v55 }
0x1c73   :  { %v7232_v25 = vpop.f32.mrf.mxu1 }
0x1c74   :  { %v15205_v18 = vadd.f32 %v7232_v25, %v13033_v50  ;;  %7283 = vmax.xlane.f32.xlu0 %v15202_v10  ;;  %v7565_v25 = vld [vmem:[#allocation9 + $0x1f0] sm:$0xff] }
0x1c75   :  { %v11465_v11 = vpop.f32.mrf.mxu1 }
0x1c76   :  { %v15209_v1 = vadd.f32 %v11465_v11, %v13062_v16  ;;  %7281 = vmax.xlane.f32.xlu1 %v15205_v18 }
0x1c77   :  { %v7242_v34 = vpop.f32.mrf.mxu1 }
0x1c78   :  { %v15213_v0 = vadd.f32 %v7242_v34, %v13049_v30  ;;  %7287 = vmax.xlane.f32.xlu0 %v15209_v1 }
0x1c79   :  { %v11468_v43 = vpop.f32.mrf.mxu1 }
0x1c7a   :  { %v15217_v62 = vadd.f32 %v11468_v43, %v13077_v7  ;;  %7285 = vmax.xlane.f32.xlu1 %v15213_v0  ;;  %v7563_v43 = vld [vmem:[#allocation9 + $0x1e0] sm:$0xff] }
0x1c7b   :  { %v7252_v50 = vpop.f32.mrf.mxu1 }
0x1c7c   :  { %v15221_v21 = vadd.f32 %v7252_v50, %v13065_v60  ;;  %7291 = vmax.xlane.f32.xlu0 %v15217_v62 }
0x1c7e   :  { %7289 = vmax.xlane.f32.xlu1 %v15221_v21 }
0x1ce9   :  { %v7264_v16 = vpop.xlane.xlu0 %7263 }
0x1cea   :  { %v7294_v41 = vsub.f32 %v7188_v46, %v7264_v16  ;;  %v7561_v16 = vld [vmem:[#allocation9 + $0x1d0] sm:$0xff] }
0x1ceb   :  { %v7262_v30 = vpop.xlane.xlu1 %7261 }
0x1cec   :  { %v7311_v54 = vmul.f32 1.442695, %v7294_v41  ;;  %v7293_v36 = vsub.f32 %v7183_v14, %v7262_v30 }
0x1ced   :  { %v7268_v48 = vpop.xlane.xlu0 %7267 }
0x1cee   :  { %12141 = vpow2.f32 %v7311_v54  ;;  %v7309_v52 = vmul.f32 1.442695, %v7293_v36  ;;  %v7296_v7 = vsub.f32 %v7198_v45, %v7268_v48  ;;  %v7560_v54 = vld [vmem:[#allocation9 + $0x1c8] sm:$0xff]  ;;  %v7559_v36 = vld [vmem:[#allocation9 + $0x1c0] sm:$0xff] }
0x1cef   :  { %v7266_v53 = vpop.xlane.xlu1 %7265 }
0x1cf0   :  { %12143 = vpow2.f32 %v7309_v52  ;;  %v7295_v15 = vsub.f32 %v7193_v56, %v7266_v53  ;;  %v7315_v38 = vmul.f32 1.442695, %v7296_v7  ;;  %v7558_v7 = vld [vmem:[#allocation9 + $0x1b8] sm:$0xff]  ;;  %v7557_v53 = vld [vmem:[#allocation9 + $0x1b0] sm:$0xff] }
0x1cf1   :  { %v7272_v5 = vpop.xlane.xlu0 %7271 }
0x1cf2   :  { %v7313_v60 = vmul.f32 1.442695, %v7295_v15  ;;  %v7298_v32 = vsub.f32 %v7208_v6, %v7272_v5  ;;  %v7556_v5 = vld [vmem:[#allocation9 + $0x1a8] sm:$0xff] }
0x1cf3   :  { %v7270_v28 = vpop.xlane.xlu1 %7269 }
0x1cf4   :  { %12145 = vpow2.f32 %v7313_v60  ;;  %v7297_v33 = vsub.f32 %v7203_v8, %v7270_v28  ;;  %v7319_v58 = vmul.f32 1.442695, %v7298_v32  ;;  %v7555_v60 = vld [vmem:[#allocation9 + $0x1a0] sm:$0xff]  ;;  %v7554_v32 = vld [vmem:[#allocation9 + $0x198] sm:$0xff]  ;;  %v7553_v28 = vld [vmem:[#allocation9 + $0x190] sm:$0xff] }
0x1cf5   :  { %12147 = vpow2.f32 %v7315_v38  ;;  %v7276_v35 = vpop.xlane.xlu0 %7275 }
0x1cf6   :  { %v7317_v19 = vmul.f32 1.442695, %v7297_v33  ;;  %v7300_v20 = vsub.f32 %v7218_v17, %v7276_v35  ;;  %v7552_v33 = vld [vmem:[#allocation9 + $0x188] sm:$0xff] }
0x1cf7   :  { %v7274_v29 = vpop.xlane.xlu1 %7273 }
0x1cf8   :  { %12149 = vpow2.f32 %v7317_v19  ;;  %v7299_v22 = vsub.f32 %v7213_v39, %v7274_v29  ;;  %v7323_v23 = vmul.f32 1.442695, %v7300_v20 }
0x1cf9   :  { %12151 = vpow2.f32 %v7319_v58  ;;  %v7280_v4 = vpop.xlane.xlu0 %7279  ;;  %v7551_v58 = vld [vmem:[#allocation9 + $0x180] sm:$0xff] }
0x1cfa   :  { %v7321_v13 = vmul.f32 1.442695, %v7299_v22  ;;  %v7302_v37 = vsub.f32 %v15197_v42, %v7280_v4 }
0x1cfb   :  { %v12142_v31 = vpop.eup %12141  ;;  %v7278_v3 = vpop.xlane.xlu1 %7277 }
0x1cfc   :  { %12153 = vpow2.f32 %v7321_v13  ;;  %v7301_v26 = vsub.f32 %v7223_v55, %v7278_v3  ;;  %7343 = vadd.xlane.f32.xlu0 %v12142_v31  ;;  %v7327_v40 = vmul.f32 1.442695, %v7302_v37 }
0x1cfd   :  { %v12144_v9 = vpop.eup %12143  ;;  %12155 = vpow2.f32 %v7323_v23  ;;  %v7284_v24 = vpop.xlane.xlu0 %7283 }
0x1cfe   :  { %v7325_v46 = vmul.f32 1.442695, %v7301_v26  ;;  %v7304_v2 = vsub.f32 %v15202_v10, %v7284_v24  ;;  %11501 = vmatprep.mubr.f32.mxu0 %v12144_v9  ;;  %7341 = vadd.xlane.f32.xlu1 %v12144_v9  ;;  %v7566_v10 = vld [vmem:[#allocation9 + $0x1f8] sm:$0xff] }
0x1cff   :  { %v7282_v14 = vpop.xlane.xlu1 %7281  ;;  %11502 = vmatmul.mubr.f32.vlgmr.msra.gmra.mxu0 %v12142_v31  ;;  %11525 = vmatprep.subr.mxu0 %v7566_v10 }
0x1d00   :  { %12157 = vpow2.f32 %v7325_v46  ;;  %v7303_v27 = vsub.f32 %v15205_v18, %v7282_v14  ;;  %v7331_v44 = vmul.f32 1.442695, %v7304_v2  ;;  %11526 = vmatpush3.msra.mxu0 %v7566_v10  ;;  %v7975_v10 = vld [vmem:[#allocation11 + $0x1f0] sm:$0xff] }
0x1d01   :  { %v15228_v45 = vpop.eup %12145  ;;  %12159 = vpow2.f32 %v7327_v40  ;;  %v7288_v56 = vpop.xlane.xlu0 %7287  ;;  %11527 = vmatprep.subr.mxu0 %v7565_v25 }
0x1d02   :  { %v15230_v51 = vpop.eup %12147  ;;  %v7329_v6 = vmul.f32 1.442695, %v7303_v27  ;;  %v7306_v61 = vsub.f32 %v15209_v1, %v7288_v56  ;;  %11504 = vmatprep.mubr.f32.mxu0 %v15228_v45  ;;  %11528 = vmatpush3.msra.mxu0 %v7565_v25  ;;  %v7974_v25 = vld [vmem:[#allocation11 + $0x1e8] sm:$0xff] }
0x1d03   :  { %v7286_v8 = vpop.xlane.xlu1 %7285  ;;  %11505 = vmatmul.mubr.f32.gmra.mxu0 %v15230_v51 }
0x1d04   :  { %12161 = vpow2.f32 %v7329_v6  ;;  %v7305_v12 = vsub.f32 %v15213_v0, %v7286_v8  ;;  %v7335_v47 = vmul.f32 1.442695, %v7306_v61  ;;  %v7564_v0 = vld [vmem:[#allocation9 + $0x1e8] sm:$0xff]  ;;  %v15305_v61 = vld [vmem:[%s15758_s10 + $0x3] ss:$0 sm:$0xff]  ;;  %s12362_s10 = scalar_lea.vmem %s8590_s7, 32 }
0x1d05   :  { %v15236_v17 = vpop.eup %12149  ;;  %12163 = vpow2.f32 %v7331_v44  ;;  %v7292_v39 = vpop.xlane.xlu0 %7291  ;;  %11529 = vmatprep.subr.mxu0 %v7564_v0  ;;  %p12363_p2 = scmp.ne.s32.totalorder %s8590_s7, %s12362_s10  ;;  %p12368_p4 = scmp.lt.s32.totalorder %s12362_s10, %s12362_s10 }
0x1d06   :  { %v15238_v57 = vpop.eup %12151  ;;  %v7333_v42 = vmul.f32 1.442695, %v7305_v12  ;;  %v7308_v49 = vsub.f32 %v15217_v62, %v7292_v39  ;;  %11507 = vmatprep.mubr.f32.mxu0 %v15236_v17  ;;  %11530 = vmatpush3.msra.mxu0 %v7564_v0 }
0x1d07   :  { %11508 = vmatmul.mubr.f32.gmra.mxu0 %v15238_v57  ;;  %v7290_v55 = vpop.xlane.xlu1 %7289  ;;  %11531 = vmatprep.subr.mxu0 %v7563_v43  ;;  %p12369_p5 = por %p12368_p4, %p12367_p3 }
0x1d08   :  { %12165 = vpow2.f32 %v7333_v42  ;;  %v7307_v63 = vsub.f32 %v15221_v21, %v7290_v55  ;;  %v7339_v11 = vmul.f32 1.442695, %v7308_v49  ;;  %v7562_v21 = vld [vmem:[#allocation9 + $0x1d8] sm:$0xff]  ;;  %11532 = vmatpush3.msra.mxu0 %v7563_v43 }
0x1d09   :  { %v15244_v18 = vpop.eup %12153  ;;  %12167 = vpow2.f32 %v7335_v47  ;;  %11533 = vmatprep.subr.mxu0 %v7562_v21  ;;  %v15970_v49 = vld [vmem:[#allocation22_spill] sm:$0xff]  ;;  %p12370_p6 = pnand %p12369_p5, %p12363_p2 }
0x1d0a   :  { %v15246_v1 = vpop.eup %12155  ;;  %v7337_v34 = vmul.f32 1.442695, %v7307_v63  ;;  %11510 = vmatprep.mubr.f32.mxu0 %v15244_v18  ;;  %11534 = vmatpush3.msra.mxu0 %v7562_v21  ;;  %v7976_v63 = vld [vmem:[#allocation11 + $0x1f8] sm:$0xff] }
0x1d0b   :  { %11511 = vmatmul.mubr.f32.gmra.mxu0 %v15246_v1  ;;  %11535 = vmatprep.subr.mxu0 %v7561_v16 }
0x1d0c   :  { %12169 = vpow2.f32 %v7337_v34  ;;  %11536 = vmatpush3.msra.mxu0 %v7561_v16  ;;  %11581 = vmatprep.subr.mxu1 %v7976_v63 }
0x1d0d   :  { %v15250_v62 = vpop.eup %12157  ;;  %12171 = vpow2.f32 %v7339_v11  ;;  %11537 = vmatprep.subr.mxu0 %v7560_v54  ;;  %11582 = vmatpush3.msra.mxu1 %v7976_v63 }
0x1d0e   :  { %v15252_v50 = vpop.eup %12159  ;;  %11513 = vmatprep.mubr.f32.mxu0 %v15250_v62  ;;  %11538 = vmatpush3.msra.mxu0 %v7560_v54 }
0x1d0f   :  { %11514 = vmatmul.mubr.f32.gmra.mxu0 %v15252_v50  ;;  %11539 = vmatprep.subr.mxu0 %v7559_v36 }
0x1d10   :  { %11540 = vmatpush3.msra.mxu0 %v7559_v36  ;;  %11583 = vmatprep.subr.mxu1 %v7975_v10  ;;  %v7973_v36 = vld [vmem:[#allocation11 + $0x1e0] sm:$0xff] }
0x1d11   :  { %v15256_v41 = vpop.eup %12161  ;;  %11541 = vmatprep.subr.mxu0 %v7558_v7  ;;  %11584 = vmatpush3.msra.mxu1 %v7975_v10 }
0x1d12   :  { %v15258_v30 = vpop.eup %12163  ;;  %11516 = vmatprep.mubr.f32.mxu0 %v15256_v41  ;;  %11542 = vmatpush3.msra.mxu0 %v7558_v7  ;;  %v7972_v7 = vld [vmem:[#allocation11 + $0x1d8] sm:$0xff] }
0x1d13   :  { %11517 = vmatmul.mubr.f32.gmra.mxu0 %v15258_v30  ;;  %11543 = vmatprep.subr.mxu0 %v7557_v53 }
0x1d14   :  { %11544 = vmatpush3.msra.mxu0 %v7557_v53  ;;  %11585 = vmatprep.subr.mxu1 %v7974_v25  ;;  %v7971_v53 = vld [vmem:[#allocation11 + $0x1d0] sm:$0xff] }
0x1d15   :  { %v15262_v48 = vpop.eup %12165  ;;  %11545 = vmatprep.subr.mxu0 %v7556_v5  ;;  %11586 = vmatpush3.msra.mxu1 %v7974_v25  ;;  %v15337_v25 = vld [vmem:[%s15763_s15 + $0x3] ss:$0 sm:$0xff] }
0x1d16   :  { %v15264_v52 = vpop.eup %12167  ;;  %11519 = vmatprep.mubr.f32.mxu0 %v15262_v48  ;;  %11546 = vmatpush3.msra.mxu0 %v7556_v5  ;;  %v8160_v5 = vld [vmem:[#allocation12 + $0x1e8] sm:$0xff] }
0x1d17   :  { %11520 = vmatmul.mubr.f32.gmra.mxu0 %v15264_v52  ;;  %11547 = vmatprep.subr.mxu0 %v7555_v60 }
0x1d18   :  { %11548 = vmatpush3.msra.mxu0 %v7555_v60  ;;  %11587 = vmatprep.subr.mxu1 %v7973_v36  ;;  %v8158_v60 = vld [vmem:[#allocation12 + $0x1d8] sm:$0xff] }
0x1d19   :  { %v15268_v15 = vpop.eup %12169  ;;  %11549 = vmatprep.subr.mxu0 %v7554_v32  ;;  %11588 = vmatpush3.msra.mxu1 %v7973_v36 }
0x1d1a   :  { %v15270_v38 = vpop.eup %12171  ;;  %11522 = vmatprep.mubr.f32.mxu0 %v15268_v15  ;;  %11550 = vmatpush3.msra.mxu0 %v7554_v32  ;;  %v8157_v32 = vld [vmem:[#allocation12 + $0x1d0] sm:$0xff] }
0x1d1b   :  { %11523 = vmatmul.mubr.f32.gmra.mxu0 %v15270_v38  ;;  %11551 = vmatprep.subr.mxu0 %v7553_v28 }
0x1d1c   :  { %11552 = vmatpush3.msra.mxu0 %v7553_v28  ;;  %11589 = vmatprep.subr.mxu1 %v7972_v7  ;;  %v8156_v28 = vld [vmem:[#allocation12 + $0x1c8] sm:$0xff] }
0x1d1d   :  { %11553 = vmatprep.subr.mxu0 %v7552_v33  ;;  %11590 = vmatpush3.msra.mxu1 %v7972_v7 }
0x1d1e   :  { %11554 = vmatpush3.msra.mxu0 %v7552_v33  ;;  %11591 = vmatprep.subr.mxu1 %v7971_v53  ;;  %v8155_v33 = vld [vmem:[#allocation12 + $0x1c0] sm:$0xff] }
0x1d1f   :  { %11555 = vmatprep.subr.mxu0 %v7551_v58  ;;  %11592 = vmatpush3.msra.mxu1 %v7971_v53 }
0x1d20   :  { %11556 = vmatpush3.msra.mxu0 %v7551_v58  ;;  %v8154_v58 = vld [vmem:[#allocation12 + $0x1b8] sm:$0xff] }
0x1d85   :  { %v7344_v19 = vpop.xlane.xlu0 %7343 }
0x1d87   :  { %v7342_v35 = vpop.xlane.xlu1 %7341 }
0x1d88   :  { %12173 = vrcp.f32 %v7342_v35  ;;  %v8153_v35 = vld [vmem:[#allocation12 + $0x1b0] sm:$0xff] }
0x1d89   :  { %12175 = vrcp.f32 %v7344_v19 }
0x1d95   :  { %v12174_v29 = vpop.eup %12173 }
0x1d96   :  { %v12176_v23 = vpop.eup %12175 }
0x1dbf   :  { %v11503_v20 = vpop.f32.mrf.mxu0 }
0x1dc0   :  { %v7535_v13 = vmul.f32 %v12176_v23, %v11503_v20 }
0x1dc1   :  { %v7439_v22 = vpop.f32.mrf.mxu0 }
0x1dc2   :  { %v7534_v4 = vmul.f32 %v12174_v29, %v7439_v22 }
0x1dc3   :  { %v15274_v37 = vpop.f32.mrf.mxu0 }
0x1dc4   :  { %11557 = vmatprep.mubr.f32.mxu0 %v7534_v4 }
0x1dc5   :  { %11558 = vmatmul.mubr.f32.vlgmr.msra.gmra.mxu0 %v7535_v13  ;;  %v15276_v31 = vpop.f32.mrf.mxu0 }
0x1dc7   :  { %v15278_v3 = vpop.f32.mrf.mxu0 }
0x1dc9   :  { %v15280_v26 = vpop.f32.mrf.mxu0 }
0x1dcb   :  { %v15282_v9 = vpop.f32.mrf.mxu0 }
0x1dcd   :  { %v15284_v40 = vpop.f32.mrf.mxu0 }
0x1dcf   :  { %v15286_v24 = vpop.f32.mrf.mxu0 }
0x1dd1   :  { %v15288_v46 = vpop.f32.mrf.mxu0 }
0x1dd3   :  { %v15290_v2 = vpop.f32.mrf.mxu0 }
0x1dd5   :  { %v15292_v14 = vpop.f32.mrf.mxu0 }
0x1dd7   :  { %v15294_v27 = vpop.f32.mrf.mxu0 }
0x1dd9   :  { %v15296_v44 = vpop.f32.mrf.mxu0 }
0x1ddb   :  { %v15298_v56 = vpop.f32.mrf.mxu0 }
0x1ddd   :  { %v15300_v6 = vpop.f32.mrf.mxu0 }
0x1e85   :  { %v11559_v8 = vpop.f32.mrf.mxu0 }
0x1e86   :  { %v7647_v12 = vadd.f32 %v11559_v8, %v15305_v61 }
0x1e87   :  { %v7641_v47 = vpop.f32.mrf.mxu0 }
0x1e88   :  { %v7721_v39 = vadd.f32 %v7647_v12, %v14937_v59  ;;  %v7642_v42 = vadd.f32 %v15305_v61, %v7641_v47 }
0x1e8a   :  { %v7720_v55 = vadd.f32 %v7642_v42, %v15970_v49  ;;  %7738 = vadd.xlane.f32.xlu0 %v7721_v39 }
0x1e8c   :  { %7736 = vadd.xlane.f32.xlu1 %v7720_v55 }
0x1f13   :  { %v7739_v11 = vpop.xlane.xlu0 %7738 }
0x1f14   :  { %v7769_v34 = vmul.f32 0.0078125, %v7739_v11 }
0x1f15   :  { %v7737_v0 = vpop.xlane.xlu1 %7736 }
0x1f16   :  { %v15311_v43 = vsub.f32 %v7721_v39, %v7769_v34  ;;  %v7768_v59 = vmul.f32 0.0078125, %v7737_v0 }
0x1f18   :  { %v15313_v21 = vsub.f32 %v7720_v55, %v7768_v59  ;;  %v7801_v16 = vmul.f32 %v15311_v43, %v15311_v43 }
0x1f1a   :  { %7818 = vadd.xlane.f32.xlu0 %v7801_v16  ;;  %v7800_v54 = vmul.f32 %v15313_v21, %v15313_v21 }
0x1f1c   :  { %7816 = vadd.xlane.f32.xlu1 %v7800_v54 }
0x1f1e   :  { %7347 = vadd.xlane.f32.xlu0 %v15230_v51  ;;  %v7969_v51 = vld [vmem:[#allocation11 + $0x1c0] sm:$0xff] }
0x1f20   :  { %7345 = vadd.xlane.f32.xlu1 %v15228_v45  ;;  %v7970_v45 = vld [vmem:[#allocation11 + $0x1c8] sm:$0xff] }
0x1f21   :  { %11593 = vmatprep.subr.mxu1 %v7970_v45 }
0x1f22   :  { %7351 = vadd.xlane.f32.xlu0 %v15238_v57  ;;  %11594 = vmatpush3.msra.mxu1 %v7970_v45  ;;  %v7967_v57 = vld [vmem:[#allocation11 + $0x1b0] sm:$0xff] }
0x1f23   :  { %11595 = vmatprep.subr.mxu1 %v7969_v51 }
0x1f24   :  { %7349 = vadd.xlane.f32.xlu1 %v15236_v17  ;;  %11596 = vmatpush3.msra.mxu1 %v7969_v51  ;;  %v7968_v17 = vld [vmem:[#allocation11 + $0x1b8] sm:$0xff] }
0x1f25   :  { %11597 = vmatprep.subr.mxu1 %v7968_v17 }
0x1f26   :  { %7355 = vadd.xlane.f32.xlu0 %v15246_v1  ;;  %11598 = vmatpush3.msra.mxu1 %v7968_v17  ;;  %v7965_v1 = vld [vmem:[#allocation11 + $0x1a0] sm:$0xff] }
0x1f27   :  { %11599 = vmatprep.subr.mxu1 %v7967_v57 }
0x1f28   :  { %7353 = vadd.xlane.f32.xlu1 %v15244_v18  ;;  %11600 = vmatpush3.msra.mxu1 %v7967_v57  ;;  %v7966_v18 = vld [vmem:[#allocation11 + $0x1a8] sm:$0xff] }
0x1f29   :  { %11601 = vmatprep.subr.mxu1 %v7966_v18 }
0x1f2a   :  { %7359 = vadd.xlane.f32.xlu0 %v15252_v50  ;;  %11602 = vmatpush3.msra.mxu1 %v7966_v18  ;;  %v7963_v50 = vld [vmem:[#allocation11 + $0x190] sm:$0xff] }
0x1f2b   :  { %11603 = vmatprep.subr.mxu1 %v7965_v1 }
0x1f2c   :  { %7357 = vadd.xlane.f32.xlu1 %v15250_v62  ;;  %11604 = vmatpush3.msra.mxu1 %v7965_v1  ;;  %v7964_v62 = vld [vmem:[#allocation11 + $0x198] sm:$0xff] }
0x1f2d   :  { %11605 = vmatprep.subr.mxu1 %v7964_v62 }
0x1f2e   :  { %7363 = vadd.xlane.f32.xlu0 %v15258_v30  ;;  %11606 = vmatpush3.msra.mxu1 %v7964_v62  ;;  %v7961_v30 = vld [vmem:[#allocation11 + $0x180] sm:$0xff] }
0x1f2f   :  { %11607 = vmatprep.subr.mxu1 %v7963_v50 }
0x1f30   :  { %7361 = vadd.xlane.f32.xlu1 %v15256_v41  ;;  %11608 = vmatpush3.msra.mxu1 %v7963_v50  ;;  %v7962_v41 = vld [vmem:[#allocation11 + $0x188] sm:$0xff] }
0x1f31   :  { %11609 = vmatprep.subr.mxu1 %v7962_v41 }
0x1f32   :  { %7367 = vadd.xlane.f32.xlu0 %v15264_v52  ;;  %11610 = vmatpush3.msra.mxu1 %v7962_v41  ;;  %v8162_v52 = vld [vmem:[#allocation12 + $0x1f8] sm:$0xff] }
0x1f33   :  { %11611 = vmatprep.subr.mxu1 %v7961_v30  ;;  %11637 = vmatprep.subr.mxu0 %v8162_v52 }
0x1f34   :  { %7365 = vadd.xlane.f32.xlu1 %v15262_v48  ;;  %11612 = vmatpush3.msra.mxu1 %v7961_v30  ;;  %v15971_v48 = vmov 0.0  }
0x1f35   :  { %11693 = vmatprep.subr.mxu1 %v15971_v48  ;;  %11638 = vmatpush3.msra.mxu0 %v8162_v52 }
0x1f36   :  { %7371 = vadd.xlane.f32.xlu0 %v15270_v38  ;;  %v8161_v38 = vld [vmem:[#allocation12 + $0x1f0] sm:$0xff] }
0x1f37   :  { %11639 = vmatprep.subr.mxu0 %v8161_v38 }
0x1f38   :  { %7369 = vadd.xlane.f32.xlu1 %v15268_v15  ;;  %11640 = vmatpush3.msra.mxu0 %v8161_v38  ;;  %v8159_v15 = vld [vmem:[#allocation12 + $0x1e0] sm:$0xff] }
0x1f39   :  { %11641 = vmatprep.subr.mxu0 %v8160_v5 }
0x1f3a   :  { %11642 = vmatpush3.msra.mxu0 %v8160_v5 }
0x1f3b   :  { %11643 = vmatprep.subr.mxu0 %v8159_v15 }
0x1f3c   :  { %11644 = vmatpush3.msra.mxu0 %v8159_v15 }
0x1f3d   :  { %11645 = vmatprep.subr.mxu0 %v8158_v60 }
0x1f3e   :  { %11646 = vmatpush3.msra.mxu0 %v8158_v60 }
0x1f3f   :  { %11647 = vmatprep.subr.mxu0 %v8157_v32 }
0x1f40   :  { %11648 = vmatpush3.msra.mxu0 %v8157_v32 }
0x1f41   :  { %11649 = vmatprep.subr.mxu0 %v8156_v28 }
0x1f42   :  { %11650 = vmatpush3.msra.mxu0 %v8156_v28 }
0x1f43   :  { %11651 = vmatprep.subr.mxu0 %v8155_v33 }
0x1f44   :  { %11652 = vmatpush3.msra.mxu0 %v8155_v33 }
0x1f45   :  { %11653 = vmatprep.subr.mxu0 %v8154_v58 }
0x1f46   :  { %11654 = vmatpush3.msra.mxu0 %v8154_v58 }
0x1f47   :  { %11655 = vmatprep.subr.mxu0 %v8153_v35 }
0x1f48   :  { %11656 = vmatpush3.msra.mxu0 %v8153_v35 }
0x1fa3   :  { %v7819_v19 = vpop.xlane.xlu0 %7818 }
0x1fa4   :  { %v7849_v20 = vmul.f32 0.0078125, %v7819_v19 }
0x1fa5   :  { %v7817_v29 = vpop.xlane.xlu1 %7816 }
0x1fa6   :  { %v7865_v22 = vadd.f32 1e-05, %v7849_v20  ;;  %v7848_v23 = vmul.f32 0.0078125, %v7817_v29  ;;  %v8150_v29 = vld [vmem:[#allocation12 + $0x198] sm:$0xff] }
0x1fa7   :  { %v7348_v4 = vpop.xlane.xlu0 %7347 }
0x1fa8   :  { %12177 = vrsqrt.f32 %v7865_v22  ;;  %v7864_v13 = vadd.f32 1e-05, %v7848_v23 }
0x1fa9   :  { %12179 = vrcp.f32 %v7348_v4  ;;  %v7346_v8 = vpop.xlane.xlu1 %7345  ;;  %v15375_v4 = vld [vmem:[%s15760_s12 + $0x3] ss:$0 sm:$0xff] }
0x1faa   :  { %12181 = vrsqrt.f32 %v7864_v13  ;;  %v15972_v13 = vld [vmem:[#allocation23_spill] sm:$0xff] }
0x1fab   :  { %12183 = vrcp.f32 %v7346_v8  ;;  %v7352_v12 = vpop.xlane.xlu0 %7351 }
0x1fac   :  { %12185 = vrcp.f32 %v7352_v12 }
0x1fad   :  { %v7350_v47 = vpop.xlane.xlu1 %7349 }
0x1fae   :  { %12187 = vrcp.f32 %v7350_v47 }
0x1faf   :  { %v7356_v39 = vpop.xlane.xlu0 %7355 }
0x1fb0   :  { %12189 = vrcp.f32 %v7356_v39 }
0x1fb1   :  { %v7354_v42 = vpop.xlane.xlu1 %7353 }
0x1fb2   :  { %12191 = vrcp.f32 %v7354_v42  ;;  %v15973_v42 = vld [vmem:[#allocation21_spill] sm:$0xff] }
0x1fb3   :  { %v7360_v49 = vpop.xlane.xlu0 %7359 }
0x1fb4   :  { %12193 = vrcp.f32 %v7360_v49 }
0x1fb5   :  { %v12178_v55 = vpop.eup %12177  ;;  %v7358_v63 = vpop.xlane.xlu1 %7357 }
0x1fb6   :  { %v12180_v10 = vpop.eup %12179  ;;  %v7897_v11 = vmul.f32 %v12178_v55, %v15311_v43  ;;  %12195 = vrcp.f32 %v7358_v63  ;;  %v15348_v43 = vld [vmem:[%s15764_s16 + $0x3] ss:$0 sm:$0xff] }
0x1fb7   :  { %v12182_v34 = vpop.eup %12181  ;;  %v7364_v0 = vpop.xlane.xlu0 %7363  ;;  %v7537_v45 = vmul.f32 %v12180_v10, %v15274_v37 }
0x1fb8   :  { %v12184_v59 = vpop.eup %12183  ;;  %v7896_v16 = vmul.f32 %v12182_v34, %v15313_v21  ;;  %v7921_v54 = vmul.f32 %v15337_v25, %v7897_v11  ;;  %12197 = vrcp.f32 %v7364_v0  ;;  %v15974_v0 = vld [vmem:[#allocation25_spill] sm:$0xff] }
0x1fb9   :  { %v7362_v36 = vpop.xlane.xlu1 %7361  ;;  %v7536_v7 = vmul.f32 %v12184_v59, %v15276_v31  ;;  %v12186_v53 = vpop.eup %12185 }
0x1fba   :  { %12199 = vrcp.f32 %v7362_v36  ;;  %v7920_v51 = vmul.f32 %v15337_v25, %v7896_v16  ;;  %v15355_v37 = vadd.f32 %v15348_v43, %v7921_v54  ;;  %v7539_v62 = vmul.f32 %v12186_v53, %v15278_v3  ;;  %v15975_v53 = vld [vmem:[#allocation24_spill] sm:$0xff] }
0x1fbb   :  { %v12188_v17 = vpop.eup %12187  ;;  %11560 = vmatprep.mubr.f32.mxu0 %v7536_v7  ;;  %v7368_v21 = vpop.xlane.xlu0 %7367 }
0x1fbc   :  { %11561 = vmatmul.mubr.f32.gmra.mxu0 %v7537_v45  ;;  %v7538_v57 = vmul.f32 %v12188_v17, %v15280_v26  ;;  %v15352_v18 = vadd.f32 %v15348_v43, %v7920_v51  ;;  %12201 = vrcp.f32 %v7368_v21  ;;  %v15976_v21 = vld [vmem:[#allocation27_spill] sm:$0xff] }
0x1fbd   :  { %v7366_v31 = vpop.xlane.xlu1 %7365  ;;  %v12190_v1 = vpop.eup %12189 }
0x1fbe   :  { %12203 = vrcp.f32 %v7366_v31  ;;  %11563 = vmatprep.mubr.f32.mxu0 %v7538_v57  ;;  %11613 = vmatprep.mubr.f32.mxu1 %v15352_v18  ;;  %v7541_v38 = vmul.f32 %v12190_v1, %v15282_v9 }
0x1fbf   :  { %v12192_v50 = vpop.eup %12191  ;;  %v7372_v41 = vpop.xlane.xlu0 %7371  ;;  %11614 = vmatmul.mubr.f32.vlgmr.msra.gmra.mxu1 %v15355_v37 }
0x1fc0   :  { %11564 = vmatmul.mubr.f32.gmra.mxu0 %v7539_v62  ;;  %v7540_v26 = vmul.f32 %v12192_v50, %v15284_v40  ;;  %12205 = vrcp.f32 %v7372_v41  ;;  %v15977_v62 = vld [vmem:[#allocation26_spill] sm:$0xff] }
0x1fc1   :  { %v7370_v30 = vpop.xlane.xlu1 %7369  ;;  %v12194_v52 = vpop.eup %12193 }
0x1fc2   :  { %12207 = vrcp.f32 %v7370_v30  ;;  %11566 = vmatprep.mubr.f32.mxu0 %v7540_v26  ;;  %v7543_v3 = vmul.f32 %v12194_v52, %v15286_v24  ;;  %v15978_v30 = vld [vmem:[#allocation29_spill] sm:$0xff] }
0x1fc3   :  { %v12196_v5 = vpop.eup %12195 }
0x1fc4   :  { %11567 = vmatmul.mubr.f32.gmra.mxu0 %v7541_v38  ;;  %v7542_v15 = vmul.f32 %v12196_v5, %v15288_v46 }
0x1fc5   :  { %v12198_v60 = vpop.eup %12197 }
0x1fc6   :  { %11569 = vmatprep.mubr.f32.mxu0 %v7542_v15  ;;  %v7545_v33 = vmul.f32 %v12198_v60, %v15290_v2  ;;  %v8151_v2 = vld [vmem:[#allocation12 + $0x1a0] sm:$0xff] }
0x1fc7   :  { %v12200_v32 = vpop.eup %12199  ;;  %v15979_v15 = vld [vmem:[#allocation28_spill] sm:$0xff] }
0x1fc8   :  { %11570 = vmatmul.mubr.f32.gmra.mxu0 %v7543_v3  ;;  %v7544_v28 = vmul.f32 %v12200_v32, %v15292_v14  ;;  %v8152_v14 = vld [vmem:[#allocation12 + $0x1a8] sm:$0xff] }
0x1fc9   :  { %v12202_v40 = vpop.eup %12201  ;;  %11657 = vmatprep.subr.mxu0 %v8152_v14 }
0x1fca   :  { %11572 = vmatprep.mubr.f32.mxu0 %v7544_v28  ;;  %v7547_v46 = vmul.f32 %v12202_v40, %v15294_v27  ;;  %11658 = vmatpush3.msra.mxu0 %v8152_v14  ;;  %v8148_v27 = vld [vmem:[#allocation12 + $0x188] sm:$0xff]  ;;  %v15980_v28 = vld [vmem:[#allocation31_spill] sm:$0xff] }
0x1fcb   :  { %v12204_v58 = vpop.eup %12203  ;;  %11659 = vmatprep.subr.mxu0 %v8151_v2 }
0x1fcc   :  { %11573 = vmatmul.mubr.f32.gmra.mxu0 %v7545_v33  ;;  %v7546_v9 = vmul.f32 %v12204_v58, %v15296_v44  ;;  %v8149_v44 = vld [vmem:[#allocation12 + $0x190] sm:$0xff] }
0x1fcd   :  { %v12206_v35 = vpop.eup %12205  ;;  %11660 = vmatpush3.msra.mxu0 %v8151_v2 }
0x1fce   :  { %11575 = vmatprep.mubr.f32.mxu0 %v7546_v9  ;;  %v7549_v20 = vmul.f32 %v12206_v35, %v15298_v56  ;;  %11661 = vmatprep.subr.mxu0 %v8150_v29  ;;  %v15981_v9 = vld [vmem:[#allocation30_spill] sm:$0xff] }
0x1fcf   :  { %v12208_v19 = vpop.eup %12207  ;;  %11662 = vmatpush3.msra.mxu0 %v8150_v29  ;;  %v15983_v29 = vld [vmem:[#allocation32_spill] sm:$0xff] }
0x1fd0   :  { %11576 = vmatmul.mubr.f32.gmra.mxu0 %v7547_v46  ;;  %v7548_v24 = vmul.f32 %v12208_v19, %v15300_v6  ;;  %11663 = vmatprep.subr.mxu0 %v8149_v44  ;;  %v8147_v6 = vld [vmem:[#allocation12 + $0x180] sm:$0xff] }
0x1fd1   :  { %11664 = vmatpush3.msra.mxu0 %v8149_v44 }
0x1fd2   :  { %11578 = vmatprep.mubr.f32.mxu0 %v7548_v24  ;;  %11665 = vmatprep.subr.mxu0 %v8148_v27  ;;  %v15982_v24 = vld [vmem:[#allocation33_spill] sm:$0xff] }
0x1fd3   :  { %11666 = vmatpush3.msra.mxu0 %v8148_v27 }
0x1fd4   :  { %11579 = vmatmul.mubr.f32.gmra.mxu0 %v7549_v20  ;;  %11667 = vmatprep.subr.mxu0 %v8147_v6 }
0x1fd5   :  { %11668 = vmatpush3.msra.mxu0 %v8147_v6 }
0x1fd6   :  { %11700 = vmatprep.subr.mxu0 %v15971_v48 }
0x207c   :  { %v11562_v56 = vpop.f32.mrf.mxu0 }
0x207d   :  { %v7657_v22 = vadd.f32 %v11562_v56, %v15305_v61  ;;  %v15984_v56 = vld [vmem:[#allocation35_spill] sm:$0xff] }
0x207e   :  { %v7651_v23 = vpop.f32.mrf.mxu0 }
0x207f   :  { %v15378_v8 = vadd.f32 %v7657_v22, %v15972_v13  ;;  %v7652_v12 = vadd.f32 %v15305_v61, %v7651_v23  ;;  %v11615_v47 = vpop.f32.mrf.mxu1  ;;  %v15985_v13 = vld [vmem:[#allocation34_spill] sm:$0xff] }
0x2080   :  { %v11565_v39 = vpop.f32.mrf.mxu0  ;;  %v8057_v63 = vadd.f32 %v11615_v47, %v15375_v4 }
0x2081   :  { %v15382_v49 = vadd.f32 %v7652_v12, %v15973_v42  ;;  %v7667_v55 = vadd.f32 %v11565_v39, %v15305_v61  ;;  %7742 = vadd.xlane.f32.xlu0 %v15378_v8  ;;  %v8051_v10 = vpop.f32.mrf.mxu1 }
0x2082   :  { %v7661_v11 = vpop.f32.mrf.mxu0  ;;  %v8052_v34 = vadd.f32 %v15375_v4, %v8051_v10  ;;  %v8131_v7 = vmax.f32 %v8057_v63, 0.0 }
0x2083   :  { %v15389_v59 = vadd.f32 %v7667_v55, %v15974_v0  ;;  %v7662_v16 = vadd.f32 %v15305_v61, %v7661_v11  ;;  %7740 = vadd.xlane.f32.xlu1 %v15382_v49  ;;  %v8715_v11 = vld [vmem:[%s15762_s14 + $0x3] ss:$0 sm:$0xff] }
0x2084   :  { %v8130_v54 = vmax.f32 %v8052_v34, 0.0  ;;  %v11568_v36 = vpop.f32.mrf.mxu0 }
0x2085   :  { %v15394_v45 = vadd.f32 %v7662_v16, %v15975_v53  ;;  %v7677_v51 = vadd.f32 %v11568_v36, %v15305_v61  ;;  %7746 = vadd.xlane.f32.xlu0 %v15389_v59 }
0x2086   :  { %v7671_v17 = vpop.f32.mrf.mxu0  ;;  %11669 = vmatprep.mubr.f32.mxu0 %v8130_v54 }
0x2087   :  { %v15399_v57 = vadd.f32 %v7677_v51, %v15976_v21  ;;  %v7672_v31 = vadd.f32 %v15305_v61, %v7671_v17  ;;  %7744 = vadd.xlane.f32.xlu1 %v15394_v45  ;;  %11670 = vmatmul.mubr.f32.vlgmr.msra.gmra.mxu0 %v8131_v7 }
0x2088   :  { %v11571_v1 = vpop.f32.mrf.mxu0 }
0x2089   :  { %v15404_v50 = vadd.f32 %v7672_v31, %v15977_v62  ;;  %v7687_v41 = vadd.f32 %v11571_v1, %v15305_v61  ;;  %7750 = vadd.xlane.f32.xlu0 %v15399_v57 }
0x208a   :  { %v7681_v26 = vpop.f32.mrf.mxu0 }
0x208b   :  { %v15409_v52 = vadd.f32 %v7687_v41, %v15978_v30  ;;  %v7682_v38 = vadd.f32 %v15305_v61, %v7681_v26  ;;  %7748 = vadd.xlane.f32.xlu1 %v15404_v50 }
0x208c   :  { %v11574_v5 = vpop.f32.mrf.mxu0 }
0x208d   :  { %v15414_v60 = vadd.f32 %v7682_v38, %v15979_v15  ;;  %v7697_v3 = vadd.f32 %v11574_v5, %v15305_v61  ;;  %7754 = vadd.xlane.f32.xlu0 %v15409_v52 }
0x208e   :  { %v7691_v32 = vpop.f32.mrf.mxu0 }
0x208f   :  { %v15419_v40 = vadd.f32 %v7697_v3, %v15980_v28  ;;  %v7692_v33 = vadd.f32 %v15305_v61, %v7691_v32  ;;  %7752 = vadd.xlane.f32.xlu1 %v15414_v60 }
0x2090   :  { %v11577_v58 = vpop.f32.mrf.mxu0 }
0x2091   :  { %v15424_v35 = vadd.f32 %v7692_v33, %v15981_v9  ;;  %v7707_v46 = vadd.f32 %v11577_v58, %v15305_v61  ;;  %7758 = vadd.xlane.f32.xlu0 %v15419_v40 }
0x2092   :  { %v7701_v19 = vpop.f32.mrf.mxu0 }
0x2093   :  { %v15429_v20 = vadd.f32 %v7707_v46, %v15982_v24  ;;  %v7702_v14 = vadd.f32 %v15305_v61, %v7701_v19  ;;  %7756 = vadd.xlane.f32.xlu1 %v15424_v35 }
0x2094   :  { %v11580_v2 = vpop.f32.mrf.mxu0 }
0x2095   :  { %v15434_v44 = vadd.f32 %v7702_v14, %v15983_v29  ;;  %v7717_v27 = vadd.f32 %v11580_v2, %v15305_v61  ;;  %7762 = vadd.xlane.f32.xlu0 %v15429_v20 }
0x2096   :  { %v7711_v6 = vpop.f32.mrf.mxu0 }
0x2097   :  { %v15439_v22 = vadd.f32 %v7717_v27, %v15984_v56  ;;  %v7712_v23 = vadd.f32 %v15305_v61, %v7711_v6  ;;  %7760 = vadd.xlane.f32.xlu1 %v15434_v44 }
0x2099   :  { %v15444_v12 = vadd.f32 %v7712_v23, %v15985_v13  ;;  %7766 = vadd.xlane.f32.xlu0 %v15439_v22 }
0x209b   :  { %7764 = vadd.xlane.f32.xlu1 %v15444_v12 }
0x210a   :  { %v7743_v39 = vpop.xlane.xlu0 %7742 }
0x210b   :  { %v7771_v0 = vmul.f32 0.0078125, %v7743_v39 }
0x210c   :  { %v7741_v47 = vpop.xlane.xlu1 %7740 }
0x210d   :  { %v7770_v61 = vmul.f32 0.0078125, %v7741_v47  ;;  %v15458_v31 = vsub.f32 %v15378_v8, %v7771_v0 }
0x210e   :  { %v7747_v55 = vpop.xlane.xlu0 %7746 }
0x210f   :  { %v15452_v7 = vsub.f32 %v15382_v49, %v7770_v61  ;;  %v7773_v1 = vmul.f32 0.0078125, %v7747_v55 }
0x2110   :  { %v7745_v42 = vpop.xlane.xlu1 %7744 }
0x2111   :  { %v7772_v53 = vmul.f32 0.0078125, %v7745_v42  ;;  %v15471_v30 = vsub.f32 %v15389_v59, %v7773_v1 }
0x2112   :  { %v7751_v10 = vpop.xlane.xlu0 %7750 }
0x2113   :  { %v15465_v41 = vsub.f32 %v15394_v45, %v7772_v53  ;;  %v7775_v8 = vmul.f32 0.0078125, %v7751_v10  ;;  %v7805_v59 = vmul.f32 %v15471_v30, %v15471_v30 }
0x2114   :  { %v7749_v63 = vpop.xlane.xlu1 %7748 }
0x2115   :  { %v7774_v49 = vmul.f32 0.0078125, %v7749_v63  ;;  %v7804_v15 = vmul.f32 %v15465_v41, %v15465_v41  ;;  %v15481_v3 = vsub.f32 %v15399_v57, %v7775_v8 }
0x2116   :  { %v7755_v21 = vpop.xlane.xlu0 %7754 }
0x2117   :  { %v15476_v5 = vsub.f32 %v15404_v50, %v7774_v49  ;;  %v7777_v32 = vmul.f32 0.0078125, %v7755_v21  ;;  %v7807_v19 = vmul.f32 %v15481_v3, %v15481_v3 }
0x2118   :  { %v7753_v54 = vpop.xlane.xlu1 %7752 }
0x2119   :  { %v7776_v45 = vmul.f32 0.0078125, %v7753_v54  ;;  %v7806_v50 = vmul.f32 %v15476_v5, %v15476_v5  ;;  %v15491_v46 = vsub.f32 %v15409_v52, %v7777_v32 }
0x211a   :  { %v7759_v38 = vpop.xlane.xlu0 %7758 }
0x211b   :  { %v15486_v33 = vsub.f32 %v15414_v60, %v7776_v45  ;;  %v7779_v57 = vmul.f32 0.0078125, %v7759_v38  ;;  %v7809_v52 = vmul.f32 %v15491_v46, %v15491_v46 }
0x211c   :  { %v7757_v26 = vpop.xlane.xlu1 %7756 }
0x211d   :  { %v7778_v58 = vmul.f32 0.0078125, %v7757_v26  ;;  %v7808_v60 = vmul.f32 %v15486_v33, %v15486_v33  ;;  %v15501_v29 = vsub.f32 %v15419_v40, %v7779_v57 }
0x211e   :  { %v7763_v9 = vpop.xlane.xlu0 %7762 }
0x211f   :  { %v15496_v24 = vsub.f32 %v15424_v35, %v7778_v58  ;;  %v7781_v27 = vmul.f32 0.0078125, %v7763_v9  ;;  %v7811_v40 = vmul.f32 %v15501_v29, %v15501_v29 }
0x2120   :  { %v7761_v28 = vpop.xlane.xlu1 %7760 }
0x2121   :  { %v7780_v14 = vmul.f32 0.0078125, %v7761_v28  ;;  %v7810_v23 = vmul.f32 %v15496_v24, %v15496_v24  ;;  %v15511_v13 = vsub.f32 %v15429_v20, %v7781_v27 }
0x2122   :  { %v7767_v6 = vpop.xlane.xlu0 %7766 }
0x2123   :  { %v15506_v56 = vsub.f32 %v15434_v44, %v7780_v14  ;;  %v7783_v47 = vmul.f32 0.0078125, %v7767_v6  ;;  %v7813_v20 = vmul.f32 %v15511_v13, %v15511_v13 }
0x2124   :  { %v7765_v2 = vpop.xlane.xlu1 %7764 }
0x2125   :  { %v7782_v35 = vmul.f32 0.0078125, %v7765_v2  ;;  %v7812_v44 = vmul.f32 %v15506_v56, %v15506_v56  ;;  %v15521_v42 = vsub.f32 %v15439_v22, %v7783_v47 }
0x2127   :  { %v15516_v39 = vsub.f32 %v15444_v12, %v7782_v35  ;;  %v7815_v12 = vmul.f32 %v15521_v42, %v15521_v42 }
0x2129   :  { %v7814_v55 = vmul.f32 %v15516_v39, %v15516_v39 }
0x2147   :  { %v11671_v34 = vpop.f32.mrf.mxu0 }
0x2148   :  { %v8243_v16 = vadd.f32 %v11671_v34, %v8715_v11 }
0x2149   :  { %v8237_v36 = vpop.f32.mrf.mxu0 }
0x214a   :  { %v15455_v51 = vadd.f32 %v8243_v16, %v15355_v37  ;;  %v8238_v17 = vadd.f32 %v8715_v11, %v8237_v36  ;;  %v7802_v37 = vmul.f32 %v15452_v7, %v15452_v7 }
0x214c   :  { %v15461_v62 = vadd.f32 %v8238_v17, %v15352_v18  ;;  %8306 = vadd.xlane.f32.xlu1 %v15455_v51  ;;  %v7803_v18 = vmul.f32 %v15458_v31, %v15458_v31 }
0x214e   :  { %8304 = vadd.xlane.f32.xlu0 %v15461_v62 }
0x2150   :  { %7820 = vadd.xlane.f32.xlu1 %v7802_v37 }
0x2152   :  { %7822 = vadd.xlane.f32.xlu0 %v7803_v18 }
0x2154   :  { %7824 = vadd.xlane.f32.xlu1 %v7804_v15 }
0x2156   :  { %7826 = vadd.xlane.f32.xlu0 %v7805_v59 }
0x2158   :  { %7828 = vadd.xlane.f32.xlu1 %v7806_v50 }
0x215a   :  { %7830 = vadd.xlane.f32.xlu0 %v7807_v19 }
0x215c   :  { %7832 = vadd.xlane.f32.xlu1 %v7808_v60 }
0x215e   :  { %7834 = vadd.xlane.f32.xlu0 %v7809_v52 }
0x2160   :  { %7836 = vadd.xlane.f32.xlu1 %v7810_v23 }
0x2162   :  { %7838 = vadd.xlane.f32.xlu0 %v7811_v40 }
0x2164   :  { %7840 = vadd.xlane.f32.xlu1 %v7812_v44 }
0x2166   :  { %7842 = vadd.xlane.f32.xlu0 %v7813_v20 }
0x2168   :  { %7844 = vadd.xlane.f32.xlu1 %v7814_v55 }
0x216a   :  { %7846 = vadd.xlane.f32.xlu0 %v7815_v12 }
0x21d5   :  { %v8307_v63 = vpop.xlane.xlu1 %8306 }
0x21d6   :  { %v8309_v10 = vmul.f32 0.0078125, %v8307_v63 }
0x21d7   :  { %v8305_v11 = vpop.xlane.xlu0 %8304 }
0x21d8   :  { %v15530_v61 = vsub.f32 %v15455_v51, %v8309_v10  ;;  %v8308_v22 = vmul.f32 0.0078125, %v8305_v11 }
0x21d9   :  { %v7821_v34 = vpop.xlane.xlu1 %7820 }
0x21da   :  { %v15533_v0 = vsub.f32 %v15461_v62, %v8308_v22  ;;  %v7850_v16 = vmul.f32 0.0078125, %v7821_v34  ;;  %v8313_v54 = vmul.f32 %v15530_v61, %v15530_v61 }
0x21db   :  { %v7823_v36 = vpop.xlane.xlu0 %7822 }
0x21dc   :  { %v7866_v53 = vadd.f32 1e-05, %v7850_v16  ;;  %v7851_v17 = vmul.f32 0.0078125, %v7823_v36  ;;  %8316 = vadd.xlane.f32.xlu1 %v8313_v54  ;;  %v8312_v21 = vmul.f32 %v15533_v0, %v15533_v0 }
0x21dd   :  { %v7825_v1 = vpop.xlane.xlu1 %7824 }
0x21de   :  { %12209 = vrsqrt.f32 %v7866_v53  ;;  %v7867_v51 = vadd.f32 1e-05, %v7851_v17  ;;  %v7852_v49 = vmul.f32 0.0078125, %v7825_v1  ;;  %8314 = vadd.xlane.f32.xlu0 %v8312_v21 }
0x21df   :  { %v7827_v37 = vpop.xlane.xlu0 %7826 }
0x21e0   :  { %12211 = vrsqrt.f32 %v7867_v51  ;;  %v7868_v62 = vadd.f32 1e-05, %v7852_v49  ;;  %v7853_v26 = vmul.f32 0.0078125, %v7827_v37 }
0x21e1   :  { %v7829_v8 = vpop.xlane.xlu1 %7828 }
0x21e2   :  { %12213 = vrsqrt.f32 %v7868_v62  ;;  %v7869_v18 = vadd.f32 1e-05, %v7853_v26  ;;  %v7854_v38 = vmul.f32 0.0078125, %v7829_v8 }
0x21e3   :  { %v7831_v45 = vpop.xlane.xlu0 %7830 }
0x21e4   :  { %12215 = vrsqrt.f32 %v7869_v18  ;;  %v7870_v15 = vadd.f32 1e-05, %v7854_v38  ;;  %v7855_v32 = vmul.f32 0.0078125, %v7831_v45 }
0x21e5   :  { %v7833_v59 = vpop.xlane.xlu1 %7832 }
0x21e6   :  { %12217 = vrsqrt.f32 %v7870_v15  ;;  %v7871_v28 = vadd.f32 1e-05, %v7855_v32  ;;  %v7856_v58 = vmul.f32 0.0078125, %v7833_v59 }
0x21e7   :  { %v7835_v50 = vpop.xlane.xlu0 %7834 }
0x21e8   :  { %12219 = vrsqrt.f32 %v7871_v28  ;;  %v7872_v9 = vadd.f32 1e-05, %v7856_v58  ;;  %v7857_v57 = vmul.f32 0.0078125, %v7835_v50 }
0x21e9   :  { %v7837_v19 = vpop.xlane.xlu1 %7836 }
0x21ea   :  { %12221 = vrsqrt.f32 %v7872_v9  ;;  %v7873_v14 = vadd.f32 1e-05, %v7857_v57  ;;  %v7858_v60 = vmul.f32 0.0078125, %v7837_v19 }
0x21eb   :  { %v12210_v2 = vpop.eup %12209  ;;  %v7839_v27 = vpop.xlane.xlu0 %7838 }
0x21ec   :  { %12223 = vrsqrt.f32 %v7873_v14  ;;  %v7874_v52 = vadd.f32 1e-05, %v7858_v60  ;;  %v7859_v6 = vmul.f32 0.0078125, %v7839_v27  ;;  %v7898_v35 = vmul.f32 %v12210_v2, %v15452_v7 }
0x21ed   :  { %v12212_v23 = vpop.eup %12211  ;;  %v7841_v47 = vpop.xlane.xlu1 %7840 }
0x21ee   :  { %12225 = vrsqrt.f32 %v7874_v52  ;;  %v7875_v40 = vadd.f32 1e-05, %v7859_v6  ;;  %v7860_v44 = vmul.f32 0.0078125, %v7841_v47  ;;  %v7922_v20 = vmul.f32 %v15337_v25, %v7898_v35 }
0x21ef   :  { %v12214_v55 = vpop.eup %12213  ;;  %v7843_v12 = vpop.xlane.xlu0 %7842  ;;  %v7899_v63 = vmul.f32 %v12212_v23, %v15458_v31 }
0x21f0   :  { %12227 = vrsqrt.f32 %v7875_v40  ;;  %v7876_v10 = vadd.f32 1e-05, %v7860_v44  ;;  %v7861_v11 = vmul.f32 0.0078125, %v7843_v12  ;;  %v7946_v22 = vadd.f32 %v15348_v43, %v7922_v20 }
0x21f1   :  { %v12216_v34 = vpop.eup %12215  ;;  %v7845_v16 = vpop.xlane.xlu1 %7844  ;;  %v7923_v7 = vmul.f32 %v15337_v25, %v7899_v63  ;;  %v7900_v54 = vmul.f32 %v12214_v55, %v15465_v41 }
0x21f2   :  { %12229 = vrsqrt.f32 %v7876_v10  ;;  %v7877_v36 = vadd.f32 1e-05, %v7861_v11  ;;  %v7862_v53 = vmul.f32 0.0078125, %v7845_v16  ;;  %11616 = vmatprep.mubr.f32.mxu1 %v7946_v22  ;;  %v7901_v17 = vmul.f32 %v12216_v34, %v15471_v30  ;;  %v8732_v34 = vld [vmem:[%s15767_s19 + $0xd8] sm:$0xff]  ;;  %v8731_v16 = vld [vmem:[%s15767_s19 + $0xd0] sm:$0xff] }
0x21f3   :  { %v12218_v21 = vpop.eup %12217  ;;  %v7847_v1 = vpop.xlane.xlu0 %7846  ;;  %v7947_v31 = vadd.f32 %v15348_v43, %v7923_v7  ;;  %v7924_v51 = vmul.f32 %v15337_v25, %v7900_v54  ;;  %v8730_v7 = vld [vmem:[%s15767_s19 + $0xc8] sm:$0xff]  ;;  %v8729_v54 = vld [vmem:[%s15767_s19 + $0xc0] sm:$0xff] }
0x21f4   :  { %12231 = vrsqrt.f32 %v7877_v36  ;;  %v7878_v49 = vadd.f32 1e-05, %v7862_v53  ;;  %v7863_v37 = vmul.f32 0.0078125, %v7847_v1  ;;  %v7925_v62 = vmul.f32 %v15337_v25, %v7901_v17  ;;  %v8728_v36 = vld [vmem:[%s15767_s19 + $0xb8] sm:$0xff]  ;;  %v8727_v17 = vld [vmem:[%s15767_s19 + $0xb0] sm:$0xff] }
0x21f5   :  { %v12220_v26 = vpop.eup %12219  ;;  %11617 = vmatmul.mubr.f32.gmra.mxu1 %v7947_v31  ;;  %v7948_v41 = vadd.f32 %v15348_v43, %v7924_v51  ;;  %v7902_v8 = vmul.f32 %v12218_v21, %v15476_v5  ;;  %v8726_v31 = vld [vmem:[%s15767_s19 + $0xa8] sm:$0xff] }
0x21f6   :  { %12233 = vrsqrt.f32 %v7878_v49  ;;  %v7879_v18 = vadd.f32 1e-05, %v7863_v37  ;;  %v7949_v30 = vadd.f32 %v15348_v43, %v7925_v62  ;;  %v7903_v38 = vmul.f32 %v12220_v26, %v15481_v3  ;;  %v8725_v37 = vld [vmem:[%s15767_s19 + $0xa0] sm:$0xff]  ;;  %v8724_v26 = vld [vmem:[%s15767_s19 + $0x98] sm:$0xff] }
0x21f7   :  { %v12222_v45 = vpop.eup %12221  ;;  %11619 = vmatprep.mubr.f32.mxu1 %v7948_v41  ;;  %v7926_v15 = vmul.f32 %v15337_v25, %v7902_v8  ;;  %v8723_v41 = vld [vmem:[%s15767_s19 + $0x90] sm:$0xff]  ;;  %v8722_v8 = vld [vmem:[%s15767_s19 + $0x88] sm:$0xff] }
0x21f8   :  { %12235 = vrsqrt.f32 %v7879_v18  ;;  %v7927_v32 = vmul.f32 %v15337_v25, %v7903_v38  ;;  %v7904_v59 = vmul.f32 %v12222_v45, %v15486_v33 }
0x21f9   :  { %v12224_v28 = vpop.eup %12223  ;;  %11620 = vmatmul.mubr.f32.gmra.mxu1 %v7949_v30  ;;  %v7950_v58 = vadd.f32 %v15348_v43, %v7926_v15  ;;  %v8717_v30 = vld [vmem:[%s15765_s17 + $0x3] ss:$0 sm:$0xff] }
0x21fa   :  { %v7951_v5 = vadd.f32 %v15348_v43, %v7927_v32  ;;  %v7928_v50 = vmul.f32 %v15337_v25, %v7904_v59  ;;  %v7905_v9 = vmul.f32 %v12224_v28, %v15491_v46  ;;  %v8719_v15 = vld [vmem:[%s15766_s18 + $0x3] ss:$0 sm:$0xff] }
0x21fb   :  { %v12226_v3 = vpop.eup %12225  ;;  %11622 = vmatprep.mubr.f32.mxu1 %v7950_v58 }
0x21fc   :  { %v7952_v57 = vadd.f32 %v15348_v43, %v7928_v50  ;;  %v7929_v19 = vmul.f32 %v15337_v25, %v7905_v9  ;;  %v7906_v14 = vmul.f32 %v12226_v3, %v15496_v24  ;;  %v4510_v50 = vld [vmem:[%s15767_s19 + $0x78] sm:$0xff]  ;;  %v4508_v9 = vld [vmem:[%s15767_s19 + $0x68] sm:$0xff]  ;;  %v4507_v3 = vld [vmem:[%s15767_s19 + $0x60] sm:$0xff] }
0x21fd   :  { %v12228_v60 = vpop.eup %12227  ;;  %11623 = vmatmul.mubr.f32.gmra.mxu1 %v7951_v5 }
0x21fe   :  { %11625 = vmatprep.mubr.f32.mxu1 %v7952_v57  ;;  %v7953_v33 = vadd.f32 %v15348_v43, %v7929_v19  ;;  %v7930_v2 = vmul.f32 %v15337_v25, %v7906_v14  ;;  %v7907_v27 = vmul.f32 %v12228_v60, %v15501_v29  ;;  %v4506_v57 = vld [vmem:[%s15767_s19 + $0x58] sm:$0xff]  ;;  %v4505_v19 = vld [vmem:[%s15767_s19 + $0x50] sm:$0xff]  ;;  %v4504_v14 = vld [vmem:[%s15767_s19 + $0x48] sm:$0xff] }
0x21ff   :  { %v12230_v52 = vpop.eup %12229  ;;  %v4503_v60 = vld [vmem:[%s15767_s19 + $0x40] sm:$0xff] }
0x2200   :  { %v7954_v46 = vadd.f32 %v15348_v43, %v7930_v2  ;;  %v7931_v6 = vmul.f32 %v15337_v25, %v7907_v27  ;;  %v7908_v35 = vmul.f32 %v12230_v52, %v15506_v56  ;;  %v4501_v2 = vld [vmem:[%s15767_s19 + $0x30] sm:$0xff]  ;;  %v4500_v27 = vld [vmem:[%s15767_s19 + $0x28] sm:$0xff]  ;;  %v4499_v52 = vld [vmem:[%s15767_s19 + $0x20] sm:$0xff] }
0x2201   :  { %v12232_v23 = vpop.eup %12231  ;;  %11626 = vmatmul.mubr.f32.gmra.mxu1 %v7953_v33  ;;  %v4502_v33 = vld [vmem:[%s15767_s19 + $0x38] sm:$0xff] }
0x2202   :  { %11628 = vmatprep.mubr.f32.mxu1 %v7954_v46  ;;  %v7955_v24 = vadd.f32 %v15348_v43, %v7931_v6  ;;  %v7932_v47 = vmul.f32 %v15337_v25, %v7908_v35  ;;  %v7909_v40 = vmul.f32 %v12232_v23, %v15511_v13  ;;  %v4498_v46 = vld [vmem:[%s15767_s19 + $0x18] sm:$0xff]  ;;  %v4497_v6 = vld [vmem:[%s15767_s19 + $0x10] sm:$0xff]  ;;  %v4496_v35 = vld [vmem:[%s15767_s19 + $0x8] sm:$0xff] }
0x2203   :  { %v12234_v44 = vpop.eup %12233  ;;  %v4495_v23 = vld [vmem:[%s15767_s19] sm:$0xff] }
0x2204   :  { %v7956_v20 = vadd.f32 %v15348_v43, %v7932_v47  ;;  %v7933_v29 = vmul.f32 %v15337_v25, %v7909_v40  ;;  %v7910_v55 = vmul.f32 %v12234_v44, %v15516_v39  ;;  %v8736_v39 = vld [vmem:[%s15767_s19 + $0xf8] sm:$0xff] }
0x2205   :  { %v12236_v12 = vpop.eup %12235  ;;  %11629 = vmatmul.mubr.f32.gmra.mxu1 %v7955_v24  ;;  %11701 = vmatpush3.msra.mxu0 %v8736_v39  ;;  %v15986_v24 = vld [vmem:[#allocation37_spill] sm:$0xff] }
0x2206   :  { %11631 = vmatprep.mubr.f32.mxu1 %v7956_v20  ;;  %v7957_v56 = vadd.f32 %v15348_v43, %v7933_v29  ;;  %v7934_v63 = vmul.f32 %v15337_v25, %v7910_v55  ;;  %v7911_v10 = vmul.f32 %v12236_v12, %v15521_v42  ;;  %v8735_v42 = vld [vmem:[%s15767_s19 + $0xf0] sm:$0xff]  ;;  %11702 = vmatprep.subr.mxu0 %v15971_v48 }
0x2207   :  { %11703 = vmatpush3.msra.mxu0 %v8735_v42 }
0x2208   :  { %v7958_v11 = vadd.f32 %v15348_v43, %v7934_v63  ;;  %v7935_v13 = vmul.f32 %v15337_v25, %v7911_v10  ;;  %v8734_v25 = vld [vmem:[%s15767_s19 + $0xe8] sm:$0xff]  ;;  %11704 = vmatprep.subr.mxu0 %v15971_v48 }
0x2209   :  { %11632 = vmatmul.mubr.f32.gmra.mxu1 %v7957_v56  ;;  %11705 = vmatpush3.msra.mxu0 %v8734_v25 }
0x220a   :  { %11634 = vmatprep.mubr.f32.mxu1 %v7958_v11  ;;  %v7959_v22 = vadd.f32 %v15348_v43, %v7935_v13  ;;  %v8733_v43 = vld [vmem:[%s15767_s19 + $0xe0] sm:$0xff]  ;;  %11706 = vmatprep.subr.mxu0 %v15971_v48 }
0x220b   :  { %11707 = vmatpush3.msra.mxu0 %v8733_v43 }
0x220c   :  { %11708 = vmatprep.subr.mxu0 %v15971_v48 }
0x220d   :  { %11635 = vmatmul.mubr.f32.gmra.mxu1 %v7959_v22  ;;  %11709 = vmatpush3.msra.mxu0 %v8732_v34  ;;  %v8721_v34 = vld [vmem:[%s15767_s19 + $0x80] sm:$0xff] }
0x220e   :  { %11697 = vmatprep.mubr.msk.f32.mxu1 %vm12403_vm3, %v15971_v48  ;;  %11710 = vmatprep.subr.mxu0 %v15971_v48 }
0x220f   :  { %11711 = vmatpush3.msra.mxu0 %v8731_v16 }
0x2210   :  { %11712 = vmatprep.subr.mxu0 %v15971_v48 }
0x2211   :  { %11713 = vmatpush3.msra.mxu0 %v8730_v7 }
0x2212   :  { %11714 = vmatprep.subr.mxu0 %v15971_v48 }
0x2213   :  { %11715 = vmatpush3.msra.mxu0 %v8729_v54 }
0x2214   :  { %11716 = vmatprep.subr.mxu0 %v15971_v48 }
0x2215   :  { %11717 = vmatpush3.msra.mxu0 %v8728_v36 }
0x2216   :  { %11718 = vmatprep.subr.mxu0 %v15971_v48 }
0x2217   :  { %11719 = vmatpush3.msra.mxu0 %v8727_v17 }
0x2218   :  { %11720 = vmatprep.subr.mxu0 %v15971_v48 }
0x2219   :  { %11721 = vmatpush3.msra.mxu0 %v8726_v31 }
0x221a   :  { %11722 = vmatprep.subr.mxu0 %v15971_v48 }
0x221b   :  { %11723 = vmatpush3.msra.mxu0 %v8725_v37 }
0x221c   :  { %11724 = vmatprep.subr.mxu0 %v15971_v48 }
0x221d   :  { %11725 = vmatpush3.msra.mxu0 %v8724_v26 }
0x221e   :  { %11726 = vmatprep.subr.mxu0 %v15971_v48 }
0x221f   :  { %11727 = vmatpush3.msra.mxu0 %v8723_v41 }
0x2220   :  { %11728 = vmatprep.subr.mxu0 %v15971_v48 }
0x2221   :  { %11729 = vmatpush3.msra.mxu0 %v8722_v8 }
0x2222   :  { %11730 = vmatprep.subr.mxu0 %v15971_v48 }
0x2223   :  { %11731 = vmatpush3.msra.mxu0 %v8721_v34 }
0x2265   :  { %v8317_v53 = vpop.xlane.xlu1 %8316 }
0x2266   :  { %v8319_v21 = vmul.f32 0.0078125, %v8317_v53 }
0x2267   :  { %v8315_v1 = vpop.xlane.xlu0 %8314 }
0x2268   :  { %v8321_v51 = vadd.f32 1e-05, %v8319_v21  ;;  %v8318_v49 = vmul.f32 0.0078125, %v8315_v1 }
0x226a   :  { %12237 = vrsqrt.f32 %v8321_v51  ;;  %v8320_v62 = vadd.f32 1e-05, %v8318_v49 }
0x226c   :  { %12239 = vrsqrt.f32 %v8320_v62 }
0x2277   :  { %v12238_v18 = vpop.eup %12237 }
0x2278   :  { %v8325_v38 = vmul.f32 %v12238_v18, %v15530_v61  ;;  %v12241_v61 = vld [vmem:[%s15905_s30] sm:$0x3] }
0x2279   :  { %v12240_v45 = vpop.eup %12239 }
0x227a   :  { %v8335_v32 = vmul.f32 %v8717_v30, %v8325_v38  ;;  %v8324_v59 = vmul.f32 %v12240_v45, %v15533_v0  ;;  %v4509_v0 = vld [vmem:[%s15767_s19 + $0x70] sm:$0xff] }
0x227c   :  { %v8345_v28 = vadd.f32 %v8719_v15, %v8335_v32  ;;  %v8334_v58 = vmul.f32 %v8717_v30, %v8324_v59 }
0x227e   :  { %11694 = vmatpush3.msra.mxu1 %v8345_v28  ;;  %v8344_v5 = vadd.f32 %v8719_v15, %v8334_v58 }
0x227f   :  { %11695 = vmatprep.subr.mxu1 %v15971_v48 }
0x2280   :  { %11696 = vmatpush3.msra.mxu1 %v8344_v5 }
0x2281   :  { %11698 = vmatmul.mubr.msk.f32.vlgmr.msra.gmra.mxu1 %vm537_vm0, %v12241_v61  ;;  %11735 = vmatprep.subr.mxu1 %v15971_v48  ;;  %vm8581_vm0 = vcmask 25600  }
0x2282   :  { %11736 = vmatpush3.msra.mxu1 %v4510_v50  ;;  %11767 = vmatprep.mubr.msk.f32.mxu1 %vm12403_vm3, %v15971_v48 }
0x2283   :  { %11737 = vmatprep.subr.mxu1 %v15971_v48 }
0x2284   :  { %11738 = vmatpush3.msra.mxu1 %v4509_v0 }
0x2285   :  { %11739 = vmatprep.subr.mxu1 %v15971_v48 }
0x2286   :  { %11740 = vmatpush3.msra.mxu1 %v4508_v9 }
0x2287   :  { %11741 = vmatprep.subr.mxu1 %v15971_v48 }
0x2288   :  { %11742 = vmatpush3.msra.mxu1 %v4507_v3 }
0x2289   :  { %11743 = vmatprep.subr.mxu1 %v15971_v48 }
0x228a   :  { %11744 = vmatpush3.msra.mxu1 %v4506_v57 }
0x228b   :  { %11745 = vmatprep.subr.mxu1 %v15971_v48 }
0x228c   :  { %11746 = vmatpush3.msra.mxu1 %v4505_v19 }
0x228d   :  { %11747 = vmatprep.subr.mxu1 %v15971_v48 }
0x228e   :  { %11748 = vmatpush3.msra.mxu1 %v4504_v14 }
0x228f   :  { %11749 = vmatprep.subr.mxu1 %v15971_v48 }
0x2290   :  { %11750 = vmatpush3.msra.mxu1 %v4503_v60 }
0x2291   :  { %11751 = vmatprep.subr.mxu1 %v15971_v48 }
0x2292   :  { %11752 = vmatpush3.msra.mxu1 %v4502_v33 }
0x2293   :  { %11753 = vmatprep.subr.mxu1 %v15971_v48 }
0x2294   :  { %11754 = vmatpush3.msra.mxu1 %v4501_v2 }
0x2295   :  { %11755 = vmatprep.subr.mxu1 %v15971_v48 }
0x2296   :  { %11756 = vmatpush3.msra.mxu1 %v4500_v27 }
0x2297   :  { %11757 = vmatprep.subr.mxu1 %v15971_v48 }
0x2298   :  { %11758 = vmatpush3.msra.mxu1 %v4499_v52 }
0x2299   :  { %11759 = vmatprep.subr.mxu1 %v15971_v48 }
0x229a   :  { %11760 = vmatpush3.msra.mxu1 %v4498_v46 }
0x229b   :  { %11761 = vmatprep.subr.mxu1 %v15971_v48 }
0x229c   :  { %11762 = vmatpush3.msra.mxu1 %v4497_v6 }
0x229d   :  { %11763 = vmatprep.subr.mxu1 %v15971_v48 }
0x229e   :  { %11764 = vmatpush3.msra.mxu1 %v4496_v35 }
0x229f   :  { %11765 = vmatprep.subr.mxu1 %v15971_v48 }
0x22a0   :  { %11766 = vmatpush3.msra.mxu1 %v4495_v23  ;;  %v8737_v23 = vld [vmem:[%s15768_s20] ss:$0 sm:$0xff] }
0x22a1   :  { %11768 = vmatmul.mubr.f32.vlgmr.msra.gmra.mxu1 %v15986_v24 }
0x22b5   :  { %v11618_v47 = vpop.f32.mrf.mxu1 }
0x22b6   :  { %v8067_v40 = vadd.f32 %v11618_v47, %v15375_v4 }
0x22b7   :  { %v8061_v44 = vpop.f32.mrf.mxu1 }
0x22b8   :  { %v8062_v20 = vadd.f32 %v15375_v4, %v8061_v44  ;;  %v8133_v12 = vmax.f32 %v8067_v40, 0.0 }
0x22b9   :  { %v11621_v29 = vpop.f32.mrf.mxu1 }
0x22ba   :  { %v8132_v55 = vmax.f32 %v8062_v20, 0.0  ;;  %v8077_v56 = vadd.f32 %v11621_v29, %v15375_v4 }
0x22bb   :  { %v8071_v63 = vpop.f32.mrf.mxu1 }
0x22bc   :  { %v8072_v10 = vadd.f32 %v15375_v4, %v8071_v63  ;;  %11672 = vmatprep.mubr.f32.mxu0 %v8132_v55  ;;  %v8135_v22 = vmax.f32 %v8077_v56, 0.0 }
0x22bd   :  { %v11624_v11 = vpop.f32.mrf.mxu1  ;;  %11673 = vmatmul.mubr.f32.gmra.mxu0 %v8133_v12 }
0x22be   :  { %v8134_v13 = vmax.f32 %v8072_v10, 0.0  ;;  %v8087_v39 = vadd.f32 %v11624_v11, %v15375_v4 }
0x22bf   :  { %v8081_v42 = vpop.f32.mrf.mxu1 }
0x22c0   :  { %v8082_v25 = vadd.f32 %v15375_v4, %v8081_v42  ;;  %11675 = vmatprep.mubr.f32.mxu0 %v8134_v13  ;;  %v8137_v7 = vmax.f32 %v8087_v39, 0.0 }
0x22c1   :  { %v11627_v43 = vpop.f32.mrf.mxu1  ;;  %11676 = vmatmul.mubr.f32.gmra.mxu0 %v8135_v22 }
0x22c2   :  { %v8136_v16 = vmax.f32 %v8082_v25, 0.0  ;;  %v8097_v54 = vadd.f32 %v11627_v43, %v15375_v4 }
0x22c3   :  { %v8091_v36 = vpop.f32.mrf.mxu1 }
0x22c4   :  { %v8092_v53 = vadd.f32 %v15375_v4, %v8091_v36  ;;  %11678 = vmatprep.mubr.f32.mxu0 %v8136_v16  ;;  %v8139_v1 = vmax.f32 %v8097_v54, 0.0 }
0x22c5   :  { %v11630_v17 = vpop.f32.mrf.mxu1  ;;  %11679 = vmatmul.mubr.f32.gmra.mxu0 %v8137_v7 }
0x22c6   :  { %v8138_v21 = vmax.f32 %v8092_v53, 0.0  ;;  %v8107_v31 = vadd.f32 %v11630_v17, %v15375_v4 }
0x22c7   :  { %v8101_v51 = vpop.f32.mrf.mxu1 }
0x22c8   :  { %v8102_v49 = vadd.f32 %v15375_v4, %v8101_v51  ;;  %11681 = vmatprep.mubr.f32.mxu0 %v8138_v21  ;;  %v8141_v26 = vmax.f32 %v8107_v31, 0.0 }
0x22c9   :  { %v11633_v37 = vpop.f32.mrf.mxu1  ;;  %11682 = vmatmul.mubr.f32.gmra.mxu0 %v8139_v1 }
0x22ca   :  { %v8140_v62 = vmax.f32 %v8102_v49, 0.0  ;;  %v8117_v41 = vadd.f32 %v11633_v37, %v15375_v4 }
0x22cb   :  { %v8111_v8 = vpop.f32.mrf.mxu1 }
0x22cc   :  { %v8112_v18 = vadd.f32 %v15375_v4, %v8111_v8  ;;  %11684 = vmatprep.mubr.f32.mxu0 %v8140_v62  ;;  %v8143_v45 = vmax.f32 %v8117_v41, 0.0 }
0x22cd   :  { %v11636_v30 = vpop.f32.mrf.mxu1  ;;  %11685 = vmatmul.mubr.f32.gmra.mxu0 %v8141_v26 }
0x22ce   :  { %v8142_v38 = vmax.f32 %v8112_v18, 0.0  ;;  %v8127_v15 = vadd.f32 %v11636_v30, %v15375_v4 }
0x22cf   :  { %v8121_v32 = vpop.f32.mrf.mxu1 }
0x22d0   :  { %v8122_v59 = vadd.f32 %v15375_v4, %v8121_v32  ;;  %11687 = vmatprep.mubr.f32.mxu0 %v8142_v38  ;;  %v8145_v58 = vmax.f32 %v8127_v15, 0.0 }
0x22d1   :  { %11688 = vmatmul.mubr.f32.gmra.mxu0 %v8143_v45 }
0x22d2   :  { %v8144_v28 = vmax.f32 %v8122_v59, 0.0 }
0x22d4   :  { %11690 = vmatprep.mubr.f32.mxu0 %v8144_v28 }
0x22d5   :  { %11691 = vmatmul.mubr.f32.gmra.mxu0 %v8145_v58 }
0x22d6   :  { %11732 = vmatprep.mubr.msk.f32.mxu0 %vm12403_vm3, %v15971_v48 }
0x2341   :  { %v8412_v5 = vpop.f32.mrf.mxu1 }
0x2342   :  { %11733 = vmatmul.mubr.f32.vlgmr.msra.gmra.mxu0 %v8412_v5 }
0x2343   :  { %v11699_v50 = vpop.f32.mrf.mxu1 }
0x2361   :  { %v8569_v61 = vpop.f32.mrf.mxu1 }
0x2363   :  { %v11769_v0 = vpop.f32.mrf.mxu1 }
0x237d   :  { %v11674_v9 = vpop.f32.mrf.mxu0 }
0x237f   :  { %v8247_v3 = vpop.f32.mrf.mxu0 }
0x2381   :  { %v11677_v57 = vpop.f32.mrf.mxu0 }
0x2383   :  { %v8255_v19 = vpop.f32.mrf.mxu0 }
0x2385   :  { %v11680_v14 = vpop.f32.mrf.mxu0 }
0x2387   :  { %v8263_v4 = vpop.f32.mrf.mxu0 }
0x2389   :  { %v11683_v60 = vpop.f32.mrf.mxu0 }
0x238b   :  { %v8271_v33 = vpop.f32.mrf.mxu0 }
0x238d   :  { %v11686_v2 = vpop.f32.mrf.mxu0 }
0x238f   :  { %v8279_v27 = vpop.f32.mrf.mxu0 }
0x2391   :  { %v11689_v52 = vpop.f32.mrf.mxu0 }
0x2393   :  { %v8287_v46 = vpop.f32.mrf.mxu0 }
0x2395   :  { %v11692_v6 = vpop.f32.mrf.mxu0 }
0x2397   :  { %v8295_v35 = vpop.f32.mrf.mxu0 }
0x2402   :  { %v8499_v48 = vpop.f32.mrf.mxu0 }
0x2403   :  { %v8570_v24 = vadd.f32 %v8569_v61, %v8499_v48 }
0x2404   :  { %v11734_v47 = vpop.f32.mrf.mxu0 }
0x2405   :  { %v8580_v40 = vadd.f32 %v8737_v23, %v8570_v24 }
0x2407   :  { %8582 = vst.msk [vmem:[#allocation14] sm:$0x3] %vm8581_vm0, %v8580_v40 }
0x2408   :  { %12373 = shalt.err (!%p12370_p6)
}
0x2409   :  { %8592 = dma.vmem_to_hbm [thread:$0]  %s8590_s7, 32, %s15769_s21, [#allocation5]  }
0x240a   :  { %12390 = dma.done.wait [#allocation5], 32  }
0x240b   :  { %12391 = vsyncadd [#allocation5], 4294967264 }
0x240c   :  { %8596 = vsyncpa [#allocation4], 1 }
0x240d   :  { %8597 = vsyncpa [#allocation7], 1 }
0x240e   :  { %8598 = vsyncpa [#allocation10], 1 }
0x240f   :  { %8599 = vsyncpa [#allocation13], 1 }
0x2410   :  { %8600 = vsyncpa [#allocation5], 1 }

</bundles_post_ra>
